<compile_context>
chip_gen: v5e
topology: v5e:2x2
jax: 0.10.0
libtpu: 0.0.40
codegen_flags: <defaults>
</compile_context>

<pallas_src>
import jax
import jax.numpy as jnp
from jax.experimental import pallas as pl
from jax.experimental.pallas import tpu as pltpu

VEC_DIM = 768      # input vector dim
D_MODEL = 768      # bart-base d_model
LN_EPS = 1e-5
TB_MAX = 512       # batch tile (multiple of 8); 512 is safe on v7x's 64 MiB VMEM


def _head_kernel(x_ref, w1_ref, b1_ref, w2_ref, b2_ref, w3_ref, b3_ref, o_ref):
    """Fused head: Linear->ReLU->(Dropout eval)->Linear->LayerNorm->Linear.

    Activations / weights are bf16 (DMA + MXU native); accumulation and the
    LayerNorm statistics are f32.  The LayerNorm affine is pre-folded into
    w3/b3 by the wrapper.
    """
    x = x_ref[...]                                                # [TB, 768] bf16

    # vector_to_embedding[0]: Linear(768, 768) + ReLU
    h = jnp.dot(x, w1_ref[...], preferred_element_type=jnp.float32) + b1_ref[...]
    h = jnp.maximum(h, 0.0)

    # Dropout(0.1): identity in eval mode.
    # TODO(synk): training-mode dropout (pltpu.prng_* mask) not implemented.

    # vector_to_embedding[3]: Linear(768, 768)
    h2 = jnp.dot(h.astype(jnp.bfloat16), w2_ref[...],
                 preferred_element_type=jnp.float32) + b2_ref[...]

    # LayerNorm(768) over last dim, f32; affine folded into w3/b3.
    mean = jnp.mean(h2, axis=-1, keepdims=True)
    diff = h2 - mean
    var = jnp.mean(diff * diff, axis=-1, keepdims=True)
    ln = diff * jax.lax.rsqrt(var + LN_EPS)

    # custom_embedding: Linear(768, d_model), with gamma/beta folded in.
    out = jnp.dot(ln.astype(jnp.bfloat16), w3_ref[...],
                  preferred_element_type=jnp.float32) + b3_ref[...]
    o_ref[...] = out.astype(o_ref.dtype)


@jax.jit
def final_generative_head(x, w1, b1, w2, b2, gamma, beta, w3, b3):
    """x: [B, 768] -> bart_embeddings: [B, 1, d_model] (bfloat16).

    Weights w1/w2/w3 are pre-transposed to [in, out]; biases/gamma/beta are
    [1, dim].  The LayerNorm affine is folded into w3/b3 here (in f32), then
    weights are cast to bf16 for streaming.
    """
    B = x.shape[0]
    x_p = x.astype(jnp.bfloat16)

    # Fold LayerNorm affine into custom_embedding (f32, then cast to bf16).
    w3_f32 = w3.astype(jnp.float32)
    w3f = gamma.astype(jnp.float32).reshape(-1, 1) * w3_f32          # [768, d_model]
    b3f = beta.astype(jnp.float32) @ w3_f32 + b3.astype(jnp.float32)  # [1, d_model]

    w1b = w1.astype(jnp.bfloat16)
    w2b = w2.astype(jnp.bfloat16)
    w3b = w3f.astype(jnp.bfloat16)
    b1f = b1.astype(jnp.float32)
    b2f = b2.astype(jnp.float32)

    # Batch tiling: full-array block for small B; otherwise TB_MAX with a
    # (possibly ragged) cdiv grid — Pallas masks the out-of-bounds rows.
    tb = B if B <= TB_MAX else TB_MAX
    grid = (pl.cdiv(B, tb),)

    act_in_spec = pl.BlockSpec((tb, VEC_DIM), lambda i: (i, 0))
    act_out_spec = pl.BlockSpec((tb, D_MODEL), lambda i: (i, 0))
    # Constant block index -> weights/bias DMA'd once, stay VMEM-resident.
    mat_spec = pl.BlockSpec((VEC_DIM, VEC_DIM), lambda i: (0, 0))
    vec_spec = pl.BlockSpec((1, VEC_DIM), lambda i: (0, 0))
    w3_spec = pl.BlockSpec((VEC_DIM, D_MODEL), lambda i: (0, 0))
    b3_spec = pl.BlockSpec((1, D_MODEL), lambda i: (0, 0))

    cost = pl.CostEstimate(
        flops=6 * B * VEC_DIM * D_MODEL,                   # 3 matmuls, 2*M*N*K each
        transcendentals=B,                                 # rsqrt per row
        bytes_accessed=(2 * VEC_DIM * VEC_DIM * 2          # w1, w2 (bf16)
                        + VEC_DIM * D_MODEL * 2            # w3 (bf16)
                        + 2 * VEC_DIM * 4 + D_MODEL * 4    # biases (f32)
                        + B * VEC_DIM * 2                  # x (bf16)
                        + B * D_MODEL * 2),                # out (bf16)
    )

    out2d = pl.pallas_call(
        _head_kernel,
        out_shape=jax.ShapeDtypeStruct((B, D_MODEL), jnp.bfloat16),
        grid=grid,
        in_specs=[
            act_in_spec,   # x
            mat_spec,      # w1
            vec_spec,      # b1
            mat_spec,      # w2
            vec_spec,      # b2
            w3_spec,       # w3 (gamma folded in)
            b3_spec,       # b3 (beta folded in)
        ],
        out_specs=act_out_spec,
        compiler_params=pltpu.CompilerParams(
            dimension_semantics=("parallel",),      # batch axis -> 2 TCs on v7x
            vmem_limit_bytes=32 << 20,              # fits v7x's 64 MiB physical
        ),
        cost_estimate=cost,
    )(x_p, w1b, b1f, w2b, b2f, w3b, b3f)

    # unsqueeze(1).expand(B, 1, -1) with seq_len == 1 -> just add the axis.
    return out2d.reshape(B, 1, D_MODEL)


def _init_linear(key, fan_in, fan_out):
    """PyTorch nn.Linear default init: U(-1/sqrt(fan_in), 1/sqrt(fan_in)).
    Weight returned already transposed to [in, out], in f32."""
    kw, kb = jax.random.split(key)
    bound = 1.0 / jnp.sqrt(float(fan_in))
    w = jax.random.uniform(kw, (fan_in, fan_out), jnp.float32, -bound, bound)
    b = jax.random.uniform(kb, (1, fan_out), jnp.float32, -bound, bound)
    return w, b


def _reference_mirrored(x, w1, b1, w2, b2, gamma, beta, w3, b3):
    """Pure-JAX reference mirroring the kernel's dtype choices and LN fold."""
    w3_f32 = w3.astype(jnp.float32)
    w3f = gamma.astype(jnp.float32).reshape(-1, 1) * w3_f32
    b3f = beta.astype(jnp.float32) @ w3_f32 + b3.astype(jnp.float32)

    xb = x.astype(jnp.bfloat16)
    h = jnp.dot(xb, w1.astype(jnp.bfloat16),
                preferred_element_type=jnp.float32) + b1
    h = jnp.maximum(h, 0.0)
    h2 = jnp.dot(h.astype(jnp.bfloat16), w2.astype(jnp.bfloat16),
                 preferred_element_type=jnp.float32) + b2
    mean = jnp.mean(h2, axis=-1, keepdims=True)
    diff = h2 - mean
    var = jnp.mean(diff * diff, axis=-1, keepdims=True)
    ln = diff * jax.lax.rsqrt(var + LN_EPS)
    out = jnp.dot(ln.astype(jnp.bfloat16), w3f.astype(jnp.bfloat16),
                  preferred_element_type=jnp.float32) + b3f
    return out.astype(jnp.bfloat16)[:, None, :]


def _reference_f32(x, w1, b1, w2, b2, gamma, beta, w3, b3):
    """Full-f32 reference matching the PyTorch module (eval-mode dropout)."""
    h = jnp.maximum(x @ w1 + b1, 0.0)
    h2 = h @ w2 + b2
    mean = jnp.mean(h2, axis=-1, keepdims=True)
    diff = h2 - mean
    var = jnp.mean(diff * diff, axis=-1, keepdims=True)
    ln = diff * jax.lax.rsqrt(var + LN_EPS) * gamma + beta
    return (ln @ w3 + b3)[:, None, :]


if __name__ == "__main__":
    key = jax.random.PRNGKey(0)
    k_x, k1, k2, k3, kg, kb, k_x2 = jax.random.split(key, 7)

    w1, b1 = _init_linear(k1, VEC_DIM, VEC_DIM)
    w2, b2 = _init_linear(k2, VEC_DIM, VEC_DIM)
    w3, b3 = _init_linear(k3, VEC_DIM, D_MODEL)
    # Non-trivial affine to exercise the gamma/beta fold.
    gamma = 1.0 + 0.1 * jax.random.normal(kg, (1, VEC_DIM), jnp.float32)
    beta = 0.1 * jax.random.normal(kb, (1, VEC_DIM), jnp.float32)

    # --- small batch (single full block, no raggedness) ---
    B = 2
    x = jax.random.normal(k_x, (B, VEC_DIM), jnp.float32)
    out = jax.block_until_ready(
        final_generative_head(x, w1, b1, w2, b2, gamma, beta, w3, b3))
    assert out.shape == (B, 1, D_MODEL) and out.dtype == jnp.bfloat16, (out.shape, out.dtype)

    out_f = out.astype(jnp.float32)
    ref_m = _reference_mirrored(x, w1, b1, w2, b2, gamma, beta, w3, b3).astype(jnp.float32)
    assert jnp.allclose(out_f, ref_m, atol=2e-2, rtol=2e-2), float(jnp.max(jnp.abs(out_f - ref_m)))
    # Looser check against the f32 (PyTorch-equivalent) math, so the bf16
    # path is not only self-certified.
    ref_f = _reference_f32(x, w1, b1, w2, b2, gamma, beta, w3, b3)
    assert jnp.allclose(out_f, ref_f, atol=1.5e-1, rtol=1e-1), float(jnp.max(jnp.abs(out_f - ref_f)))

    # --- ragged last block (B > TB_MAX, no wrapper-side padding) ---
    B2 = TB_MAX + 8
    x2 = jax.random.normal(k_x2, (B2, VEC_DIM), jnp.float32)
    out2 = jax.block_until_ready(
        final_generative_head(x2, w1, b1, w2, b2, gamma, beta, w3, b3))
    assert out2.shape == (B2, 1, D_MODEL)
    out2_f = out2.astype(jnp.float32)
    assert bool(jnp.all(jnp.isfinite(out2_f)))
    ref2 = _reference_mirrored(x2, w1, b1, w2, b2, gamma, beta, w3, b3).astype(jnp.float32)
    assert jnp.allclose(out2_f, ref2, atol=2e-2, rtol=2e-2), float(jnp.max(jnp.abs(out2_f - ref2)))

    # TODO(synk): frozen pretrained BART (generate / loss path) and the
    # BartTokenizer are external pretrained components with no Pallas
    # equivalent here.
    print("KERNEL_OK")
</pallas_src>

<mosaic_0001>
module attributes {stable_mosaic.version = 11 : i64} {
  func.func @_head_kernel(%arg0: i32, %arg1: memref<2x768xbf16, #tpu.memory_space<vmem>>, %arg2: memref<768x768xbf16, #tpu.memory_space<vmem>>, %arg3: memref<1x768xf32, #tpu.memory_space<vmem>>, %arg4: memref<768x768xbf16, #tpu.memory_space<vmem>>, %arg5: memref<1x768xf32, #tpu.memory_space<vmem>>, %arg6: memref<768x768xbf16, #tpu.memory_space<vmem>>, %arg7: memref<1x768xf32, #tpu.memory_space<vmem>>, %arg8: memref<2x768xbf16, #tpu.memory_space<vmem>>) attributes {dimension_semantics = [#tpu.dimension_semantics<parallel>], iteration_bounds = array<i64: 1>, scalar_prefetch = 0 : i64, scratch_operands = 0 : i64, tpu.core_type = #tpu.core_type<tc>, window_params = [{transform_indices = @transform_0, window_bounds = array<i64: 2, 768>}, {pipeline_mode = #tpu.pipeline_mode<synchronous>, transform_indices = @transform_1, window_bounds = array<i64: 768, 768>}, {pipeline_mode = #tpu.pipeline_mode<synchronous>, transform_indices = @transform_2, window_bounds = array<i64: 1, 768>}, {pipeline_mode = #tpu.pipeline_mode<synchronous>, transform_indices = @transform_3, window_bounds = array<i64: 768, 768>}, {pipeline_mode = #tpu.pipeline_mode<synchronous>, transform_indices = @transform_4, window_bounds = array<i64: 1, 768>}, {pipeline_mode = #tpu.pipeline_mode<synchronous>, transform_indices = @transform_5, window_bounds = array<i64: 768, 768>}, {pipeline_mode = #tpu.pipeline_mode<synchronous>, transform_indices = @transform_6, window_bounds = array<i64: 1, 768>}, {transform_indices = @transform_7, window_bounds = array<i64: 2, 768>}]} {
    %c0 = arith.constant 0 : index
    %c0_0 = arith.constant 0 : index
    %0 = vector.load %arg1[%c0, %c0_0] : memref<2x768xbf16, #tpu.memory_space<vmem>>, vector<2x768xbf16>
    %c0_1 = arith.constant 0 : index
    %c0_2 = arith.constant 0 : index
    %1 = vector.load %arg2[%c0_1, %c0_2] : memref<768x768xbf16, #tpu.memory_space<vmem>>, vector<768x768xbf16>
    %cst = arith.constant dense<0.000000e+00> : vector<2x768xf32>
    %2 = tpu.matmul %0, %1, %cst {dimension_numbers = #tpu.dot_dimension_numbers<[1], [0], [0], [1], [0, 0, 1, 1], [], []>} : vector<2x768xbf16>, vector<768x768xbf16>, vector<2x768xf32> -> vector<2x768xf32>
    %c0_3 = arith.constant 0 : index
    %c0_4 = arith.constant 0 : index
    %3 = vector.load %arg3[%c0_3, %c0_4] : memref<1x768xf32, #tpu.memory_space<vmem>>, vector<1x768xf32>
    %4 = vector.broadcast %3 : vector<1x768xf32> to vector<2x768xf32>
    %5 = arith.addf %2, %4 : vector<2x768xf32>
    %cst_5 = arith.constant 0.000000e+00 : f32
    %6 = vector.broadcast %cst_5 : f32 to vector<2x768xf32>
    %7 = arith.maximumf %5, %6 : vector<2x768xf32>
    %8 = arith.truncf %7 : vector<2x768xf32> to vector<2x768xbf16>
    %c0_6 = arith.constant 0 : index
    %c0_7 = arith.constant 0 : index
    %9 = vector.load %arg4[%c0_6, %c0_7] : memref<768x768xbf16, #tpu.memory_space<vmem>>, vector<768x768xbf16>
    %cst_8 = arith.constant dense<0.000000e+00> : vector<2x768xf32>
    %10 = tpu.matmul %8, %9, %cst_8 {dimension_numbers = #tpu.dot_dimension_numbers<[1], [0], [0], [1], [0, 0, 1, 1], [], []>} : vector<2x768xbf16>, vector<768x768xbf16>, vector<2x768xf32> -> vector<2x768xf32>
    %c0_9 = arith.constant 0 : index
    %c0_10 = arith.constant 0 : index
    %11 = vector.load %arg5[%c0_9, %c0_10] : memref<1x768xf32, #tpu.memory_space<vmem>>, vector<1x768xf32>
    %12 = vector.broadcast %11 : vector<1x768xf32> to vector<2x768xf32>
    %13 = arith.addf %10, %12 : vector<2x768xf32>
    %cst_11 = arith.constant dense<0.000000e+00> : vector<2xf32>
    %14 = vector.multi_reduction <add>, %13, %cst_11 [1] : vector<2x768xf32> to vector<2xf32>
    %15 = vector.shape_cast %14 : vector<2xf32> to vector<2x1xf32>
    %cst_12 = arith.constant 7.680000e+02 : f32
    %16 = vector.broadcast %cst_12 : f32 to vector<2x1xf32>
    %17 = arith.divf %15, %16 : vector<2x1xf32>
    %18 = vector.broadcast %17 : vector<2x1xf32> to vector<2x768xf32>
    %19 = arith.subf %13, %18 : vector<2x768xf32>
    %20 = arith.mulf %19, %19 : vector<2x768xf32>
    %cst_13 = arith.constant dense<0.000000e+00> : vector<2xf32>
    %21 = vector.multi_reduction <add>, %20, %cst_13 [1] : vector<2x768xf32> to vector<2xf32>
    %22 = vector.shape_cast %21 : vector<2xf32> to vector<2x1xf32>
    %cst_14 = arith.constant 7.680000e+02 : f32
    %23 = vector.broadcast %cst_14 : f32 to vector<2x1xf32>
    %24 = arith.divf %22, %23 : vector<2x1xf32>
    %cst_15 = arith.constant 9.99999974E-6 : f32
    %25 = vector.broadcast %cst_15 : f32 to vector<2x1xf32>
    %26 = arith.addf %24, %25 : vector<2x1xf32>
    %27 = math.rsqrt %26 : vector<2x1xf32>
    %28 = vector.broadcast %27 : vector<2x1xf32> to vector<2x768xf32>
    %29 = arith.mulf %19, %28 : vector<2x768xf32>
    %30 = arith.truncf %29 : vector<2x768xf32> to vector<2x768xbf16>
    %c0_16 = arith.constant 0 : index
    %c0_17 = arith.constant 0 : index
    %31 = vector.load %arg6[%c0_16, %c0_17] : memref<768x768xbf16, #tpu.memory_space<vmem>>, vector<768x768xbf16>
    %cst_18 = arith.constant dense<0.000000e+00> : vector<2x768xf32>
    %32 = tpu.matmul %30, %31, %cst_18 {dimension_numbers = #tpu.dot_dimension_numbers<[1], [0], [0], [1], [0, 0, 1, 1], [], []>} : vector<2x768xbf16>, vector<768x768xbf16>, vector<2x768xf32> -> vector<2x768xf32>
    %c0_19 = arith.constant 0 : index
    %c0_20 = arith.constant 0 : index
    %33 = vector.load %arg7[%c0_19, %c0_20] : memref<1x768xf32, #tpu.memory_space<vmem>>, vector<1x768xf32>
    %34 = vector.broadcast %33 : vector<1x768xf32> to vector<2x768xf32>
    %35 = arith.addf %32, %34 : vector<2x768xf32>
    %36 = arith.truncf %35 : vector<2x768xf32> to vector<2x768xbf16>
    %c0_21 = arith.constant 0 : index
    %c0_22 = arith.constant 0 : index
    %37 = vector.load %arg8[%c0_21, %c0_22] : memref<2x768xbf16, #tpu.memory_space<vmem>>, vector<2x768xbf16>
    tpu.vector_store %arg8[%c0_21, %c0_22], %36 {strides = array<i32>} : memref<2x768xbf16, #tpu.memory_space<vmem>>, vector<2x768xbf16>,
    return
  }
  func.func @transform_0(%arg0: i32) -> (i32, i32) {
    %c0_i32 = arith.constant 0 : i32
    %c0_i32_0 = arith.constant 0 : i32
    return %arg0, %c0_i32 : i32, i32
  }
  func.func @transform_1(%arg0: i32) -> (i32, i32) {
    %c0_i32 = arith.constant 0 : i32
    %c0_i32_0 = arith.constant 0 : i32
    %c0_i32_1 = arith.constant 0 : i32
    return %c0_i32, %c0_i32_0 : i32, i32
  }
  func.func @transform_2(%arg0: i32) -> (i32, i32) {
    %c0_i32 = arith.constant 0 : i32
    %c0_i32_0 = arith.constant 0 : i32
    %c0_i32_1 = arith.constant 0 : i32
    return %c0_i32, %c0_i32_0 : i32, i32
  }
  func.func @transform_3(%arg0: i32) -> (i32, i32) {
    %c0_i32 = arith.constant 0 : i32
    %c0_i32_0 = arith.constant 0 : i32
    %c0_i32_1 = arith.constant 0 : i32
    return %c0_i32, %c0_i32_0 : i32, i32
  }
  func.func @transform_4(%arg0: i32) -> (i32, i32) {
    %c0_i32 = arith.constant 0 : i32
    %c0_i32_0 = arith.constant 0 : i32
    %c0_i32_1 = arith.constant 0 : i32
    return %c0_i32, %c0_i32_0 : i32, i32
  }
  func.func @transform_5(%arg0: i32) -> (i32, i32) {
    %c0_i32 = arith.constant 0 : i32
    %c0_i32_0 = arith.constant 0 : i32
    %c0_i32_1 = arith.constant 0 : i32
    return %c0_i32, %c0_i32_0 : i32, i32
  }
  func.func @transform_6(%arg0: i32) -> (i32, i32) {
    %c0_i32 = arith.constant 0 : i32
    %c0_i32_0 = arith.constant 0 : i32
    %c0_i32_1 = arith.constant 0 : i32
    return %c0_i32, %c0_i32_0 : i32, i32
  }
  func.func @transform_7(%arg0: i32) -> (i32, i32) {
    %c0_i32 = arith.constant 0 : i32
    %c0_i32_0 = arith.constant 0 : i32
    return %arg0, %c0_i32 : i32, i32
  }
}

</mosaic_0001>

<bundles_post_ra>
// kernel: final_generative_head.1
= control target key start
LH: loop header
LB: loop body
LE: loop exit
PB: predicated region body
PF: predicated region fallthrough
CT: control target
= control target key end

     0   :  { %s16755_s0 = inlined_call_operand.vmem [shape: bf16[2,768], index: 0, kind: input, shape index: {}]   ;;  %s16756_s1 = inlined_call_operand.vmem [shape: bf16[768,768], index: 1, kind: input, shape index: {}]   ;;  %s16757_s2 = inlined_call_operand.vmem [shape: f32[1,768], index: 2, kind: input, shape index: {}]   ;;  %s16758_s3 = inlined_call_operand.vmem [shape: bf16[768,768], index: 3, kind: input, shape index: {}]   ;;  %s16759_s4 = inlined_call_operand.vmem [shape: f32[1,768], index: 4, kind: input, shape index: {}]   ;;  %s16760_s5 = inlined_call_operand.vmem [shape: bf16[768,768], index: 5, kind: input, shape index: {}]   ;;  %s16761_s6 = inlined_call_operand.vmem [shape: f32[1,768], index: 6, kind: input, shape index: {}]   ;;  %s16762_s7 = inlined_call_operand.hbm [shape: bf16[2,768], index: 7, kind: output, shape index: {}]  }
   0x1   :  { %v6969_v0 = vld [vmem:[%s16756_s1 + $0x150] sm:$0xf]  ;;  %v10300_v1 = vld [vmem:[%s16756_s1 + $0x164] sm:$0xf0]  ;;  %v6945_v11 = vld [vmem:[%s16756_s1 + $0x120] sm:$0xf] }
   0x2   :  { %v7161_v2 = vld [vmem:[%s16756_s1 + $0x2d0] sm:$0xf]  ;;  %v6970_v3 = vor.u32 %v10300_v1, %v6969_v0  ;;  %v10348_v4 = vld [vmem:[%s16756_s1 + $0x2e4] sm:$0xf0]  ;;  %v10294_v13 = vld [vmem:[%s16756_s1 + $0x134] sm:$0xf0] }
   0x3   :  { %v7353_v5 = vld [vmem:[%s16756_s1 + $0x450] sm:$0xf]  ;;  %v10396_v6 = vld [vmem:[%s16756_s1 + $0x464] sm:$0xf0]  ;;  %v7162_v7 = vor.u32 %v10348_v4, %v7161_v2  ;;  %v7137_v14 = vld [vmem:[%s16756_s1 + $0x2a0] sm:$0xf]  ;;  %v6946_v16 = vor.u32 %v10294_v13, %v6945_v11 }
   0x4   :  { %v7354_v8 = vor.u32 %v10396_v6, %v7353_v5  ;;  %v7545_v9 = vld [vmem:[%s16756_s1 + $0x5d0] sm:$0xf]  ;;  %v10444_v10 = vld [vmem:[%s16756_s1 + $0x5e4] sm:$0xf0]  ;;  %1784 = vmatpush.bf16.msra.mxu0 %v6970_v3  ;;  %v10342_v15 = vld [vmem:[%s16756_s1 + $0x2b4] sm:$0xf0] }
   0x5   :  { %v7546_v12 = vor.u32 %v10444_v10, %v7545_v9  ;;  %1797 = vmatpush.bf16.msra.mxu1 %v7162_v7  ;;  %v7138_v17 = vor.u32 %v10342_v15, %v7137_v14  ;;  %v7329_v18 = vld [vmem:[%s16756_s1 + $0x420] sm:$0xf]  ;;  %v10390_v19 = vld [vmem:[%s16756_s1 + $0x434] sm:$0xf0]  ;;  %v6921_v23 = vld [vmem:[%s16756_s1 + $0xf0] sm:$0xf] }
   0x6   :  { %1810 = vmatpush.bf16.msra.mxu2 %v7354_v8  ;;  %v7521_v20 = vld [vmem:[%s16756_s1 + $0x5a0] sm:$0xf]  ;;  %v7330_v21 = vor.u32 %v10390_v19, %v7329_v18  ;;  %v10438_v22 = vld [vmem:[%s16756_s1 + $0x5b4] sm:$0xf0]  ;;  %v10288_v24 = vld [vmem:[%s16756_s1 + $0x104] sm:$0xf0] }
   0x7   :  { %1823 = vmatpush.bf16.msra.mxu3 %v7546_v12  ;;  %v7522_v25 = vor.u32 %v10438_v22, %v7521_v20  ;;  %v7113_v26 = vld [vmem:[%s16756_s1 + $0x270] sm:$0xf]  ;;  %v10336_v27 = vld [vmem:[%s16756_s1 + $0x284] sm:$0xf0]  ;;  %v6922_v29 = vor.u32 %v10288_v24, %v6921_v23  ;;  %v6897_v35 = vld [vmem:[%s16756_s1 + $0xc0] sm:$0xf] }
   0x8   :  { %v7305_v28 = vld [vmem:[%s16756_s1 + $0x3f0] sm:$0xf]  ;;  %1785 = vmatpush.bf16.msra.mxu0 %v6946_v16  ;;  %v10384_v30 = vld [vmem:[%s16756_s1 + $0x404] sm:$0xf0]  ;;  %v7114_v33 = vor.u32 %v10336_v27, %v7113_v26  ;;  %v10282_v36 = vld [vmem:[%s16756_s1 + $0xd4] sm:$0xf0] }
   0x9   :  { %v7497_v31 = vld [vmem:[%s16756_s1 + $0x570] sm:$0xf]  ;;  %v10432_v32 = vld [vmem:[%s16756_s1 + $0x584] sm:$0xf0]  ;;  %1798 = vmatpush.bf16.msra.mxu1 %v7138_v17  ;;  %v7306_v34 = vor.u32 %v10384_v30, %v7305_v28  ;;  %v7089_v37 = vld [vmem:[%s16756_s1 + $0x240] sm:$0xf]  ;;  %v6898_v44 = vor.u32 %v10282_v36, %v6897_v35 }
   0xa   :  { %1811 = vmatpush.bf16.msra.mxu2 %v7330_v21  ;;  %v7498_v38 = vor.u32 %v10432_v32, %v7497_v31  ;;  %v10330_v39 = vld [vmem:[%s16756_s1 + $0x254] sm:$0xf0]  ;;  %v7281_v40 = vld [vmem:[%s16756_s1 + $0x3c0] sm:$0xf]  ;;  %v6873_v47 = vld [vmem:[%s16756_s1 + $0x90] sm:$0xf] }
   0xb   :  { %1824 = vmatpush.bf16.msra.mxu3 %v7522_v25  ;;  %v10378_v41 = vld [vmem:[%s16756_s1 + $0x3d4] sm:$0xf0]  ;;  %v7473_v42 = vld [vmem:[%s16756_s1 + $0x540] sm:$0xf]  ;;  %v7090_v45 = vor.u32 %v10330_v39, %v7089_v37  ;;  %v10276_v48 = vld [vmem:[%s16756_s1 + $0xa4] sm:$0xf0] }
   0xc   :  { %v10426_v43 = vld [vmem:[%s16756_s1 + $0x554] sm:$0xf0]  ;;  %1786 = vmatpush.bf16.msra.mxu0 %v6922_v29  ;;  %v7282_v46 = vor.u32 %v10378_v41, %v7281_v40  ;;  %v7065_v49 = vld [vmem:[%s16756_s1 + $0x210] sm:$0xf]  ;;  %v10324_v51 = vld [vmem:[%s16756_s1 + $0x224] sm:$0xf0]  ;;  %v6874_v56 = vor.u32 %v10276_v48, %v6873_v47 }
   0xd   :  { %1799 = vmatpush.bf16.msra.mxu1 %v7114_v33  ;;  %v7474_v50 = vor.u32 %v10426_v43, %v7473_v42  ;;  %v7257_v52 = vld [vmem:[%s16756_s1 + $0x390] sm:$0xf]  ;;  %v10372_v53 = vld [vmem:[%s16756_s1 + $0x3a4] sm:$0xf0]  ;;  %v7066_v57 = vor.u32 %v10324_v51, %v7065_v49  ;;  %v6849_v59 = vld [vmem:[%s16756_s1 + $0x60] sm:$0xf] }
   0xe   :  { %1812 = vmatpush.bf16.msra.mxu2 %v7306_v34  ;;  %v7449_v54 = vld [vmem:[%s16756_s1 + $0x510] sm:$0xf]  ;;  %v10420_v55 = vld [vmem:[%s16756_s1 + $0x524] sm:$0xf0]  ;;  %v7258_v58 = vor.u32 %v10372_v53, %v7257_v52  ;;  %v10270_v60 = vld [vmem:[%s16756_s1 + $0x74] sm:$0xf0] }
   0xf   :  { %1825 = vmatpush.bf16.msra.mxu3 %v7498_v38  ;;  %v7041_v61 = vld [vmem:[%s16756_s1 + $0x1e0] sm:$0xf]  ;;  %v7450_v62 = vor.u32 %v10420_v55, %v7449_v54  ;;  %v10318_v63 = vld [vmem:[%s16756_s1 + $0x1f4] sm:$0xf0]  ;;  %v6850_v4 = vor.u32 %v10270_v60, %v6849_v59  ;;  %v6825_v7 = vld [vmem:[%s16756_s1 + $0x30] sm:$0xf] }
  0x10   :  { %1787 = vmatpush.bf16.msra.mxu0 %v6898_v44  ;;  %v7233_v0 = vld [vmem:[%s16756_s1 + $0x360] sm:$0xf]  ;;  %v10366_v1 = vld [vmem:[%s16756_s1 + $0x374] sm:$0xf0]  ;;  %v7042_v5 = vor.u32 %v10318_v63, %v7041_v61  ;;  %v10264_v8 = vld [vmem:[%s16756_s1 + $0x44] sm:$0xf0] }
  0x11   :  { %1800 = vmatpush.bf16.msra.mxu1 %v7090_v45  ;;  %v7425_v2 = vld [vmem:[%s16756_s1 + $0x4e0] sm:$0xf]  ;;  %v10414_v3 = vld [vmem:[%s16756_s1 + $0x4f4] sm:$0xf0]  ;;  %v7234_v6 = vor.u32 %v10366_v1, %v7233_v0  ;;  %v7017_v9 = vld [vmem:[%s16756_s1 + $0x1b0] sm:$0xf]  ;;  %v6826_v16 = vor.u32 %v10264_v8, %v6825_v7 }
  0x12   :  { %1813 = vmatpush.bf16.msra.mxu2 %v7282_v46  ;;  %v7426_v10 = vor.u32 %v10414_v3, %v7425_v2  ;;  %v10312_v11 = vld [vmem:[%s16756_s1 + $0x1c4] sm:$0xf0]  ;;  %v7209_v12 = vld [vmem:[%s16756_s1 + $0x330] sm:$0xf]  ;;  %v6801_v17 = vld [vmem:[%s16756_s1] sm:$0xf] }
  0x13   :  { %1826 = vmatpush.bf16.msra.mxu3 %v7474_v50  ;;  %v10360_v13 = vld [vmem:[%s16756_s1 + $0x344] sm:$0xf0]  ;;  %v7401_v14 = vld [vmem:[%s16756_s1 + $0x4b0] sm:$0xf]  ;;  %v10258_v18 = vld [vmem:[%s16756_s1 + $0x14] sm:$0xf0]  ;;  %v7018_v19 = vor.u32 %v10312_v11, %v7017_v9 }
  0x14   :  { %1788 = vmatpush.bf16.msra.mxu0 %v6874_v56  ;;  %v10408_v15 = vld [vmem:[%s16756_s1 + $0x4c4] sm:$0xf0]  ;;  %v7210_v20 = vor.u32 %v10360_v13, %v7209_v12  ;;  %v6993_v21 = vld [vmem:[%s16756_s1 + $0x180] sm:$0xf]  ;;  %v10306_v22 = vld [vmem:[%s16756_s1 + $0x194] sm:$0xf0]  ;;  %v6802_v31 = vor.u32 %v10258_v18, %v6801_v17 }
  0x15   :  { %1801 = vmatpush.bf16.msra.mxu1 %v7066_v57  ;;  %v7185_v23 = vld [vmem:[%s16756_s1 + $0x300] sm:$0xf]  ;;  %v7402_v24 = vor.u32 %v10408_v15, %v7401_v14  ;;  %v10354_v25 = vld [vmem:[%s16756_s1 + $0x314] sm:$0xf0]  ;;  %v7737_v28 = vld [vmem:[%s16756_s1 + $0x750] sm:$0xf]  ;;  %v6994_v35 = vor.u32 %v10306_v22, %v6993_v21 }
  0x16   :  { %1814 = vmatpush.bf16.msra.mxu2 %v7258_v58  ;;  %v7377_v26 = vld [vmem:[%s16756_s1 + $0x480] sm:$0xf]  ;;  %v10402_v27 = vld [vmem:[%s16756_s1 + $0x494] sm:$0xf0]  ;;  %v10492_v29 = vld [vmem:[%s16756_s1 + $0x764] sm:$0xf0]  ;;  %v7186_v36 = vor.u32 %v10354_v25, %v7185_v23 }
  0x17   :  { %1827 = vmatpush.bf16.msra.mxu3 %v7450_v62  ;;  %v7929_v30 = vld [vmem:[%s16756_s1 + $0x8d0] sm:$0xf]  ;;  %v10540_v32 = vld [vmem:[%s16756_s1 + $0x8e4] sm:$0xf0]  ;;  %v10297_v33 = vld [vmem:[%s16756_s1 + $0x154] sm:$0xf]  ;;  %v7378_v39 = vor.u32 %v10402_v27, %v7377_v26  ;;  %v7738_v40 = vor.u32 %v10492_v29, %v7737_v28 }
  0x18   :  { %1789 = vmatpush.bf16.msra.mxu0 %v6850_v4  ;;  %v6971_v34 = vld [vmem:[%s16756_s1 + $0x168] sm:$0xf0]  ;;  %v10345_v37 = vld [vmem:[%s16756_s1 + $0x2d4] sm:$0xf]  ;;  %v7930_v41 = vor.u32 %v10540_v32, %v7929_v30  ;;  %v7713_v43 = vld [vmem:[%s16756_s1 + $0x720] sm:$0xf] }
  0x19   :  { %1802 = vmatpush.bf16.msra.mxu1 %v7042_v5  ;;  %v7163_v38 = vld [vmem:[%s16756_s1 + $0x2e8] sm:$0xf0]  ;;  %v6974_v42 = vor.u32 %v10297_v33, %v6971_v34  ;;  %v10486_v44 = vld [vmem:[%s16756_s1 + $0x734] sm:$0xf0]  ;;  %v7905_v45 = vld [vmem:[%s16756_s1 + $0x8a0] sm:$0xf] }
  0x1a   :  { %1815 = vmatpush.bf16.msra.mxu2 %v7234_v6  ;;  %v7166_v46 = vor.u32 %v10345_v37, %v7163_v38  ;;  %v10534_v47 = vld [vmem:[%s16756_s1 + $0x8b4] sm:$0xf0]  ;;  %v10291_v48 = vld [vmem:[%s16756_s1 + $0x124] sm:$0xf]  ;;  %v6947_v49 = vld [vmem:[%s16756_s1 + $0x138] sm:$0xf0]  ;;  %v7714_v52 = vor.u32 %v10486_v44, %v7713_v43 }
  0x1b   :  { %1828 = vmatpush.bf16.msra.mxu3 %v7426_v10  ;;  %v10339_v50 = vld [vmem:[%s16756_s1 + $0x2a4] sm:$0xf]  ;;  %v7139_v51 = vld [vmem:[%s16756_s1 + $0x2b8] sm:$0xf0]  ;;  %v7906_v53 = vor.u32 %v10534_v47, %v7905_v45  ;;  %v6950_v54 = vor.u32 %v10291_v48, %v6947_v49  ;;  %v7689_v55 = vld [vmem:[%s16756_s1 + $0x6f0] sm:$0xf] }
  0x1c   :  { %1790 = vmatpush.bf16.msra.mxu0 %v6826_v16  ;;  %v10480_v56 = vld [vmem:[%s16756_s1 + $0x704] sm:$0xf0]  ;;  %v7881_v57 = vld [vmem:[%s16756_s1 + $0x870] sm:$0xf]  ;;  %v7142_v58 = vor.u32 %v10339_v50, %v7139_v51  ;;  %v10285_v60 = vld [vmem:[%s16756_s1 + $0xf4] sm:$0xf] }
  0x1d   :  { %1803 = vmatpush.bf16.msra.mxu1 %v7018_v19  ;;  %v10528_v59 = vld [vmem:[%s16756_s1 + $0x884] sm:$0xf0]  ;;  %v6923_v61 = vld [vmem:[%s16756_s1 + $0x108] sm:$0xf0]  ;;  %v10333_v62 = vld [vmem:[%s16756_s1 + $0x274] sm:$0xf]  ;;  %v7690_v0 = vor.u32 %v10480_v56, %v7689_v55 }
  0x1e   :  { %1816 = vmatpush.bf16.msra.mxu2 %v7210_v20  ;;  %v7115_v63 = vld [vmem:[%s16756_s1 + $0x288] sm:$0xf0]  ;;  %v7665_v1 = vld [vmem:[%s16756_s1 + $0x6c0] sm:$0xf]  ;;  %v7882_v3 = vor.u32 %v10528_v59, %v7881_v57  ;;  %v6926_v4 = vor.u32 %v10285_v60, %v6923_v61  ;;  %v10474_v5 = vld [vmem:[%s16756_s1 + $0x6d4] sm:$0xf0] }
  0x1f   :  { %1829 = vmatpush.bf16.msra.mxu3 %v7402_v24  ;;  %v27_v2 = vld [vmem:[%s16755_s0] sm:$0x3f]  ;;  %v7118_v7 = vor.u32 %v10333_v62, %v7115_v63  ;;  %v10522_v8 = vld [vmem:[%s16756_s1 + $0x854] sm:$0xf0]  ;;  %v6899_v10 = vld [vmem:[%s16756_s1 + $0xd8] sm:$0xf0]  ;;  %v7666_v13 = vor.u32 %v10474_v5, %v7665_v1 }
  0x20   :  { %1791 = vmatpush.bf16.msra.mxu0 %v6802_v31  ;;  %v7857_v6 = vld [vmem:[%s16756_s1 + $0x840] sm:$0xf]  ;;  %331 = vst [vmem:[#allocation1] ss:$9 sm:$0xff] %v27_v2  ;;  %v10279_v9 = vld [vmem:[%s16756_s1 + $0xc4] sm:$0xf] }
  0x21   :  { %1804 = vmatpush.bf16.msra.mxu1 %v6994_v35  ;;  %v10327_v11 = vld [vmem:[%s16756_s1 + $0x244] sm:$0xf]  ;;  %v7091_v12 = vld [vmem:[%s16756_s1 + $0x258] sm:$0xf0]  ;;  %v7858_v14 = vor.u32 %v10522_v8, %v7857_v6  ;;  %v6902_v15 = vor.u32 %v10279_v9, %v6899_v10  ;;  %v7641_v16 = vld [vmem:[%s16756_s1 + $0x690] sm:$0xf] }
  0x22   :  { %1817 = vmatpush.bf16.msra.mxu2 %v7186_v36  ;;  %v10468_v17 = vld [vmem:[%s16756_s1 + $0x6a4] sm:$0xf0]  ;;  %v7833_v18 = vld [vmem:[%s16756_s1 + $0x810] sm:$0xf]  ;;  %v7094_v19 = vor.u32 %v10327_v11, %v7091_v12  ;;  %v10273_v21 = vld [vmem:[%s16756_s1 + $0x94] sm:$0xf] }
  0x23   :  { %1830 = vmatpush.bf16.msra.mxu3 %v7378_v39  ;;  %v10516_v20 = vld [vmem:[%s16756_s1 + $0x824] sm:$0xf0]  ;;  %v6875_v22 = vld [vmem:[%s16756_s1 + $0xa8] sm:$0xf0]  ;;  %v10321_v23 = vld [vmem:[%s16756_s1 + $0x214] sm:$0xf]  ;;  %v7642_v26 = vor.u32 %v10468_v17, %v7641_v16 }
  0x24   :  { %1836 = vmatpush.bf16.msrb.mxu0 %v7738_v40  ;;  %v7067_v24 = vld [vmem:[%s16756_s1 + $0x228] sm:$0xf0]  ;;  %v7617_v25 = vld [vmem:[%s16756_s1 + $0x660] sm:$0xf]  ;;  %v7834_v30 = vor.u32 %v10516_v20, %v7833_v18  ;;  %v6878_v31 = vor.u32 %v10273_v21, %v6875_v22  ;;  %v10462_v32 = vld [vmem:[%s16756_s1 + $0x674] sm:$0xf0] }
  0x25   :  { %1849 = vmatpush.bf16.msrb.mxu1 %v7930_v41  ;;  %v7809_v33 = vld [vmem:[%s16756_s1 + $0x7e0] sm:$0xf]  ;;  %v7070_v35 = vor.u32 %v10321_v23, %v7067_v24  ;;  %v10510_v36 = vld [vmem:[%s16756_s1 + $0x7f4] sm:$0xf0]  ;;  %v10267_v37 = vld [vmem:[%s16756_s1 + $0x64] sm:$0xf]  ;;  %v7618_v41 = vor.u32 %v10462_v32, %v7617_v25 }
  0x26   :  { %1862 = vmatpush.bf16.msrb.mxu2 %v6974_v42  ;;  %v6851_v38 = vld [vmem:[%s16756_s1 + $0x78] sm:$0xf0]  ;;  %v10315_v39 = vld [vmem:[%s16756_s1 + $0x1e4] sm:$0xf]  ;;  %v7810_v42 = vor.u32 %v10510_v36, %v7809_v33  ;;  %v7593_v44 = vld [vmem:[%s16756_s1 + $0x630] sm:$0xf] }
  0x27   :  { %1875 = vmatpush.bf16.msrb.mxu3 %v7166_v46  ;;  %v11519_v27 = vld [vmem:[#allocation1 + $0x12] sm:$0xff]  ;;  %v11521_v28 = vld [vmem:[#allocation1] sm:$0xff]  ;;  %v11531_v34 = vld [vmem:[#allocation1 + $0x9] sm:$0xff]  ;;  %v6854_v43 = vor.u32 %v10267_v37, %v6851_v38 }
  0x28   :  { %1837 = vmatpush.bf16.msrb.mxu0 %v7714_v52  ;;  %v11523_v29 = vld [vmem:[#allocation1 + $0x1b] sm:$0xff]  ;;  %1818 = vmatmul.bf16.vlgmr.msra.gmra.mxu2 %v11519_v27  ;;  %v10456_v45 = vld [vmem:[%s16756_s1 + $0x644] sm:$0xf0]  ;;  %v7785_v46 = vld [vmem:[%s16756_s1 + $0x7b0] sm:$0xf] }
  0x29   :  { %1850 = vmatpush.bf16.msrb.mxu1 %v7906_v53  ;;  %v7043_v40 = vld [vmem:[%s16756_s1 + $0x1f8] sm:$0xf0]  ;;  %1792 = vmatmul.bf16.vlgmr.msra.gmra.mxu0 %v11521_v28  ;;  %v10504_v48 = vld [vmem:[%s16756_s1 + $0x7c4] sm:$0xf0]  ;;  %v10261_v49 = vld [vmem:[%s16756_s1 + $0x34] sm:$0xf]  ;;  %v7594_v53 = vor.u32 %v10456_v45, %v7593_v44 }
  0x2a   :  { %1863 = vmatpush.bf16.msrb.mxu2 %v6950_v54  ;;  %1831 = vmatmul.bf16.vlgmr.msra.gmra.mxu3 %v11523_v29  ;;  %v7046_v47 = vor.u32 %v10315_v39, %v7043_v40  ;;  %v6827_v50 = vld [vmem:[%s16756_s1 + $0x48] sm:$0xf0]  ;;  %v10309_v51 = vld [vmem:[%s16756_s1 + $0x1b4] sm:$0xf]  ;;  %v7569_v54 = vld [vmem:[%s16756_s1 + $0x600] sm:$0xf]  ;;  %v7786_v56 = vor.u32 %v10504_v48, %v7785_v46 }
  0x2b   :  { %1876 = vmatpush.bf16.msrb.mxu3 %v7142_v58  ;;  %1805 = vmatmul.bf16.vlgmr.msra.gmra.mxu1 %v11531_v34  ;;  %v7019_v52 = vld [vmem:[%s16756_s1 + $0x1c8] sm:$0xf0]  ;;  %v10450_v55 = vld [vmem:[%s16756_s1 + $0x614] sm:$0xf0]  ;;  %v6830_v57 = vor.u32 %v10261_v49, %v6827_v50  ;;  %v7761_v58 = vld [vmem:[%s16756_s1 + $0x780] sm:$0xf] }
  0x2c   :  { %1838 = vmatpush.bf16.msrb.mxu0 %v7690_v0  ;;  %v10498_v59 = vld [vmem:[%s16756_s1 + $0x794] sm:$0xf0]  ;;  %v10255_v60 = vld [vmem:[%s16756_s1 + $0x4] sm:$0xf]  ;;  %v7022_v61 = vor.u32 %v10309_v51, %v7019_v52  ;;  %v6803_v62 = vld [vmem:[%s16756_s1 + $0x18] sm:$0xf0] }
  0x2d   :  { %1851 = vmatpush.bf16.msrb.mxu1 %v7882_v3  ;;  %v10303_v63 = vld [vmem:[%s16756_s1 + $0x184] sm:$0xf]  ;;  %v6995_v0 = vld [vmem:[%s16756_s1 + $0x198] sm:$0xf0]  ;;  %v10393_v1 = vld [vmem:[%s16756_s1 + $0x454] sm:$0xf]  ;;  %v7762_v8 = vor.u32 %v10498_v59, %v7761_v58  ;;  %v6806_v9 = vor.u32 %v10255_v60, %v6803_v62 }
  0x2e   :  { %1864 = vmatpush.bf16.msrb.mxu2 %v6926_v4  ;;  %v7355_v2 = vld [vmem:[%s16756_s1 + $0x468] sm:$0xf0]  ;;  %v10441_v3 = vld [vmem:[%s16756_s1 + $0x5d4] sm:$0xf]  ;;  %v7570_v4 = vor.u32 %v10450_v55, %v7569_v54  ;;  %v6998_v12 = vor.u32 %v10303_v63, %v6995_v0  ;;  %v10387_v16 = vld [vmem:[%s16756_s1 + $0x424] sm:$0xf] }
  0x2f   :  { %1877 = vmatpush.bf16.msrb.mxu3 %v7118_v7  ;;  %v7547_v5 = vld [vmem:[%s16756_s1 + $0x5e8] sm:$0xf0]  ;;  %v10489_v6 = vld [vmem:[%s16756_s1 + $0x754] sm:$0xf]  ;;  %v7331_v17 = vld [vmem:[%s16756_s1 + $0x438] sm:$0xf0] }
  0x30   :  { %1839 = vmatpush.bf16.msrb.mxu0 %v7666_v13  ;;  %v7739_v7 = vld [vmem:[%s16756_s1 + $0x768] sm:$0xf0]  ;;  %v10537_v10 = vld [vmem:[%s16756_s1 + $0x8d4] sm:$0xf]  ;;  %v7358_v13 = vor.u32 %v10393_v1, %v7355_v2  ;;  %v10435_v18 = vld [vmem:[%s16756_s1 + $0x5a4] sm:$0xf] }
  0x31   :  { %1852 = vmatpush.bf16.msrb.mxu1 %v7858_v14  ;;  %v7931_v11 = vld [vmem:[%s16756_s1 + $0x8e8] sm:$0xf0]  ;;  %v7550_v14 = vor.u32 %v10441_v3, %v7547_v5  ;;  %v7523_v20 = vld [vmem:[%s16756_s1 + $0x5b8] sm:$0xf0]  ;;  %v10483_v21 = vld [vmem:[%s16756_s1 + $0x724] sm:$0xf] }
  0x32   :  { %1865 = vmatpush.bf16.msrb.mxu2 %v6902_v15  ;;  %v7742_v15 = vor.u32 %v10489_v6, %v7739_v7  ;;  %v7715_v22 = vld [vmem:[%s16756_s1 + $0x738] sm:$0xf0]  ;;  %v10531_v23 = vld [vmem:[%s16756_s1 + $0x8a4] sm:$0xf]  ;;  %v10381_v33 = vld [vmem:[%s16756_s1 + $0x3f4] sm:$0xf] }
  0x33   :  { %1878 = vmatpush.bf16.msrb.mxu3 %v7094_v19  ;;  %v7934_v19 = vor.u32 %v10537_v10, %v7931_v11  ;;  %v7907_v24 = vld [vmem:[%s16756_s1 + $0x8b8] sm:$0xf0]  ;;  %v11648_v25 = vld [vmem:[#allocation1 + $0x24] sm:$0xff]  ;;  %v7718_v32 = vor.u32 %v10483_v21, %v7715_v22  ;;  %v10429_v36 = vld [vmem:[%s16756_s1 + $0x574] sm:$0xf] }
  0x34   :  { %1840 = vmatpush.bf16.msrb.mxu0 %v7642_v26  ;;  %v7334_v26 = vor.u32 %v10387_v16, %v7331_v17  ;;  %v7910_v37 = vor.u32 %v10531_v23, %v7907_v24  ;;  %v7499_v38 = vld [vmem:[%s16756_s1 + $0x588] sm:$0xf0]  ;;  %v10477_v39 = vld [vmem:[%s16756_s1 + $0x6f4] sm:$0xf]  ;;  %v10375_v46 = vld [vmem:[%s16756_s1 + $0x3c4] sm:$0xf] }
  0x35   :  { %1853 = vmatpush.bf16.msrb.mxu1 %v7834_v30  ;;  %v11650_v30 = vld [vmem:[#allocation1 + $0x2d] sm:$0xff]  ;;  %v7502_v44 = vor.u32 %v10429_v36, %v7499_v38  ;;  %v10423_v48 = vld [vmem:[%s16756_s1 + $0x544] sm:$0xf]  ;;  %v7475_v50 = vld [vmem:[%s16756_s1 + $0x558] sm:$0xf0] }
  0x36   :  { %1866 = vmatpush.bf16.msrb.mxu2 %v6878_v31  ;;  %v7526_v31 = vor.u32 %v10435_v18, %v7523_v20  ;;  %v7691_v40 = vld [vmem:[%s16756_s1 + $0x708] sm:$0xf0]  ;;  %v10471_v51 = vld [vmem:[%s16756_s1 + $0x6c4] sm:$0xf]  ;;  %v7667_v52 = vld [vmem:[%s16756_s1 + $0x6d8] sm:$0xf0] }
  0x37   :  { %1879 = vmatpush.bf16.msrb.mxu3 %v7070_v35  ;;  %v7307_v35 = vld [vmem:[%s16756_s1 + $0x408] sm:$0xf0]  ;;  %v7694_v45 = vor.u32 %v10477_v39, %v7691_v40  ;;  %v7859_v54 = vld [vmem:[%s16756_s1 + $0x858] sm:$0xf0]  ;;  %v10369_v58 = vld [vmem:[%s16756_s1 + $0x394] sm:$0xf] }
  0x38   :  { %1841 = vmatpush.bf16.msrb.mxu0 %v7618_v41  ;;  %v10525_v41 = vld [vmem:[%s16756_s1 + $0x874] sm:$0xf]  ;;  %v7259_v59 = vld [vmem:[%s16756_s1 + $0x3a8] sm:$0xf0]  ;;  %v10363_v6 = vld [vmem:[%s16756_s1 + $0x364] sm:$0xf] }
  0x39   :  { %1854 = vmatpush.bf16.msrb.mxu1 %v7810_v42  ;;  %v7883_v42 = vld [vmem:[%s16756_s1 + $0x888] sm:$0xf0]  ;;  %v10417_v60 = vld [vmem:[%s16756_s1 + $0x514] sm:$0xf]  ;;  %v7262_v3 = vor.u32 %v10369_v58, %v7259_v59  ;;  %v7235_v7 = vld [vmem:[%s16756_s1 + $0x378] sm:$0xf0] }
  0x3a   :  { %1867 = vmatpush.bf16.msrb.mxu2 %v6854_v43  ;;  %v7310_v43 = vor.u32 %v10381_v33, %v7307_v35  ;;  %v7886_v49 = vor.u32 %v10525_v41, %v7883_v42  ;;  %v7451_v62 = vld [vmem:[%s16756_s1 + $0x528] sm:$0xf0]  ;;  %v10465_v63 = vld [vmem:[%s16756_s1 + $0x694] sm:$0xf]  ;;  %v7427_v10 = vld [vmem:[%s16756_s1 + $0x4f8] sm:$0xf0] }
  0x3b   :  { %1880 = vmatpush.bf16.msrb.mxu3 %v7046_v47  ;;  %v7283_v47 = vld [vmem:[%s16756_s1 + $0x3d8] sm:$0xf0]  ;;  %v7643_v0 = vld [vmem:[%s16756_s1 + $0x6a8] sm:$0xf0]  ;;  %v10513_v1 = vld [vmem:[%s16756_s1 + $0x814] sm:$0xf] }
  0x3c   :  { %1842 = vmatpush.bf16.msrb.mxu0 %v7594_v53  ;;  %v10519_v53 = vld [vmem:[%s16756_s1 + $0x844] sm:$0xf]  ;;  %v7286_v55 = vor.u32 %v10375_v46, %v7283_v47  ;;  %v7835_v2 = vld [vmem:[%s16756_s1 + $0x828] sm:$0xf0]  ;;  %v7646_v5 = vor.u32 %v10465_v63, %v7643_v0  ;;  %v10357_v18 = vld [vmem:[%s16756_s1 + $0x334] sm:$0xf] }
  0x3d   :  { %1855 = vmatpush.bf16.msrb.mxu1 %v7786_v56  ;;  %v7478_v56 = vor.u32 %v10423_v48, %v7475_v50  ;;  %v10459_v11 = vld [vmem:[%s16756_s1 + $0x664] sm:$0xf]  ;;  %v10405_v20 = vld [vmem:[%s16756_s1 + $0x4b4] sm:$0xf]  ;;  %v7403_v22 = vld [vmem:[%s16756_s1 + $0x4c8] sm:$0xf0] }
  0x3e   :  { %1868 = vmatpush.bf16.msrb.mxu2 %v6830_v57  ;;  %v7670_v57 = vor.u32 %v10471_v51, %v7667_v52  ;;  %v10453_v23 = vld [vmem:[%s16756_s1 + $0x634] sm:$0xf]  ;;  %v7595_v24 = vld [vmem:[%s16756_s1 + $0x648] sm:$0xf0] }
  0x3f   :  { %1881 = vmatpush.bf16.msrb.mxu3 %v7022_v61  ;;  %v7862_v61 = vor.u32 %v10519_v53, %v7859_v54 }
  0x40   :  { %1843 = vmatpush.bf16.msrb.mxu0 %v7570_v4  ;;  %v7454_v4 = vor.u32 %v10417_v60, %v7451_v62 }
  0x41   :  { %1856 = vmatpush.bf16.msrb.mxu1 %v7762_v8  ;;  %v10411_v8 = vld [vmem:[%s16756_s1 + $0x4e4] sm:$0xf] }
  0x42   :  { %1869 = vmatpush.bf16.msrb.mxu2 %v6806_v9  ;;  %v7838_v9 = vor.u32 %v10513_v1, %v7835_v2  ;;  %v7430_v16 = vor.u32 %v10411_v8, %v7427_v10 }
  0x43   :  { %1882 = vmatpush.bf16.msrb.mxu3 %v6998_v12  ;;  %1844 = vmatmul.bf16.vlgmr.msrb.gmra.mxu0 %v11648_v25  ;;  %v7619_v12 = vld [vmem:[%s16756_s1 + $0x678] sm:$0xf0] }
  0x44   :  { %1888 = vmatpush.bf16.msra.mxu0 %v7358_v13  ;;  %1857 = vmatmul.bf16.vlgmr.msrb.gmra.mxu1 %v11650_v30  ;;  %v10507_v13 = vld [vmem:[%s16756_s1 + $0x7e4] sm:$0xf]  ;;  %v7622_v17 = vor.u32 %v10459_v11, %v7619_v12 }
  0x45   :  { %1901 = vmatpush.bf16.msra.mxu1 %v7550_v14  ;;  %1870 = vmatmul.bf16.vlgmr.msrb.gmra.mxu2 %v11521_v28  ;;  %v7811_v14 = vld [vmem:[%s16756_s1 + $0x7f8] sm:$0xf0] }
  0x46   :  { %1914 = vmatpush.bf16.msra.mxu2 %v7742_v15  ;;  %1883 = vmatmul.bf16.vlgmr.msrb.gmra.mxu3 %v11531_v34  ;;  %v7238_v15 = vor.u32 %v10363_v6, %v7235_v7  ;;  %v7814_v21 = vor.u32 %v10507_v13, %v7811_v14 }
  0x47   :  { %1927 = vmatpush.bf16.msra.mxu3 %v7934_v19  ;;  %v7211_v19 = vld [vmem:[%s16756_s1 + $0x348] sm:$0xf0] }
  0x48   :  { %1889 = vmatpush.bf16.msra.mxu0 %v7334_v26  ;;  %v10501_v26 = vld [vmem:[%s16756_s1 + $0x7b4] sm:$0xf] }
  0x49   :  { %1902 = vmatpush.bf16.msra.mxu1 %v7526_v31  ;;  %v7787_v31 = vld [vmem:[%s16756_s1 + $0x7c8] sm:$0xf0] }
  0x4a   :  { %1915 = vmatpush.bf16.msra.mxu2 %v7718_v32 }
  0x4b   :  { %1928 = vmatpush.bf16.msra.mxu3 %v7910_v37 }
  0x4c   :  { %1890 = vmatpush.bf16.msra.mxu0 %v7310_v43 }
  0x4d   :  { %1903 = vmatpush.bf16.msra.mxu1 %v7502_v44 }
  0x4e   :  { %1916 = vmatpush.bf16.msra.mxu2 %v7694_v45 }
  0x4f   :  { %1929 = vmatpush.bf16.msra.mxu3 %v7886_v49 }
  0x50   :  { %1891 = vmatpush.bf16.msra.mxu0 %v7286_v55 }
  0x51   :  { %1904 = vmatpush.bf16.msra.mxu1 %v7478_v56 }
  0x52   :  { %1917 = vmatpush.bf16.msra.mxu2 %v7670_v57 }
  0x53   :  { %1930 = vmatpush.bf16.msra.mxu3 %v7862_v61 }
  0x54   :  { %1892 = vmatpush.bf16.msra.mxu0 %v7262_v3 }
  0x55   :  { %1905 = vmatpush.bf16.msra.mxu1 %v7454_v4 }
  0x56   :  { %1918 = vmatpush.bf16.msra.mxu2 %v7646_v5 }
  0x57   :  { %1931 = vmatpush.bf16.msra.mxu3 %v7838_v9 }
  0x58   :  { %12 = vsyncpa [#allocation3], 0  ;;  %1893 = vmatpush.bf16.msra.mxu0 %v7238_v15  ;;  %v7214_v32 = vor.u32 %v10357_v18, %v7211_v19  ;;  %v10351_v33 = vld [vmem:[%s16756_s1 + $0x304] sm:$0xf]  ;;  %v7187_v35 = vld [vmem:[%s16756_s1 + $0x318] sm:$0xf0]  ;;  %v7406_v36 = vor.u32 %v10405_v20, %v7403_v22  ;;  %v7598_v37 = vor.u32 %v10453_v23, %v7595_v24  ;;  %v7790_v41 = vor.u32 %v10501_v26, %v7787_v31 }
  0x59   :  { %1906 = vmatpush.bf16.msra.mxu1 %v7430_v16  ;;  %v10399_v38 = vld [vmem:[%s16756_s1 + $0x484] sm:$0xf]  ;;  %v7379_v39 = vld [vmem:[%s16756_s1 + $0x498] sm:$0xf0]  ;;  %v6977_v45 = vld [vmem:[%s16756_s1 + $0x158] sm:$0xf]  ;;  %v7190_v48 = vor.u32 %v10351_v33, %v7187_v35 }
  0x5a   :  { %1919 = vmatpush.bf16.msra.mxu2 %v7622_v17  ;;  %v10447_v40 = vld [vmem:[%s16756_s1 + $0x604] sm:$0xf]  ;;  %v7571_v42 = vld [vmem:[%s16756_s1 + $0x618] sm:$0xf0]  ;;  %v10301_v46 = vld [vmem:[%s16756_s1 + $0x16c] sm:$0xf0]  ;;  %v7382_v52 = vor.u32 %v10399_v38, %v7379_v39 }
  0x5b   :  { %1932 = vmatpush.bf16.msra.mxu3 %v7814_v21  ;;  %v10495_v43 = vld [vmem:[%s16756_s1 + $0x784] sm:$0xf]  ;;  %v7763_v44 = vld [vmem:[%s16756_s1 + $0x798] sm:$0xf0]  ;;  %v7169_v47 = vld [vmem:[%s16756_s1 + $0x2d8] sm:$0xf]  ;;  %v7574_v53 = vor.u32 %v10447_v40, %v7571_v42  ;;  %v6978_v57 = vor.u32 %v10301_v46, %v6977_v45 }
  0x5c   :  { %1894 = vmatpush.bf16.msra.mxu0 %v7214_v32  ;;  %v10349_v49 = vld [vmem:[%s16756_s1 + $0x2ec] sm:$0xf0]  ;;  %v7361_v50 = vld [vmem:[%s16756_s1 + $0x458] sm:$0xf]  ;;  %v7766_v56 = vor.u32 %v10495_v43, %v7763_v44  ;;  %v6953_v60 = vld [vmem:[%s16756_s1 + $0x128] sm:$0xf] }
  0x5d   :  { %v10397_v51 = vld [vmem:[%s16756_s1 + $0x46c] sm:$0xf0]  ;;  %1907 = vmatpush.bf16.msra.mxu1 %v7406_v36  ;;  %v7553_v54 = vld [vmem:[%s16756_s1 + $0x5d8] sm:$0xf]  ;;  %v7170_v58 = vor.u32 %v10349_v49, %v7169_v47  ;;  %v10295_v61 = vld [vmem:[%s16756_s1 + $0x13c] sm:$0xf0] }
  0x5e   :  { %1920 = vmatpush.bf16.msra.mxu2 %v7598_v37  ;;  %v10445_v55 = vld [vmem:[%s16756_s1 + $0x5ec] sm:$0xf0]  ;;  %v7362_v59 = vor.u32 %v10397_v51, %v7361_v50  ;;  %v7145_v62 = vld [vmem:[%s16756_s1 + $0x2a8] sm:$0xf]  ;;  %v10343_v0 = vld [vmem:[%s16756_s1 + $0x2bc] sm:$0xf0]  ;;  %v6954_v5 = vor.u32 %v10295_v61, %v6953_v60 }
  0x5f   :  { %1933 = vmatpush.bf16.msra.mxu3 %v7790_v41  ;;  %v7554_v63 = vor.u32 %v10445_v55, %v7553_v54  ;;  %v7337_v1 = vld [vmem:[%s16756_s1 + $0x428] sm:$0xf]  ;;  %v10391_v2 = vld [vmem:[%s16756_s1 + $0x43c] sm:$0xf0]  ;;  %v7146_v6 = vor.u32 %v10343_v0, %v7145_v62  ;;  %v6929_v8 = vld [vmem:[%s16756_s1 + $0xf8] sm:$0xf] }
  0x60   :  { %1895 = vmatpush.bf16.msra.mxu0 %v7190_v48  ;;  %v7529_v3 = vld [vmem:[%s16756_s1 + $0x5a8] sm:$0xf]  ;;  %v10439_v4 = vld [vmem:[%s16756_s1 + $0x5bc] sm:$0xf0]  ;;  %v7338_v7 = vor.u32 %v10391_v2, %v7337_v1  ;;  %v10289_v9 = vld [vmem:[%s16756_s1 + $0x10c] sm:$0xf0] }
  0x61   :  { %1908 = vmatpush.bf16.msra.mxu1 %v7382_v52  ;;  %v7121_v10 = vld [vmem:[%s16756_s1 + $0x278] sm:$0xf]  ;;  %v7530_v11 = vor.u32 %v10439_v4, %v7529_v3  ;;  %v10337_v12 = vld [vmem:[%s16756_s1 + $0x28c] sm:$0xf0]  ;;  %v6930_v17 = vor.u32 %v10289_v9, %v6929_v8  ;;  %v6905_v20 = vld [vmem:[%s16756_s1 + $0xc8] sm:$0xf] }
  0x62   :  { %1921 = vmatpush.bf16.msra.mxu2 %v7574_v53  ;;  %v7313_v13 = vld [vmem:[%s16756_s1 + $0x3f8] sm:$0xf]  ;;  %v10385_v14 = vld [vmem:[%s16756_s1 + $0x40c] sm:$0xf0]  ;;  %v7122_v18 = vor.u32 %v10337_v12, %v7121_v10  ;;  %v10283_v21 = vld [vmem:[%s16756_s1 + $0xdc] sm:$0xf0] }
  0x63   :  { %1934 = vmatpush.bf16.msra.mxu3 %v7766_v56  ;;  %v7505_v15 = vld [vmem:[%s16756_s1 + $0x578] sm:$0xf]  ;;  %v10433_v16 = vld [vmem:[%s16756_s1 + $0x58c] sm:$0xf0]  ;;  %1896 = vmatmul.bf16.vlgmr.msra.gmra.mxu0 %v11519_v27  ;;  %v7314_v19 = vor.u32 %v10385_v14, %v7313_v13  ;;  %v7097_v22 = vld [vmem:[%s16756_s1 + $0x248] sm:$0xf]  ;;  %v6906_v35 = vor.u32 %v10283_v21, %v6905_v20 }
  0x64   :  { %1940 = vmatpush.bf16.msrb.mxu0 %v6978_v57  ;;  %1909 = vmatmul.bf16.vlgmr.msra.gmra.mxu1 %v11523_v29  ;;  %v7506_v23 = vor.u32 %v10433_v16, %v7505_v15  ;;  %v10331_v24 = vld [vmem:[%s16756_s1 + $0x25c] sm:$0xf0]  ;;  %v7289_v26 = vld [vmem:[%s16756_s1 + $0x3c8] sm:$0xf]  ;;  %v6881_v38 = vld [vmem:[%s16756_s1 + $0x98] sm:$0xf] }
  0x65   :  { %1953 = vmatpush.bf16.msrb.mxu1 %v7170_v58  ;;  %1922 = vmatmul.bf16.vlgmr.msra.gmra.mxu2 %v11648_v25  ;;  %v10379_v31 = vld [vmem:[%s16756_s1 + $0x3dc] sm:$0xf0]  ;;  %v7481_v32 = vld [vmem:[%s16756_s1 + $0x548] sm:$0xf]  ;;  %v7098_v36 = vor.u32 %v10331_v24, %v7097_v22  ;;  %v10277_v39 = vld [vmem:[%s16756_s1 + $0xac] sm:$0xf0] }
  0x66   :  { %1966 = vmatpush.bf16.msrb.mxu2 %v7362_v59  ;;  %1935 = vmatmul.bf16.vlgmr.msra.gmra.mxu3 %v11650_v30  ;;  %v10427_v33 = vld [vmem:[%s16756_s1 + $0x55c] sm:$0xf0]  ;;  %v7290_v37 = vor.u32 %v10379_v31, %v7289_v26  ;;  %v7073_v40 = vld [vmem:[%s16756_s1 + $0x218] sm:$0xf]  ;;  %v10325_v42 = vld [vmem:[%s16756_s1 + $0x22c] sm:$0xf0]  ;;  %v6882_v47 = vor.u32 %v10277_v39, %v6881_v38 }
  0x67   :  { %1979 = vmatpush.bf16.msrb.mxu3 %v7554_v63  ;;  %v7482_v41 = vor.u32 %v10427_v33, %v7481_v32  ;;  %v7265_v43 = vld [vmem:[%s16756_s1 + $0x398] sm:$0xf]  ;;  %v10373_v44 = vld [vmem:[%s16756_s1 + $0x3ac] sm:$0xf0]  ;;  %v7074_v48 = vor.u32 %v10325_v42, %v7073_v40  ;;  %v6857_v50 = vld [vmem:[%s16756_s1 + $0x68] sm:$0xf] }
  0x68   :  { %1941 = vmatpush.bf16.msrb.mxu0 %v6954_v5  ;;  %v7457_v45 = vld [vmem:[%s16756_s1 + $0x518] sm:$0xf]  ;;  %v10421_v46 = vld [vmem:[%s16756_s1 + $0x52c] sm:$0xf0]  ;;  %v7266_v49 = vor.u32 %v10373_v44, %v7265_v43  ;;  %v10271_v51 = vld [vmem:[%s16756_s1 + $0x7c] sm:$0xf0] }
  0x69   :  { %1954 = vmatpush.bf16.msrb.mxu1 %v7146_v6  ;;  %v7049_v52 = vld [vmem:[%s16756_s1 + $0x1e8] sm:$0xf]  ;;  %v7458_v53 = vor.u32 %v10421_v46, %v7457_v45  ;;  %v10319_v54 = vld [vmem:[%s16756_s1 + $0x1fc] sm:$0xf0]  ;;  %v6858_v59 = vor.u32 %v10271_v51, %v6857_v50  ;;  %v6833_v62 = vld [vmem:[%s16756_s1 + $0x38] sm:$0xf] }
  0x6a   :  { %1967 = vmatpush.bf16.msrb.mxu2 %v7338_v7  ;;  %v7241_v55 = vld [vmem:[%s16756_s1 + $0x368] sm:$0xf]  ;;  %v10367_v56 = vld [vmem:[%s16756_s1 + $0x37c] sm:$0xf0]  ;;  %v7050_v60 = vor.u32 %v10319_v54, %v7049_v52  ;;  %v10265_v63 = vld [vmem:[%s16756_s1 + $0x4c] sm:$0xf0] }
  0x6b   :  { %1980 = vmatpush.bf16.msrb.mxu3 %v7530_v11  ;;  %v7433_v57 = vld [vmem:[%s16756_s1 + $0x4e8] sm:$0xf]  ;;  %v10415_v58 = vld [vmem:[%s16756_s1 + $0x4fc] sm:$0xf0]  ;;  %v7242_v61 = vor.u32 %v10367_v56, %v7241_v55  ;;  %v7025_v0 = vld [vmem:[%s16756_s1 + $0x1b8] sm:$0xf]  ;;  %v6834_v7 = vor.u32 %v10265_v63, %v6833_v62 }
  0x6c   :  { %1942 = vmatpush.bf16.msrb.mxu0 %v6930_v17  ;;  %v7434_v1 = vor.u32 %v10415_v58, %v7433_v57  ;;  %v10313_v2 = vld [vmem:[%s16756_s1 + $0x1cc] sm:$0xf0]  ;;  %v7217_v3 = vld [vmem:[%s16756_s1 + $0x338] sm:$0xf]  ;;  %v6809_v8 = vld [vmem:[%s16756_s1 + $0x8] sm:$0xf] }
  0x6d   :  { %1955 = vmatpush.bf16.msrb.mxu1 %v7122_v18  ;;  %v10361_v4 = vld [vmem:[%s16756_s1 + $0x34c] sm:$0xf0]  ;;  %v7409_v5 = vld [vmem:[%s16756_s1 + $0x4b8] sm:$0xf]  ;;  %v10259_v9 = vld [vmem:[%s16756_s1 + $0x1c] sm:$0xf0]  ;;  %v7026_v10 = vor.u32 %v10313_v2, %v7025_v0 }
  0x6e   :  { %1968 = vmatpush.bf16.msrb.mxu2 %v7314_v19  ;;  %v10409_v6 = vld [vmem:[%s16756_s1 + $0x4cc] sm:$0xf0]  ;;  %v7218_v11 = vor.u32 %v10361_v4, %v7217_v3  ;;  %v7001_v12 = vld [vmem:[%s16756_s1 + $0x188] sm:$0xf]  ;;  %v10307_v13 = vld [vmem:[%s16756_s1 + $0x19c] sm:$0xf0]  ;;  %v6810_v22 = vor.u32 %v10259_v9, %v6809_v8 }
  0x6f   :  { %1981 = vmatpush.bf16.msrb.mxu3 %v7506_v23  ;;  %v7193_v14 = vld [vmem:[%s16756_s1 + $0x308] sm:$0xf]  ;;  %v7410_v15 = vor.u32 %v10409_v6, %v7409_v5  ;;  %v10355_v16 = vld [vmem:[%s16756_s1 + $0x31c] sm:$0xf0]  ;;  %v7745_v19 = vld [vmem:[%s16756_s1 + $0x758] sm:$0xf]  ;;  %v7002_v31 = vor.u32 %v10307_v13, %v7001_v12 }
  0x70   :  { %1943 = vmatpush.bf16.msrb.mxu0 %v6906_v35  ;;  %v7385_v17 = vld [vmem:[%s16756_s1 + $0x488] sm:$0xf]  ;;  %v10403_v18 = vld [vmem:[%s16756_s1 + $0x49c] sm:$0xf0]  ;;  %v10493_v20 = vld [vmem:[%s16756_s1 + $0x76c] sm:$0xf0]  ;;  %v7194_v32 = vor.u32 %v10355_v16, %v7193_v14 }
  0x71   :  { %1956 = vmatpush.bf16.msrb.mxu1 %v7098_v36  ;;  %v7937_v21 = vld [vmem:[%s16756_s1 + $0x8d8] sm:$0xf]  ;;  %v10541_v23 = vld [vmem:[%s16756_s1 + $0x8ec] sm:$0xf0]  ;;  %v10298_v24 = vld [vmem:[%s16756_s1 + $0x15c] sm:$0xf]  ;;  %v7386_v36 = vor.u32 %v10403_v18, %v7385_v17 }
  0x72   :  { %1969 = vmatpush.bf16.msrb.mxu2 %v7290_v37  ;;  %v6979_v26 = vld [vmem:[%s16756_s1 + $0x170] sm:$0xf0]  ;;  %v10346_v33 = vld [vmem:[%s16756_s1 + $0x2dc] sm:$0xf]  ;;  %v7746_v37 = vor.u32 %v10493_v20, %v7745_v19  ;;  %v7938_v38 = vor.u32 %v10541_v23, %v7937_v21  ;;  %v7721_v40 = vld [vmem:[%s16756_s1 + $0x728] sm:$0xf] }
  0x73   :  { %1982 = vmatpush.bf16.msrb.mxu3 %v7482_v41  ;;  %v7171_v35 = vld [vmem:[%s16756_s1 + $0x2f0] sm:$0xf0]  ;;  %v6982_v39 = vor.u32 %v10298_v24, %v6979_v26  ;;  %v10487_v41 = vld [vmem:[%s16756_s1 + $0x73c] sm:$0xf0]  ;;  %v7913_v42 = vld [vmem:[%s16756_s1 + $0x8a8] sm:$0xf] }
  0x74   :  { %1944 = vmatpush.bf16.msrb.mxu0 %v6882_v47  ;;  %v7174_v43 = vor.u32 %v10346_v33, %v7171_v35  ;;  %v10535_v44 = vld [vmem:[%s16756_s1 + $0x8bc] sm:$0xf0]  ;;  %v10292_v45 = vld [vmem:[%s16756_s1 + $0x12c] sm:$0xf]  ;;  %v6955_v46 = vld [vmem:[%s16756_s1 + $0x140] sm:$0xf0] }
  0x75   :  { %1957 = vmatpush.bf16.msrb.mxu1 %v7074_v48  ;;  %v10340_v47 = vld [vmem:[%s16756_s1 + $0x2ac] sm:$0xf]  ;;  %v7147_v48 = vld [vmem:[%s16756_s1 + $0x2c0] sm:$0xf0]  ;;  %v7914_v50 = vor.u32 %v10535_v44, %v7913_v42  ;;  %v6958_v51 = vor.u32 %v10292_v45, %v6955_v46  ;;  %v7697_v52 = vld [vmem:[%s16756_s1 + $0x6f8] sm:$0xf] }
  0x76   :  { %1970 = vmatpush.bf16.msrb.mxu2 %v7266_v49  ;;  %v7722_v49 = vor.u32 %v10487_v41, %v7721_v40  ;;  %v7889_v54 = vld [vmem:[%s16756_s1 + $0x878] sm:$0xf]  ;;  %v7150_v55 = vor.u32 %v10340_v47, %v7147_v48  ;;  %v10529_v56 = vld [vmem:[%s16756_s1 + $0x88c] sm:$0xf0]  ;;  %v10286_v57 = vld [vmem:[%s16756_s1 + $0xfc] sm:$0xf] }
  0x77   :  { %1983 = vmatpush.bf16.msrb.mxu3 %v7458_v53  ;;  %v10481_v53 = vld [vmem:[%s16756_s1 + $0x70c] sm:$0xf0]  ;;  %v6931_v58 = vld [vmem:[%s16756_s1 + $0x110] sm:$0xf0]  ;;  %v7890_v62 = vor.u32 %v10529_v56, %v7889_v54  ;;  %v7673_v63 = vld [vmem:[%s16756_s1 + $0x6c8] sm:$0xf] }
  0x78   :  { %1945 = vmatpush.bf16.msrb.mxu0 %v6858_v59  ;;  %v10334_v59 = vld [vmem:[%s16756_s1 + $0x27c] sm:$0xf]  ;;  %v10475_v0 = vld [vmem:[%s16756_s1 + $0x6dc] sm:$0xf0]  ;;  %v10280_v3 = vld [vmem:[%s16756_s1 + $0xcc] sm:$0xf] }
  0x79   :  { %1958 = vmatpush.bf16.msrb.mxu1 %v7050_v60  ;;  %v7123_v60 = vld [vmem:[%s16756_s1 + $0x290] sm:$0xf0]  ;;  %v10523_v2 = vld [vmem:[%s16756_s1 + $0x85c] sm:$0xf0]  ;;  %v6907_v4 = vld [vmem:[%s16756_s1 + $0xe0] sm:$0xf0] }
  0x7a   :  { %1971 = vmatpush.bf16.msrb.mxu2 %v7242_v61  ;;  %v7698_v61 = vor.u32 %v10481_v53, %v7697_v52  ;;  %v10328_v5 = vld [vmem:[%s16756_s1 + $0x24c] sm:$0xf]  ;;  %v7099_v6 = vld [vmem:[%s16756_s1 + $0x260] sm:$0xf0]  ;;  %v6910_v9 = vor.u32 %v10280_v3, %v6907_v4  ;;  %v7841_v12 = vld [vmem:[%s16756_s1 + $0x818] sm:$0xf] }
  0x7b   :  { %1984 = vmatpush.bf16.msrb.mxu3 %v7434_v1  ;;  %v7126_v1 = vor.u32 %v10334_v59, %v7123_v60  ;;  %v7102_v13 = vor.u32 %v10328_v5, %v7099_v6  ;;  %v10517_v14 = vld [vmem:[%s16756_s1 + $0x82c] sm:$0xf0]  ;;  %v6883_v16 = vld [vmem:[%s16756_s1 + $0xb0] sm:$0xf0]  ;;  %v10322_v17 = vld [vmem:[%s16756_s1 + $0x21c] sm:$0xf] }
  0x7c   :  { %1946 = vmatpush.bf16.msrb.mxu0 %v6834_v7  ;;  %v7674_v7 = vor.u32 %v10475_v0, %v7673_v63  ;;  %v7075_v18 = vld [vmem:[%s16756_s1 + $0x230] sm:$0xf0]  ;;  %v7842_v20 = vor.u32 %v10517_v14, %v7841_v12  ;;  %v10463_v23 = vld [vmem:[%s16756_s1 + $0x67c] sm:$0xf0]  ;;  %v7817_v24 = vld [vmem:[%s16756_s1 + $0x7e8] sm:$0xf] }
  0x7d   :  { %1959 = vmatpush.bf16.msrb.mxu1 %v7026_v10  ;;  %v7649_v10 = vld [vmem:[%s16756_s1 + $0x698] sm:$0xf]  ;;  %v7078_v26 = vor.u32 %v10322_v17, %v7075_v18  ;;  %v6859_v33 = vld [vmem:[%s16756_s1 + $0x80] sm:$0xf0]  ;;  %v10316_v35 = vld [vmem:[%s16756_s1 + $0x1ec] sm:$0xf] }
  0x7e   :  { %1972 = vmatpush.bf16.msrb.mxu2 %v7218_v11  ;;  %v10469_v11 = vld [vmem:[%s16756_s1 + $0x6ac] sm:$0xf0]  ;;  %v7601_v40 = vld [vmem:[%s16756_s1 + $0x638] sm:$0xf]  ;;  %v10262_v45 = vld [vmem:[%s16756_s1 + $0x3c] sm:$0xf] }
  0x7f   :  { %1985 = vmatpush.bf16.msrb.mxu3 %v7410_v15  ;;  %v10274_v15 = vld [vmem:[%s16756_s1 + $0x9c] sm:$0xf]  ;;  %v7650_v19 = vor.u32 %v10469_v11, %v7649_v10  ;;  %v10457_v41 = vld [vmem:[%s16756_s1 + $0x64c] sm:$0xf0]  ;;  %v7793_v42 = vld [vmem:[%s16756_s1 + $0x7b8] sm:$0xf] }
  0x80   :  { %1947 = vmatpush.bf16.msrb.mxu0 %v6810_v22  ;;  %v6886_v21 = vor.u32 %v10274_v15, %v6883_v16  ;;  %v7625_v22 = vld [vmem:[%s16756_s1 + $0x668] sm:$0xf]  ;;  %v10505_v44 = vld [vmem:[%s16756_s1 + $0x7cc] sm:$0xf0]  ;;  %v6835_v46 = vld [vmem:[%s16756_s1 + $0x50] sm:$0xf0] }
  0x81   :  { %1960 = vmatpush.bf16.msrb.mxu1 %v7002_v31  ;;  %v10511_v31 = vld [vmem:[%s16756_s1 + $0x7fc] sm:$0xf0]  ;;  %v10310_v47 = vld [vmem:[%s16756_s1 + $0x1bc] sm:$0xf]  ;;  %v7027_v48 = vld [vmem:[%s16756_s1 + $0x1d0] sm:$0xf0]  ;;  %v7794_v52 = vor.u32 %v10505_v44, %v7793_v42  ;;  %v6838_v53 = vor.u32 %v10262_v45, %v6835_v46 }
  0x82   :  { %1973 = vmatpush.bf16.msrb.mxu2 %v7194_v32  ;;  %v10268_v32 = vld [vmem:[%s16756_s1 + $0x6c] sm:$0xf]  ;;  %v7769_v54 = vld [vmem:[%s16756_s1 + $0x788] sm:$0xf]  ;;  %v7003_v60 = vld [vmem:[%s16756_s1 + $0x1a0] sm:$0xf0] }
  0x83   :  { %1986 = vmatpush.bf16.msrb.mxu3 %v7386_v36  ;;  %1948 = vmatmul.bf16.vlgmr.msrb.gmra.mxu0 %v11521_v28  ;;  %v7051_v36 = vld [vmem:[%s16756_s1 + $0x200] sm:$0xf0]  ;;  %v10256_v56 = vld [vmem:[%s16756_s1 + $0xc] sm:$0xf]  ;;  %v7555_v0 = vld [vmem:[%s16756_s1 + $0x5f0] sm:$0xf0] }
  0x84   :  { %1992 = vmatpush.bf16.msra.mxu0 %v7746_v37  ;;  %1961 = vmatmul.bf16.vlgmr.msrb.gmra.mxu1 %v11531_v34  ;;  %v7626_v37 = vor.u32 %v10463_v23, %v7625_v22  ;;  %v10304_v59 = vld [vmem:[%s16756_s1 + $0x18c] sm:$0xf]  ;;  %v10538_v4 = vld [vmem:[%s16756_s1 + $0x8dc] sm:$0xf]  ;;  %v7939_v5 = vld [vmem:[%s16756_s1 + $0x8f0] sm:$0xf0] }
  0x85   :  { %2005 = vmatpush.bf16.msra.mxu1 %v7938_v38  ;;  %1974 = vmatmul.bf16.vlgmr.msrb.gmra.mxu2 %v11519_v27  ;;  %v6934_v27 = vor.u32 %v10286_v57, %v6931_v58  ;;  %v7818_v38 = vor.u32 %v10511_v31, %v7817_v24  ;;  %v7030_v57 = vor.u32 %v10310_v47, %v7027_v48  ;;  %v6811_v58 = vld [vmem:[%s16756_s1 + $0x20] sm:$0xf0]  ;;  %v10388_v10 = vld [vmem:[%s16756_s1 + $0x42c] sm:$0xf]  ;;  %v10382_v22 = vld [vmem:[%s16756_s1 + $0x3fc] sm:$0xf] }
  0x86   :  { %2018 = vmatpush.bf16.msra.mxu2 %v6982_v39  ;;  %1987 = vmatmul.bf16.vlgmr.msrb.gmra.mxu3 %v11523_v29  ;;  %v7865_v29 = vld [vmem:[%s16756_s1 + $0x848] sm:$0xf]  ;;  %v6862_v39 = vor.u32 %v10268_v32, %v6859_v33  ;;  %v6814_v3 = vor.u32 %v10256_v56, %v6811_v58  ;;  %v7006_v6 = vor.u32 %v10304_v59, %v7003_v60  ;;  %v7339_v11 = vld [vmem:[%s16756_s1 + $0x440] sm:$0xf0]  ;;  %v10436_v12 = vld [vmem:[%s16756_s1 + $0x5ac] sm:$0xf] }
  0x87   :  { %2031 = vmatpush.bf16.msra.mxu3 %v7174_v43  ;;  %v7866_v8 = vor.u32 %v10523_v2, %v7865_v29  ;;  %v7054_v43 = vor.u32 %v10316_v35, %v7051_v36  ;;  %v10490_v29 = vld [vmem:[%s16756_s1 + $0x75c] sm:$0xf]  ;;  %v7531_v14 = vld [vmem:[%s16756_s1 + $0x5c0] sm:$0xf0]  ;;  %v10484_v15 = vld [vmem:[%s16756_s1 + $0x72c] sm:$0xf] }
  0x88   :  { %1993 = vmatpush.bf16.msra.mxu0 %v7722_v49  ;;  %v7602_v49 = vor.u32 %v10457_v41, %v7601_v40  ;;  %v7723_v16 = vld [vmem:[%s16756_s1 + $0x740] sm:$0xf0]  ;;  %v10532_v17 = vld [vmem:[%s16756_s1 + $0x8ac] sm:$0xf]  ;;  %v7315_v23 = vld [vmem:[%s16756_s1 + $0x410] sm:$0xf0] }
  0x89   :  { %2006 = vmatpush.bf16.msra.mxu1 %v7914_v50  ;;  %v7577_v50 = vld [vmem:[%s16756_s1 + $0x608] sm:$0xf]  ;;  %v7915_v18 = vld [vmem:[%s16756_s1 + $0x8c0] sm:$0xf0]  ;;  %v10430_v24 = vld [vmem:[%s16756_s1 + $0x57c] sm:$0xf] }
  0x8a   :  { %2019 = vmatpush.bf16.msra.mxu2 %v6958_v51  ;;  %v10451_v51 = vld [vmem:[%s16756_s1 + $0x61c] sm:$0xf0]  ;;  %v7507_v31 = vld [vmem:[%s16756_s1 + $0x590] sm:$0xf0]  ;;  %v10478_v32 = vld [vmem:[%s16756_s1 + $0x6fc] sm:$0xf] }
  0x8b   :  { %2032 = vmatpush.bf16.msra.mxu3 %v7150_v55  ;;  %v10499_v55 = vld [vmem:[%s16756_s1 + $0x79c] sm:$0xf0]  ;;  %v7578_v63 = vor.u32 %v10451_v51, %v7577_v50  ;;  %v7699_v33 = vld [vmem:[%s16756_s1 + $0x710] sm:$0xf0]  ;;  %v10526_v35 = vld [vmem:[%s16756_s1 + $0x87c] sm:$0xf] }
  0x8c   :  { %1994 = vmatpush.bf16.msra.mxu0 %v7698_v61  ;;  %v10394_v61 = vld [vmem:[%s16756_s1 + $0x45c] sm:$0xf]  ;;  %v7770_v2 = vor.u32 %v10499_v55, %v7769_v54  ;;  %v7891_v36 = vld [vmem:[%s16756_s1 + $0x890] sm:$0xf0]  ;;  %v7291_v40 = vld [vmem:[%s16756_s1 + $0x3e0] sm:$0xf0] }
  0x8d   :  { %2007 = vmatpush.bf16.msra.mxu1 %v7890_v62  ;;  %v7363_v62 = vld [vmem:[%s16756_s1 + $0x470] sm:$0xf0]  ;;  %v10472_v41 = vld [vmem:[%s16756_s1 + $0x6cc] sm:$0xf]  ;;  %v7675_v42 = vld [vmem:[%s16756_s1 + $0x6e0] sm:$0xf0] }
  0x8e   :  { %2020 = vmatpush.bf16.msra.mxu2 %v6934_v27  ;;  %v10442_v27 = vld [vmem:[%s16756_s1 + $0x5dc] sm:$0xf]  ;;  %v7867_v44 = vld [vmem:[%s16756_s1 + $0x860] sm:$0xf0]  ;;  %v7678_v47 = vor.u32 %v10472_v41, %v7675_v42  ;;  %v7651_v54 = vld [vmem:[%s16756_s1 + $0x6b0] sm:$0xf0] }
  0x8f   :  { %2033 = vmatpush.bf16.msra.mxu3 %v7126_v1  ;;  %v7747_v1 = vld [vmem:[%s16756_s1 + $0x770] sm:$0xf0]  ;;  %v10370_v48 = vld [vmem:[%s16756_s1 + $0x39c] sm:$0xf]  ;;  %v10364_v58 = vld [vmem:[%s16756_s1 + $0x36c] sm:$0xf] }
  0x90   :  { %1995 = vmatpush.bf16.msra.mxu0 %v7674_v7  ;;  %v7366_v7 = vor.u32 %v10394_v61, %v7363_v62  ;;  %v10418_v50 = vld [vmem:[%s16756_s1 + $0x51c] sm:$0xf]  ;;  %v7843_v56 = vld [vmem:[%s16756_s1 + $0x830] sm:$0xf0]  ;;  %v7243_v61 = vld [vmem:[%s16756_s1 + $0x380] sm:$0xf0] }
  0x91   :  { %2008 = vmatpush.bf16.msra.mxu1 %v7866_v8  ;;  %v7558_v8 = vor.u32 %v10442_v27, %v7555_v0  ;;  %v10514_v55 = vld [vmem:[%s16756_s1 + $0x81c] sm:$0xf]  ;;  %v10412_v62 = vld [vmem:[%s16756_s1 + $0x4ec] sm:$0xf]  ;;  %v7435_v27 = vld [vmem:[%s16756_s1 + $0x500] sm:$0xf0] }
  0x92   :  { %2021 = vmatpush.bf16.msra.mxu2 %v6910_v9  ;;  %v7750_v9 = vor.u32 %v10490_v29, %v7747_v1  ;;  %v10460_v0 = vld [vmem:[%s16756_s1 + $0x66c] sm:$0xf]  ;;  %v7627_v29 = vld [vmem:[%s16756_s1 + $0x680] sm:$0xf0]  ;;  %v10398_v41 = vld [vmem:[%s16756_s1 + $0x474] sm:$0xf0] }
  0x93   :  { %2034 = vmatpush.bf16.msra.mxu3 %v7102_v13  ;;  %v7942_v13 = vor.u32 %v10538_v4, %v7939_v5  ;;  %v12337_v1 = vld [vmem:[%s16757_s2] sm:$0x3f]  ;;  %v7246_v4 = vor.u32 %v10364_v58, %v7243_v61  ;;  %v10358_v5 = vld [vmem:[%s16756_s1 + $0x33c] sm:$0xf]  ;;  %v7345_v58 = vld [vmem:[%s16756_s1 + $0x430] sm:$0xf] }
  0x94   :  { %1996 = vmatpush.bf16.msra.mxu0 %v7650_v19  ;;  %v7342_v19 = vor.u32 %v10388_v10, %v7339_v11  ;;  %v318_v10 = vperm.slane %v12337_v1, 0  ;;  %vm4474_vm0 = vcmask 1041408   ;;  %vm6766_vm5 = vcmask 1040384   ;;  %s6790_s25 = sshll.u32 %s16762_s7, 4  ;;  %s6791_s25 = int_to_ptr.hbm [resolvable:$true] %s6790_s25 }
  0x95   :  { %2009 = vmatpush.bf16.msra.mxu1 %v7842_v20  ;;  %v7534_v20 = vor.u32 %v10436_v12, %v7531_v14  ;;  %v7411_v12 = vld [vmem:[%s16756_s1 + $0x4d0] sm:$0xf0]  ;;  %vm6772_vm6 = vcmask 1043459   ;;  %vm6776_vm7 = vcmask 1044483   ;;  %vm6779_vm8 = vcmask 1042432  }
  0x96   :  { %2022 = vmatpush.bf16.msra.mxu2 %v6886_v21  ;;  %v7726_v21 = vor.u32 %v10484_v15, %v7723_v16  ;;  %v7603_v14 = vld [vmem:[%s16756_s1 + $0x650] sm:$0xf0]  ;;  %v10502_v15 = vld [vmem:[%s16756_s1 + $0x7bc] sm:$0xf] }
  0x97   :  { %2035 = vmatpush.bf16.msra.mxu3 %v7078_v26  ;;  %v7918_v26 = vor.u32 %v10532_v17, %v7915_v18  ;;  %v7795_v16 = vld [vmem:[%s16756_s1 + $0x7d0] sm:$0xf0]  ;;  %v10352_v18 = vld [vmem:[%s16756_s1 + $0x30c] sm:$0xf] }
  0x98   :  { %1997 = vmatpush.bf16.msra.mxu0 %v7626_v37  ;;  %v7318_v37 = vor.u32 %v10382_v22, %v7315_v23  ;;  %v10400_v23 = vld [vmem:[%s16756_s1 + $0x48c] sm:$0xf] }
  0x99   :  { %2010 = vmatpush.bf16.msra.mxu1 %v7818_v38  ;;  %v7510_v38 = vor.u32 %v10430_v24, %v7507_v31  ;;  %v7387_v24 = vld [vmem:[%s16756_s1 + $0x4a0] sm:$0xf0] }
  0x9a   :  { %2023 = vmatpush.bf16.msra.mxu2 %v6862_v39  ;;  %v10376_v39 = vld [vmem:[%s16756_s1 + $0x3cc] sm:$0xf]  ;;  %v7390_v42 = vor.u32 %v10400_v23, %v7387_v24  ;;  %v7105_v23 = vld [vmem:[%s16756_s1 + $0x250] sm:$0xf] }
  0x9b   :  { %2036 = vmatpush.bf16.msra.mxu3 %v7054_v43  ;;  %v10520_v43 = vld [vmem:[%s16756_s1 + $0x84c] sm:$0xf]  ;;  %v7294_v45 = vor.u32 %v10376_v39, %v7291_v40  ;;  %v7177_v39 = vld [vmem:[%s16756_s1 + $0x2e0] sm:$0xf] }
  0x9c   :  { %1998 = vmatpush.bf16.msra.mxu0 %v7602_v49  ;;  %v7267_v49 = vld [vmem:[%s16756_s1 + $0x3b0] sm:$0xf0]  ;;  %v7870_v51 = vor.u32 %v10520_v43, %v7867_v44  ;;  %v7561_v44 = vld [vmem:[%s16756_s1 + $0x5e0] sm:$0xf] }
  0x9d   :  { %2011 = vmatpush.bf16.msra.mxu1 %v7794_v52  ;;  %v7459_v52 = vld [vmem:[%s16756_s1 + $0x530] sm:$0xf0] }
  0x9e   :  { %2024 = vmatpush.bf16.msra.mxu2 %v6838_v53  ;;  %v10466_v53 = vld [vmem:[%s16756_s1 + $0x69c] sm:$0xf]  ;;  %v7462_v59 = vor.u32 %v10418_v50, %v7459_v52 }
  0x9f   :  { %2037 = vmatpush.bf16.msra.mxu3 %v7030_v57  ;;  %v7270_v57 = vor.u32 %v10370_v48, %v7267_v49  ;;  %v7654_v60 = vor.u32 %v10466_v53, %v7651_v54  ;;  %v6961_v53 = vld [vmem:[%s16756_s1 + $0x130] sm:$0xf]  ;;  %v10296_v54 = vld [vmem:[%s16756_s1 + $0x144] sm:$0xf0] }
  0xa0   :  { %1999 = vmatpush.bf16.msra.mxu0 %v7578_v63  ;;  %v7846_v63 = vor.u32 %v10514_v55, %v7843_v56  ;;  %v7153_v55 = vld [vmem:[%s16756_s1 + $0x2b0] sm:$0xf] }
  0xa1   :  { %2012 = vmatpush.bf16.msra.mxu1 %v7770_v2  ;;  %v10508_v2 = vld [vmem:[%s16756_s1 + $0x7ec] sm:$0xf] }
  0xa2   :  { %2025 = vmatpush.bf16.msra.mxu2 %v6814_v3  ;;  %v7819_v3 = vld [vmem:[%s16756_s1 + $0x800] sm:$0xf0] }
  0xa3   :  { %2038 = vmatpush.bf16.msra.mxu3 %v7006_v6  ;;  %2000 = vmatmul.bf16.vlgmr.msra.gmra.mxu0 %v11648_v25  ;;  %v7702_v25 = vor.u32 %v10478_v32, %v7699_v33  ;;  %v7438_v6 = vor.u32 %v10412_v62, %v7435_v27  ;;  %v7822_v11 = vor.u32 %v10508_v2, %v7819_v3  ;;  %v7537_v62 = vld [vmem:[%s16756_s1 + $0x5b0] sm:$0xf]  ;;  %v10440_v27 = vld [vmem:[%s16756_s1 + $0x5c4] sm:$0xf0]  ;;  %v6937_v3 = vld [vmem:[%s16756_s1 + $0x100] sm:$0xf] }
  0xa4   :  { %2044 = vmatpush.bf16.msrb.mxu0 %v7366_v7  ;;  %2013 = vmatmul.bf16.vlgmr.msra.gmra.mxu1 %v11650_v30  ;;  %v7894_v30 = vor.u32 %v10526_v35, %v7891_v36  ;;  %v7630_v7 = vor.u32 %v10460_v0, %v7627_v29  ;;  %v7798_v33 = vor.u32 %v10502_v15, %v7795_v16  ;;  %v7579_v35 = vld [vmem:[%s16756_s1 + $0x620] sm:$0xf0]  ;;  %v10496_v36 = vld [vmem:[%s16756_s1 + $0x78c] sm:$0xf]  ;;  %v12475_v16 = vld [vmem:[#allocation1 + $0x1b] sm:$0xff] }
  0xa5   :  { %2057 = vmatpush.bf16.msrb.mxu1 %v7558_v8  ;;  %2026 = vmatmul.bf16.vlgmr.msra.gmra.mxu2 %v11521_v28  ;;  %v10424_v28 = vld [vmem:[%s16756_s1 + $0x54c] sm:$0xf]  ;;  %v7219_v8 = vld [vmem:[%s16756_s1 + $0x350] sm:$0xf0]  ;;  %v6962_v0 = vor.u32 %v10296_v54, %v6961_v53  ;;  %v10272_v53 = vld [vmem:[%s16756_s1 + $0x84] sm:$0xf0] }
  0xa6   :  { %2070 = vmatpush.bf16.msrb.mxu2 %v7750_v9  ;;  %2039 = vmatmul.bf16.vlgmr.msra.gmra.mxu3 %v11531_v34  ;;  %v7483_v34 = vld [vmem:[%s16756_s1 + $0x560] sm:$0xf0]  ;;  %v10406_v9 = vld [vmem:[%s16756_s1 + $0x4bc] sm:$0xf]  ;;  %v7222_v17 = vor.u32 %v10358_v5, %v7219_v8  ;;  %v7129_v5 = vld [vmem:[%s16756_s1 + $0x280] sm:$0xf] }
  0xa7   :  { %2083 = vmatpush.bf16.msrb.mxu3 %v7942_v13  ;;  %v7486_v46 = vor.u32 %v10424_v28, %v7483_v34  ;;  %v10454_v13 = vld [vmem:[%s16756_s1 + $0x63c] sm:$0xf]  ;;  %v7369_v34 = vld [vmem:[%s16756_s1 + $0x460] sm:$0xf]  ;;  %v10338_v8 = vld [vmem:[%s16756_s1 + $0x294] sm:$0xf0] }
  0xa8   :  { %2045 = vmatpush.bf16.msrb.mxu0 %v7342_v19  ;;  %v7195_v19 = vld [vmem:[%s16756_s1 + $0x320] sm:$0xf0]  ;;  %v7606_v22 = vor.u32 %v10454_v13, %v7603_v14  ;;  %v1806_v32 = vpop.f32.mrf.mxu1  ;;  %v7370_v52 = vor.u32 %v10398_v41, %v7369_v34  ;;  %v7513_v13 = vld [vmem:[%s16756_s1 + $0x580] sm:$0xf]  ;;  %v10434_v14 = vld [vmem:[%s16756_s1 + $0x594] sm:$0xf0] }
  0xa9   :  { %2058 = vmatpush.bf16.msrb.mxu1 %v7534_v20  ;;  %v1793_v20 = vpop.f32.mrf.mxu0  ;;  %v7198_v28 = vor.u32 %v10352_v18, %v7195_v19  ;;  %v7130_v19 = vor.u32 %v10338_v8, %v7129_v5  ;;  %v7514_v24 = vor.u32 %v10434_v14, %v7513_v13  ;;  %v7081_v34 = vld [vmem:[%s16756_s1 + $0x220] sm:$0xf]  ;;  %v7057_v54 = vld [vmem:[%s16756_s1 + $0x1f0] sm:$0xf]  ;;  %v10266_v5 = vld [vmem:[%s16756_s1 + $0x54] sm:$0xf0] }
  0xaa   :  { %2071 = vmatpush.bf16.msrb.mxu2 %v7726_v21  ;;  %v7414_v21 = vor.u32 %v10406_v9, %v7411_v12  ;;  %v1794_v31 = vadd.f32 %v1793_v20, %v318_v10  ;;  %v7321_v9 = vld [vmem:[%s16756_s1 + $0x400] sm:$0xf]  ;;  %v10386_v10 = vld [vmem:[%s16756_s1 + $0x414] sm:$0xf0]  ;;  %v12466_v12 = vld [vmem:[#allocation1 + $0x2d] sm:$0xff] }
  0xab   :  { %2084 = vmatpush.bf16.msrb.mxu3 %v7918_v26  ;;  %v10448_v26 = vld [vmem:[%s16756_s1 + $0x60c] sm:$0xf]  ;;  %v7322_v20 = vor.u32 %v10386_v10, %v7321_v9  ;;  %v10314_v10 = vld [vmem:[%s16756_s1 + $0x1d4] sm:$0xf0]  ;;  %v7225_v13 = vld [vmem:[%s16756_s1 + $0x340] sm:$0xf] }
  0xac   :  { %2046 = vmatpush.bf16.msrb.mxu0 %v7318_v37  ;;  %v7771_v37 = vld [vmem:[%s16756_s1 + $0x7a0] sm:$0xf0]  ;;  %v1807_v40 = vadd.f32 %v1806_v32, %v1794_v31  ;;  %v7582_v43 = vor.u32 %v10448_v26, %v7579_v35  ;;  %v10332_v26 = vld [vmem:[%s16756_s1 + $0x264] sm:$0xf0]  ;;  %v7297_v31 = vld [vmem:[%s16756_s1 + $0x3d0] sm:$0xf] }
  0xad   :  { %2059 = vmatpush.bf16.msrb.mxu1 %v7510_v38  ;;  %v6985_v38 = vld [vmem:[%s16756_s1 + $0x160] sm:$0xf]  ;;  %v1832_v50 = vpop.f32.mrf.mxu3  ;;  %v10380_v32 = vld [vmem:[%s16756_s1 + $0x3e4] sm:$0xf0]  ;;  %v10362_v14 = vld [vmem:[%s16756_s1 + $0x354] sm:$0xf0] }
  0xae   :  { %2072 = vmatpush.bf16.msrb.mxu2 %v7702_v25  ;;  %v10302_v25 = vld [vmem:[%s16756_s1 + $0x174] sm:$0xf0]  ;;  %v10428_v35 = vld [vmem:[%s16756_s1 + $0x564] sm:$0xf0] }
  0xaf   :  { %2085 = vmatpush.bf16.msrb.mxu3 %v7894_v30  ;;  %v10350_v30 = vld [vmem:[%s16756_s1 + $0x2f4] sm:$0xf0]  ;;  %v6986_v48 = vor.u32 %v10302_v25, %v6985_v38 }
  0xb0   :  { %2047 = vmatpush.bf16.msrb.mxu0 %v7294_v45  ;;  %v10446_v45 = vld [vmem:[%s16756_s1 + $0x5f4] sm:$0xf0] }
  0xb1   :  { %2060 = vmatpush.bf16.msrb.mxu1 %v7486_v46  ;;  %v1819_v46 = vpop.f32.mrf.mxu2  ;;  %v7562_v56 = vor.u32 %v10446_v45, %v7561_v44  ;;  %v1795_v61 = vpop.f32.mrf.mxu0  ;;  %v10374_v44 = vld [vmem:[%s16756_s1 + $0x3b4] sm:$0xf0] }
  0xb2   :  { %2073 = vmatpush.bf16.msrb.mxu2 %v7678_v47  ;;  %v7774_v47 = vor.u32 %v10496_v36, %v7771_v37  ;;  %v1820_v49 = vadd.f32 %v1819_v46, %v1807_v40  ;;  %v7298_v40 = vor.u32 %v10380_v32, %v7297_v31  ;;  %v7465_v46 = vld [vmem:[%s16756_s1 + $0x520] sm:$0xf]  ;;  %v10416_v61 = vld [vmem:[%s16756_s1 + $0x504] sm:$0xf0] }
  0xb3   :  { %2086 = vmatpush.bf16.msrb.mxu3 %v7870_v51  ;;  %v7178_v51 = vor.u32 %v10350_v30, %v7177_v39  ;;  %v7106_v39 = vor.u32 %v10332_v26, %v7105_v23  ;;  %v10278_v30 = vld [vmem:[%s16756_s1 + $0xb4] sm:$0xf0]  ;;  %v7009_v23 = vld [vmem:[%s16756_s1 + $0x190] sm:$0xf]  ;;  %v10356_v32 = vld [vmem:[%s16756_s1 + $0x324] sm:$0xf0] }
  0xb4   :  { %2048 = vmatpush.bf16.msrb.mxu0 %v7270_v57  ;;  %v10344_v57 = vld [vmem:[%s16756_s1 + $0x2c4] sm:$0xf0]  ;;  %v7201_v26 = vld [vmem:[%s16756_s1 + $0x310] sm:$0xf] }
  0xb5   :  { %2061 = vmatpush.bf16.msrb.mxu1 %v7462_v59  ;;  %v10392_v59 = vld [vmem:[%s16756_s1 + $0x444] sm:$0xf0]  ;;  %v7154_v29 = vor.u32 %v10344_v57, %v7153_v55  ;;  %v1834_v18 = vpop.f32.mrf.mxu3  ;;  %v7249_v57 = vld [vmem:[%s16756_s1 + $0x370] sm:$0xf] }
  0xb6   :  { %2074 = vmatpush.bf16.msrb.mxu2 %v7654_v60  ;;  %v1833_v60 = vadd.f32 %v1832_v50, %v1820_v49  ;;  %v7346_v2 = vor.u32 %v10392_v59, %v7345_v58  ;;  %v10368_v58 = vld [vmem:[%s16756_s1 + $0x384] sm:$0xf0] }
  0xb7   :  { %2087 = vmatpush.bf16.msrb.mxu3 %v7846_v63  ;;  %v1808_v63 = vpop.f32.mrf.mxu1 }
  0xb8   :  { %2049 = vmatpush.bf16.msrb.mxu0 %v7246_v4  ;;  %v10290_v4 = vld [vmem:[%s16756_s1 + $0x114] sm:$0xf0] }
  0xb9   :  { %2062 = vmatpush.bf16.msrb.mxu1 %v7438_v6  ;;  %v12451_v6 = vld [vmem:[#allocation1 + $0x24] sm:$0xff]  ;;  %v1821_v15 = vpop.f32.mrf.mxu2 }
  0xba   :  { %2075 = vmatpush.bf16.msrb.mxu2 %v7630_v7  ;;  %v7538_v7 = vor.u32 %v10440_v27, %v7537_v62  ;;  %v7417_v15 = vld [vmem:[%s16756_s1 + $0x4c0] sm:$0xf] }
  0xbb   :  { %2088 = vmatpush.bf16.msrb.mxu3 %v7822_v11  ;;  %v12463_v11 = vld [vmem:[#allocation1 + $0x12] sm:$0xff] }
  0xbc   :  { %2050 = vmatpush.bf16.msrb.mxu0 %v7222_v17  ;;  %v6938_v17 = vor.u32 %v10290_v4, %v6937_v3  ;;  %v7250_v3 = vor.u32 %v10368_v58, %v7249_v57  ;;  %v6841_v4 = vld [vmem:[%s16756_s1 + $0x40] sm:$0xf]  ;;  %v10341_v57 = vld [vmem:[%s16756_s1 + $0x2b4] sm:$0xf]  ;;  %v7155_v58 = vld [vmem:[%s16756_s1 + $0x2c8] sm:$0xf0] }
  0xbd   :  { %2063 = vmatpush.bf16.msrb.mxu1 %v7414_v21  ;;  %v6913_v21 = vld [vmem:[%s16756_s1 + $0xd0] sm:$0xf]  ;;  %v6842_v18 = vor.u32 %v10266_v5, %v6841_v4  ;;  %v12669_v4 = vld [vmem:[#allocation1] sm:$0xff] }
  0xbe   :  { %2076 = vmatpush.bf16.msrb.mxu2 %v7606_v22  ;;  %v10284_v22 = vld [vmem:[%s16756_s1 + $0xe4] sm:$0xf0]  ;;  %v10335_v5 = vld [vmem:[%s16756_s1 + $0x284] sm:$0xf] }
  0xbf   :  { %2089 = vmatpush.bf16.msrb.mxu3 %v7798_v33  ;;  %v7489_v33 = vld [vmem:[%s16756_s1 + $0x550] sm:$0xf]  ;;  %v6914_v37 = vor.u32 %v10284_v22, %v6913_v21  ;;  %v7226_v22 = vor.u32 %v10362_v14, %v7225_v13 }
  0xc0   :  { %2051 = vmatpush.bf16.msrb.mxu0 %v7198_v28  ;;  %v1845_v36 = vpop.f32.mrf.mxu0  ;;  %v6889_v28 = vld [vmem:[%s16756_s1 + $0xa0] sm:$0xf]  ;;  %v7490_v41 = vor.u32 %v10428_v35, %v7489_v33  ;;  %v7393_v33 = vld [vmem:[%s16756_s1 + $0x490] sm:$0xf]  ;;  %v10404_v35 = vld [vmem:[%s16756_s1 + $0x4a4] sm:$0xf0] }
  0xc1   :  { %2064 = vmatpush.bf16.msrb.mxu1 %v7390_v42  ;;  %v1846_v38 = vadd.f32 %v1845_v36, %v1833_v60  ;;  %v1858_v25 = vpop.f32.mrf.mxu1  ;;  %v10326_v42 = vld [vmem:[%s16756_s1 + $0x234] sm:$0xf0]  ;;  %v6890_v49 = vor.u32 %v10278_v30, %v6889_v28  ;;  %v7441_v60 = vld [vmem:[%s16756_s1 + $0x4f0] sm:$0xf]  ;;  %v10299_v30 = vld [vmem:[%s16756_s1 + $0x164] sm:$0xf] }
  0xc2   :  { %2077 = vmatpush.bf16.msrb.mxu2 %v7582_v43  ;;  %v7273_v43 = vld [vmem:[%s16756_s1 + $0x3a0] sm:$0xf]  ;;  %v7082_v50 = vor.u32 %v10326_v42, %v7081_v34  ;;  %v7442_v9 = vor.u32 %v10416_v61, %v7441_v60  ;;  %v10542_v28 = vld [vmem:[%s16756_s1 + $0x8f4] sm:$0xf0]  ;;  %v6987_v34 = vld [vmem:[%s16756_s1 + $0x178] sm:$0xf0]  ;;  %v7202_v42 = vor.u32 %v10356_v32, %v7201_v26 }
  0xc3   :  { %2090 = vmatpush.bf16.msrb.mxu3 %v7774_v47  ;;  %2052 = vmatmul.bf16.vlgmr.msrb.gmra.mxu0 %v12463_v11  ;;  %v12520_v45 = vadd.f32 %v1858_v25, %v1846_v38  ;;  %v10422_v47 = vld [vmem:[%s16756_s1 + $0x534] sm:$0xf0]  ;;  %v7945_v25 = vld [vmem:[%s16756_s1 + $0x8e0] sm:$0xf] }
  0xc4   :  { %2096 = vmatpush.bf16.msra.mxu0 %v6986_v48  ;;  %2065 = vmatmul.bf16.vlgmr.msrb.gmra.mxu1 %v12475_v16  ;;  %v319_v48 = vperm.slane %v12337_v1, 1  ;;  %v7466_v55 = vor.u32 %v10422_v47, %v7465_v46  ;;  %v10494_v38 = vld [vmem:[%s16756_s1 + $0x774] sm:$0xf0]  ;;  %v7394_v46 = vor.u32 %v10404_v35, %v7393_v33  ;;  %v7657_v35 = vld [vmem:[%s16756_s1 + $0x6a0] sm:$0xf] }
  0xc5   :  { %2109 = vmatpush.bf16.msra.mxu1 %v7178_v51  ;;  %2078 = vmatmul.bf16.vlgmr.msrb.gmra.mxu2 %v12451_v6  ;;  %v7274_v51 = vor.u32 %v10374_v44, %v7273_v43  ;;  %v10347_v43 = vld [vmem:[%s16756_s1 + $0x2e4] sm:$0xf]  ;;  %v7179_v44 = vld [vmem:[%s16756_s1 + $0x2f8] sm:$0xf0] }
  0xc6   :  { %2122 = vmatpush.bf16.msra.mxu2 %v7370_v52  ;;  %2091 = vmatmul.bf16.vlgmr.msrb.gmra.mxu3 %v12466_v12  ;;  %v6865_v52 = vld [vmem:[%s16756_s1 + $0x70] sm:$0xf] }
  0xc7   :  { %2135 = vmatpush.bf16.msra.mxu3 %v7562_v56  ;;  %v10320_v56 = vld [vmem:[%s16756_s1 + $0x204] sm:$0xf0] }
  0xc8   :  { %2097 = vmatpush.bf16.msra.mxu0 %v6962_v0  ;;  %v1871_v59 = vpop.f32.mrf.mxu2  ;;  %v1847_v63 = vpop.f32.mrf.mxu0  ;;  %v6866_v0 = vor.u32 %v10272_v53, %v6865_v52  ;;  %v7921_v52 = vld [vmem:[%s16756_s1 + $0x8b0] sm:$0xf]  ;;  %v7182_v53 = vor.u32 %v10347_v43, %v7179_v44 }
  0xc9   :  { %2110 = vmatpush.bf16.msra.mxu1 %v7154_v29  ;;  %v1872_v62 = vadd.f32 %v1871_v59, %v319_v48  ;;  %v1884_v27 = vpop.f32.mrf.mxu3  ;;  %v1860_v29 = vpop.f32.mrf.mxu1  ;;  %v7946_v48 = vor.u32 %v10542_v28, %v7945_v25  ;;  %v7897_v63 = vld [vmem:[%s16756_s1 + $0x880] sm:$0xf]  ;;  %v10275_v28 = vld [vmem:[%s16756_s1 + $0xa4] sm:$0xf] }
  0xca   :  { %2123 = vmatpush.bf16.msra.mxu2 %v7346_v2  ;;  %v7058_v2 = vor.u32 %v10320_v56, %v7057_v54  ;;  %v10536_v54 = vld [vmem:[%s16756_s1 + $0x8c4] sm:$0xf0]  ;;  %v6963_v56 = vld [vmem:[%s16756_s1 + $0x148] sm:$0xf0]  ;;  %v10530_v29 = vld [vmem:[%s16756_s1 + $0x894] sm:$0xf0] }
  0xcb   :  { %2136 = vmatpush.bf16.msra.mxu3 %v7538_v7  ;;  %v7033_v7 = vld [vmem:[%s16756_s1 + $0x1c0] sm:$0xf]  ;;  %v12562_v8 = vadd.f32 %v1884_v27, %v1872_v62  ;;  %v7922_v60 = vor.u32 %v10536_v54, %v7921_v52  ;;  %v10482_v27 = vld [vmem:[%s16756_s1 + $0x714] sm:$0xf0]  ;;  %v7898_v13 = vor.u32 %v10530_v29, %v7897_v63  ;;  %v10269_v52 = vld [vmem:[%s16756_s1 + $0x74] sm:$0xf] }
  0xcc   :  { %2098 = vmatpush.bf16.msra.mxu0 %v6938_v17  ;;  %v10410_v17 = vld [vmem:[%s16756_s1 + $0x4d4] sm:$0xf0]  ;;  %v7034_v21 = vor.u32 %v10314_v10, %v7033_v7  ;;  %v7705_v62 = vld [vmem:[%s16756_s1 + $0x700] sm:$0xf]  ;;  %v7131_v7 = vld [vmem:[%s16756_s1 + $0x298] sm:$0xf0] }
  0xcd   :  { %2111 = vmatpush.bf16.msra.mxu1 %v7130_v19  ;;  %v6817_v19 = vld [vmem:[%s16756_s1 + $0x10] sm:$0xf]  ;;  %v7418_v31 = vor.u32 %v10410_v17, %v7417_v15  ;;  %v7706_v10 = vor.u32 %v10482_v27, %v7705_v62  ;;  %v10476_v17 = vld [vmem:[%s16756_s1 + $0x6e4] sm:$0xf0]  ;;  %v7609_v27 = vld [vmem:[%s16756_s1 + $0x640] sm:$0xf] }
  0xce   :  { %2124 = vmatpush.bf16.msra.mxu2 %v7322_v20  ;;  %v10260_v20 = vld [vmem:[%s16756_s1 + $0x24] sm:$0xf0]  ;;  %v7681_v15 = vld [vmem:[%s16756_s1 + $0x6d0] sm:$0xf]  ;;  %v10458_v63 = vld [vmem:[%s16756_s1 + $0x654] sm:$0xf0] }
  0xcf   :  { %2137 = vmatpush.bf16.msra.mxu3 %v7514_v24  ;;  %v10308_v24 = vld [vmem:[%s16756_s1 + $0x1a4] sm:$0xf0]  ;;  %v7682_v26 = vor.u32 %v10476_v17, %v7681_v15  ;;  %v7585_v15 = vld [vmem:[%s16756_s1 + $0x610] sm:$0xf] }
  0xd0   :  { %2099 = vmatpush.bf16.msra.mxu0 %v6914_v37  ;;  %v1873_v36 = vpop.f32.mrf.mxu2  ;;  %v7753_v37 = vld [vmem:[%s16756_s1 + $0x760] sm:$0xf]  ;;  %v10452_v17 = vld [vmem:[%s16756_s1 + $0x624] sm:$0xf0] }
  0xd1   :  { %2112 = vmatpush.bf16.msra.mxu1 %v7106_v39  ;;  %v1886_v39 = vpop.f32.mrf.mxu3  ;;  %v7754_v47 = vor.u32 %v10494_v38, %v7753_v37  ;;  %v10470_v36 = vld [vmem:[%s16756_s1 + $0x6b4] sm:$0xf0]  ;;  %v7849_v37 = vld [vmem:[%s16756_s1 + $0x820] sm:$0xf] }
  0xd2   :  { %2125 = vmatpush.bf16.msra.mxu2 %v7298_v40  ;;  %v6818_v40 = vor.u32 %v10260_v20, %v6817_v19  ;;  %v7134_v19 = vor.u32 %v10335_v5, %v7131_v7  ;;  %v10524_v20 = vld [vmem:[%s16756_s1 + $0x864] sm:$0xf0]  ;;  %v10263_v5 = vld [vmem:[%s16756_s1 + $0x44] sm:$0xf]  ;;  %v6843_v7 = vld [vmem:[%s16756_s1 + $0x58] sm:$0xf0] }
  0xd3   :  { %2138 = vmatpush.bf16.msra.mxu3 %v7490_v41  ;;  %v7010_v41 = vor.u32 %v10308_v24, %v7009_v23  ;;  %v10329_v23 = vld [vmem:[%s16756_s1 + $0x254] sm:$0xf]  ;;  %v7107_v24 = vld [vmem:[%s16756_s1 + $0x268] sm:$0xf0] }
  0xd4   :  { %2100 = vmatpush.bf16.msra.mxu0 %v6890_v49  ;;  %v6990_v49 = vor.u32 %v10299_v30, %v6987_v34  ;;  %v7110_v39 = vor.u32 %v10329_v23, %v7107_v24  ;;  %v6891_v30 = vld [vmem:[%s16756_s1 + $0xb8] sm:$0xf0]  ;;  %v10323_v34 = vld [vmem:[%s16756_s1 + $0x224] sm:$0xf] }
  0xd5   :  { %2113 = vmatpush.bf16.msra.mxu1 %v7082_v50  ;;  %v7729_v50 = vld [vmem:[%s16756_s1 + $0x730] sm:$0xf]  ;;  %v6894_v44 = vor.u32 %v10275_v28, %v6891_v30 }
  0xd6   :  { %2126 = vmatpush.bf16.msra.mxu2 %v7274_v51  ;;  %v10488_v51 = vld [vmem:[%s16756_s1 + $0x744] sm:$0xf0] }
  0xd7   :  { %2139 = vmatpush.bf16.msra.mxu3 %v7466_v55  ;;  %v10293_v55 = vld [vmem:[%s16756_s1 + $0x134] sm:$0xf]  ;;  %v7730_v59 = vor.u32 %v10488_v51, %v7729_v50  ;;  %v10512_v51 = vld [vmem:[%s16756_s1 + $0x804] sm:$0xf0] }
  0xd8   :  { %2101 = vmatpush.bf16.msra.mxu0 %v6866_v0  ;;  %v6966_v61 = vor.u32 %v10293_v55, %v6963_v56  ;;  %v7158_v0 = vor.u32 %v10341_v57, %v7155_v58  ;;  %v10317_v56 = vld [vmem:[%s16756_s1 + $0x1f4] sm:$0xf]  ;;  %v7059_v57 = vld [vmem:[%s16756_s1 + $0x208] sm:$0xf0] }
  0xd9   :  { %2114 = vmatpush.bf16.msra.mxu1 %v7058_v2  ;;  %v10287_v2 = vld [vmem:[%s16756_s1 + $0x104] sm:$0xf] }
  0xda   :  { %2127 = vmatpush.bf16.msra.mxu2 %v7250_v3  ;;  %v6939_v3 = vld [vmem:[%s16756_s1 + $0x118] sm:$0xf0] }
  0xdb   :  { %2140 = vmatpush.bf16.msra.mxu3 %v7442_v9  ;;  %v12678_v9 = vld [vmem:[#allocation1 + $0x9] sm:$0xff]  ;;  %v6942_v14 = vor.u32 %v10287_v2, %v6939_v3  ;;  %v7062_v2 = vor.u32 %v10317_v56, %v7059_v57  ;;  %v10506_v3 = vld [vmem:[%s16756_s1 + $0x7d4] sm:$0xf0] }
  0xdc   :  { %2102 = vmatpush.bf16.msra.mxu0 %v6842_v18  ;;  %v7873_v18 = vld [vmem:[%s16756_s1 + $0x850] sm:$0xf] }
  0xdd   :  { %2115 = vmatpush.bf16.msra.mxu1 %v7034_v21  ;;  %v10281_v21 = vld [vmem:[%s16756_s1 + $0xd4] sm:$0xf]  ;;  %v7874_v32 = vor.u32 %v10524_v20, %v7873_v18  ;;  %v7777_v20 = vld [vmem:[%s16756_s1 + $0x790] sm:$0xf] }
  0xde   :  { %2128 = vmatpush.bf16.msra.mxu2 %v7226_v22  ;;  %v6915_v22 = vld [vmem:[%s16756_s1 + $0xe8] sm:$0xf0] }
  0xdf   :  { %2141 = vmatpush.bf16.msra.mxu3 %v7418_v31  ;;  %v6918_v33 = vor.u32 %v10281_v21, %v6915_v22  ;;  %v10500_v21 = vld [vmem:[%s16756_s1 + $0x7a4] sm:$0xf0]  ;;  %v10257_v22 = vld [vmem:[%s16756_s1 + $0x14] sm:$0xf] }
  0xe0   :  { %2103 = vmatpush.bf16.msra.mxu0 %v6818_v40  ;;  %v1897_v31 = vpop.f32.mrf.mxu0  ;;  %v10518_v40 = vld [vmem:[%s16756_s1 + $0x834] sm:$0xf0]  ;;  %v7778_v28 = vor.u32 %v10500_v21, %v7777_v20 }
  0xe1   :  { %2116 = vmatpush.bf16.msra.mxu1 %v7010_v41  ;;  %v1898_v38 = vadd.f32 %v1897_v31, %v12562_v8  ;;  %v1910_v25 = vpop.f32.mrf.mxu1  ;;  %v7083_v8 = vld [vmem:[%s16756_s1 + $0x238] sm:$0xf0]  ;;  %v7850_v43 = vor.u32 %v10518_v40, %v7849_v37  ;;  %v10305_v31 = vld [vmem:[%s16756_s1 + $0x194] sm:$0xf]  ;;  %v10443_v37 = vld [vmem:[%s16756_s1 + $0x5e4] sm:$0xf] }
  0xe2   :  { %2129 = vmatpush.bf16.msra.mxu2 %v7202_v42  ;;  %v7658_v42 = vor.u32 %v10470_v36, %v7657_v35  ;;  %v7086_v50 = vor.u32 %v10323_v34, %v7083_v8  ;;  %v10395_v35 = vld [vmem:[%s16756_s1 + $0x464] sm:$0xf]  ;;  %v7371_v36 = vld [vmem:[%s16756_s1 + $0x478] sm:$0xf0] }
  0xe3   :  { %2142 = vmatpush.bf16.msra.mxu3 %v7394_v46  ;;  %2104 = vmatmul.bf16.vlgmr.msra.gmra.mxu0 %v12669_v4  ;;  %v1911_v41 = vadd.f32 %v1910_v25, %v1898_v38  ;;  %v7633_v46 = vld [vmem:[%s16756_s1 + $0x670] sm:$0xf]  ;;  %v7586_v38 = vor.u32 %v10452_v17, %v7585_v15  ;;  %v7563_v25 = vld [vmem:[%s16756_s1 + $0x5f8] sm:$0xf0]  ;;  %v10539_v34 = vld [vmem:[%s16756_s1 + $0x8e4] sm:$0xf] }
  0xe4   :  { %2148 = vmatpush.bf16.msrb.mxu0 %v7754_v47  ;;  %2117 = vmatmul.bf16.vlgmr.msra.gmra.mxu1 %v12678_v9  ;;  %v10464_v47 = vld [vmem:[%s16756_s1 + $0x684] sm:$0xf0]  ;;  %v7755_v40 = vld [vmem:[%s16756_s1 + $0x778] sm:$0xf0]  ;;  %v10473_v15 = vld [vmem:[%s16756_s1 + $0x6d4] sm:$0xf] }
  0xe5   :  { %2161 = vmatpush.bf16.msrb.mxu1 %v7946_v48  ;;  %2130 = vmatmul.bf16.vlgmr.msra.gmra.mxu2 %v12463_v11  ;;  %v7825_v48 = vld [vmem:[%s16756_s1 + $0x7f0] sm:$0xf]  ;;  %v7634_v58 = vor.u32 %v10464_v47, %v7633_v46  ;;  %v7947_v8 = vld [vmem:[%s16756_s1 + $0x8f8] sm:$0xf0]  ;;  %v10389_v46 = vld [vmem:[%s16756_s1 + $0x434] sm:$0xf] }
  0xe6   :  { %2174 = vmatpush.bf16.msrb.mxu2 %v6990_v49  ;;  %2143 = vmatmul.bf16.vlgmr.msra.gmra.mxu3 %v12475_v16  ;;  %v7347_v47 = vld [vmem:[%s16756_s1 + $0x448] sm:$0xf0] }
  0xe7   :  { %2187 = vmatpush.bf16.msrb.mxu3 %v7182_v53  ;;  %v6867_v53 = vld [vmem:[%s16756_s1 + $0x88] sm:$0xf0] }
  0xe8   :  { %2149 = vmatpush.bf16.msrb.mxu0 %v7730_v59  ;;  %v1923_v49 = vpop.f32.mrf.mxu2  ;;  %v6870_v62 = vor.u32 %v10269_v52, %v6867_v53  ;;  %v7731_v52 = vld [vmem:[%s16756_s1 + $0x748] sm:$0xf0]  ;;  %v10533_v53 = vld [vmem:[%s16756_s1 + $0x8b4] sm:$0xf] }
  0xe9   :  { %2162 = vmatpush.bf16.msrb.mxu1 %v7922_v60  ;;  %v1924_v54 = vadd.f32 %v1923_v49, %v1911_v41  ;;  %v1936_v55 = vpop.f32.mrf.mxu3  ;;  %v1899_v60 = vpop.f32.mrf.mxu0  ;;  %v7950_v49 = vor.u32 %v10539_v34, %v7947_v8  ;;  %v7683_v17 = vld [vmem:[%s16756_s1 + $0x6e8] sm:$0xf0]  ;;  %v10413_v8 = vld [vmem:[%s16756_s1 + $0x4f4] sm:$0xf] }
  0xea   :  { %2175 = vmatpush.bf16.msrb.mxu2 %v6966_v61  ;;  %v7826_v61 = vor.u32 %v10512_v51, %v7825_v48  ;;  %v1912_v29 = vpop.f32.mrf.mxu1  ;;  %v10437_v48 = vld [vmem:[%s16756_s1 + $0x5b4] sm:$0xf]  ;;  %v7323_v60 = vld [vmem:[%s16756_s1 + $0x418] sm:$0xf0]  ;;  %v7251_v34 = vld [vmem:[%s16756_s1 + $0x388] sm:$0xf0] }
  0xeb   :  { %2188 = vmatpush.bf16.msrb.mxu3 %v7158_v0  ;;  %v12756_v59 = vadd.f32 %v1936_v55, %v1924_v54  ;;  %v7801_v0 = vld [vmem:[%s16756_s1 + $0x7c0] sm:$0xf]  ;;  %v10485_v51 = vld [vmem:[%s16756_s1 + $0x734] sm:$0xf]  ;;  %v7923_v54 = vld [vmem:[%s16756_s1 + $0x8c8] sm:$0xf0]  ;;  %v7350_v55 = vor.u32 %v10389_v46, %v7347_v47 }
  0xec   :  { %2150 = vmatpush.bf16.msrb.mxu0 %v7706_v10  ;;  %v10311_v10 = vld [vmem:[%s16756_s1 + $0x1c4] sm:$0xf]  ;;  %v7802_v18 = vor.u32 %v10506_v3, %v7801_v0  ;;  %v7734_v57 = vor.u32 %v10485_v51, %v7731_v52  ;;  %v7707_v0 = vld [vmem:[%s16756_s1 + $0x718] sm:$0xf0]  ;;  %v7635_v46 = vld [vmem:[%s16756_s1 + $0x688] sm:$0xf0] }
  0xed   :  { %2163 = vmatpush.bf16.msrb.mxu1 %v7898_v13  ;;  %v7035_v13 = vld [vmem:[%s16756_s1 + $0x1d8] sm:$0xf0]  ;;  %v10527_v29 = vld [vmem:[%s16756_s1 + $0x884] sm:$0xf] }
  0xee   :  { %2176 = vmatpush.bf16.msrb.mxu2 %v6942_v14  ;;  %v7610_v14 = vor.u32 %v10458_v63, %v7609_v27  ;;  %v7038_v24 = vor.u32 %v10311_v10, %v7035_v13  ;;  %v7515_v27 = vld [vmem:[%s16756_s1 + $0x598] sm:$0xf0]  ;;  %v10479_v63 = vld [vmem:[%s16756_s1 + $0x704] sm:$0xf]  ;;  %v7299_v10 = vld [vmem:[%s16756_s1 + $0x3e8] sm:$0xf0] }
  0xef   :  { %2189 = vmatpush.bf16.msrb.mxu3 %v7134_v19  ;;  %v6846_v19 = vor.u32 %v10263_v5, %v6843_v7  ;;  %v7710_v7 = vor.u32 %v10479_v63, %v7707_v0  ;;  %v10425_v13 = vld [vmem:[%s16756_s1 + $0x554] sm:$0xf]  ;;  %v7803_v63 = vld [vmem:[%s16756_s1 + $0x7d8] sm:$0xf0] }
  0xf0   :  { %2151 = vmatpush.bf16.msrb.mxu0 %v7682_v26  ;;  %v1925_v23 = vpop.f32.mrf.mxu2  ;;  %v6819_v26 = vld [vmem:[%s16756_s1 + $0x28] sm:$0xf0] }
  0xf1   :  { %2164 = vmatpush.bf16.msrb.mxu1 %v7874_v32  ;;  %v7011_v32 = vld [vmem:[%s16756_s1 + $0x1a8] sm:$0xf0]  ;;  %v6822_v30 = vor.u32 %v10257_v22, %v6819_v26  ;;  %v7686_v23 = vor.u32 %v10473_v15, %v7683_v17  ;;  %v7275_v26 = vld [vmem:[%s16756_s1 + $0x3b8] sm:$0xf0]  ;;  %v10497_v15 = vld [vmem:[%s16756_s1 + $0x794] sm:$0xf] }
  0xf2   :  { %2177 = vmatpush.bf16.msrb.mxu2 %v6918_v33  ;;  %v1938_v33 = vpop.f32.mrf.mxu3  ;;  %v7014_v41 = vor.u32 %v10305_v31, %v7011_v32  ;;  %v10419_v31 = vld [vmem:[%s16756_s1 + $0x524] sm:$0xf]  ;;  %v7779_v17 = vld [vmem:[%s16756_s1 + $0x7a8] sm:$0xf0] }
  0xf3   :  { %2190 = vmatpush.bf16.msrb.mxu3 %v7110_v39  ;;  %v10491_v39 = vld [vmem:[%s16756_s1 + $0x764] sm:$0xf] }
  0xf4   :  { %2152 = vmatpush.bf16.msrb.mxu0 %v7658_v42  ;;  %v7374_v42 = vor.u32 %v10395_v35, %v7371_v36  ;;  %v7467_v35 = vld [vmem:[%s16756_s1 + $0x538] sm:$0xf0]  ;;  %v10467_v36 = vld [vmem:[%s16756_s1 + $0x6a4] sm:$0xf] }
  0xf5   :  { %2165 = vmatpush.bf16.msrb.mxu1 %v7850_v43  ;;  %v7566_v43 = vor.u32 %v10443_v37, %v7563_v25  ;;  %v7659_v37 = vld [vmem:[%s16756_s1 + $0x6b8] sm:$0xf0] }
  0xf6   :  { %2178 = vmatpush.bf16.msrb.mxu2 %v6894_v44  ;;  %v7758_v44 = vor.u32 %v10491_v39, %v7755_v40  ;;  %v7851_v25 = vld [vmem:[%s16756_s1 + $0x838] sm:$0xf0]  ;;  %v7470_v40 = vor.u32 %v10419_v31, %v7467_v35  ;;  %v10684_v31 = vld [vmem:[%s16758_s3 + $0x464] sm:$0xf0] }
  0xf7   :  { %2191 = vmatpush.bf16.msrb.mxu3 %v7086_v50  ;;  %v7539_v50 = vld [vmem:[%s16756_s1 + $0x5c8] sm:$0xf0] }
  0xf8   :  { %2153 = vmatpush.bf16.msrb.mxu0 %v7634_v58  ;;  %v7542_v56 = vor.u32 %v10437_v48, %v7539_v50  ;;  %v10383_v58 = vld [vmem:[%s16756_s1 + $0x404] sm:$0xf]  ;;  %v10509_v48 = vld [vmem:[%s16756_s1 + $0x7f4] sm:$0xf] }
  0xf9   :  { %2166 = vmatpush.bf16.msrb.mxu1 %v7826_v61  ;;  %v10431_v61 = vld [vmem:[%s16756_s1 + $0x584] sm:$0xf]  ;;  %v7326_v3 = vor.u32 %v10383_v58, %v7323_v60  ;;  %v7419_v60 = vld [vmem:[%s16756_s1 + $0x4d8] sm:$0xf0] }
  0xfa   :  { %2179 = vmatpush.bf16.msrb.mxu2 %v6870_v62  ;;  %v7926_v62 = vor.u32 %v10533_v53, %v7923_v54  ;;  %v7518_v5 = vor.u32 %v10431_v61, %v7515_v27  ;;  %v10359_v54 = vld [vmem:[%s16756_s1 + $0x344] sm:$0xf] }
  0xfb   :  { %2192 = vmatpush.bf16.msrb.mxu3 %v7062_v2  ;;  %v7899_v2 = vld [vmem:[%s16756_s1 + $0x898] sm:$0xf0]  ;;  %v10455_v61 = vld [vmem:[%s16756_s1 + $0x644] sm:$0xf] }
  0xfc   :  { %2154 = vmatpush.bf16.msrb.mxu0 %v7610_v14  ;;  %v7902_v14 = vor.u32 %v10527_v29, %v7899_v2  ;;  %v10503_v27 = vld [vmem:[%s16756_s1 + $0x7c4] sm:$0xf]  ;;  %v10353_v29 = vld [vmem:[%s16756_s1 + $0x314] sm:$0xf]  ;;  %v7203_v2 = vld [vmem:[%s16756_s1 + $0x328] sm:$0xf0] }
  0xfd   :  { %2167 = vmatpush.bf16.msrb.mxu1 %v7802_v18  ;;  %v10521_v18 = vld [vmem:[%s16756_s1 + $0x854] sm:$0xf] }
  0xfe   :  { %2180 = vmatpush.bf16.msrb.mxu2 %v6846_v19  ;;  %v7875_v19 = vld [vmem:[%s16756_s1 + $0x868] sm:$0xf0] }
  0xff   :  { %2193 = vmatpush.bf16.msrb.mxu3 %v7038_v24  ;;  %v10371_v24 = vld [vmem:[%s16756_s1 + $0x3a4] sm:$0xf]  ;;  %v7878_v33 = vor.u32 %v10521_v18, %v7875_v19  ;;  %v8121_v19 = vld [vmem:[%s16758_s3 + $0x150] sm:$0xf] }
 0x100   :  { %2155 = vmatpush.bf16.msrb.mxu0 %v7586_v38  ;;  %v12906_v21 = vpop.f32.mrf.mxu0  ;;  %v10515_v38 = vld [vmem:[%s16756_s1 + $0x824] sm:$0xf]  ;;  %v7278_v39 = vor.u32 %v10371_v24, %v7275_v26  ;;  %v10636_v24 = vld [vmem:[%s16758_s3 + $0x2e4] sm:$0xf0]  ;;  %v8505_v26 = vld [vmem:[%s16758_s3 + $0x450] sm:$0xf] }
 0x101   :  { %2168 = vmatpush.bf16.msrb.mxu1 %v7778_v28  ;;  %v12917_v32 = vpop.f32.mrf.mxu1  ;;  %v7662_v28 = vor.u32 %v10467_v36, %v7659_v37  ;;  %v7782_v36 = vor.u32 %v10497_v15, %v7779_v17  ;;  %v8625_v15 = vld [vmem:[%s16758_s3 + $0x540] sm:$0xf]  ;;  %v10714_v17 = vld [vmem:[%s16758_s3 + $0x554] sm:$0xf0] }
 0x102   :  { %2181 = vmatpush.bf16.msrb.mxu2 %v6822_v30  ;;  %v10365_v30 = vld [vmem:[%s16756_s1 + $0x374] sm:$0xf] }
 0x103   :  { %2194 = vmatpush.bf16.msrb.mxu3 %v7014_v41  ;;  %2156 = vmatmul.bf16.vlgmr.msrb.gmra.mxu0 %v12451_v6  ;;  %v7254_v50 = vor.u32 %v10365_v30, %v7251_v34  ;;  %v320_v30 = vperm.slane %v12337_v1, 2  ;;  %v8697_v34 = vld [vmem:[%s16758_s3 + $0x5d0] sm:$0xf]  ;;  %v10678_v1 = vld [vmem:[%s16758_s3 + $0x434] sm:$0xf0] }
 0x104   :  { %2200 = vmatpush.bf16.msra.mxu0 %v7374_v42  ;;  %2169 = vmatmul.bf16.vlgmr.msrb.gmra.mxu1 %v12466_v12  ;;  %v7854_v42 = vor.u32 %v10515_v38, %v7851_v25  ;;  %v8097_v38 = vld [vmem:[%s16758_s3 + $0x120] sm:$0xf]  ;;  %v10582_v25 = vld [vmem:[%s16758_s3 + $0x134] sm:$0xf0] }
 0x105   :  { %2213 = vmatpush.bf16.msra.mxu1 %v7566_v43  ;;  %2182 = vmatmul.bf16.vlgmr.msrb.gmra.mxu2 %v12669_v4  ;;  %v10377_v4 = vld [vmem:[%s16756_s1 + $0x3d4] sm:$0xf]  ;;  %v7443_v43 = vld [vmem:[%s16756_s1 + $0x508] sm:$0xf0] }
 0x106   :  { %2226 = vmatpush.bf16.msra.mxu2 %v7758_v44  ;;  %2195 = vmatmul.bf16.vlgmr.msrb.gmra.mxu3 %v12678_v9  ;;  %v7491_v9 = vld [vmem:[%s16756_s1 + $0x568] sm:$0xf0]  ;;  %v7302_v20 = vor.u32 %v10377_v4, %v7299_v10  ;;  %v10461_v44 = vld [vmem:[%s16756_s1 + $0x674] sm:$0xf]  ;;  %v7446_v52 = vor.u32 %v10413_v8, %v7443_v43  ;;  %v10732_v8 = vld [vmem:[%s16758_s3 + $0x5e4] sm:$0xf0] }
 0x107   :  { %2239 = vmatpush.bf16.msra.mxu3 %v7950_v49  ;;  %v7494_v22 = vor.u32 %v10425_v13, %v7491_v9  ;;  %v7827_v49 = vld [vmem:[%s16756_s1 + $0x808] sm:$0xf0]  ;;  %v7638_v53 = vor.u32 %v10461_v44, %v7635_v46  ;;  %v10449_v10 = vld [vmem:[%s16756_s1 + $0x614] sm:$0xf]  ;;  %v8481_v43 = vld [vmem:[%s16758_s3 + $0x420] sm:$0xf]  ;;  %v8098_v44 = vor.u32 %v10582_v25, %v8097_v38 }
 0x108   :  { %2201 = vmatpush.bf16.msra.mxu0 %v7350_v55  ;;  %v12943_v41 = vpop.f32.mrf.mxu2  ;;  %v1951_v51 = vpop.f32.mrf.mxu0  ;;  %v7227_v55 = vld [vmem:[%s16756_s1 + $0x358] sm:$0xf0]  ;;  %v7830_v58 = vor.u32 %v10509_v48, %v7827_v49  ;;  %v7395_v4 = vld [vmem:[%s16756_s1 + $0x4a8] sm:$0xf0]  ;;  %v8073_v46 = vld [vmem:[%s16758_s3 + $0xf0] sm:$0xf]  ;;  %v8698_v49 = vor.u32 %v10732_v8, %v8697_v34 }
 0x109   :  { %2214 = vmatpush.bf16.msra.mxu1 %v7542_v56  ;;  %v12954_v47 = vpop.f32.mrf.mxu3  ;;  %v10407_v56 = vld [vmem:[%s16756_s1 + $0x4c4] sm:$0xf]  ;;  %v7230_v0 = vor.u32 %v10359_v54, %v7227_v55  ;;  %v7587_v9 = vld [vmem:[%s16756_s1 + $0x628] sm:$0xf0]  ;;  %v10576_v48 = vld [vmem:[%s16758_s3 + $0x104] sm:$0xf0]  ;;  %v8482_v51 = vor.u32 %v10678_v1, %v8481_v43  ;;  %v1950_v55 = vadd.f32 %v12906_v21, %v320_v30 }
 0x10a   :  { %2227 = vmatpush.bf16.msra.mxu2 %v7734_v57  ;;  %v1964_v57 = vpop.f32.mrf.mxu1  ;;  %v7590_v35 = vor.u32 %v10449_v10, %v7587_v9  ;;  %v10726_v54 = vld [vmem:[%s16758_s3 + $0x5b4] sm:$0xf0]  ;;  %v8217_v9 = vld [vmem:[%s16758_s3 + $0x210] sm:$0xf] }
 0x10b   :  { %2240 = vmatpush.bf16.msra.mxu3 %v7926_v62  ;;  %v7611_v62 = vld [vmem:[%s16756_s1 + $0x658] sm:$0xf0]  ;;  %v8457_v57 = vld [vmem:[%s16758_s3 + $0x3f0] sm:$0xf]  ;;  %v10570_v21 = vld [vmem:[%s16758_s3 + $0xd4] sm:$0xf0] }
 0x10c   :  { %2202 = vmatpush.bf16.msra.mxu0 %v7326_v3  ;;  %v7422_v3 = vor.u32 %v10407_v56, %v7419_v60  ;;  %v10624_v56 = vld [vmem:[%s16758_s3 + $0x284] sm:$0xf0]  ;;  %v10606_v25 = vld [vmem:[%s16758_s3 + $0x1f4] sm:$0xf0] }
 0x10d   :  { %2215 = vmatpush.bf16.msra.mxu1 %v7518_v5  ;;  %v7614_v5 = vor.u32 %v10455_v61, %v7611_v62 }
 0x10e   :  { %2228 = vmatpush.bf16.msra.mxu2 %v7710_v7  ;;  %v10401_v7 = vld [vmem:[%s16756_s1 + $0x494] sm:$0xf] }
 0x10f   :  { %2241 = vmatpush.bf16.msra.mxu3 %v7902_v14  ;;  %v7806_v14 = vor.u32 %v10503_v27, %v7803_v63  ;;  %v10720_v27 = vld [vmem:[%s16758_s3 + $0x584] sm:$0xf0]  ;;  %v1963_v63 = vadd.f32 %v12917_v32, %v1950_v55  ;;  %v8025_v32 = vld [vmem:[%s16758_s3 + $0x90] sm:$0xf] }
 0x110   :  { %2203 = vmatpush.bf16.msra.mxu0 %v7302_v20  ;;  %v1977_v13 = vpop.f32.mrf.mxu2  ;;  %v10588_v20 = vld [vmem:[%s16758_s3 + $0x164] sm:$0xf0] }
 0x111   :  { %2216 = vmatpush.bf16.msra.mxu1 %v7494_v22  ;;  %v1990_v18 = vpop.f32.mrf.mxu3  ;;  %v8313_v22 = vld [vmem:[%s16758_s3 + $0x2d0] sm:$0xf]  ;;  %v8122_v37 = vor.u32 %v10588_v20, %v8121_v19  ;;  %v10612_v19 = vld [vmem:[%s16758_s3 + $0x224] sm:$0xf0] }
 0x112   :  { %2229 = vmatpush.bf16.msra.mxu2 %v7686_v23  ;;  %v7206_v23 = vor.u32 %v10353_v29, %v7203_v2  ;;  %v8433_v29 = vld [vmem:[%s16758_s3 + $0x3c0] sm:$0xf]  ;;  %v10666_v2 = vld [vmem:[%s16758_s3 + $0x3d4] sm:$0xf0]  ;;  %v1976_v18 = vadd.f32 %v12943_v41, %v1963_v63  ;;  %v8409_v20 = vld [vmem:[%s16758_s3 + $0x390] sm:$0xf] }
 0x113   :  { %2242 = vmatpush.bf16.msra.mxu3 %v7878_v33  ;;  %v7398_v33 = vor.u32 %v10401_v7, %v7395_v4  ;;  %v10564_v7 = vld [vmem:[%s16758_s3 + $0xa4] sm:$0xf0]  ;;  %v10558_v41 = vld [vmem:[%s16758_s3 + $0x74] sm:$0xf0]  ;;  %v10585_v63 = vld [vmem:[%s16758_s3 + $0x154] sm:$0xf] }
 0x114   :  { %2204 = vmatpush.bf16.msra.mxu0 %v7278_v39  ;;  %v8289_v39 = vld [vmem:[%s16758_s3 + $0x2a0] sm:$0xf]  ;;  %v1989_v38 = vadd.f32 %v12954_v47, %v1976_v18  ;;  %v7977_v47 = vld [vmem:[%s16758_s3 + $0x30] sm:$0xf] }
 0x115   :  { %2217 = vmatpush.bf16.msra.mxu1 %v7470_v40  ;;  %v8314_v40 = vor.u32 %v10636_v24, %v8313_v22  ;;  %v10660_v22 = vld [vmem:[%s16758_s3 + $0x3a4] sm:$0xf0]  ;;  %v8001_v24 = vld [vmem:[%s16758_s3 + $0x60] sm:$0xf] }
 0x116   :  { %2230 = vmatpush.bf16.msra.mxu2 %v7662_v28  ;;  %v8506_v28 = vor.u32 %v10684_v31, %v8505_v26  ;;  %v8626_v26 = vor.u32 %v10714_v17, %v8625_v15  ;;  %v8218_v31 = vor.u32 %v10612_v19, %v8217_v9  ;;  %v8002_v8 = vor.u32 %v10558_v41, %v8001_v24  ;;  %v10579_v9 = vld [vmem:[%s16758_s3 + $0x124] sm:$0xf]  ;;  %v8315_v24 = vld [vmem:[%s16758_s3 + $0x2e8] sm:$0xf0]  ;;  %v8865_v41 = vld [vmem:[%s16758_s3 + $0x720] sm:$0xf] }
 0x117   :  { %2243 = vmatpush.bf16.msra.mxu3 %v7854_v42  ;;  %v10630_v42 = vld [vmem:[%s16758_s3 + $0x2b4] sm:$0xf0]  ;;  %v13232_v18 = vld [vmem:[%s16757_s2] sm:$0x3f] }
 0x118   :  { %2205 = vmatpush.bf16.msra.mxu0 %v7254_v50  ;;  %v8290_v50 = vor.u32 %v10630_v42, %v8289_v39  ;;  %v8385_v39 = vld [vmem:[%s16758_s3 + $0x360] sm:$0xf]  ;;  %v10552_v42 = vld [vmem:[%s16758_s3 + $0x44] sm:$0xf0]  ;;  %v321_v19 = vperm.slane %v13232_v18, 3 }
 0x119   :  { %2218 = vmatpush.bf16.msra.mxu1 %v7446_v52  ;;  %v8265_v52 = vld [vmem:[%s16758_s3 + $0x270] sm:$0xf]  ;;  %v7978_v55 = vor.u32 %v10552_v42, %v7977_v47  ;;  %v10768_v42 = vld [vmem:[%s16758_s3 + $0x704] sm:$0xf0] }
 0x11a   :  { %2231 = vmatpush.bf16.msra.mxu2 %v7638_v53  ;;  %v8673_v53 = vld [vmem:[%s16758_s3 + $0x5a0] sm:$0xf]  ;;  %v8266_v61 = vor.u32 %v10624_v56, %v8265_v52  ;;  %v10600_v52 = vld [vmem:[%s16758_s3 + $0x1c4] sm:$0xf0] }
 0x11b   :  { %2244 = vmatpush.bf16.msra.mxu3 %v7830_v58  ;;  %v10672_v58 = vld [vmem:[%s16758_s3 + $0x404] sm:$0xf0]  ;;  %v8674_v60 = vor.u32 %v10726_v54, %v8673_v53  ;;  %v8361_v53 = vld [vmem:[%s16758_s3 + $0x330] sm:$0xf]  ;;  %v7953_v56 = vld [vmem:[%s16758_s3] sm:$0xf] }
 0x11c   :  { %2206 = vmatpush.bf16.msra.mxu0 %v7230_v0  ;;  %v8458_v62 = vor.u32 %v10672_v58, %v8457_v57  ;;  %v10618_v0 = vld [vmem:[%s16758_s3 + $0x254] sm:$0xf0]  ;;  %v10648_v54 = vld [vmem:[%s16758_s3 + $0x344] sm:$0xf0]  ;;  %v8145_v58 = vld [vmem:[%s16758_s3 + $0x180] sm:$0xf] }
 0x11d   :  { %2219 = vmatpush.bf16.msra.mxu1 %v7422_v3  ;;  %v10546_v57 = vld [vmem:[%s16758_s3 + $0x14] sm:$0xf0] }
 0x11e   :  { %2232 = vmatpush.bf16.msra.mxu2 %v7614_v5 }
 0x11f   :  { %2245 = vmatpush.bf16.msra.mxu3 %v7806_v14  ;;  %v8434_v14 = vor.u32 %v10666_v2, %v8433_v29  ;;  %v8123_v29 = vld [vmem:[%s16758_s3 + $0x168] sm:$0xf0] }
 0x120   :  { %2207 = vmatpush.bf16.msra.mxu0 %v7206_v23  ;;  %v2001_v3 = vpop.f32.mrf.mxu0  ;;  %v8026_v23 = vor.u32 %v10564_v7, %v8025_v32  ;;  %v7954_v32 = vor.u32 %v10546_v57, %v7953_v56  ;;  %v8126_v17 = vor.u32 %v10585_v63, %v8123_v29  ;;  %v8003_v29 = vld [vmem:[%s16758_s3 + $0x78] sm:$0xf0] }
 0x121   :  { %2220 = vmatpush.bf16.msra.mxu1 %v7398_v33  ;;  %v13113_v10 = vpop.f32.mrf.mxu1  ;;  %v8410_v33 = vor.u32 %v10660_v22, %v8409_v20  ;;  %v8099_v22 = vld [vmem:[%s16758_s3 + $0x138] sm:$0xf0] }
 0x122   :  { %2233 = vmatpush.bf16.msra.mxu2 %v7590_v35  ;;  %v8193_v35 = vld [vmem:[%s16758_s3 + $0x1e0] sm:$0xf] }
 0x123   :  { %2246 = vmatpush.bf16.msra.mxu3 %v7782_v36  ;;  %2208 = vmatmul.bf16.vlgmr.msra.gmra.mxu0 %v12463_v11  ;;  %v8074_v11 = vor.u32 %v10576_v48, %v8073_v46  ;;  %v8601_v36 = vld [vmem:[%s16758_s3 + $0x510] sm:$0xf] }
 0x124   :  { %4006 = vmatpush.bf16.msrb.mxu0 %v8122_v37  ;;  %2221 = vmatmul.bf16.vlgmr.msra.gmra.mxu1 %v12475_v16  ;;  %v8049_v16 = vld [vmem:[%s16758_s3 + $0xc0] sm:$0xf]  ;;  %v10708_v37 = vld [vmem:[%s16758_s3 + $0x524] sm:$0xf0]  ;;  %v8169_v48 = vld [vmem:[%s16758_s3 + $0x1b0] sm:$0xf] }
 0x125   :  { %4019 = vmatpush.bf16.msrb.mxu1 %v8314_v40  ;;  %2234 = vmatmul.bf16.vlgmr.msra.gmra.mxu2 %v12451_v6  ;;  %v8241_v6 = vld [vmem:[%s16758_s3 + $0x240] sm:$0xf]  ;;  %v8050_v5 = vor.u32 %v10570_v21, %v8049_v16  ;;  %v10654_v40 = vld [vmem:[%s16758_s3 + $0x374] sm:$0xf0]  ;;  %v8602_v43 = vor.u32 %v10708_v37, %v8601_v36  ;;  %v8170_v16 = vor.u32 %v10600_v52, %v8169_v48  ;;  %v8051_v48 = vld [vmem:[%s16758_s3 + $0xd8] sm:$0xf0] }
 0x126   :  { %4032 = vmatpush.bf16.msrb.mxu2 %v8506_v28  ;;  %2247 = vmatmul.bf16.vlgmr.msra.gmra.mxu3 %v12466_v12  ;;  %v8649_v12 = vld [vmem:[%s16758_s3 + $0x570] sm:$0xf]  ;;  %v8242_v13 = vor.u32 %v10618_v0, %v8241_v6  ;;  %v8386_v46 = vor.u32 %v10654_v40, %v8385_v39  ;;  %v8362_v21 = vor.u32 %v10648_v54, %v8361_v53  ;;  %v8075_v40 = vld [vmem:[%s16758_s3 + $0x108] sm:$0xf0]  ;;  %v8817_v52 = vld [vmem:[%s16758_s3 + $0x6c0] sm:$0xf] }
 0x127   :  { %4045 = vmatpush.bf16.msrb.mxu3 %v8698_v49  ;;  %v8650_v4 = vor.u32 %v10720_v27, %v8649_v12  ;;  %v8577_v49 = vld [vmem:[%s16758_s3 + $0x4e0] sm:$0xf]  ;;  %v10642_v27 = vld [vmem:[%s16758_s3 + $0x314] sm:$0xf0]  ;;  %v8102_v37 = vor.u32 %v10579_v9, %v8099_v22  ;;  %v10549_v9 = vld [vmem:[%s16758_s3 + $0x34] sm:$0xf] }
 0x128   :  { %4007 = vmatpush.bf16.msrb.mxu0 %v8098_v44  ;;  %v13159_v28 = vpop.f32.mrf.mxu2  ;;  %v2003_v34 = vpop.f32.mrf.mxu0  ;;  %v8194_v44 = vor.u32 %v10606_v25, %v8193_v35  ;;  %v8337_v12 = vld [vmem:[%s16758_s3 + $0x300] sm:$0xf] }
 0x129   :  { %4020 = vmatpush.bf16.msrb.mxu1 %v8290_v50  ;;  %v13161_v30 = vpop.f32.mrf.mxu3  ;;  %v2016_v1 = vpop.f32.mrf.mxu1  ;;  %v10702_v50 = vld [vmem:[%s16758_s3 + $0x4f4] sm:$0xf0]  ;;  %v2028_v39 = vadd.f32 %v13159_v28, %v321_v19  ;;  %v10627_v34 = vld [vmem:[%s16758_s3 + $0x2a4] sm:$0xf]  ;;  %v8841_v28 = vld [vmem:[%s16758_s3 + $0x6f0] sm:$0xf] }
 0x12a   :  { %4033 = vmatpush.bf16.msrb.mxu2 %v8482_v51  ;;  %v2002_v51 = vadd.f32 %v2001_v3, %v1989_v38  ;;  %v8889_v3 = vld [vmem:[%s16758_s3 + $0x750] sm:$0xf]  ;;  %v10573_v38 = vld [vmem:[%s16758_s3 + $0xf4] sm:$0xf]  ;;  %v10567_v1 = vld [vmem:[%s16758_s3 + $0xc4] sm:$0xf] }
 0x12b   :  { %4046 = vmatpush.bf16.msrb.mxu3 %v8674_v60  ;;  %v10594_v60 = vld [vmem:[%s16758_s3 + $0x194] sm:$0xf0]  ;;  %v8054_v53 = vor.u32 %v10567_v1, %v8051_v48  ;;  %v7979_v19 = vld [vmem:[%s16758_s3 + $0x48] sm:$0xf0] }
 0x12c   :  { %4008 = vmatpush.bf16.msrb.mxu0 %v8074_v11  ;;  %v8578_v11 = vor.u32 %v10702_v50, %v8577_v49  ;;  %v2015_v6 = vadd.f32 %v13113_v10, %v2002_v51  ;;  %v2253_v10 = vmax.f32 %v12756_v59, 0.0  ;;  %v10690_v59 = vld [vmem:[%s16758_s3 + $0x494] sm:$0xf0]  ;;  %v10621_v49 = vld [vmem:[%s16758_s3 + $0x274] sm:$0xf]  ;;  %v8842_v51 = vor.u32 %v10768_v42, %v8841_v28 }
 0x12d   :  { %4021 = vmatpush.bf16.msrb.mxu1 %v8266_v61  ;;  %v8553_v61 = vld [vmem:[%s16758_s3 + $0x4b0] sm:$0xf]  ;;  %v8267_v50 = vld [vmem:[%s16758_s3 + $0x288] sm:$0xf0]  ;;  %v10738_v48 = vld [vmem:[%s16758_s3 + $0x614] sm:$0xf0] }
 0x12e   :  { %4034 = vmatpush.bf16.msrb.mxu2 %v8458_v62  ;;  %v10696_v62 = vld [vmem:[%s16758_s3 + $0x4c4] sm:$0xf0]  ;;  %v2254_v15 = vmax.f32 %v2015_v6, 0.0  ;;  %v8270_v56 = vor.u32 %v10621_v49, %v8267_v50  ;;  %v8891_v1 = vld [vmem:[%s16758_s3 + $0x768] sm:$0xf0] }
 0x12f   :  { %4047 = vmatpush.bf16.msrb.mxu3 %v8650_v4  ;;  %v8554_v7 = vor.u32 %v10696_v62, %v8553_v61  ;;  %v2252_v4 = vmax.f32 %v12520_v45, 0.0  ;;  %v8529_v45 = vld [vmem:[%s16758_s3 + $0x480] sm:$0xf]  ;;  %v8793_v61 = vld [vmem:[%s16758_s3 + $0x690] sm:$0xf] }
 0x130   :  { %4009 = vmatpush.bf16.msrb.mxu0 %v8050_v5  ;;  %v2029_v0 = vpop.f32.mrf.mxu2  ;;  %v10780_v5 = vld [vmem:[%s16758_s3 + $0x764] sm:$0xf0]  ;;  %v8530_v35 = vor.u32 %v10690_v59, %v8529_v45  ;;  %v13260_v36 = vpack.c.bf16 %v2254_v15, %v2254_v15  ;;  %v10603_v45 = vld [vmem:[%s16758_s3 + $0x1e4] sm:$0xf]  ;;  %v8195_v59 = vld [vmem:[%s16758_s3 + $0x1f8] sm:$0xf0] }
 0x131   :  { %4022 = vmatpush.bf16.msrb.mxu1 %v8242_v13  ;;  %v2042_v2 = vpop.f32.mrf.mxu3  ;;  %v8146_v13 = vor.u32 %v10594_v60, %v8145_v58  ;;  %v8890_v20 = vor.u32 %v10780_v5, %v8889_v3  ;;  %v10756_v62 = vld [vmem:[%s16758_s3 + $0x6a4] sm:$0xf0]  ;;  %v8219_v3 = vld [vmem:[%s16758_s3 + $0x228] sm:$0xf0]  ;;  %v10681_v49 = vld [vmem:[%s16758_s3 + $0x454] sm:$0xf] }
 0x132   :  { %4035 = vmatpush.bf16.msrb.mxu2 %v8434_v14  ;;  %v8338_v14 = vor.u32 %v10642_v27, %v8337_v12  ;;  %v10555_v27 = vld [vmem:[%s16758_s3 + $0x64] sm:$0xf]  ;;  %v10609_v2 = vld [vmem:[%s16758_s3 + $0x214] sm:$0xf]  ;;  %v8794_v5 = vor.u32 %v10756_v62, %v8793_v61  ;;  %v8507_v50 = vld [vmem:[%s16758_s3 + $0x468] sm:$0xf0] }
 0x133   :  { %4048 = vmatpush.bf16.msrb.mxu3 %v8626_v26  ;;  %v10774_v26 = vld [vmem:[%s16758_s3 + $0x734] sm:$0xf0]  ;;  %v8222_v15 = vor.u32 %v10609_v2, %v8219_v3  ;;  %v9083_v61 = vld [vmem:[%s16758_s3 + $0x8e8] sm:$0xf0]  ;;  %v10675_v62 = vld [vmem:[%s16758_s3 + $0x424] sm:$0xf] }
 0x134   :  { %4010 = vmatpush.bf16.msrb.mxu0 %v8026_v23  ;;  %v10633_v23 = vld [vmem:[%s16758_s3 + $0x2d4] sm:$0xf]  ;;  %v8866_v47 = vor.u32 %v10774_v26, %v8865_v41  ;;  %v10744_v41 = vld [vmem:[%s16758_s3 + $0x644] sm:$0xf0]  ;;  %v10543_v26 = vld [vmem:[%s16758_s3 + $0x4] sm:$0xf] }
 0x135   :  { %4023 = vmatpush.bf16.msrb.mxu1 %v8218_v31  ;;  %v13256_v31 = vpack.c.bf16 %v2252_v4, %v2252_v4  ;;  %v8318_v25 = vor.u32 %v10633_v23, %v8315_v24  ;;  %v8769_v4 = vld [vmem:[%s16758_s3 + $0x660] sm:$0xf]  ;;  %v8745_v24 = vld [vmem:[%s16758_s3 + $0x630] sm:$0xf] }
 0x136   :  { %4036 = vmatpush.bf16.msrb.mxu2 %v8410_v33  ;;  %v13258_v33 = vpack.c.bf16 %v2253_v10, %v2253_v10  ;;  %v10750_v10 = vld [vmem:[%s16758_s3 + $0x674] sm:$0xf0]  ;;  %v8746_v42 = vor.u32 %v10744_v41, %v8745_v24  ;;  %v10663_v24 = vld [vmem:[%s16758_s3 + $0x3c4] sm:$0xf]  ;;  %v8435_v41 = vld [vmem:[%s16758_s3 + $0x3d8] sm:$0xf0] }
 0x137   :  { %4049 = vmatpush.bf16.msrb.mxu3 %v8602_v43  ;;  %v8078_v43 = vor.u32 %v10573_v38, %v8075_v40  ;;  %v7955_v38 = vld [vmem:[%s16758_s3 + $0x18] sm:$0xf0]  ;;  %v10828_v40 = vld [vmem:[%s16758_s3 + $0x8e4] sm:$0xf0] }
 0x138   :  { %4011 = vmatpush.bf16.msrb.mxu0 %v8002_v8  ;;  %v8291_v8 = vld [vmem:[%s16758_s3 + $0x2b8] sm:$0xf0] }
 0x139   :  { %4024 = vmatpush.bf16.msrb.mxu1 %v8194_v44  ;;  %v8294_v44 = vor.u32 %v10627_v34, %v8291_v8  ;;  %v10777_v34 = vld [vmem:[%s16758_s3 + $0x754] sm:$0xf] }
 0x13a   :  { %4037 = vmatpush.bf16.msrb.mxu2 %v8386_v46  ;;  %v2041_v46 = vadd.f32 %v13161_v30, %v2028_v39  ;;  %v10762_v30 = vld [vmem:[%s16758_s3 + $0x6d4] sm:$0xf0]  ;;  %v9081_v39 = vld [vmem:[%s16758_s3 + $0x8d0] sm:$0xf]  ;;  %v10597_v8 = vld [vmem:[%s16758_s3 + $0x1b4] sm:$0xf] }
 0x13b   :  { %4050 = vmatpush.bf16.msrb.mxu3 %v8578_v11  ;;  %v8027_v11 = vld [vmem:[%s16758_s3 + $0xa8] sm:$0xf0]  ;;  %v8818_v60 = vor.u32 %v10762_v30, %v8817_v52  ;;  %v9057_v30 = vld [vmem:[%s16758_s3 + $0x8a0] sm:$0xf] }
 0x13c   :  { %4012 = vmatpush.bf16.msrb.mxu0 %v7978_v55  ;;  %v10561_v55 = vld [vmem:[%s16758_s3 + $0x94] sm:$0xf] }
 0x13d   :  { %4025 = vmatpush.bf16.msrb.mxu1 %v8170_v16  ;;  %v10615_v16 = vld [vmem:[%s16758_s3 + $0x244] sm:$0xf]  ;;  %v8030_v12 = vor.u32 %v10561_v55, %v8027_v11 }
 0x13e   :  { %4038 = vmatpush.bf16.msrb.mxu2 %v8362_v21  ;;  %v8243_v21 = vld [vmem:[%s16758_s3 + $0x258] sm:$0xf0]  ;;  %v10771_v55 = vld [vmem:[%s16758_s3 + $0x724] sm:$0xf] }
 0x13f   :  { %4051 = vmatpush.bf16.msrb.mxu3 %v8554_v7  ;;  %v8246_v63 = vor.u32 %v10615_v16, %v8243_v21  ;;  %v8867_v16 = vld [vmem:[%s16758_s3 + $0x738] sm:$0xf0]  ;;  %v8510_v21 = vor.u32 %v10681_v49, %v8507_v50  ;;  %v10747_v50 = vld [vmem:[%s16758_s3 + $0x664] sm:$0xf] }
 0x140   :  { %4013 = vmatpush.bf16.msrb.mxu0 %v7954_v32  ;;  %v2053_v54 = vpop.f32.mrf.mxu0 }
 0x141   :  { %4026 = vmatpush.bf16.msrb.mxu1 %v8146_v13  ;;  %v2054_v57 = vadd.f32 %v2053_v54, %v2041_v46  ;;  %v2066_v58 = vpop.f32.mrf.mxu1  ;;  %v8721_v46 = vld [vmem:[%s16758_s3 + $0x600] sm:$0xf]  ;;  %v8894_v54 = vor.u32 %v10777_v34, %v8891_v1  ;;  %v10657_v1 = vld [vmem:[%s16758_s3 + $0x394] sm:$0xf] }
 0x142   :  { %4039 = vmatpush.bf16.msrb.mxu2 %v8338_v14  ;;  %v8006_v14 = vor.u32 %v10555_v27, %v8003_v29  ;;  %v9033_v27 = vld [vmem:[%s16758_s3 + $0x870] sm:$0xf]  ;;  %v10765_v29 = vld [vmem:[%s16758_s3 + $0x6f4] sm:$0xf] }
 0x143   :  { %4014 = vmatmul.bf16.vlgmr.msrb.gmra.mxu0 %v13256_v31  ;;  %4052 = vmatpush.bf16.msrb.mxu3 %v8530_v35  ;;  %v2067_v6 = vadd.f32 %v2066_v58, %v2054_v57  ;;  %v8147_v57 = vld [vmem:[%s16758_s3 + $0x198] sm:$0xf0]  ;;  %v8722_v58 = vor.u32 %v10738_v48, %v8721_v46  ;;  %v8961_v46 = vld [vmem:[%s16758_s3 + $0x7e0] sm:$0xf]  ;;  %v10798_v48 = vld [vmem:[%s16758_s3 + $0x7f4] sm:$0xf0] }
 0x144   :  { %4058 = vmatpush.bf16.msra.mxu0 %v8890_v20  ;;  %4027 = vmatmul.bf16.vlgmr.msrb.gmra.mxu1 %v13258_v33  ;;  %v8770_v20 = vor.u32 %v10750_v10, %v8769_v4  ;;  %v9059_v4 = vld [vmem:[%s16758_s3 + $0x8b8] sm:$0xf0]  ;;  %v10669_v10 = vld [vmem:[%s16758_s3 + $0x3f4] sm:$0xf] }
 0x145   :  { %4040 = vmatmul.bf16.vlgmr.msrb.gmra.mxu2 %v13260_v36 }
 0x146   :  { %4084 = vmatpush.bf16.msra.mxu2 %v8126_v17 }
 0x147   :  { %4097 = vmatpush.bf16.msra.mxu3 %v8318_v25  ;;  %v8198_v25 = vor.u32 %v10603_v45, %v8195_v59  ;;  %v8819_v59 = vld [vmem:[%s16758_s3 + $0x6d8] sm:$0xf0] }
 0x148   :  { %4059 = vmatpush.bf16.msra.mxu0 %v8866_v47  ;;  %v2079_v0 = vpop.f32.mrf.mxu2  ;;  %v2055_v17 = vpop.f32.mrf.mxu0  ;;  %v8171_v47 = vld [vmem:[%s16758_s3 + $0x1c8] sm:$0xf0] }
 0x149   :  { %v2080_v32 = vadd.f32 %v2079_v0, %v2067_v6  ;;  %v2092_v7 = vpop.f32.mrf.mxu3  ;;  %v2068_v22 = vpop.f32.mrf.mxu1  ;;  %v8174_v52 = vor.u32 %v10597_v8, %v8171_v47  ;;  %v8483_v6 = vld [vmem:[%s16758_s3 + $0x438] sm:$0xf0]  ;;  %v8870_v0 = vor.u32 %v10771_v55, %v8867_v16  ;;  %v10759_v17 = vld [vmem:[%s16758_s3 + $0x6c4] sm:$0xf]  ;;  %v8795_v8 = vld [vmem:[%s16758_s3 + $0x6a8] sm:$0xf0] }
 0x14a   :  { %4085 = vmatpush.bf16.msra.mxu2 %v8102_v37  ;;  %v7982_v37 = vor.u32 %v10549_v9, %v7979_v19  ;;  %v10810_v9 = vld [vmem:[%s16758_s3 + $0x854] sm:$0xf0]  ;;  %v10813_v22 = vld [vmem:[%s16758_s3 + $0x874] sm:$0xf]  ;;  %v8987_v55 = vld [vmem:[%s16758_s3 + $0x828] sm:$0xf0] }
 0x14b   :  { %4098 = vmatpush.bf16.msra.mxu3 %v8294_v44  ;;  %v2093_v13 = vadd.f32 %v2092_v7, %v2080_v32  ;;  %v8486_v32 = vor.u32 %v10675_v62, %v8483_v6  ;;  %v10819_v7 = vld [vmem:[%s16758_s3 + $0x8a4] sm:$0xf]  ;;  %v10792_v16 = vld [vmem:[%s16758_s3 + $0x7c4] sm:$0xf0] }
 0x14c   :  { %4060 = vmatpush.bf16.msra.mxu0 %v8842_v51  ;;  %v7958_v51 = vor.u32 %v10543_v26, %v7955_v38  ;;  %v9062_v19 = vor.u32 %v10819_v7, %v9059_v4  ;;  %v8985_v26 = vld [vmem:[%s16758_s3 + $0x810] sm:$0xf]  ;;  %v8822_v38 = vor.u32 %v10759_v17, %v8819_v59  ;;  %v10735_v7 = vld [vmem:[%s16758_s3 + $0x604] sm:$0xf]  ;;  %v8913_v4 = vld [vmem:[%s16758_s3 + $0x780] sm:$0xf] }
 0x14d   :  { %v2255_v23 = vmax.f32 %v2093_v13, 0.0  ;;  %v8459_v13 = vld [vmem:[%s16758_s3 + $0x408] sm:$0xf0]  ;;  %v10729_v17 = vld [vmem:[%s16758_s3 + $0x5d4] sm:$0xf] }
 0x14e   :  { %4086 = vmatpush.bf16.msra.mxu2 %v8078_v43  ;;  %v9082_v43 = vor.u32 %v10828_v40, %v9081_v39 }
 0x14f   :  { %4099 = vmatpush.bf16.msra.mxu3 %v8270_v56  ;;  %v13360_v35 = vpack.c.bf16 %v2255_v23, %v2255_v23  ;;  %v10591_v56 = vld [vmem:[%s16758_s3 + $0x184] sm:$0xf]  ;;  %v9035_v23 = vld [vmem:[%s16758_s3 + $0x888] sm:$0xf0] }
 0x150   :  { %4061 = vmatpush.bf16.msra.mxu0 %v8818_v60  ;;  %v2081_v28 = vpop.f32.mrf.mxu2  ;;  %4071 = vmatpush.bf16.msra.mxu1 %v9082_v43  ;;  %v10825_v60 = vld [vmem:[%s16758_s3 + $0x8d4] sm:$0xf]  ;;  %v9038_v40 = vor.u32 %v10813_v22, %v9035_v23  ;;  %v9011_v43 = vld [vmem:[%s16758_s3 + $0x858] sm:$0xf0]  ;;  %v8939_v22 = vld [vmem:[%s16758_s3 + $0x7c8] sm:$0xf0] }
 0x151   :  { %4053 = vmatmul.bf16.vlgmr.msrb.gmra.mxu3 %v13360_v35  ;;  %v2094_v44 = vpop.f32.mrf.mxu3  ;;  %v9086_v2 = vor.u32 %v10825_v60, %v9083_v61  ;;  %v8438_v28 = vor.u32 %v10663_v24, %v8435_v41  ;;  %v10741_v60 = vld [vmem:[%s16758_s3 + $0x634] sm:$0xf]  ;;  %v10685_v24 = vld [vmem:[%s16758_s3 + $0x46c] sm:$0xf0]  ;;  %v10639_v41 = vld [vmem:[%s16758_s3 + $0x304] sm:$0xf] }
 0x152   :  { %4087 = vmatpush.bf16.msra.mxu2 %v8054_v53  ;;  %v10822_v53 = vld [vmem:[%s16758_s3 + $0x8b4] sm:$0xf0]  ;;  %v8411_v44 = vld [vmem:[%s16758_s3 + $0x3a8] sm:$0xf0] }
 0x153   :  { %4100 = vmatpush.bf16.msra.mxu3 %v8246_v63  ;;  %v9058_v11 = vor.u32 %v10822_v53, %v9057_v30  ;;  %v10816_v63 = vld [vmem:[%s16758_s3 + $0x884] sm:$0xf0]  ;;  %v8771_v30 = vld [vmem:[%s16758_s3 + $0x678] sm:$0xf0]  ;;  %v8414_v53 = vor.u32 %v10657_v1, %v8411_v44  ;;  %v10783_v1 = vld [vmem:[%s16758_s3 + $0x784] sm:$0xf] }
 0x154   :  { %4062 = vmatpush.bf16.msra.mxu0 %v8794_v5  ;;  %v9034_v3 = vor.u32 %v10816_v63, %v9033_v27  ;;  %v8843_v5 = vld [vmem:[%s16758_s3 + $0x708] sm:$0xf0]  ;;  %v8915_v44 = vld [vmem:[%s16758_s3 + $0x798] sm:$0xf0] }
 0x155   :  { %4072 = vmatpush.bf16.msra.mxu1 %v9058_v11  ;;  %v8937_v11 = vld [vmem:[%s16758_s3 + $0x7b0] sm:$0xf]  ;;  %v8747_v27 = vld [vmem:[%s16758_s3 + $0x648] sm:$0xf0] }
 0x156   :  { %4088 = vmatpush.bf16.msra.mxu2 %v8030_v12  ;;  %v8150_v12 = vor.u32 %v10591_v56, %v8147_v57  ;;  %v10651_v56 = vld [vmem:[%s16758_s3 + $0x364] sm:$0xf]  ;;  %v8387_v57 = vld [vmem:[%s16758_s3 + $0x378] sm:$0xf0] }
 0x157   :  { %4101 = vmatpush.bf16.msra.mxu3 %v8222_v15  ;;  %v8846_v15 = vor.u32 %v10765_v29, %v8843_v5  ;;  %v10795_v29 = vld [vmem:[%s16758_s3 + $0x7e4] sm:$0xf]  ;;  %v10645_v5 = vld [vmem:[%s16758_s3 + $0x334] sm:$0xf] }
 0x158   :  { %4063 = vmatpush.bf16.msra.mxu0 %v8770_v20  ;;  %v8462_v20 = vor.u32 %v10669_v10, %v8459_v13  ;;  %v10786_v10 = vld [vmem:[%s16758_s3 + $0x794] sm:$0xf0]  ;;  %v8750_v13 = vor.u32 %v10741_v60, %v8747_v27  ;;  %v10711_v60 = vld [vmem:[%s16758_s3 + $0x544] sm:$0xf] }
 0x159   :  { %4073 = vmatpush.bf16.msra.mxu1 %v9034_v3  ;;  %v322_v3 = vperm.slane %v13232_v18, 4 }
 0x15a   :  { %4089 = vmatpush.bf16.msra.mxu2 %v8006_v14  ;;  %v9009_v14 = vld [vmem:[%s16758_s3 + $0x840] sm:$0xf] }
 0x15b   :  { %4102 = vmatpush.bf16.msra.mxu3 %v8198_v25  ;;  %v9010_v45 = vor.u32 %v10810_v9, %v9009_v14  ;;  %v10753_v25 = vld [vmem:[%s16758_s3 + $0x694] sm:$0xf]  ;;  %v8723_v14 = vld [vmem:[%s16758_s3 + $0x618] sm:$0xf0] }
 0x15c   :  { %4064 = vmatpush.bf16.msra.mxu0 %v8746_v42  ;;  %v10807_v42 = vld [vmem:[%s16758_s3 + $0x844] sm:$0xf]  ;;  %v8798_v49 = vor.u32 %v10753_v25, %v8795_v8  ;;  %v8726_v25 = vor.u32 %v10735_v7, %v8723_v14  ;;  %v8417_v7 = vld [vmem:[%s16758_s3 + $0x398] sm:$0xf]  ;;  %v8633_v14 = vld [vmem:[%s16758_s3 + $0x548] sm:$0xf] }
 0x15d   :  { %4074 = vmatpush.bf16.msra.mxu1 %v9010_v45  ;;  %v8513_v45 = vld [vmem:[%s16758_s3 + $0x458] sm:$0xf]  ;;  %v10723_v8 = vld [vmem:[%s16758_s3 + $0x5a4] sm:$0xf] }
 0x15e   :  { %4090 = vmatpush.bf16.msra.mxu2 %v7982_v37  ;;  %v10804_v37 = vld [vmem:[%s16758_s3 + $0x824] sm:$0xf0] }
 0x15f   :  { %4103 = vmatpush.bf16.msra.mxu3 %v8174_v52  ;;  %v8986_v34 = vor.u32 %v10804_v37, %v8985_v26  ;;  %v8962_v52 = vor.u32 %v10798_v48, %v8961_v46  ;;  %v8339_v26 = vld [vmem:[%s16758_s3 + $0x318] sm:$0xf0]  ;;  %v10679_v48 = vld [vmem:[%s16758_s3 + $0x43c] sm:$0xf0] }
 0x160   :  { %4065 = vmatpush.bf16.msra.mxu0 %v8722_v58  ;;  %v13484_v39 = vpop.f32.mrf.mxu0 }
 0x161   :  { %v13490_v47 = vpop.f32.mrf.mxu1  ;;  %4075 = vmatpush.bf16.msra.mxu1 %v8986_v34  ;;  %v2106_v37 = vadd.f32 %v13484_v39, %v322_v3  ;;  %v8489_v39 = vld [vmem:[%s16758_s3 + $0x428] sm:$0xf]  ;;  %v10705_v3 = vld [vmem:[%s16758_s3 + $0x514] sm:$0xf] }
 0x162   :  { %4091 = vmatpush.bf16.msra.mxu2 %v7958_v51  ;;  %v9014_v51 = vor.u32 %v10807_v42, %v9011_v43  ;;  %v8514_v42 = vor.u32 %v10685_v24, %v8513_v45  ;;  %v8342_v43 = vor.u32 %v10639_v41, %v8339_v26  ;;  %v10699_v45 = vld [vmem:[%s16758_s3 + $0x4e4] sm:$0xf]  ;;  %v8393_v24 = vld [vmem:[%s16758_s3 + $0x368] sm:$0xf] }
 0x163   :  { %4104 = vmatpush.bf16.msra.mxu3 %v8150_v12  ;;  %v8938_v12 = vor.u32 %v10792_v16, %v8937_v11  ;;  %v8681_v11 = vld [vmem:[%s16758_s3 + $0x5a8] sm:$0xf]  ;;  %v10727_v16 = vld [vmem:[%s16758_s3 + $0x5bc] sm:$0xf0] }
 0x164   :  { %4110 = vmatpush.bf16.msrb.mxu0 %v8510_v21  ;;  %v8774_v21 = vor.u32 %v10747_v50, %v8771_v30  ;;  %v10733_v50 = vld [vmem:[%s16758_s3 + $0x5ec] sm:$0xf0]  ;;  %v10717_v30 = vld [vmem:[%s16758_s3 + $0x574] sm:$0xf]  ;;  %v8682_v27 = vor.u32 %v10727_v16, %v8681_v11  ;;  %v8081_v11 = vld [vmem:[%s16758_s3 + $0xf8] sm:$0xf] }
 0x165   :  { %4092 = vmatmul.bf16.vlgmr.msra.gmra.mxu2 %v13256_v31  ;;  %4076 = vmatpush.bf16.msra.mxu1 %v8962_v52  ;;  %v8918_v52 = vor.u32 %v10783_v1, %v8915_v44  ;;  %v10583_v1 = vld [vmem:[%s16758_s3 + $0x13c] sm:$0xf0]  ;;  %v8369_v44 = vld [vmem:[%s16758_s3 + $0x338] sm:$0xf]  ;;  %v10577_v16 = vld [vmem:[%s16758_s3 + $0x10c] sm:$0xf0] }
 0x166   :  { %4136 = vmatpush.bf16.msrb.mxu2 %v8894_v54  ;;  %4105 = vmatmul.bf16.vlgmr.msra.gmra.mxu3 %v13258_v33  ;;  %v10801_v54 = vld [vmem:[%s16758_s3 + $0x814] sm:$0xf] }
 0x167   :  { %4149 = vmatpush.bf16.msrb.mxu3 %v9086_v2  ;;  %v8990_v6 = vor.u32 %v10801_v54, %v8987_v55  ;;  %v8963_v2 = vld [vmem:[%s16758_s3 + $0x7f8] sm:$0xf0]  ;;  %v8490_v54 = vor.u32 %v10679_v48, %v8489_v39  ;;  %v8465_v55 = vld [vmem:[%s16758_s3 + $0x3f8] sm:$0xf]  ;;  %v8555_v48 = vld [vmem:[%s16758_s3 + $0x4c8] sm:$0xf0] }
 0x168   :  { %4111 = vmatpush.bf16.msrb.mxu0 %v8486_v32  ;;  %v13528_v58 = vpop.f32.mrf.mxu2  ;;  %v2107_v61 = vpop.f32.mrf.mxu0  ;;  %v8363_v32 = vld [vmem:[%s16758_s3 + $0x348] sm:$0xf0]  ;;  %v8966_v9 = vor.u32 %v10795_v29, %v8963_v2  ;;  %v10721_v29 = vld [vmem:[%s16758_s3 + $0x58c] sm:$0xf0] }
 0x169   :  { %v13539_v62 = vpop.f32.mrf.mxu3  ;;  %v2120_v63 = vpop.f32.mrf.mxu1  ;;  %4077 = vmatpush.bf16.msra.mxu1 %v8938_v12  ;;  %v8366_v59 = vor.u32 %v10645_v5, %v8363_v32  ;;  %v8627_v61 = vld [vmem:[%s16758_s3 + $0x558] sm:$0xf0]  ;;  %v8441_v12 = vld [vmem:[%s16758_s3 + $0x3c8] sm:$0xf]  ;;  %v8603_v5 = vld [vmem:[%s16758_s3 + $0x528] sm:$0xf0] }
 0x16a   :  { %4137 = vmatpush.bf16.msrb.mxu2 %v8870_v0  ;;  %v8390_v0 = vor.u32 %v10651_v56, %v8387_v57  ;;  %v10673_v57 = vld [vmem:[%s16758_s3 + $0x40c] sm:$0xf0]  ;;  %v8630_v63 = vor.u32 %v10711_v60, %v8627_v61 }
 0x16b   :  { %4150 = vmatpush.bf16.msrb.mxu3 %v9062_v19  ;;  %v8699_v19 = vld [vmem:[%s16758_s3 + $0x5e8] sm:$0xf0] }
 0x16c   :  { %4112 = vmatpush.bf16.msrb.mxu0 %v8462_v20  ;;  %v10789_v20 = vld [vmem:[%s16758_s3 + $0x7b4] sm:$0xf]  ;;  %v8702_v23 = vor.u32 %v10729_v17, %v8699_v19 }
 0x16d   :  { %v8942_v34 = vor.u32 %v10789_v20, %v8939_v22  ;;  %v8129_v22 = vld [vmem:[%s16758_s3 + $0x158] sm:$0xf] }
 0x16e   :  { %4138 = vmatpush.bf16.msrb.mxu2 %v8846_v15  ;;  %v8914_v15 = vor.u32 %v10786_v10, %v8913_v4  ;;  %v10661_v4 = vld [vmem:[%s16758_s3 + $0x3ac] sm:$0xf0]  ;;  %v8606_v10 = vor.u32 %v10705_v3, %v8603_v5  ;;  %v8057_v3 = vld [vmem:[%s16758_s3 + $0xc8] sm:$0xf]  ;;  %v10571_v5 = vld [vmem:[%s16758_s3 + $0xdc] sm:$0xf0] }
 0x16f   :  { %4151 = vmatpush.bf16.msrb.mxu3 %v9038_v40  ;;  %v8418_v19 = vor.u32 %v10661_v4, %v8417_v7 }
 0x170   :  { %4113 = vmatpush.bf16.msrb.mxu0 %v8438_v28  ;;  %4078 = vmatpush.bf16.msra.mxu1 %v8914_v15  ;;  %v8675_v28 = vld [vmem:[%s16758_s3 + $0x5b8] sm:$0xf0] }
 0x171   :  { %v2146_v40 = vpop.f32.mrf.mxu3  ;;  %v8678_v46 = vor.u32 %v10723_v8, %v8675_v28  ;;  %v8105_v8 = vld [vmem:[%s16758_s3 + $0x128] sm:$0xf]  ;;  %v10693_v28 = vld [vmem:[%s16758_s3 + $0x4b4] sm:$0xf] }
 0x172   :  { %4139 = vmatpush.bf16.msrb.mxu2 %v8822_v38  ;;  %v2133_v38 = vpop.f32.mrf.mxu2 }
 0x173   :  { %4152 = vmatpush.bf16.msrb.mxu3 %v9014_v51  ;;  %v2119_v51 = vadd.f32 %v13490_v47, %v2106_v37  ;;  %v10655_v37 = vld [vmem:[%s16758_s3 + $0x37c] sm:$0xf0]  ;;  %v8609_v38 = vld [vmem:[%s16758_s3 + $0x518] sm:$0xf] }
 0x174   :  { %4114 = vmatpush.bf16.msrb.mxu0 %v8414_v53  ;;  %4123 = vmatpush.bf16.msrb.mxu1 %v8702_v23  ;;  %v8651_v53 = vld [vmem:[%s16758_s3 + $0x588] sm:$0xf0]  ;;  %v10589_v23 = vld [vmem:[%s16758_s3 + $0x16c] sm:$0xf0]  ;;  %v8394_v39 = vor.u32 %v10655_v37, %v8393_v24  ;;  %v8009_v24 = vld [vmem:[%s16758_s3 + $0x68] sm:$0xf] }
 0x175   :  { %v8654_v56 = vor.u32 %v10717_v30, %v8651_v53  ;;  %v10703_v30 = vld [vmem:[%s16758_s3 + $0x4fc] sm:$0xf0]  ;;  %v8558_v53 = vor.u32 %v10693_v28, %v8555_v48  ;;  %v8059_v37 = vld [vmem:[%s16758_s3 + $0xe0] sm:$0xf0]  ;;  %v10562_v28 = vld [vmem:[%s16758_s3 + $0x9c] sm:$0xf] }
 0x176   :  { %4140 = vmatpush.bf16.msrb.mxu2 %v8798_v49  ;;  %v8705_v49 = vld [vmem:[%s16758_s3 + $0x5d8] sm:$0xf]  ;;  %v7961_v48 = vld [vmem:[%s16758_s3 + $0x8] sm:$0xf] }
 0x177   :  { %4153 = vmatpush.bf16.msrb.mxu3 %v8990_v6  ;;  %v8706_v47 = vor.u32 %v10733_v50, %v8705_v49  ;;  %v8466_v6 = vor.u32 %v10673_v57, %v8465_v55  ;;  %v10649_v50 = vld [vmem:[%s16758_s3 + $0x34c] sm:$0xf0]  ;;  %v8106_v55 = vor.u32 %v10583_v1, %v8105_v8 }
 0x178   :  { %4115 = vmatpush.bf16.msrb.mxu0 %v8390_v0  ;;  %4124 = vmatpush.bf16.msrb.mxu1 %v8678_v46  ;;  %v8657_v0 = vld [vmem:[%s16758_s3 + $0x578] sm:$0xf]  ;;  %v8370_v57 = vor.u32 %v10649_v50, %v8369_v44  ;;  %v10547_v50 = vld [vmem:[%s16758_s3 + $0x1c] sm:$0xf0] }
 0x17a   :  { %4141 = vmatpush.bf16.msrb.mxu2 %v8774_v21  ;;  %v2132_v21 = vadd.f32 %v13528_v58, %v2119_v51  ;;  %v10667_v58 = vld [vmem:[%s16758_s3 + $0x3dc] sm:$0xf0] }
 0x17b   :  { %4154 = vmatpush.bf16.msrb.mxu3 %v8966_v9  ;;  %v8442_v32 = vor.u32 %v10667_v58, %v8441_v12  ;;  %v10715_v9 = vld [vmem:[%s16758_s3 + $0x55c] sm:$0xf0]  ;;  %v8561_v12 = vld [vmem:[%s16758_s3 + $0x4b8] sm:$0xf]  ;;  %v8131_v58 = vld [vmem:[%s16758_s3 + $0x170] sm:$0xf0] }
 0x17c   :  { %4116 = vmatpush.bf16.msrb.mxu0 %v8366_v59  ;;  %4125 = vmatpush.bf16.msrb.mxu1 %v8654_v56  ;;  %v2145_v2 = vadd.f32 %v13539_v62, %v2132_v21  ;;  %v8658_v62 = vor.u32 %v10721_v29, %v8657_v0  ;;  %v8579_v59 = vld [vmem:[%s16758_s3 + $0x4f8] sm:$0xf0]  ;;  %v8634_v41 = vor.u32 %v10715_v9, %v8633_v14  ;;  %v8345_v21 = vld [vmem:[%s16758_s3 + $0x308] sm:$0xf]  ;;  %v8107_v14 = vld [vmem:[%s16758_s3 + $0x140] sm:$0xf0] }
 0x17d   :  { %v8582_v26 = vor.u32 %v10699_v45, %v8579_v59  ;;  %v8531_v56 = vld [vmem:[%s16758_s3 + $0x498] sm:$0xf0]  ;;  %v8082_v0 = vor.u32 %v10577_v16, %v8081_v11  ;;  %v8058_v9 = vor.u32 %v10571_v5, %v8057_v3  ;;  %v8873_v11 = vld [vmem:[%s16758_s3 + $0x728] sm:$0xf]  ;;  %v10775_v16 = vld [vmem:[%s16758_s3 + $0x73c] sm:$0xf0] }
 0x17e   :  { %4142 = vmatpush.bf16.msrb.mxu2 %v8750_v13  ;;  %v10574_v59 = vld [vmem:[%s16758_s3 + $0xfc] sm:$0xf] }
 0x17f   :  { %4155 = vmatpush.bf16.msrb.mxu3 %v8942_v34  ;;  %v8130_v34 = vor.u32 %v10589_v23, %v8129_v22  ;;  %v323_v22 = vperm.slane %v13232_v18, 5  ;;  %v10568_v18 = vld [vmem:[%s16758_s3 + $0xcc] sm:$0xf]  ;;  %v10634_v5 = vld [vmem:[%s16758_s3 + $0x2dc] sm:$0xf] }
 0x180   :  { %4117 = vmatpush.bf16.msrb.mxu0 %v8342_v43  ;;  %4126 = vmatpush.bf16.msrb.mxu1 %v8630_v63  ;;  %v2157_v13 = vpop.f32.mrf.mxu0  ;;  %v10586_v63 = vld [vmem:[%s16758_s3 + $0x15c] sm:$0xf]  ;;  %v8062_v8 = vor.u32 %v10568_v18, %v8059_v37  ;;  %v8825_v37 = vld [vmem:[%s16758_s3 + $0x6c8] sm:$0xf] }
 0x181   :  { %v2158_v15 = vadd.f32 %v2157_v13, %v2145_v2  ;;  %v2170_v17 = vpop.f32.mrf.mxu1  ;;  %v8134_v7 = vor.u32 %v10586_v63, %v8131_v58  ;;  %v10580_v13 = vld [vmem:[%s16758_s3 + $0x12c] sm:$0xf]  ;;  %v8874_v58 = vor.u32 %v10775_v16, %v8873_v11  ;;  %v8777_v16 = vld [vmem:[%s16758_s3 + $0x668] sm:$0xf] }
 0x182   :  { %4143 = vmatpush.bf16.msrb.mxu2 %v8726_v25  ;;  %v10709_v25 = vld [vmem:[%s16758_s3 + $0x52c] sm:$0xf0]  ;;  %v8110_v45 = vor.u32 %v10580_v13, %v8107_v14  ;;  %v10778_v14 = vld [vmem:[%s16758_s3 + $0x75c] sm:$0xf] }
 0x183   :  { %4156 = vmatpush.bf16.msrb.mxu3 %v8918_v52  ;;  %v2171_v20 = vadd.f32 %v2170_v17, %v2158_v15  ;;  %v8610_v46 = vor.u32 %v10709_v25, %v8609_v38  ;;  %v8585_v52 = vld [vmem:[%s16758_s3 + $0x4e8] sm:$0xf]  ;;  %v8033_v15 = vld [vmem:[%s16758_s3 + $0x98] sm:$0xf]  ;;  %v10565_v17 = vld [vmem:[%s16758_s3 + $0xac] sm:$0xf0] }
 0x184   :  { %4127 = vmatpush.bf16.msrb.mxu1 %v8606_v10  ;;  %v8586_v60 = vor.u32 %v10703_v30, %v8585_v52  ;;  %v10691_v10 = vld [vmem:[%s16758_s3 + $0x49c] sm:$0xf0]  ;;  %v8034_v23 = vor.u32 %v10565_v17, %v8033_v15  ;;  %v8897_v30 = vld [vmem:[%s16758_s3 + $0x758] sm:$0xf] }
 0x185   :  { %v2256_v40 = vmax.f32 %v2171_v20, 0.0  ;;  %v8083_v20 = vld [vmem:[%s16758_s3 + $0x110] sm:$0xf0] }
 0x186   :  { %4188 = vmatpush.bf16.msra.mxu2 %v8514_v42 }
 0x187   :  { %4201 = vmatpush.bf16.msra.mxu3 %v8706_v47  ;;  %v13705_v42 = vpack.c.bf16 %v2256_v40, %v2256_v40  ;;  %v10687_v47 = vld [vmem:[%s16758_s3 + $0x484] sm:$0xf]  ;;  %v7985_v40 = vld [vmem:[%s16758_s3 + $0x38] sm:$0xf] }
 0x188   :  { %4128 = vmatpush.bf16.msrb.mxu1 %v8582_v26  ;;  %v13707_v43 = vpop.f32.mrf.mxu2  ;;  %v2159_v51 = vpop.f32.mrf.mxu0  ;;  %v8534_v61 = vor.u32 %v10687_v47, %v8531_v56  ;;  %v8086_v26 = vor.u32 %v10574_v59, %v8083_v20 }
 0x189   :  { %v13718_v49 = vpop.f32.mrf.mxu3  ;;  %4066 = vmatmul.bf16.vlgmr.msra.gmra.mxu0 %v13705_v42  ;;  %4144 = vmatmul.bf16.vlgmr.msrb.gmra.mxu2 %v13705_v42  ;;  %v2184_v38 = vadd.f32 %v13707_v43, %v323_v22  ;;  %v10631_v22 = vld [vmem:[%s16758_s3 + $0x2bc] sm:$0xf0] }
 0x18a   :  { %4189 = vmatpush.bf16.msra.mxu2 %v8490_v54  ;;  %v2172_v54 = vpop.f32.mrf.mxu1  ;;  %4162 = vmatpush.bf16.msra.mxu0 %v8130_v34  ;;  %v10553_v34 = vld [vmem:[%s16758_s3 + $0x4c] sm:$0xf0] }
 0x18b   :  { %4202 = vmatpush.bf16.msra.mxu3 %v8682_v27  ;;  %v10697_v27 = vld [vmem:[%s16758_s3 + $0x4cc] sm:$0xf0]  ;;  %v2197_v43 = vadd.f32 %v13718_v49, %v2184_v38  ;;  %v8011_v54 = vld [vmem:[%s16758_s3 + $0x80] sm:$0xf0]  ;;  %v10763_v38 = vld [vmem:[%s16758_s3 + $0x6dc] sm:$0xf0] }
 0x18c   :  { %4129 = vmatpush.bf16.msrb.mxu1 %v8558_v53  ;;  %v10781_v49 = vld [vmem:[%s16758_s3 + $0x76c] sm:$0xf0]  ;;  %v10556_v53 = vld [vmem:[%s16758_s3 + $0x6c] sm:$0xf] }
 0x18d   :  { %v8898_v47 = vor.u32 %v10781_v49, %v8897_v30 }
 0x18e   :  { %4190 = vmatpush.bf16.msra.mxu2 %v8466_v6  ;;  %v10643_v6 = vld [vmem:[%s16758_s3 + $0x31c] sm:$0xf0]  ;;  %4163 = vmatpush.bf16.msra.mxu0 %v8106_v55  ;;  %v7962_v55 = vor.u32 %v10547_v50, %v7961_v48  ;;  %v8801_v48 = vld [vmem:[%s16758_s3 + $0x698] sm:$0xf]  ;;  %v10757_v50 = vld [vmem:[%s16758_s3 + $0x6ac] sm:$0xf0] }
 0x18f   :  { %4203 = vmatpush.bf16.msra.mxu3 %v8658_v62  ;;  %v8346_v29 = vor.u32 %v10643_v6, %v8345_v21  ;;  %v8537_v62 = vld [vmem:[%s16758_s3 + $0x488] sm:$0xf]  ;;  %v7987_v6 = vld [vmem:[%s16758_s3 + $0x50] sm:$0xf0] }
 0x190   :  { %4130 = vmatpush.bf16.msrb.mxu1 %v8534_v61  ;;  %v2185_v2 = vpop.f32.mrf.mxu2  ;;  %v10550_v61 = vld [vmem:[%s16758_s3 + $0x3c] sm:$0xf] }
 0x191   :  { %v2198_v4 = vpop.f32.mrf.mxu3  ;;  %v7990_v3 = vor.u32 %v10550_v61, %v7987_v6  ;;  %v8827_v61 = vld [vmem:[%s16758_s3 + $0x6e0] sm:$0xf0] }
 0x192   :  { %4191 = vmatpush.bf16.msra.mxu2 %v8442_v32  ;;  %v8562_v32 = vor.u32 %v10697_v27, %v8561_v12  ;;  %4164 = vmatpush.bf16.msra.mxu0 %v8082_v0  ;;  %v8321_v0 = vld [vmem:[%s16758_s3 + $0x2d8] sm:$0xf]  ;;  %v10769_v4 = vld [vmem:[%s16758_s3 + $0x70c] sm:$0xf0] }
 0x193   :  { %4204 = vmatpush.bf16.msra.mxu3 %v8634_v41  ;;  %v10559_v41 = vld [vmem:[%s16758_s3 + $0x7c] sm:$0xf0] }
 0x194   :  { %v8010_v25 = vor.u32 %v10559_v41, %v8009_v24  ;;  %v8299_v24 = vld [vmem:[%s16758_s3 + $0x2c0] sm:$0xf0] }
 0x196   :  { %4192 = vmatpush.bf16.msra.mxu2 %v8418_v19  ;;  %v8538_v19 = vor.u32 %v10691_v10, %v8537_v62  ;;  %4165 = vmatpush.bf16.msra.mxu0 %v8058_v9  ;;  %v10544_v62 = vld [vmem:[%s16758_s3 + $0xc] sm:$0xf]  ;;  %v7963_v10 = vld [vmem:[%s16758_s3 + $0x20] sm:$0xf0]  ;;  %v8899_v9 = vld [vmem:[%s16758_s3 + $0x770] sm:$0xf0] }
 0x197   :  { %4205 = vmatpush.bf16.msra.mxu3 %v8610_v46  ;;  %v7986_v46 = vor.u32 %v10553_v34, %v7985_v40  ;;  %v7966_v20 = vor.u32 %v10544_v62, %v7963_v10  ;;  %v8902_v18 = vor.u32 %v10778_v14, %v8899_v9  ;;  %v8875_v40 = vld [vmem:[%s16758_s3 + $0x740] sm:$0xf0]  ;;  %v8201_v14 = vld [vmem:[%s16758_s3 + $0x1e8] sm:$0xf] }
 0x199   :  { %4118 = vmatmul.bf16.vlgmr.msrb.gmra.mxu0 %v13260_v36 }
 0x19a   :  { %4193 = vmatpush.bf16.msra.mxu2 %v8394_v39  ;;  %4166 = vmatpush.bf16.msra.mxu0 %v8034_v23  ;;  %v8035_v39 = vld [vmem:[%s16758_s3 + $0xb0] sm:$0xf0]  ;;  %v10628_v23 = vld [vmem:[%s16758_s3 + $0x2ac] sm:$0xf] }
 0x19b   :  { %4206 = vmatpush.bf16.msra.mxu3 %v8586_v60  ;;  %v8038_v52 = vor.u32 %v10562_v28, %v8035_v39  ;;  %v8273_v28 = vld [vmem:[%s16758_s3 + $0x278] sm:$0xf]  ;;  %v8826_v39 = vor.u32 %v10763_v38, %v8825_v37  ;;  %v10748_v37 = vld [vmem:[%s16758_s3 + $0x66c] sm:$0xf]  ;;  %v8779_v38 = vld [vmem:[%s16758_s3 + $0x680] sm:$0xf0] }
 0x19e   :  { %4194 = vmatpush.bf16.msra.mxu2 %v8370_v57  ;;  %4167 = vmatpush.bf16.msra.mxu0 %v8010_v25  ;;  %v8014_v57 = vor.u32 %v10556_v53, %v8011_v54  ;;  %v10772_v25 = vld [vmem:[%s16758_s3 + $0x72c] sm:$0xf]  ;;  %v8249_v53 = vld [vmem:[%s16758_s3 + $0x248] sm:$0xf]  ;;  %v10619_v54 = vld [vmem:[%s16758_s3 + $0x25c] sm:$0xf0] }
 0x19f   :  { %4207 = vmatpush.bf16.msra.mxu3 %v8562_v32  ;;  %v8323_v32 = vld [vmem:[%s16758_s3 + $0x2f0] sm:$0xf0]  ;;  %v8250_v6 = vor.u32 %v10619_v54, %v8249_v53 }
 0x1a0   :  { %v2209_v1 = vpop.f32.mrf.mxu0  ;;  %v8326_v17 = vor.u32 %v10634_v5, %v8323_v32  ;;  %v8753_v5 = vld [vmem:[%s16758_s3 + $0x638] sm:$0xf]  ;;  %v10745_v32 = vld [vmem:[%s16758_s3 + $0x64c] sm:$0xf0] }
 0x1a1   :  { %v2222_v44 = vpop.f32.mrf.mxu1  ;;  %v2210_v51 = vadd.f32 %v2209_v1, %v2197_v43  ;;  %v10625_v43 = vld [vmem:[%s16758_s3 + $0x28c] sm:$0xf0]  ;;  %v10622_v1 = vld [vmem:[%s16758_s3 + $0x27c] sm:$0xf] }
 0x1a2   :  { %4195 = vmatpush.bf16.msra.mxu2 %v8346_v29  ;;  %4168 = vmatpush.bf16.msra.mxu0 %v7986_v46  ;;  %v10637_v29 = vld [vmem:[%s16758_s3 + $0x2ec] sm:$0xf0]  ;;  %v8878_v46 = vor.u32 %v10772_v25, %v8875_v40  ;;  %v8274_v30 = vor.u32 %v10625_v43, %v8273_v28  ;;  %v8179_v43 = vld [vmem:[%s16758_s3 + $0x1d0] sm:$0xf0] }
 0x1a3   :  { %4208 = vmatpush.bf16.msra.mxu3 %v8538_v19  ;;  %v2223_v56 = vadd.f32 %v2222_v44, %v2210_v51  ;;  %v8322_v15 = vor.u32 %v10637_v29, %v8321_v0  ;;  %v8297_v19 = vld [vmem:[%s16758_s3 + $0x2a8] sm:$0xf]  ;;  %v8275_v44 = vld [vmem:[%s16758_s3 + $0x290] sm:$0xf0]  ;;  %v10766_v51 = vld [vmem:[%s16758_s3 + $0x6fc] sm:$0xf] }
 0x1a4   :  { %v8298_v34 = vor.u32 %v10631_v22, %v8297_v19  ;;  %v8278_v49 = vor.u32 %v10622_v1, %v8275_v44  ;;  %v10613_v0 = vld [vmem:[%s16758_s3 + $0x22c] sm:$0xf0]  ;;  %v10610_v29 = vld [vmem:[%s16758_s3 + $0x21c] sm:$0xf]  ;;  %v10607_v19 = vld [vmem:[%s16758_s3 + $0x1fc] sm:$0xf0]  ;;  %v8782_v44 = vor.u32 %v10748_v37, %v8779_v38 }
 0x1a5   :  { %4196 = vmatmul.bf16.vlgmr.msra.gmra.mxu2 %v13260_v36  ;;  %v8202_v25 = vor.u32 %v10607_v19, %v8201_v14  ;;  %v10601_v28 = vld [vmem:[%s16758_s3 + $0x1cc] sm:$0xf0]  ;;  %v10823_v14 = vld [vmem:[%s16758_s3 + $0x8bc] sm:$0xf0]  ;;  %v10664_v19 = vld [vmem:[%s16758_s3 + $0x3cc] sm:$0xf] }
 0x1a6   :  { %4240 = vmatpush.bf16.msrb.mxu2 %v8134_v7  ;;  %4169 = vmatpush.bf16.msra.mxu0 %v7962_v55  ;;  %v8849_v7 = vld [vmem:[%s16758_s3 + $0x6f8] sm:$0xf]  ;;  %v8802_v55 = vor.u32 %v10757_v50, %v8801_v48  ;;  %v8491_v50 = vld [vmem:[%s16758_s3 + $0x440] sm:$0xf0]  ;;  %v10817_v37 = vld [vmem:[%s16758_s3 + $0x88c] sm:$0xf0] }
 0x1a7   :  { %v8850_v59 = vor.u32 %v10769_v4, %v8849_v7  ;;  %v10754_v7 = vld [vmem:[%s16758_s3 + $0x69c] sm:$0xf]  ;;  %v8803_v4 = vld [vmem:[%s16758_s3 + $0x6b0] sm:$0xf0] }
 0x1a8   :  { %v2235_v21 = vpop.f32.mrf.mxu2  ;;  %v2211_v27 = vpop.f32.mrf.mxu0  ;;  %v8806_v22 = vor.u32 %v10754_v7, %v8803_v4  ;;  %v8521_v7 = vld [vmem:[%s16758_s3 + $0x460] sm:$0xf]  ;;  %v10686_v4 = vld [vmem:[%s16758_s3 + $0x474] sm:$0xf0]  ;;  %v10814_v38 = vld [vmem:[%s16758_s3 + $0x87c] sm:$0xf] }
 0x1a9   :  { %v2248_v60 = vpop.f32.mrf.mxu3  ;;  %v2236_v12 = vadd.f32 %v2235_v21, %v2223_v56  ;;  %v2224_v63 = vpop.f32.mrf.mxu1  ;;  %4170 = vmatmul.bf16.vlgmr.msra.gmra.mxu0 %v13256_v31  ;;  %v8251_v56 = vld [vmem:[%s16758_s3 + $0x260] sm:$0xf0]  ;;  %v10751_v21 = vld [vmem:[%s16758_s3 + $0x67c] sm:$0xf0] }
 0x1aa   :  { %4241 = vmatpush.bf16.msrb.mxu2 %v8110_v45  ;;  %4214 = vmatpush.bf16.msrb.mxu0 %v8898_v47  ;;  %v10616_v47 = vld [vmem:[%s16758_s3 + $0x24c] sm:$0xf]  ;;  %v8225_v63 = vld [vmem:[%s16758_s3 + $0x218] sm:$0xf] }
 0x1ab   :  { %v2249_v2 = vadd.f32 %v2248_v60, %v2236_v12  ;;  %v10760_v60 = vld [vmem:[%s16758_s3 + $0x6cc] sm:$0xf]  ;;  %v8254_v12 = vor.u32 %v10616_v47, %v8251_v56  ;;  %v8226_v10 = vor.u32 %v10613_v0, %v8225_v63  ;;  %v10595_v47 = vld [vmem:[%s16758_s3 + $0x19c] sm:$0xf0]  ;;  %v10670_v63 = vld [vmem:[%s16758_s3 + $0x3fc] sm:$0xf] }
 0x1ac   :  { %v10592_v56 = vld [vmem:[%s16758_s3 + $0x18c] sm:$0xf] }
 0x1ad   :  { %v2257_v13 = vmax.f32 %v2249_v2, 0.0  ;;  %v8227_v2 = vld [vmem:[%s16758_s3 + $0x230] sm:$0xf0]  ;;  %v10736_v0 = vld [vmem:[%s16758_s3 + $0x60c] sm:$0xf] }
 0x1ae   :  { %4242 = vmatpush.bf16.msrb.mxu2 %v8086_v26  ;;  %4215 = vmatpush.bf16.msrb.mxu0 %v8874_v58  ;;  %v8778_v58 = vor.u32 %v10751_v21, %v8777_v16  ;;  %v8155_v16 = vld [vmem:[%s16758_s3 + $0x1a0] sm:$0xf0]  ;;  %v9089_v21 = vld [vmem:[%s16758_s3 + $0x8d8] sm:$0xf] }
 0x1af   :  { %v13884_v45 = vpack.c.bf16 %v2257_v13, %v2257_v13  ;;  %v8230_v13 = vor.u32 %v10610_v29, %v8227_v2  ;;  %v8731_v29 = vld [vmem:[%s16758_s3 + $0x620] sm:$0xf0] }
 0x1b0   :  { %v2237_v41 = vpop.f32.mrf.mxu2 }
 0x1b1   :  { %v2250_v26 = vpop.f32.mrf.mxu3  ;;  %4079 = vmatmul.bf16.vlgmr.msra.gmra.mxu1 %v13884_v45  ;;  %4157 = vmatmul.bf16.vlgmr.msrb.gmra.mxu3 %v13884_v45  ;;  %v10682_v41 = vld [vmem:[%s16758_s3 + $0x45c] sm:$0xf] }
 0x1b2   :  { %4243 = vmatpush.bf16.msrb.mxu2 %v8062_v8  ;;  %4175 = vmatpush.bf16.msra.mxu1 %v8322_v15  ;;  %v8302_v8 = vor.u32 %v10628_v23, %v8299_v24  ;;  %v8729_v23 = vld [vmem:[%s16758_s3 + $0x608] sm:$0xf]  ;;  %v10739_v24 = vld [vmem:[%s16758_s3 + $0x61c] sm:$0xf0] }
 0x1b3   :  { %4253 = vmatpush.bf16.msrb.mxu3 %v8326_v17  ;;  %4216 = vmatpush.bf16.msrb.mxu0 %v8850_v59  ;;  %v8754_v17 = vor.u32 %v10745_v32, %v8753_v5  ;;  %v10604_v59 = vld [vmem:[%s16758_s3 + $0x1ec] sm:$0xf] }
 0x1b6   :  { %4244 = vmatpush.bf16.msrb.mxu2 %v8038_v52  ;;  %v8851_v52 = vld [vmem:[%s16758_s3 + $0x710] sm:$0xf0]  ;;  %4176 = vmatpush.bf16.msra.mxu1 %v8298_v34  ;;  %v8177_v34 = vld [vmem:[%s16758_s3 + $0x1b8] sm:$0xf] }
 0x1b7   :  { %4254 = vmatpush.bf16.msrb.mxu3 %v8302_v8  ;;  %4217 = vmatpush.bf16.msrb.mxu0 %v8826_v39  ;;  %v8854_v11 = vor.u32 %v10766_v51, %v8851_v52  ;;  %v8730_v8 = vor.u32 %v10739_v24, %v8729_v23  ;;  %v10598_v39 = vld [vmem:[%s16758_s3 + $0x1bc] sm:$0xf]  ;;  %v8755_v52 = vld [vmem:[%s16758_s3 + $0x650] sm:$0xf0]  ;;  %v8178_v53 = vor.u32 %v10601_v28, %v8177_v34  ;;  %v8497_v24 = vld [vmem:[%s16758_s3 + $0x430] sm:$0xf] }
 0x1b8   :  { %v10742_v51 = vld [vmem:[%s16758_s3 + $0x63c] sm:$0xf]  ;;  %v8182_v54 = vor.u32 %v10598_v39, %v8179_v43  ;;  %v8419_v34 = vld [vmem:[%s16758_s3 + $0x3b0] sm:$0xf0]  ;;  %v8473_v43 = vld [vmem:[%s16758_s3 + $0x400] sm:$0xf] }
 0x1ba   :  { %4245 = vmatpush.bf16.msrb.mxu2 %v8014_v57  ;;  %v13949_v57 = vld [vmem:[%s16759_s4] sm:$0x3f]  ;;  %4177 = vmatpush.bf16.msra.mxu1 %v8274_v30 }
 0x1bb   :  { %4255 = vmatpush.bf16.msrb.mxu3 %v8278_v49  ;;  %v2554_v27 = vperm.slane %v13949_v57, 0  ;;  %4218 = vmatpush.bf16.msrb.mxu0 %v8802_v55  ;;  %v8153_v55 = vld [vmem:[%s16758_s3 + $0x188] sm:$0xf] }
 0x1bc   :  { %v8154_v2 = vor.u32 %v10595_v47, %v8153_v55  ;;  %v8449_v47 = vld [vmem:[%s16758_s3 + $0x3d0] sm:$0xf] }
 0x1be   :  { %4246 = vmatpush.bf16.msrb.mxu2 %v7990_v3  ;;  %v8830_v3 = vor.u32 %v10760_v60, %v8827_v61  ;;  %4178 = vmatpush.bf16.msra.mxu1 %v8250_v6  ;;  %v10829_v60 = vld [vmem:[%s16758_s3 + $0x8ec] sm:$0xf0]  ;;  %v8758_v6 = vor.u32 %v10742_v51, %v8755_v52  ;;  %v9019_v51 = vld [vmem:[%s16758_s3 + $0x860] sm:$0xf0]  ;;  %v10652_v52 = vld [vmem:[%s16758_s3 + $0x36c] sm:$0xf] }
 0x1bf   :  { %4256 = vmatpush.bf16.msrb.mxu3 %v8254_v12  ;;  %4219 = vmatpush.bf16.msrb.mxu0 %v8778_v58  ;;  %v10826_v12 = vld [vmem:[%s16758_s3 + $0x8dc] sm:$0xf]  ;;  %v8467_v58 = vld [vmem:[%s16758_s3 + $0x410] sm:$0xf0]  ;;  %v9090_v5 = vor.u32 %v10829_v60, %v9089_v21  ;;  %v10805_v21 = vld [vmem:[%s16758_s3 + $0x82c] sm:$0xf0] }
 0x1c0   :  { %v4015_v62 = vpop.f32.mrf.mxu0  ;;  %v10802_v60 = vld [vmem:[%s16758_s3 + $0x81c] sm:$0xf] }
 0x1c1   :  { %v4016_v9 = vadd.f32 %v4015_v62, %v2554_v27  ;;  %v4028_v15 = vpop.f32.mrf.mxu1  ;;  %4131 = vmatmul.bf16.vlgmr.msrb.gmra.mxu1 %v13360_v35  ;;  %4209 = vmatmul.bf16.vlgmr.msra.gmra.mxu3 %v13360_v35  ;;  %v9091_v27 = vld [vmem:[%s16758_s3 + $0x8f0] sm:$0xf0]  ;;  %v9065_v62 = vld [vmem:[%s16758_s3 + $0x8a8] sm:$0xf] }
 0x1c2   :  { %4247 = vmatpush.bf16.msrb.mxu2 %v7966_v20  ;;  %v8203_v20 = vld [vmem:[%s16758_s3 + $0x200] sm:$0xf0]  ;;  %4179 = vmatpush.bf16.msra.mxu1 %v8226_v10  ;;  %v9094_v32 = vor.u32 %v10826_v12, %v9091_v27  ;;  %v8470_v10 = vor.u32 %v10670_v63, %v8467_v58  ;;  %v10646_v12 = vld [vmem:[%s16758_s3 + $0x33c] sm:$0xf]  ;;  %v8371_v27 = vld [vmem:[%s16758_s3 + $0x350] sm:$0xf0] }
 0x1c3   :  { %v4029_v26 = vadd.f32 %v4028_v15, %v4016_v9  ;;  %4257 = vmatpush.bf16.msrb.mxu3 %v8230_v13  ;;  %v8206_v40 = vor.u32 %v10604_v59, %v8203_v20  ;;  %4220 = vmatpush.bf16.msrb.mxu0 %v8754_v17  ;;  %v8734_v13 = vor.u32 %v10736_v0, %v8731_v29  ;;  %v10820_v9 = vld [vmem:[%s16758_s3 + $0x8ac] sm:$0xf]  ;;  %v9067_v15 = vld [vmem:[%s16758_s3 + $0x8c0] sm:$0xf0] }
 0x1c4   :  { %v8443_v59 = vld [vmem:[%s16758_s3 + $0x3e0] sm:$0xf0]  ;;  %v8522_v20 = vor.u32 %v10686_v4, %v8521_v7  ;;  %v9070_v23 = vor.u32 %v10820_v9, %v9067_v15  ;;  %v10796_v7 = vld [vmem:[%s16758_s3 + $0x7ec] sm:$0xf]  ;;  %v10590_v9 = vld [vmem:[%s16758_s3 + $0x174] sm:$0xf0] }
 0x1c5   :  { %4248 = vmatmul.bf16.vlgmr.msrb.gmra.mxu2 %v13256_v31  ;;  %v8971_v4 = vld [vmem:[%s16758_s3 + $0x800] sm:$0xf0] }
 0x1c6   :  { %4292 = vmatpush.bf16.msra.mxu2 %v8902_v18  ;;  %v8515_v18 = vld [vmem:[%s16758_s3 + $0x470] sm:$0xf0]  ;;  %4180 = vmatpush.bf16.msra.mxu1 %v8202_v25 }
 0x1c7   :  { %v8518_v1 = vor.u32 %v10682_v41, %v8515_v18  ;;  %4258 = vmatpush.bf16.msrb.mxu3 %v8206_v40  ;;  %4221 = vmatpush.bf16.msrb.mxu0 %v8730_v8  ;;  %v10680_v41 = vld [vmem:[%s16758_s3 + $0x444] sm:$0xf0]  ;;  %v8446_v18 = vor.u32 %v10664_v19, %v8443_v59  ;;  %v9043_v25 = vld [vmem:[%s16758_s3 + $0x890] sm:$0xf0]  ;;  %v10658_v40 = vld [vmem:[%s16758_s3 + $0x39c] sm:$0xf] }
 0x1c8   :  { %v4041_v48 = vpop.f32.mrf.mxu2  ;;  %v4017_v49 = vpop.f32.mrf.mxu0  ;;  %v8498_v8 = vor.u32 %v10680_v41, %v8497_v24  ;;  %v9046_v39 = vor.u32 %v10814_v38, %v9043_v25  ;;  %v8401_v19 = vld [vmem:[%s16758_s3 + $0x370] sm:$0xf]  ;;  %v10656_v59 = vld [vmem:[%s16758_s3 + $0x384] sm:$0xf0]  ;;  %v10790_v24 = vld [vmem:[%s16758_s3 + $0x7bc] sm:$0xf] }
 0x1c9   :  { %v14044_v30 = vadd.f32 %v4041_v48, %v4029_v26  ;;  %v9041_v26 = vld [vmem:[%s16758_s3 + $0x878] sm:$0xf]  ;;  %v10811_v48 = vld [vmem:[%s16758_s3 + $0x85c] sm:$0xf0]  ;;  %v8395_v49 = vld [vmem:[%s16758_s3 + $0x380] sm:$0xf0]  ;;  %v8402_v25 = vor.u32 %v10656_v59, %v8401_v19 }
 0x1ca   :  { %4293 = vmatpush.bf16.msra.mxu2 %v8878_v46  ;;  %v10676_v46 = vld [vmem:[%s16758_s3 + $0x42c] sm:$0xf]  ;;  %4181 = vmatpush.bf16.msra.mxu1 %v8178_v53  ;;  %v9042_v28 = vor.u32 %v10817_v37, %v9041_v26  ;;  %v8947_v41 = vld [vmem:[%s16758_s3 + $0x7d0] sm:$0xf0]  ;;  %v2555_v26 = vperm.slane %v13949_v57, 1 }
 0x1cb   :  { %4266 = vmatpush.bf16.msra.mxu0 %v8518_v1  ;;  %v8494_v61 = vor.u32 %v10676_v46, %v8491_v50  ;;  %4259 = vmatpush.bf16.msrb.mxu3 %v8182_v54  ;;  %v10674_v1 = vld [vmem:[%s16758_s3 + $0x414] sm:$0xf0]  ;;  %v8422_v46 = vor.u32 %v10658_v40, %v8419_v34  ;;  %v10808_v50 = vld [vmem:[%s16758_s3 + $0x84c] sm:$0xf]  ;;  %v8113_v40 = vld [vmem:[%s16758_s3 + $0x130] sm:$0xf] }
 0x1cc   :  { %4222 = vmatmul.bf16.vlgmr.msrb.gmra.mxu0 %v13705_v42  ;;  %v8474_v53 = vor.u32 %v10674_v1, %v8473_v43  ;;  %v9022_v55 = vor.u32 %v10808_v50, %v9019_v51  ;;  %v10584_v34 = vld [vmem:[%s16758_s3 + $0x144] sm:$0xf0]  ;;  %v10787_v1 = vld [vmem:[%s16758_s3 + $0x79c] sm:$0xf0]  ;;  %v8707_v51 = vld [vmem:[%s16758_s3 + $0x5f0] sm:$0xf0] }
 0x1cd   :  { %v8921_v43 = vld [vmem:[%s16758_s3 + $0x788] sm:$0xf]  ;;  %v8114_v50 = vor.u32 %v10584_v34, %v8113_v40  ;;  %v8659_v19 = vld [vmem:[%s16758_s3 + $0x590] sm:$0xf0]  ;;  %v8665_v59 = vld [vmem:[%s16758_s3 + $0x580] sm:$0xf] }
 0x1ce   :  { %4294 = vmatpush.bf16.msra.mxu2 %v8854_v11  ;;  %v4030_v11 = vpop.f32.mrf.mxu1  ;;  %4182 = vmatpush.bf16.msra.mxu1 %v8154_v2  ;;  %v8425_v2 = vld [vmem:[%s16758_s3 + $0x3a0] sm:$0xf]  ;;  %v10712_v40 = vld [vmem:[%s16758_s3 + $0x54c] sm:$0xf]  ;;  %v8635_v34 = vld [vmem:[%s16758_s3 + $0x560] sm:$0xf0] }
 0x1cf   :  { %4267 = vmatpush.bf16.msra.mxu0 %v8494_v61  ;;  %v8993_v11 = vld [vmem:[%s16758_s3 + $0x818] sm:$0xf]  ;;  %v8995_v61 = vld [vmem:[%s16758_s3 + $0x830] sm:$0xf0] }
 0x1d0   :  { %v4043_v17 = vpop.f32.mrf.mxu2  ;;  %v8994_v0 = vor.u32 %v10805_v21, %v8993_v11  ;;  %v8998_v29 = vor.u32 %v10802_v60, %v8995_v61  ;;  %v8353_v11 = vld [vmem:[%s16758_s3 + $0x310] sm:$0xf]  ;;  %v10644_v61 = vld [vmem:[%s16758_s3 + $0x324] sm:$0xf0] }
 0x1d1   :  { %4183 = vmatmul.bf16.vlgmr.msra.gmra.mxu1 %v13258_v33  ;;  %v8974_v17 = vor.u32 %v10796_v7, %v8971_v4  ;;  %v10572_v7 = vld [vmem:[%s16758_s3 + $0xe4] sm:$0xf0]  ;;  %v8354_v4 = vor.u32 %v10644_v61, %v8353_v11  ;;  %v10563_v11 = vld [vmem:[%s16758_s3 + $0xa4] sm:$0xf]  ;;  %v10700_v61 = vld [vmem:[%s16758_s3 + $0x4ec] sm:$0xf] }
 0x1d2   :  { %4295 = vmatpush.bf16.msra.mxu2 %v8830_v3  ;;  %v8158_v3 = vor.u32 %v10592_v56, %v8155_v16  ;;  %4227 = vmatpush.bf16.msrb.mxu1 %v9090_v5  ;;  %v10668_v56 = vld [vmem:[%s16758_s3 + $0x3e4] sm:$0xf0]  ;;  %v8398_v16 = vor.u32 %v10652_v52, %v8395_v49  ;;  %v8713_v52 = vld [vmem:[%s16758_s3 + $0x5e0] sm:$0xf]  ;;  %v10734_v49 = vld [vmem:[%s16758_s3 + $0x5f4] sm:$0xf0] }
 0x1d3   :  { %4268 = vmatpush.bf16.msra.mxu0 %v8470_v10  ;;  %v8450_v58 = vor.u32 %v10668_v56, %v8449_v47  ;;  %v8969_v5 = vld [vmem:[%s16758_s3 + $0x7e8] sm:$0xf]  ;;  %v8347_v10 = vld [vmem:[%s16758_s3 + $0x320] sm:$0xf0]  ;;  %v8922_v47 = vor.u32 %v10787_v1, %v8921_v43  ;;  %v8714_v60 = vor.u32 %v10734_v49, %v8713_v52  ;;  %v8638_v1 = vor.u32 %v10712_v40, %v8635_v34  ;;  %v8611_v52 = vld [vmem:[%s16758_s3 + $0x530] sm:$0xf0] }
 0x1d4   :  { %4260 = vmatpush.bf16.msrb.mxu3 %v8158_v3  ;;  %v10662_v3 = vld [vmem:[%s16758_s3 + $0x3b4] sm:$0xf0]  ;;  %v8617_v49 = vld [vmem:[%s16758_s3 + $0x520] sm:$0xf]  ;;  %v10635_v34 = vld [vmem:[%s16758_s3 + $0x2e4] sm:$0xf] }
 0x1d5   :  { %v10638_v40 = vld [vmem:[%s16758_s3 + $0x2f4] sm:$0xf0] }
 0x1d6   :  { %4296 = vmatpush.bf16.msra.mxu2 %v8806_v22  ;;  %v9066_v22 = vor.u32 %v10823_v14, %v9065_v62  ;;  %v10640_v62 = vld [vmem:[%s16758_s3 + $0x30c] sm:$0xf]  ;;  %v8137_v14 = vld [vmem:[%s16758_s3 + $0x160] sm:$0xf] }
 0x1d7   :  { %4261 = vmatmul.bf16.vlgmr.msrb.gmra.mxu3 %v13258_v33  ;;  %4269 = vmatpush.bf16.msra.mxu0 %v8446_v18  ;;  %v8138_v37 = vor.u32 %v10590_v9, %v8137_v14  ;;  %v8115_v14 = vld [vmem:[%s16758_s3 + $0x148] sm:$0xf0] }
 0x1d8   :  { %4305 = vmatpush.bf16.msra.mxu3 %v9094_v32  ;;  %4228 = vmatpush.bf16.msrb.mxu1 %v9066_v22  ;;  %v10799_v32 = vld [vmem:[%s16758_s3 + $0x7fc] sm:$0xf0]  ;;  %v8350_v22 = vor.u32 %v10640_v62, %v8347_v10 }
 0x1d9   :  { %v8970_v15 = vor.u32 %v10799_v32, %v8969_v5  ;;  %v8065_v32 = vld [vmem:[%s16758_s3 + $0xd0] sm:$0xf] }
 0x1da   :  { %4297 = vmatpush.bf16.msra.mxu2 %v8782_v44  ;;  %v9017_v44 = vld [vmem:[%s16758_s3 + $0x848] sm:$0xf] }
 0x1db   :  { %v9018_v54 = vor.u32 %v10811_v48, %v9017_v44  ;;  %4270 = vmatpush.bf16.msra.mxu0 %v8422_v46  ;;  %v10784_v44 = vld [vmem:[%s16758_s3 + $0x78c] sm:$0xf]  ;;  %v8923_v46 = vld [vmem:[%s16758_s3 + $0x7a0] sm:$0xf0]  ;;  %v10730_v48 = vld [vmem:[%s16758_s3 + $0x5dc] sm:$0xf] }
 0x1dc   :  { %4306 = vmatpush.bf16.msra.mxu3 %v9070_v23  ;;  %4229 = vmatpush.bf16.msrb.mxu1 %v9042_v28  ;;  %v10793_v23 = vld [vmem:[%s16758_s3 + $0x7cc] sm:$0xf0]  ;;  %v8950_v28 = vor.u32 %v10790_v24, %v8947_v41  ;;  %v8926_v56 = vor.u32 %v10784_v44, %v8923_v46  ;;  %v8710_v21 = vor.u32 %v10730_v48, %v8707_v51  ;;  %v10569_v44 = vld [vmem:[%s16758_s3 + $0xd4] sm:$0xf]  ;;  %v8067_v46 = vld [vmem:[%s16758_s3 + $0xe8] sm:$0xf0] }
 0x1dd   :  { %v10706_v51 = vld [vmem:[%s16758_s3 + $0x51c] sm:$0xf] }
 0x1de   :  { %4298 = vmatpush.bf16.msra.mxu2 %v8758_v6  ;;  %v4054_v6 = vpop.f32.mrf.mxu3 }
 0x1df   :  { %v14183_v63 = vadd.f32 %v4054_v6, %v14044_v30  ;;  %4271 = vmatpush.bf16.msra.mxu0 %v8398_v16  ;;  %v8374_v30 = vor.u32 %v10646_v12, %v8371_v27  ;;  %v10587_v6 = vld [vmem:[%s16758_s3 + $0x164] sm:$0xf]  ;;  %v8139_v12 = vld [vmem:[%s16758_s3 + $0x178] sm:$0xf0] }
 0x1e0   :  { %4307 = vmatpush.bf16.msra.mxu3 %v9046_v39  ;;  %4230 = vmatpush.bf16.msrb.mxu1 %v9018_v54  ;;  %v10650_v39 = vld [vmem:[%s16758_s3 + $0x354] sm:$0xf0]  ;;  %v8089_v54 = vld [vmem:[%s16758_s3 + $0x100] sm:$0xf]  ;;  %v8142_v62 = vor.u32 %v10587_v6, %v8139_v12  ;;  %v8587_v6 = vld [vmem:[%s16758_s3 + $0x500] sm:$0xf0] }
 0x1e1   :  { %v8593_v12 = vld [vmem:[%s16758_s3 + $0x4f0] sm:$0xf] }
 0x1e2   :  { %4299 = vmatpush.bf16.msra.mxu2 %v8734_v13  ;;  %v8426_v13 = vor.u32 %v10662_v3, %v8425_v2  ;;  %v8689_v2 = vld [vmem:[%s16758_s3 + $0x5b0] sm:$0xf] }
 0x1e3   :  { %4272 = vmatpush.bf16.msra.mxu0 %v8374_v30  ;;  %v10728_v30 = vld [vmem:[%s16758_s3 + $0x5c4] sm:$0xf0] }
 0x1e4   :  { %4308 = vmatpush.bf16.msra.mxu3 %v9022_v55  ;;  %4231 = vmatpush.bf16.msrb.mxu1 %v8994_v0  ;;  %v10578_v55 = vld [vmem:[%s16758_s3 + $0x114] sm:$0xf0]  ;;  %v10724_v0 = vld [vmem:[%s16758_s3 + $0x5ac] sm:$0xf]  ;;  %v8690_v9 = vor.u32 %v10728_v30, %v8689_v2  ;;  %v8590_v30 = vor.u32 %v10700_v61, %v8587_v6  ;;  %v10773_v6 = vld [vmem:[%s16758_s3 + $0x734] sm:$0xf] }
 0x1e5   :  { %4300 = vmatmul.bf16.vlgmr.msra.gmra.mxu2 %v13705_v42  ;;  %v10782_v2 = vld [vmem:[%s16758_s3 + $0x774] sm:$0xf0] }
 0x1e6   :  { %4344 = vmatpush.bf16.msrb.mxu2 %v8522_v20  ;;  %v8945_v20 = vld [vmem:[%s16758_s3 + $0x7b8] sm:$0xf]  ;;  %v4056_v18 = vpop.f32.mrf.mxu3 }
 0x1e7   :  { %v8946_v57 = vor.u32 %v10793_v23, %v8945_v20  ;;  %4273 = vmatpush.bf16.msra.mxu0 %v8350_v22  ;;  %v10722_v20 = vld [vmem:[%s16758_s3 + $0x594] sm:$0xf0]  ;;  %v8041_v22 = vld [vmem:[%s16758_s3 + $0xa0] sm:$0xf]  ;;  %v8091_v18 = vld [vmem:[%s16758_s3 + $0x118] sm:$0xf0] }
 0x1e8   :  { %4309 = vmatpush.bf16.msra.mxu3 %v8998_v29  ;;  %v4093_v38 = vpop.f32.mrf.mxu2  ;;  %4232 = vmatpush.bf16.msrb.mxu1 %v8970_v15  ;;  %v8683_v29 = vld [vmem:[%s16758_s3 + $0x5c0] sm:$0xf0]  ;;  %v8066_v15 = vor.u32 %v10572_v7, %v8065_v32  ;;  %v10566_v23 = vld [vmem:[%s16758_s3 + $0xb4] sm:$0xf0]  ;;  %v10557_v32 = vld [vmem:[%s16758_s3 + $0x74] sm:$0xf] }
 0x1e9   :  { %v4094_v16 = vadd.f32 %v4093_v38, %v2555_v26  ;;  %v8686_v10 = vor.u32 %v10724_v0, %v8683_v29  ;;  %v10575_v26 = vld [vmem:[%s16758_s3 + $0x104] sm:$0xf]  ;;  %v10548_v0 = vld [vmem:[%s16758_s3 + $0x24] sm:$0xf0]  ;;  %v8905_v29 = vld [vmem:[%s16758_s3 + $0x760] sm:$0xf] }
 0x1ea   :  { %4345 = vmatpush.bf16.msrb.mxu2 %v8498_v8  ;;  %v8377_v8 = vld [vmem:[%s16758_s3 + $0x340] sm:$0xf]  ;;  %4274 = vmatmul.bf16.vlgmr.msra.gmra.mxu0 %v13260_v36  ;;  %v8094_v43 = vor.u32 %v10575_v26, %v8091_v18  ;;  %v8539_v26 = vld [vmem:[%s16758_s3 + $0x4a0] sm:$0xf0]  ;;  %v8545_v18 = vld [vmem:[%s16758_s3 + $0x490] sm:$0xf] }
 0x1eb   :  { %4318 = vmatpush.bf16.msrb.mxu0 %v8138_v37  ;;  %v8666_v37 = vor.u32 %v10722_v20, %v8665_v59 }
 0x1ec   :  { %4310 = vmatpush.bf16.msra.mxu3 %v8974_v17  ;;  %4233 = vmatpush.bf16.msrb.mxu1 %v8946_v57  ;;  %v10718_v17 = vld [vmem:[%s16758_s3 + $0x57c] sm:$0xf]  ;;  %v10716_v57 = vld [vmem:[%s16758_s3 + $0x564] sm:$0xf0] }
 0x1ed   :  { %v8662_v41 = vor.u32 %v10718_v17, %v8659_v19  ;;  %v8881_v17 = vld [vmem:[%s16758_s3 + $0x730] sm:$0xf]  ;;  %v10776_v19 = vld [vmem:[%s16758_s3 + $0x744] sm:$0xf0] }
 0x1ee   :  { %4346 = vmatpush.bf16.msrb.mxu2 %v8474_v53  ;;  %v8378_v53 = vor.u32 %v10650_v39, %v8377_v8  ;;  %v4106_v27 = vpop.f32.mrf.mxu3  ;;  %v8641_v8 = vld [vmem:[%s16758_s3 + $0x550] sm:$0xf]  ;;  %v10560_v39 = vld [vmem:[%s16758_s3 + $0x84] sm:$0xf0] }
 0x1ef   :  { %4319 = vmatpush.bf16.msrb.mxu0 %v8114_v50  ;;  %v14298_v5 = vadd.f32 %v4106_v27, %v4094_v16  ;;  %v8642_v48 = vor.u32 %v10716_v57, %v8641_v8  ;;  %v8043_v16 = vld [vmem:[%s16758_s3 + $0xb8] sm:$0xf0]  ;;  %v10704_v27 = vld [vmem:[%s16758_s3 + $0x504] sm:$0xf0]  ;;  %v8857_v57 = vld [vmem:[%s16758_s3 + $0x700] sm:$0xf] }
 0x1f0   :  { %4311 = vmatpush.bf16.msra.mxu3 %v8950_v28  ;;  %v4095_v3 = vpop.f32.mrf.mxu2  ;;  %4234 = vmatpush.bf16.msrb.mxu1 %v8922_v47  ;;  %v8017_v28 = vld [vmem:[%s16758_s3 + $0x70] sm:$0xf]  ;;  %v8070_v47 = vor.u32 %v10569_v44, %v8067_v46  ;;  %v8594_v7 = vor.u32 %v10704_v27, %v8593_v12  ;;  %v8331_v8 = vld [vmem:[%s16758_s3 + $0x2f8] sm:$0xf0]  ;;  %v8883_v12 = vld [vmem:[%s16758_s3 + $0x748] sm:$0xf0] }
 0x1f1   :  { %v8018_v50 = vor.u32 %v10560_v39, %v8017_v28  ;;  %v8046_v3 = vor.u32 %v10563_v11, %v8043_v16  ;;  %v10770_v28 = vld [vmem:[%s16758_s3 + $0x714] sm:$0xf0]  ;;  %v10764_v11 = vld [vmem:[%s16758_s3 + $0x6e4] sm:$0xf0] }
 0x1f2   :  { %4347 = vmatpush.bf16.msrb.mxu2 %v8450_v58  ;;  %v8090_v58 = vor.u32 %v10578_v55, %v8089_v54  ;;  %v7993_v54 = vld [vmem:[%s16758_s3 + $0x40] sm:$0xf]  ;;  %v10554_v55 = vld [vmem:[%s16758_s3 + $0x54] sm:$0xf0] }
 0x1f3   :  { %4235 = vmatmul.bf16.vlgmr.msrb.gmra.mxu1 %v13884_v45 }
 0x1f4   :  { %4312 = vmatpush.bf16.msra.mxu3 %v8926_v56  ;;  %4279 = vmatpush.bf16.msra.mxu1 %v8710_v21  ;;  %v8614_v56 = vor.u32 %v10706_v51, %v8611_v52  ;;  %v8907_v51 = vld [vmem:[%s16758_s3 + $0x778] sm:$0xf0]  ;;  %v8334_v52 = vor.u32 %v10635_v34, %v8331_v8  ;;  %v8761_v8 = vld [vmem:[%s16758_s3 + $0x640] sm:$0xf] }
 0x1f5   :  { %4320 = vmatpush.bf16.msrb.mxu0 %v8090_v58  ;;  %v7969_v58 = vld [vmem:[%s16758_s3 + $0x10] sm:$0xf]  ;;  %v8235_v34 = vld [vmem:[%s16758_s3 + $0x238] sm:$0xf0] }
 0x1f6   :  { %4348 = vmatpush.bf16.msrb.mxu2 %v8426_v13  ;;  %v10581_v13 = vld [vmem:[%s16758_s3 + $0x134] sm:$0xf]  ;;  %v4108_v38 = vpop.f32.mrf.mxu3 }
 0x1f7   :  { %4313 = vmatmul.bf16.vlgmr.msra.gmra.mxu3 %v13884_v45  ;;  %v8118_v24 = vor.u32 %v10581_v13, %v8115_v14  ;;  %v8563_v13 = vld [vmem:[%s16758_s3 + $0x4d0] sm:$0xf0]  ;;  %v8906_v14 = vor.u32 %v10782_v2, %v8905_v29  ;;  %v8882_v38 = vor.u32 %v10776_v19, %v8881_v17  ;;  %v8281_v29 = vld [vmem:[%s16758_s3 + $0x280] sm:$0xf]  ;;  %v10626_v2 = vld [vmem:[%s16758_s3 + $0x294] sm:$0xf0] }
 0x1f8   :  { %4357 = vmatpush.bf16.msrb.mxu3 %v8714_v60  ;;  %4280 = vmatpush.bf16.msra.mxu1 %v8686_v10  ;;  %v7994_v60 = vor.u32 %v10554_v55, %v7993_v54  ;;  %v10694_v10 = vld [vmem:[%s16758_s3 + $0x4bc] sm:$0xf]  ;;  %v10632_v54 = vld [vmem:[%s16758_s3 + $0x2c4] sm:$0xf0]  ;;  %v10629_v55 = vld [vmem:[%s16758_s3 + $0x2b4] sm:$0xf] }
 0x1f9   :  { %4321 = vmatpush.bf16.msrb.mxu0 %v8066_v15  ;;  %v10698_v15 = vld [vmem:[%s16758_s3 + $0x4d4] sm:$0xf0]  ;;  %v8566_v20 = vor.u32 %v10694_v10, %v8563_v13  ;;  %v8859_v10 = vld [vmem:[%s16758_s3 + $0x718] sm:$0xf0]  ;;  %v10617_v17 = vld [vmem:[%s16758_s3 + $0x254] sm:$0xf] }
 0x1fa   :  { %4349 = vmatpush.bf16.msrb.mxu2 %v8402_v25  ;;  %v8042_v25 = vor.u32 %v10566_v23, %v8041_v22  ;;  %v10551_v22 = vld [vmem:[%s16758_s3 + $0x44] sm:$0xf]  ;;  %v7995_v23 = vld [vmem:[%s16758_s3 + $0x58] sm:$0xf0] }
 0x1fb   :  { %v7998_v39 = vor.u32 %v10551_v22, %v7995_v23  ;;  %v10752_v22 = vld [vmem:[%s16758_s3 + $0x684] sm:$0xf0] }
 0x1fc   :  { %4358 = vmatpush.bf16.msrb.mxu3 %v8690_v9  ;;  %4281 = vmatpush.bf16.msra.mxu1 %v8662_v41  ;;  %v8569_v9 = vld [vmem:[%s16758_s3 + $0x4c0] sm:$0xf] }
 0x1fd   :  { %4322 = vmatpush.bf16.msrb.mxu0 %v8042_v25  ;;  %v8570_v41 = vor.u32 %v10698_v15, %v8569_v9  ;;  %v8329_v25 = vld [vmem:[%s16758_s3 + $0x2e0] sm:$0xf]  ;;  %v8257_v9 = vld [vmem:[%s16758_s3 + $0x250] sm:$0xf]  ;;  %v10620_v15 = vld [vmem:[%s16758_s3 + $0x264] sm:$0xf0] }
 0x1fe   :  { %4350 = vmatpush.bf16.msrb.mxu2 %v8378_v53  ;;  %v10710_v53 = vld [vmem:[%s16758_s3 + $0x534] sm:$0xf0]  ;;  %v8330_v46 = vor.u32 %v10638_v40, %v8329_v25  ;;  %v10611_v40 = vld [vmem:[%s16758_s3 + $0x224] sm:$0xf] }
 0x1ff   :  { %v8618_v21 = vor.u32 %v10710_v53, %v8617_v49  ;;  %v8858_v49 = vor.u32 %v10770_v28, %v8857_v57  ;;  %v8305_v53 = vld [vmem:[%s16758_s3 + $0x2b0] sm:$0xf]  ;;  %v10614_v25 = vld [vmem:[%s16758_s3 + $0x234] sm:$0xf0] }
 0x200   :  { %4359 = vmatpush.bf16.msrb.mxu3 %v8666_v37  ;;  %4282 = vmatpush.bf16.msra.mxu1 %v8638_v1  ;;  %v10692_v37 = vld [vmem:[%s16758_s3 + $0x4a4] sm:$0xf0]  ;;  %v10545_v1 = vld [vmem:[%s16758_s3 + $0x14] sm:$0xf]  ;;  %v8306_v61 = vor.u32 %v10632_v54, %v8305_v53  ;;  %v10746_v57 = vld [vmem:[%s16758_s3 + $0x654] sm:$0xf0] }
 0x201   :  { %4323 = vmatpush.bf16.msrb.mxu0 %v8018_v50  ;;  %v8546_v44 = vor.u32 %v10692_v37, %v8545_v18  ;;  %v10779_v50 = vld [vmem:[%s16758_s3 + $0x764] sm:$0xf]  ;;  %v8737_v53 = vld [vmem:[%s16758_s3 + $0x610] sm:$0xf]  ;;  %v10740_v54 = vld [vmem:[%s16758_s3 + $0x624] sm:$0xf0] }
 0x202   :  { %4351 = vmatpush.bf16.msrb.mxu2 %v8354_v4  ;;  %v7970_v4 = vor.u32 %v10548_v0, %v7969_v58 }
 0x204   :  { %4360 = vmatpush.bf16.msrb.mxu3 %v8642_v48  ;;  %4283 = vmatpush.bf16.msra.mxu1 %v8614_v56  ;;  %v7971_v48 = vld [vmem:[%s16758_s3 + $0x28] sm:$0xf0]  ;;  %v8833_v56 = vld [vmem:[%s16758_s3 + $0x6d0] sm:$0xf] }
 0x205   :  { %4352 = vmatmul.bf16.vlgmr.msrb.gmra.mxu2 %v13260_v36  ;;  %4324 = vmatpush.bf16.msrb.mxu0 %v7994_v60  ;;  %v7974_v16 = vor.u32 %v10545_v1, %v7971_v48  ;;  %v8910_v60 = vor.u32 %v10779_v50, %v8907_v51  ;;  %v8834_v0 = vor.u32 %v10764_v11, %v8833_v56  ;;  %v8811_v1 = vld [vmem:[%s16758_s3 + $0x6b8] sm:$0xf0]  ;;  %v8209_v48 = vld [vmem:[%s16758_s3 + $0x1f0] sm:$0xf]  ;;  %v10608_v50 = vld [vmem:[%s16758_s3 + $0x204] sm:$0xf0] }
 0x206   :  { %4396 = vmatpush.bf16.msra.mxu2 %v8142_v62  ;;  %v8019_v62 = vld [vmem:[%s16758_s3 + $0x88] sm:$0xf0]  ;;  %v10605_v51 = vld [vmem:[%s16758_s3 + $0x1f4] sm:$0xf] }
 0x207   :  { %v8022_v59 = vor.u32 %v10557_v32, %v8019_v62  ;;  %v10758_v32 = vld [vmem:[%s16758_s3 + $0x6b4] sm:$0xf0]  ;;  %v10767_v62 = vld [vmem:[%s16758_s3 + $0x704] sm:$0xf] }
 0x208   :  { %4361 = vmatpush.bf16.msrb.mxu3 %v8618_v21  ;;  %4284 = vmatpush.bf16.msra.mxu1 %v8590_v30  ;;  %v4067_v21 = vpop.f32.mrf.mxu0  ;;  %v8809_v30 = vld [vmem:[%s16758_s3 + $0x6a0] sm:$0xf] }
 0x209   :  { %4325 = vmatpush.bf16.msrb.mxu0 %v7970_v4  ;;  %v14512_v27 = vadd.f32 %v4067_v21, %v14183_v63  ;;  %v8283_v63 = vld [vmem:[%s16758_s3 + $0x298] sm:$0xf0]  ;;  %v8282_v4 = vor.u32 %v10626_v2, %v8281_v29  ;;  %v10749_v21 = vld [vmem:[%s16758_s3 + $0x674] sm:$0xf] }
 0x20a   :  { %4397 = vmatpush.bf16.msra.mxu2 %v8118_v24  ;;  %v10688_v24 = vld [vmem:[%s16758_s3 + $0x48c] sm:$0xf]  ;;  %v8187_v2 = vld [vmem:[%s16758_s3 + $0x1d8] sm:$0xf0] }
 0x20c   :  { %4362 = vmatpush.bf16.msrb.mxu3 %v8594_v7  ;;  %4285 = vmatpush.bf16.msra.mxu1 %v8566_v20  ;;  %v8886_v7 = vor.u32 %v10773_v6, %v8883_v12  ;;  %v14550_v19 = vpop.f32.mrf.mxu2  ;;  %v8785_v20 = vld [vmem:[%s16758_s3 + $0x670] sm:$0xf]  ;;  %v8738_v6 = vor.u32 %v10740_v54, %v8737_v53  ;;  %v8787_v12 = vld [vmem:[%s16758_s3 + $0x688] sm:$0xf0]  ;;  %v10818_v53 = vld [vmem:[%s16758_s3 + $0x894] sm:$0xf0] }
 0x20d   :  { %4370 = vmatpush.bf16.msra.mxu0 %v8906_v14  ;;  %v8810_v14 = vor.u32 %v10758_v32, %v8809_v30  ;;  %v8786_v37 = vor.u32 %v10752_v22, %v8785_v20  ;;  %v8790_v30 = vor.u32 %v10749_v21, %v8787_v12  ;;  %v10830_v20 = vld [vmem:[%s16758_s3 + $0x8f4] sm:$0xf0]  ;;  %v10827_v22 = vld [vmem:[%s16758_s3 + $0x8e4] sm:$0xf]  ;;  %v10812_v12 = vld [vmem:[%s16758_s3 + $0x864] sm:$0xf0] }
 0x20e   :  { %4398 = vmatpush.bf16.msra.mxu2 %v8094_v43  ;;  %v8542_v43 = vor.u32 %v10688_v24, %v8539_v26  ;;  %4326 = vmatmul.bf16.vlgmr.msrb.gmra.mxu0 %v13256_v31  ;;  %v8862_v24 = vor.u32 %v10767_v62, %v8859_v10  ;;  %v8835_v26 = vld [vmem:[%s16758_s3 + $0x6e8] sm:$0xf0]  ;;  %v8161_v62 = vld [vmem:[%s16758_s3 + $0x190] sm:$0xf]  ;;  %v10815_v54 = vld [vmem:[%s16758_s3 + $0x884] sm:$0xf] }
 0x210   :  { %4363 = vmatpush.bf16.msrb.mxu3 %v8570_v41  ;;  %4286 = vmatpush.bf16.msra.mxu1 %v8542_v43  ;;  %v4069_v23 = vpop.f32.mrf.mxu0  ;;  %v8258_v41 = vor.u32 %v10620_v15, %v8257_v9  ;;  %v10755_v43 = vld [vmem:[%s16758_s3 + $0x6a4] sm:$0xf]  ;;  %v8163_v9 = vld [vmem:[%s16758_s3 + $0x1a8] sm:$0xf0] }
 0x211   :  { %4371 = vmatpush.bf16.msra.mxu0 %v8882_v38  ;;  %v8233_v38 = vld [vmem:[%s16758_s3 + $0x220] sm:$0xf]  ;;  %v8814_v11 = vor.u32 %v10755_v43, %v8811_v1  ;;  %v9099_v23 = vld [vmem:[%s16758_s3 + $0x8f8] sm:$0xf0]  ;;  %v9075_v43 = vld [vmem:[%s16758_s3 + $0x8c8] sm:$0xf0] }
 0x212   :  { %4399 = vmatpush.bf16.msra.mxu2 %v8070_v47  ;;  %v8307_v47 = vld [vmem:[%s16758_s3 + $0x2c8] sm:$0xf0]  ;;  %v10665_v1 = vld [vmem:[%s16758_s3 + $0x3d4] sm:$0xf] }
 0x213   :  { %v8310_v58 = vor.u32 %v10629_v55, %v8307_v47  ;;  %4287 = vmatmul.bf16.vlgmr.msra.gmra.mxu1 %v13360_v35  ;;  %v10683_v55 = vld [vmem:[%s16758_s3 + $0x464] sm:$0xf]  ;;  %v8523_v47 = vld [vmem:[%s16758_s3 + $0x478] sm:$0xf0] }
 0x214   :  { %4364 = vmatpush.bf16.msrb.mxu3 %v8546_v44  ;;  %4331 = vmatpush.bf16.msrb.mxu1 %v8330_v46  ;;  %v8238_v44 = vor.u32 %v10611_v40, %v8235_v34  ;;  %v8762_v46 = vor.u32 %v10746_v57, %v8761_v8  ;;  %v8526_v29 = vor.u32 %v10683_v55, %v8523_v47  ;;  %v8739_v40 = vld [vmem:[%s16758_s3 + $0x628] sm:$0xf0]  ;;  %v9073_v57 = vld [vmem:[%s16758_s3 + $0x8b0] sm:$0xf]  ;;  %v9051_v55 = vld [vmem:[%s16758_s3 + $0x898] sm:$0xf0] }
 0x215   :  { %4372 = vmatpush.bf16.msra.mxu0 %v8858_v49  ;;  %v8211_v49 = vld [vmem:[%s16758_s3 + $0x208] sm:$0xf0]  ;;  %v9102_v34 = vor.u32 %v10827_v22, %v9099_v23  ;;  %v10659_v47 = vld [vmem:[%s16758_s3 + $0x3a4] sm:$0xf]  ;;  %v9054_v21 = vor.u32 %v10815_v54, %v9051_v55  ;;  %v10725_v55 = vld [vmem:[%s16758_s3 + $0x5b4] sm:$0xf] }
 0x216   :  { %4400 = vmatpush.bf16.msra.mxu2 %v8046_v3  ;;  %v10623_v3 = vld [vmem:[%s16758_s3 + $0x284] sm:$0xf]  ;;  %v8979_v23 = vld [vmem:[%s16758_s3 + $0x808] sm:$0xf0] }
 0x217   :  { %4365 = vmatmul.bf16.vlgmr.msrb.gmra.mxu3 %v13360_v35  ;;  %v8286_v13 = vor.u32 %v10623_v3, %v8283_v63  ;;  %v10677_v3 = vld [vmem:[%s16758_s3 + $0x434] sm:$0xf]  ;;  %v8499_v63 = vld [vmem:[%s16758_s3 + $0x448] sm:$0xf0] }
 0x218   :  { %4409 = vmatpush.bf16.msra.mxu3 %v8334_v52  ;;  %4332 = vmatpush.bf16.msrb.mxu1 %v8306_v61  ;;  %v4147_v52 = vpop.f32.mrf.mxu2  ;;  %v4119_v56 = vpop.f32.mrf.mxu0  ;;  %v8214_v61 = vor.u32 %v10605_v51, %v8211_v49  ;;  %v9049_v49 = vld [vmem:[%s16758_s3 + $0x880] sm:$0xf] }
 0x219   :  { %4373 = vmatpush.bf16.msra.mxu0 %v8834_v0  ;;  %v10602_v0 = vld [vmem:[%s16758_s3 + $0x1d4] sm:$0xf0] }
 0x21a   :  { %4401 = vmatpush.bf16.msra.mxu2 %v8022_v59  ;;  %v8259_v59 = vld [vmem:[%s16758_s3 + $0x268] sm:$0xf0] }
 0x21b   :  { %v8262_v18 = vor.u32 %v10617_v17, %v8259_v59  ;;  %v8502_v17 = vor.u32 %v10677_v3, %v8499_v63  ;;  %v9097_v59 = vld [vmem:[%s16758_s3 + $0x8e0] sm:$0xf] }
 0x21c   :  { %4410 = vmatpush.bf16.msra.mxu3 %v8310_v58  ;;  %4333 = vmatpush.bf16.msrb.mxu1 %v8282_v4  ;;  %v8185_v58 = vld [vmem:[%s16758_s3 + $0x1c0] sm:$0xf]  ;;  %v8763_v4 = vld [vmem:[%s16758_s3 + $0x658] sm:$0xf0] }
 0x21d   :  { %4374 = vmatpush.bf16.msra.mxu0 %v8810_v14  ;;  %v8186_v32 = vor.u32 %v10602_v0, %v8185_v58  ;;  %v10593_v14 = vld [vmem:[%s16758_s3 + $0x194] sm:$0xf]  ;;  %v9027_v58 = vld [vmem:[%s16758_s3 + $0x868] sm:$0xf0] }
 0x21e   :  { %4402 = vmatpush.bf16.msra.mxu2 %v7998_v39  ;;  %v8234_v39 = vor.u32 %v10614_v25, %v8233_v38  ;;  %v9098_v38 = vor.u32 %v10830_v20, %v9097_v59  ;;  %v10737_v25 = vld [vmem:[%s16758_s3 + $0x614] sm:$0xf]  ;;  %v10800_v59 = vld [vmem:[%s16758_s3 + $0x804] sm:$0xf0] }
 0x21f   :  { %v10653_v0 = vld [vmem:[%s16758_s3 + $0x374] sm:$0xf] }
 0x220   :  { %4411 = vmatpush.bf16.msra.mxu3 %v8286_v13  ;;  %4334 = vmatpush.bf16.msrb.mxu1 %v8258_v41  ;;  %v10596_v13 = vld [vmem:[%s16758_s3 + $0x1a4] sm:$0xf0]  ;;  %v8475_v41 = vld [vmem:[%s16758_s3 + $0x418] sm:$0xf0]  ;;  %v10797_v20 = vld [vmem:[%s16758_s3 + $0x7f4] sm:$0xf] }
 0x221   :  { %4375 = vmatpush.bf16.msra.mxu0 %v8786_v37  ;;  %v8166_v37 = vor.u32 %v10593_v14, %v8163_v9 }
 0x222   :  { %4403 = vmatpush.bf16.msra.mxu2 %v7974_v16  ;;  %v8210_v16 = vor.u32 %v10608_v50, %v8209_v48 }
 0x224   :  { %4412 = vmatpush.bf16.msra.mxu3 %v8262_v18  ;;  %4335 = vmatpush.bf16.msrb.mxu1 %v8234_v39  ;;  %v8162_v18 = vor.u32 %v10596_v13, %v8161_v62  ;;  %v10821_v39 = vld [vmem:[%s16758_s3 + $0x8b4] sm:$0xf]  ;;  %v8379_v62 = vld [vmem:[%s16758_s3 + $0x358] sm:$0xf0] }
 0x225   :  { %4404 = vmatmul.bf16.vlgmr.msra.gmra.mxu2 %v13256_v31  ;;  %v10761_v31 = vld [vmem:[%s16758_s3 + $0x6d4] sm:$0xf]  ;;  %4376 = vmatpush.bf16.msra.mxu0 %v8762_v46  ;;  %v8742_v46 = vor.u32 %v10737_v25, %v8739_v40  ;;  %v9078_v51 = vor.u32 %v10821_v39, %v9075_v43  ;;  %v10794_v25 = vld [vmem:[%s16758_s3 + $0x7d4] sm:$0xf0]  ;;  %v10791_v40 = vld [vmem:[%s16758_s3 + $0x7c4] sm:$0xf] }
 0x226   :  { %4448 = vmatpush.bf16.msrb.mxu2 %v8910_v60  ;;  %v8838_v28 = vor.u32 %v10761_v31, %v8835_v26  ;;  %v14619_v60 = vadd.f32 %v4119_v56, %v14298_v5  ;;  %v10599_v5 = vld [vmem:[%s16758_s3 + $0x1c4] sm:$0xf]  ;;  %v4121_v31 = vpop.f32.mrf.mxu0  ;;  %v8427_v56 = vld [vmem:[%s16758_s3 + $0x3b8] sm:$0xf0]  ;;  %v8929_v39 = vld [vmem:[%s16758_s3 + $0x790] sm:$0xf] }
 0x227   :  { %v8190_v10 = vor.u32 %v10599_v5, %v8187_v2  ;;  %v10788_v43 = vld [vmem:[%s16758_s3 + $0x7a4] sm:$0xf0] }
 0x228   :  { %4413 = vmatpush.bf16.msra.mxu3 %v8238_v44  ;;  %4336 = vmatpush.bf16.msrb.mxu1 %v8210_v16  ;;  %v14660_v15 = vpop.f32.mrf.mxu2  ;;  %v8451_v44 = vld [vmem:[%s16758_s3 + $0x3e8] sm:$0xf0]  ;;  %v9050_v16 = vor.u32 %v10818_v53, %v9049_v49 }
 0x229   :  { %4377 = vmatpush.bf16.msra.mxu0 %v8738_v6  ;;  %v8454_v52 = vor.u32 %v10665_v1, %v8451_v44  ;;  %v9025_v6 = vld [vmem:[%s16758_s3 + $0x850] sm:$0xf]  ;;  %v10785_v1 = vld [vmem:[%s16758_s3 + $0x794] sm:$0xf] }
 0x22a   :  { %4449 = vmatpush.bf16.msrb.mxu2 %v8886_v7  ;;  %v10743_v7 = vld [vmem:[%s16758_s3 + $0x644] sm:$0xf]  ;;  %v9026_v2 = vor.u32 %v10812_v12, %v9025_v6  ;;  %v8667_v6 = vld [vmem:[%s16758_s3 + $0x598] sm:$0xf0] }
 0x22b   :  { %v8766_v26 = vor.u32 %v10743_v7, %v8763_v4  ;;  %v10803_v7 = vld [vmem:[%s16758_s3 + $0x824] sm:$0xf] }
 0x22c   :  { %4414 = vmatpush.bf16.msra.mxu3 %v8214_v61  ;;  %4337 = vmatpush.bf16.msrb.mxu1 %v8186_v32  ;;  %v8430_v61 = vor.u32 %v10659_v47, %v8427_v56  ;;  %v10806_v32 = vld [vmem:[%s16758_s3 + $0x834] sm:$0xf0]  ;;  %v10647_v4 = vld [vmem:[%s16758_s3 + $0x344] sm:$0xf]  ;;  %v8691_v47 = vld [vmem:[%s16758_s3 + $0x5c8] sm:$0xf0] }
 0x22d   :  { %4422 = vmatpush.bf16.msrb.mxu0 %v8526_v29  ;;  %v8403_v29 = vld [vmem:[%s16758_s3 + $0x388] sm:$0xf0]  ;;  %v8382_v9 = vor.u32 %v10647_v4, %v8379_v62 }
 0x22e   :  { %4450 = vmatpush.bf16.msrb.mxu2 %v8862_v24  ;;  %v10671_v24 = vld [vmem:[%s16758_s3 + $0x404] sm:$0xf]  ;;  %4378 = vmatmul.bf16.vlgmr.msra.gmra.mxu0 %v13705_v42  ;;  %v4080_v5 = vpop.f32.mrf.mxu1  ;;  %v8406_v63 = vor.u32 %v10653_v0, %v8403_v29  ;;  %v8643_v0 = vld [vmem:[%s16758_s3 + $0x568] sm:$0xf0] }
 0x22f   :  { %v8478_v8 = vor.u32 %v10671_v24, %v8475_v41  ;;  %v14747_v3 = vadd.f32 %v4080_v5, %v14512_v27  ;;  %v9003_v27 = vld [vmem:[%s16758_s3 + $0x838] sm:$0xf0]  ;;  %v10641_v24 = vld [vmem:[%s16758_s3 + $0x314] sm:$0xf]  ;;  %v8355_v41 = vld [vmem:[%s16758_s3 + $0x328] sm:$0xf0] }
 0x230   :  { %4415 = vmatpush.bf16.msra.mxu3 %v8190_v10  ;;  %4338 = vmatpush.bf16.msrb.mxu1 %v8162_v18  ;;  %v4199_v50 = vpop.f32.mrf.mxu2  ;;  %v9006_v14 = vor.u32 %v10803_v7, %v9003_v27  ;;  %v8982_v18 = vor.u32 %v10797_v20, %v8979_v23  ;;  %v14843_v29 = vld [vmem:[%s16759_s4] sm:$0x3f] }
 0x231   :  { %4423 = vmatpush.bf16.msrb.mxu0 %v8502_v17  ;;  %v8977_v17 = vld [vmem:[%s16758_s3 + $0x7f0] sm:$0xf]  ;;  %v8715_v50 = vld [vmem:[%s16758_s3 + $0x5f8] sm:$0xf0]  ;;  %v2556_v5 = vperm.slane %v14843_v29, 2  ;;  %v2557_v7 = vperm.slane %v14843_v29, 3 }
 0x232   :  { %4451 = vmatpush.bf16.msrb.mxu2 %v8838_v28  ;;  %v10824_v28 = vld [vmem:[%s16758_s3 + $0x8c4] sm:$0xf0]  ;;  %v10695_v20 = vld [vmem:[%s16758_s3 + $0x4c4] sm:$0xf] }
 0x233   :  { %v9074_v48 = vor.u32 %v10824_v28, %v9073_v57  ;;  %4339 = vmatmul.bf16.vlgmr.msrb.gmra.mxu1 %v13258_v33 }
 0x234   :  { %4416 = vmatpush.bf16.msra.mxu3 %v8166_v37  ;;  %4383 = vmatpush.bf16.msra.mxu1 %v9098_v38  ;;  %v4158_v22 = vpop.f32.mrf.mxu3  ;;  %v8358_v37 = vor.u32 %v10641_v24, %v8355_v41  ;;  %v8953_v38 = vld [vmem:[%s16758_s3 + $0x7c0] sm:$0xf] }
 0x235   :  { %4424 = vmatpush.bf16.msrb.mxu0 %v8478_v8  ;;  %v8954_v57 = vor.u32 %v10794_v25, %v8953_v38 }
 0x236   :  { %4452 = vmatpush.bf16.msrb.mxu2 %v8814_v11  ;;  %v14725_v11 = vpop.f32.mrf.mxu0  ;;  %v4082_v31 = vpop.f32.mrf.mxu1 }
 0x237   :  { %4417 = vmatmul.bf16.vlgmr.msra.gmra.mxu3 %v13258_v33  ;;  %v10809_v33 = vld [vmem:[%s16758_s3 + $0x854] sm:$0xf] }
 0x238   :  { %4461 = vmatpush.bf16.msrb.mxu3 %v9102_v34  ;;  %4384 = vmatpush.bf16.msra.mxu1 %v9074_v48  ;;  %v8955_v34 = vld [vmem:[%s16758_s3 + $0x7d8] sm:$0xf0]  ;;  %v10731_v48 = vld [vmem:[%s16758_s3 + $0x5e4] sm:$0xf] }
 0x239   :  { %4425 = vmatpush.bf16.msrb.mxu0 %v8454_v52  ;;  %v8958_v28 = vor.u32 %v10791_v40, %v8955_v34  ;;  %v8930_v52 = vor.u32 %v10788_v43, %v8929_v39  ;;  %v8718_v54 = vor.u32 %v10731_v48, %v8715_v50 }
 0x23a   :  { %4453 = vmatpush.bf16.msrb.mxu2 %v8790_v30  ;;  %v9001_v30 = vld [vmem:[%s16758_s3 + $0x820] sm:$0xf] }
 0x23b   :  { %v9002_v13 = vor.u32 %v10806_v32, %v9001_v30  ;;  %v4172_v30 = vadd.f32 %v14725_v11, %v2556_v5 }
 0x23c   :  { %4462 = vmatpush.bf16.msrb.mxu3 %v9078_v51  ;;  %4385 = vmatpush.bf16.msra.mxu1 %v9050_v16  ;;  %v4160_v44 = vpop.f32.mrf.mxu3 }
 0x23d   :  { %4426 = vmatpush.bf16.msrb.mxu0 %v8430_v61  ;;  %v10719_v61 = vld [vmem:[%s16758_s3 + $0x584] sm:$0xf] }
 0x23e   :  { %4454 = vmatpush.bf16.msrb.mxu2 %v8766_v26  ;;  %v4173_v10 = vpop.f32.mrf.mxu0  ;;  %v8978_v26 = vor.u32 %v10800_v59, %v8977_v17  ;;  %v4132_v51 = vpop.f32.mrf.mxu1  ;;  %v8670_v12 = vor.u32 %v10719_v61, %v8667_v6 }
 0x23f   :  { %v4133_v49 = vadd.f32 %v4132_v51, %v14619_v60  ;;  %v10701_v10 = vld [vmem:[%s16758_s3 + $0x4f4] sm:$0xf] }
 0x240   :  { %4463 = vmatpush.bf16.msrb.mxu3 %v9054_v21  ;;  %4386 = vmatpush.bf16.msra.mxu1 %v9026_v2 }
 0x241   :  { %4427 = vmatpush.bf16.msrb.mxu0 %v8406_v63  ;;  %v4146_v56 = vadd.f32 %v14550_v19, %v4133_v49  ;;  %v8619_v63 = vld [vmem:[%s16758_s3 + $0x538] sm:$0xf0] }
 0x242   :  { %4455 = vmatpush.bf16.msrb.mxu2 %v8742_v46  ;;  %v8931_v46 = vld [vmem:[%s16758_s3 + $0x7a8] sm:$0xf0] }
 0x243   :  { %v8934_v53 = vor.u32 %v10785_v1, %v8931_v46  ;;  %v14824_v21 = vadd.f32 %v4158_v22, %v4146_v56  ;;  %v8571_v22 = vld [vmem:[%s16758_s3 + $0x4d8] sm:$0xf0] }
 0x244   :  { %4387 = vmatpush.bf16.msra.mxu1 %v9002_v13  ;;  %v4210_v60 = vpop.f32.mrf.mxu3  ;;  %v8595_v13 = vld [vmem:[%s16758_s3 + $0x508] sm:$0xf0] }
 0x245   :  { %4456 = vmatmul.bf16.vlgmr.msrb.gmra.mxu2 %v13705_v42  ;;  %v9030_v42 = vor.u32 %v10809_v33, %v9027_v58  ;;  %4428 = vmatpush.bf16.msrb.mxu0 %v8382_v9  ;;  %v10713_v58 = vld [vmem:[%s16758_s3 + $0x554] sm:$0xf]  ;;  %v8598_v11 = vor.u32 %v10701_v10, %v8595_v13  ;;  %v4476_v13 = vsel %vm4474_vm0, %v14824_v21, 0.0 }
 0x246   :  { %v4134_v19 = vpop.f32.mrf.mxu1 }
 0x247   :  { %4464 = vmatpush.bf16.msrb.mxu3 %v9030_v42  ;;  %v10707_v42 = vld [vmem:[%s16758_s3 + $0x524] sm:$0xf] }
 0x248   :  { %v4249_v8 = vpop.f32.mrf.mxu2  ;;  %4388 = vmatpush.bf16.msra.mxu1 %v8978_v26  ;;  %v8622_v4 = vor.u32 %v10707_v42, %v8619_v63  ;;  %v8574_v26 = vor.u32 %v10695_v20, %v8571_v22 }
 0x249   :  { %4429 = vmatpush.bf16.msrb.mxu0 %v8358_v37  ;;  %v4223_v33 = vpop.f32.mrf.mxu0  ;;  %v4250_v9 = vadd.f32 %v4249_v8, %v2557_v7 }
 0x24b   :  { %4465 = vmatpush.bf16.msrb.mxu3 %v9006_v14 }
 0x24c   :  { %4389 = vmatpush.bf16.msra.mxu1 %v8954_v57  ;;  %4430 = vmatmul.bf16.vlgmr.msrb.gmra.mxu0 %v13260_v36  ;;  %v8694_v36 = vor.u32 %v10725_v55, %v8691_v47  ;;  %v4212_v2 = vpop.f32.mrf.mxu3 }
 0x24e   :  { %v4184_v32 = vpop.f32.mrf.mxu1 }
 0x24f   :  { %4466 = vmatpush.bf16.msrb.mxu3 %v8982_v18  ;;  %v4185_v27 = vadd.f32 %v4184_v32, %v4172_v30  ;;  %v8547_v18 = vld [vmem:[%s16758_s3 + $0x4a8] sm:$0xf0] }
 0x250   :  { %v4251_v16 = vpop.f32.mrf.mxu2  ;;  %4390 = vmatpush.bf16.msra.mxu1 %v8930_v52 }
 0x251   :  { %v4225_v62 = vpop.f32.mrf.mxu0  ;;  %v4198_v14 = vadd.f32 %v14660_v15, %v4185_v27  ;;  %v10689_v15 = vld [vmem:[%s16758_s3 + $0x494] sm:$0xf] }
 0x252   :  { %v8550_v37 = vor.u32 %v10689_v15, %v8547_v18  ;;  %v2559_v62 = vperm.slane %v14843_v29, 5 }
 0x253   :  { %4467 = vmatpush.bf16.msrb.mxu3 %v8958_v28  ;;  %4391 = vmatmul.bf16.vlgmr.msra.gmra.mxu1 %v13884_v45  ;;  %v4211_v17 = vadd.f32 %v4210_v60, %v4198_v14 }
 0x254   :  { %4435 = vmatpush.bf16.msrb.mxu1 %v8718_v54 }
 0x255   :  { %v4224_v24 = vadd.f32 %v4223_v33, %v4211_v17 }
 0x256   :  { %v4186_v41 = vpop.f32.mrf.mxu1 }
 0x257   :  { %4468 = vmatpush.bf16.msrb.mxu3 %v8934_v53 }
 0x258   :  { %4436 = vmatpush.bf16.msrb.mxu1 %v8694_v36  ;;  %v2558_v36 = vperm.slane %v14843_v29, 4 }
 0x25a   :  { %4469 = vmatmul.bf16.vlgmr.msrb.gmra.mxu3 %v13884_v45  ;;  %v8646_v45 = vor.u32 %v10713_v58, %v8643_v0  ;;  %v4262_v59 = vpop.f32.mrf.mxu3 }
 0x25b   :  { %v4263_v23 = vadd.f32 %v4262_v59, %v4250_v9  ;;  %v4475_v9 = vsel %vm4474_vm0, %v14747_v3, 0.0 }
 0x25c   :  { %4437 = vmatpush.bf16.msrb.mxu1 %v8670_v12  ;;  %v4477_v20 = vadd.f32 %v4476_v13, %v4475_v9  ;;  %v9201_v13 = vld [vmem:[%s16760_s5 + $0xc0] sm:$0xf] }
 0x25d   :  { %v9393_v9 = vld [vmem:[%s16760_s5 + $0x240] sm:$0xf] }
 0x260   :  { %4438 = vmatpush.bf16.msrb.mxu1 %v8646_v45 }
 0x262   :  { %v4264_v38 = vpop.f32.mrf.mxu3 }
 0x264   :  { %4439 = vmatpush.bf16.msrb.mxu1 %v8622_v4 }
 0x267   :  { %v4275_v40 = vpop.f32.mrf.mxu0 }
 0x268   :  { %v4301_v31 = vpop.f32.mrf.mxu2  ;;  %4440 = vmatpush.bf16.msrb.mxu1 %v8598_v11  ;;  %v4276_v34 = vadd.f32 %v4275_v40, %v4263_v23  ;;  %v11159_v40 = vmov 768.0  }
 0x269   :  { %11121 = vrcp.f32 %v11159_v40  ;;  %v9561_v40 = vld [vmem:[%s16760_s5 + $0x390] sm:$0xf] }
 0x26c   :  { %4441 = vmatpush.bf16.msrb.mxu1 %v8574_v26 }
 0x26f   :  { %v4277_v28 = vpop.f32.mrf.mxu0 }
 0x270   :  { %v4303_v25 = vpop.f32.mrf.mxu2  ;;  %4442 = vmatpush.bf16.msrb.mxu1 %v8550_v37  ;;  %v4236_v8 = vpop.f32.mrf.mxu1 }
 0x271   :  { %v14874_v57 = vadd.f32 %v4236_v8, %v4224_v24 }
 0x273   :  { %4443 = vmatmul.bf16.vlgmr.msrb.gmra.mxu1 %v13360_v35  ;;  %v4478_v11 = vsel %vm4474_vm0, %v14874_v57, 0.0 }
 0x274   :  { %v4479_v24 = vadd.f32 %v4478_v11, %v4477_v20  ;;  %v9585_v20 = vld [vmem:[%s16760_s5 + $0x3c0] sm:$0xf] }
 0x278   :  { %v4238_v43 = vpop.f32.mrf.mxu1 }
 0x279   :  { %v10876_v43 = vld [vmem:[%s16760_s5 + $0x164] sm:$0xf0] }
 0x27a   :  { %v4314_v39 = vpop.f32.mrf.mxu3 }
 0x282   :  { %v4316_v44 = vpop.f32.mrf.mxu3 }
 0x288   :  { %v4353_v1 = vpop.f32.mrf.mxu2 }
 0x28b   :  { %v4327_v48 = vpop.f32.mrf.mxu0 }
 0x28c   :  { %v4328_v60 = vadd.f32 %v4327_v48, %v2558_v36  ;;  %v9657_v48 = vld [vmem:[%s16760_s5 + $0x450] sm:$0xf] }
 0x290   :  { %v4355_v46 = vpop.f32.mrf.mxu2  ;;  %v4288_v50 = vpop.f32.mrf.mxu1 }
 0x291   :  { %v4289_v51 = vadd.f32 %v4288_v50, %v4276_v34  ;;  %v14896_v34 = vpop.eup %11121  ;;  %v10924_v46 = vld [vmem:[%s16760_s5 + $0x2e4] sm:$0xf0] }
 0x292   :  { %v4489_v8 = vmul.f32 768.0, %v14896_v34  ;;  %v10972_v50 = vld [vmem:[%s16760_s5 + $0x464] sm:$0xf0]  ;;  %vm4493_vm1 = vweird.f32 %v14896_v34 }
 0x293   :  { %v4329_v52 = vpop.f32.mrf.mxu0  ;;  %v4302_v49 = vadd.f32 %v4301_v31, %v4289_v51 }
 0x294   :  { %v4490_v28 = vsub.f32 1.0, %v4489_v8  ;;  %v9658_v52 = vor.u32 %v10972_v50, %v9657_v48  ;;  %v10846_v48 = vld [vmem:[%s16760_s5 + $0x74] sm:$0xf0] }
 0x295   :  { %v14876_v53 = vadd.f32 %v4314_v39, %v4302_v49  ;;  %v9273_v39 = vld [vmem:[%s16760_s5 + $0x150] sm:$0xf] }
 0x296   :  { %v9274_v44 = vor.u32 %v10876_v43, %v9273_v39  ;;  %v9849_v49 = vld [vmem:[%s16760_s5 + $0x5d0] sm:$0xf]  ;;  %v4491_v36 = vmul.f32 %v14896_v34, %v4490_v28  ;;  %6313 = vmatpush.bf16.msra.mxu2 %v9658_v52  ;;  %v10996_v39 = vld [vmem:[%s16760_s5 + $0x524] sm:$0xf0] }
 0x297   :  { %v4480_v29 = vsel %vm4474_vm0, %v14876_v53, 0.0  ;;  %v9753_v28 = vld [vmem:[%s16760_s5 + $0x510] sm:$0xf] }
 0x298   :  { %v4290_v35 = vpop.f32.mrf.mxu1  ;;  %v4481_v26 = vadd.f32 %v4480_v29, %v4479_v24  ;;  %6287 = vmatpush.bf16.msra.mxu0 %v9274_v44  ;;  %v11002_v29 = vld [vmem:[%s16760_s5 + $0x554] sm:$0xf0]  ;;  %v9754_v52 = vor.u32 %v10996_v39, %v9753_v28  ;;  %v10233_v28 = vld [vmem:[%s16760_s5 + $0x8d0] sm:$0xf]  ;;  %v11116_v39 = vld [vmem:[%s16760_s5 + $0x8e4] sm:$0xf0] }
 0x299   :  { %v9249_v35 = vld [vmem:[%s16760_s5 + $0x120] sm:$0xf] }
 0x29a   :  { %v4366_v54 = vpop.f32.mrf.mxu3 }
 0x2a2   :  { %v4368_v47 = vpop.f32.mrf.mxu3 }
 0x2a3   :  { %v10870_v47 = vld [vmem:[%s16760_s5 + $0x134] sm:$0xf0] }
 0x2a8   :  { %v4405_v55 = vpop.f32.mrf.mxu2 }
 0x2a9   :  { %v4406_v10 = vadd.f32 %v4405_v55, %v2559_v62 }
 0x2ab   :  { %v4379_v16 = vpop.f32.mrf.mxu0 }
 0x2b0   :  { %v4407_v56 = vpop.f32.mrf.mxu2  ;;  %v4340_v61 = vpop.f32.mrf.mxu1 }
 0x2b1   :  { %v4341_v6 = vadd.f32 %v4340_v61, %v4328_v60  ;;  %v9441_v56 = vld [vmem:[%s16760_s5 + $0x2a0] sm:$0xf]  ;;  %v9250_v60 = vor.u32 %v10870_v47, %v9249_v35 }
 0x2b2   :  { %v9537_v35 = vld [vmem:[%s16760_s5 + $0x360] sm:$0xf] }
 0x2b3   :  { %v4381_v19 = vpop.f32.mrf.mxu0  ;;  %v4354_v12 = vadd.f32 %v4353_v1, %v4341_v6  ;;  %v9465_v1 = vld [vmem:[%s16760_s5 + $0x2d0] sm:$0xf]  ;;  %v9633_v6 = vld [vmem:[%s16760_s5 + $0x420] sm:$0xf]  ;;  %6288 = vmatpush.bf16.msra.mxu0 %v9250_v60 }
 0x2b4   :  { %v9466_v51 = vor.u32 %v10924_v46, %v9465_v1  ;;  %v10966_v19 = vld [vmem:[%s16760_s5 + $0x434] sm:$0xf0]  ;;  %v9153_v46 = vld [vmem:[%s16760_s5 + $0x60] sm:$0xf] }
 0x2b5   :  { %v4367_v33 = vadd.f32 %v4366_v54, %v4354_v12  ;;  %v11020_v54 = vld [vmem:[%s16760_s5 + $0x5e4] sm:$0xf0]  ;;  %v9825_v12 = vld [vmem:[%s16760_s5 + $0x5a0] sm:$0xf] }
 0x2b6   :  { %v9850_v55 = vor.u32 %v11020_v54, %v9849_v49  ;;  %6300 = vmatpush.bf16.msra.mxu1 %v9466_v51  ;;  %v9345_v49 = vld [vmem:[%s16760_s5 + $0x1e0] sm:$0xf]  ;;  %v10894_v54 = vld [vmem:[%s16760_s5 + $0x1f4] sm:$0xf0] }
 0x2b7   :  { %v4380_v0 = vadd.f32 %v4379_v16, %v4367_v33  ;;  %v10918_v16 = vld [vmem:[%s16760_s5 + $0x2b4] sm:$0xf0]  ;;  %v9634_v33 = vor.u32 %v10966_v19, %v9633_v6  ;;  %v9729_v60 = vld [vmem:[%s16760_s5 + $0x4e0] sm:$0xf]  ;;  %v9154_v6 = vor.u32 %v10846_v48, %v9153_v46  ;;  %v9129_v19 = vld [vmem:[%s16760_s5 + $0x30] sm:$0xf] }
 0x2b8   :  { %v4342_v5 = vpop.f32.mrf.mxu1  ;;  %v9442_v61 = vor.u32 %v10918_v16, %v9441_v56  ;;  %6326 = vmatpush.bf16.msra.mxu3 %v9850_v55  ;;  %v9275_v46 = vld [vmem:[%s16760_s5 + $0x168] sm:$0xf0]  ;;  %v10921_v48 = vld [vmem:[%s16760_s5 + $0x2d4] sm:$0xf] }
 0x2b9   :  { %v10864_v5 = vld [vmem:[%s16760_s5 + $0x104] sm:$0xf0]  ;;  %6314 = vmatpush.bf16.msra.mxu2 %v9634_v33 }
 0x2ba   :  { %v4418_v58 = vpop.f32.mrf.mxu3  ;;  %6301 = vmatpush.bf16.msra.mxu1 %v9442_v61 }
 0x2bb   :  { %v4419_v14 = vadd.f32 %v4418_v58, %v4406_v10  ;;  %v11014_v58 = vld [vmem:[%s16760_s5 + $0x5b4] sm:$0xf0] }
 0x2c2   :  { %v4420_v2 = vpop.f32.mrf.mxu3 }
 0x2c3   :  { %v9417_v2 = vld [vmem:[%s16760_s5 + $0x270] sm:$0xf] }
 0x2c8   :  { %v4457_v45 = vpop.f32.mrf.mxu2 }
 0x2c9   :  { %v4431_v63 = vpop.f32.mrf.mxu0 }
 0x2ca   :  { %v4432_v17 = vadd.f32 %v4431_v63, %v4419_v14  ;;  %v9609_v63 = vld [vmem:[%s16760_s5 + $0x3f0] sm:$0xf]  ;;  %v10858_v14 = vld [vmem:[%s16760_s5 + $0xd4] sm:$0xf0] }
 0x2cb   :  { %v9202_v24 = vor.u32 %v10858_v14, %v9201_v13  ;;  %v10834_v14 = vld [vmem:[%s16760_s5 + $0x14] sm:$0xf0] }
 0x2d0   :  { %v4459_v42 = vpop.f32.mrf.mxu2  ;;  %v4392_v30 = vpop.f32.mrf.mxu1 }
 0x2d1   :  { %v4433_v32 = vpop.f32.mrf.mxu0  ;;  %v14886_v59 = vadd.f32 %v4392_v30, %v4380_v0  ;;  %v9225_v0 = vld [vmem:[%s16760_s5 + $0xf0] sm:$0xf]  ;;  %v10912_v42 = vld [vmem:[%s16760_s5 + $0x284] sm:$0xf0] }
 0x2d2   :  { %v9226_v30 = vor.u32 %v10864_v5, %v9225_v0  ;;  %v10960_v32 = vld [vmem:[%s16760_s5 + $0x404] sm:$0xf0]  ;;  %v9418_v62 = vor.u32 %v10912_v42, %v9417_v2  ;;  %v9321_v0 = vld [vmem:[%s16760_s5 + $0x1b0] sm:$0xf] }
 0x2d3   :  { %v4482_v41 = vsel %vm4474_vm0, %v14886_v59, 0.0  ;;  %v9610_v10 = vor.u32 %v10960_v32, %v9609_v63  ;;  %v10888_v5 = vld [vmem:[%s16760_s5 + $0x1c4] sm:$0xf0] }
 0x2d4   :  { %v4483_v18 = vadd.f32 %v4482_v41, %v4481_v26  ;;  %6289 = vmatpush.bf16.msra.mxu0 %v9226_v30  ;;  %v9177_v41 = vld [vmem:[%s16760_s5 + $0x90] sm:$0xf]  ;;  %6302 = vmatpush.bf16.msra.mxu1 %v9418_v62  ;;  %v10936_v32 = vld [vmem:[%s16760_s5 + $0x344] sm:$0xf0]  ;;  %v9105_v62 = vld [vmem:[%s16760_s5] sm:$0xf] }
 0x2d5   :  { %6315 = vmatpush.bf16.msra.mxu2 %v9610_v10  ;;  %v9513_v30 = vld [vmem:[%s16760_s5 + $0x330] sm:$0xf] }
 0x2d8   :  { %v4394_v27 = vpop.f32.mrf.mxu1  ;;  %6290 = vmatpush.bf16.msra.mxu0 %v9202_v24 }
 0x2d9   :  { %v11008_v27 = vld [vmem:[%s16760_s5 + $0x584] sm:$0xf0] }
 0x2dd   :  { %v4470_v7 = vpop.f32.mrf.mxu3 }
 0x2e5   :  { %v4472_v4 = vpop.f32.mrf.mxu3 }
 0x2e6   :  { %v4492_v4 = vadd.f32 %v14896_v34, %v4491_v36  ;;  %v10942_v36 = vld [vmem:[%s16760_s5 + $0x374] sm:$0xf0] }
 0x2e8   :  { %v15005_v26 = vsel %vm4493_vm1, %v14896_v34, %v4492_v4  ;;  %v10948_v34 = vld [vmem:[%s16760_s5 + $0x3a4] sm:$0xf0] }
 0x2e9   :  { %v9562_v51 = vor.u32 %v10948_v34, %v9561_v40  ;;  %v10984_v4 = vld [vmem:[%s16760_s5 + $0x4c4] sm:$0xf0]  ;;  %v10041_v40 = vld [vmem:[%s16760_s5 + $0x750] sm:$0xf]  ;;  %v9106_v34 = vor.u32 %v10834_v14, %v9105_v62 }
 0x2f0   :  { %v4444_v22 = vpop.f32.mrf.mxu1 }
 0x2f1   :  { %v4445_v23 = vadd.f32 %v4444_v22, %v4432_v17  ;;  %v10906_v17 = vld [vmem:[%s16760_s5 + $0x254] sm:$0xf0] }
 0x2f2   :  { %v10954_v22 = vld [vmem:[%s16760_s5 + $0x3d4] sm:$0xf0] }
 0x2f3   :  { %v4458_v31 = vadd.f32 %v4457_v45, %v4445_v23  ;;  %v9826_v45 = vor.u32 %v11014_v58, %v9825_v12  ;;  %v9777_v23 = vld [vmem:[%s16760_s5 + $0x540] sm:$0xf]  ;;  %v9346_v12 = vor.u32 %v10894_v54, %v9345_v49  ;;  %v10840_v58 = vld [vmem:[%s16760_s5 + $0x44] sm:$0xf0] }
 0x2f4   :  { %v9778_v8 = vor.u32 %v11002_v29, %v9777_v23  ;;  %v9130_v13 = vor.u32 %v10840_v58, %v9129_v19  ;;  %v9489_v23 = vld [vmem:[%s16760_s5 + $0x300] sm:$0xf]  ;;  %v10930_v29 = vld [vmem:[%s16760_s5 + $0x314] sm:$0xf0] }
 0x2f5   :  { %v14892_v15 = vadd.f32 %v4470_v7, %v4458_v31  ;;  %v9801_v7 = vld [vmem:[%s16760_s5 + $0x570] sm:$0xf]  ;;  %6327 = vmatpush.bf16.msra.mxu3 %v9826_v45  ;;  %v10852_v31 = vld [vmem:[%s16760_s5 + $0xa4] sm:$0xf0]  ;;  %v11110_v19 = vld [vmem:[%s16760_s5 + $0x8b4] sm:$0xf0] }
 0x2f6   :  { %v9802_v11 = vor.u32 %v11008_v27, %v9801_v7  ;;  %v9178_v44 = vor.u32 %v10852_v31, %v9177_v41  ;;  %v9705_v27 = vld [vmem:[%s16760_s5 + $0x4b0] sm:$0xf] }
 0x2f7   :  { %v4484_v37 = vsel %vm4474_vm0, %v14892_v15, 0.0  ;;  %v9706_v31 = vor.u32 %v10984_v4, %v9705_v27  ;;  %v9227_v27 = vld [vmem:[%s16760_s5 + $0x108] sm:$0xf0] }
 0x2f8   :  { %v4446_v38 = vpop.f32.mrf.mxu1  ;;  %v4485_v25 = vadd.f32 %v4484_v37, %v4483_v18  ;;  %v9394_v18 = vor.u32 %v10906_v17, %v9393_v9  ;;  %v9586_v37 = vor.u32 %v10954_v22, %v9585_v20  ;;  %6291 = vmatpush.bf16.msra.mxu0 %v9178_v44  ;;  %v9297_v9 = vld [vmem:[%s16760_s5 + $0x180] sm:$0xf]  ;;  %v9322_v17 = vor.u32 %v10888_v5, %v9321_v0  ;;  %v10882_v22 = vld [vmem:[%s16760_s5 + $0x194] sm:$0xf0]  ;;  %v10915_v0 = vld [vmem:[%s16760_s5 + $0x2a4] sm:$0xf] }
 0x2f9   :  { %v9369_v38 = vld [vmem:[%s16760_s5 + $0x210] sm:$0xf]  ;;  %6328 = vmatpush.bf16.msra.mxu3 %v9802_v11  ;;  %v9514_v20 = vor.u32 %v10936_v32, %v9513_v30  ;;  %v9298_v44 = vor.u32 %v10882_v22, %v9297_v9  ;;  %v9443_v5 = vld [vmem:[%s16760_s5 + $0x2b8] sm:$0xf0]  ;;  %v9969_v9 = vld [vmem:[%s16760_s5 + $0x6c0] sm:$0xf] }
 0x2fa   :  { %4486 = vadd.xlane.f32.xlu0 %v4485_v25  ;;  %v10900_v25 = vld [vmem:[%s16760_s5 + $0x224] sm:$0xf0]  ;;  %6303 = vmatpush.bf16.msra.mxu1 %v9394_v18  ;;  %v9681_v18 = vld [vmem:[%s16760_s5 + $0x480] sm:$0xf]  ;;  %v10185_v30 = vld [vmem:[%s16760_s5 + $0x870] sm:$0xf] }
 0x2fb   :  { %6316 = vmatpush.bf16.msra.mxu2 %v9586_v37  ;;  %v9370_v50 = vor.u32 %v10900_v25, %v9369_v38  ;;  %v10978_v37 = vld [vmem:[%s16760_s5 + $0x494] sm:$0xf0] }
 0x2fc   :  { %6292 = vmatpush.bf16.msra.mxu0 %v9154_v6  ;;  %v9682_v49 = vor.u32 %v10978_v37, %v9681_v18  ;;  %v11098_v22 = vld [vmem:[%s16760_s5 + $0x854] sm:$0xf0]  ;;  %v9395_v18 = vld [vmem:[%s16760_s5 + $0x258] sm:$0xf0] }
 0x2fd   :  { %6329 = vmatpush.bf16.msra.mxu3 %v9778_v8  ;;  %v11068_v8 = vld [vmem:[%s16760_s5 + $0x764] sm:$0xf0] }
 0x2fe   :  { %6304 = vmatpush.bf16.msra.mxu1 %v9370_v50  ;;  %v9467_v50 = vld [vmem:[%s16760_s5 + $0x2e8] sm:$0xf0] }
 0x2ff   :  { %6317 = vmatpush.bf16.msra.mxu2 %v9562_v51 }
 0x300   :  { %6293 = vmatpush.bf16.msra.mxu0 %v9130_v13  ;;  %v9419_v13 = vld [vmem:[%s16760_s5 + $0x288] sm:$0xf0] }
 0x301   :  { %6330 = vmatpush.bf16.msra.mxu3 %v9754_v52  ;;  %v9490_v52 = vor.u32 %v10930_v29, %v9489_v23  ;;  %v10855_v23 = vld [vmem:[%s16760_s5 + $0xc4] sm:$0xf]  ;;  %v9203_v29 = vld [vmem:[%s16760_s5 + $0xd8] sm:$0xf0] }
 0x302   :  { %6305 = vmatpush.bf16.msra.mxu1 %v9346_v12  ;;  %v10867_v12 = vld [vmem:[%s16760_s5 + $0x124] sm:$0xf] }
 0x304   :  { %6294 = vmatpush.bf16.msra.mxu0 %v9106_v34  ;;  %v11092_v34 = vld [vmem:[%s16760_s5 + $0x824] sm:$0xf0] }
 0x306   :  { %6306 = vmatpush.bf16.msra.mxu1 %v9322_v17  ;;  %v10161_v17 = vld [vmem:[%s16760_s5 + $0x840] sm:$0xf] }
 0x30a   :  { %6307 = vmatpush.bf16.msra.mxu1 %v9298_v44  ;;  %v10897_v44 = vld [vmem:[%s16760_s5 + $0x214] sm:$0xf] }
 0x36d   :  { %v4487_v43 = vpop.xlane.xlu0 %4486 }
 0x36e   :  { %v4495_v1 = vmul.f32 %v15005_v26, %v4487_v43  ;;  %v10873_v43 = vld [vmem:[%s16760_s5 + $0x154] sm:$0xf] }
 0x370   :  { %v15042_v55 = vsub.f32 %v14747_v3, %v4495_v1  ;;  %v15045_v47 = vsub.f32 %v14824_v21, %v4495_v1  ;;  %v15048_v56 = vsub.f32 %v14874_v57, %v4495_v1  ;;  %v15051_v16 = vsub.f32 %v14876_v53, %v4495_v1  ;;  %v10990_v3 = vld [vmem:[%s16760_s5 + $0x4f4] sm:$0xf0] }
 0x371   :  { %v15063_v21 = vsub.f32 %v14886_v59, %v4495_v1  ;;  %v9538_v59 = vor.u32 %v10942_v36, %v9537_v35  ;;  %v9730_v33 = vor.u32 %v10990_v3, %v9729_v60  ;;  %v15084_v45 = vsub.f32 %v14892_v15, %v4495_v1 }
 0x372   :  { %v4502_v57 = vmul.f32 %v15042_v55, %v15042_v55  ;;  %v4503_v53 = vmul.f32 %v15045_v47, %v15045_v47  ;;  %v4504_v61 = vmul.f32 %v15048_v56, %v15048_v56  ;;  %v4505_v2 = vmul.f32 %v15051_v16, %v15051_v16 }
 0x373   :  { %v4506_v15 = vmul.f32 %v15063_v21, %v15063_v21  ;;  %6318 = vmatpush.bf16.msra.mxu2 %v9538_v59  ;;  %v4507_v24 = vmul.f32 %v15084_v45, %v15084_v45  ;;  %6331 = vmatpush.bf16.msra.mxu3 %v9730_v33  ;;  %v10042_v35 = vor.u32 %v11068_v8, %v10041_v40  ;;  %v9251_v59 = vld [vmem:[%s16760_s5 + $0x138] sm:$0xf0]  ;;  %v10137_v40 = vld [vmem:[%s16760_s5 + $0x810] sm:$0xf] }
 0x374   :  { %v4508_v42 = vsel %vm4474_vm0, %v4502_v57, 0.0  ;;  %v4509_v63 = vsel %vm4474_vm0, %v4503_v53, 0.0  ;;  %v4511_v10 = vsel %vm4474_vm0, %v4504_v61, 0.0  ;;  %v4513_v41 = vsel %vm4474_vm0, %v4505_v2, 0.0  ;;  %v10017_v57 = vld [vmem:[%s16760_s5 + $0x720] sm:$0xf] }
 0x375   :  { %v4510_v7 = vadd.f32 %v4509_v63, %v4508_v42  ;;  %v4515_v25 = vsel %vm4474_vm0, %v4506_v15, 0.0  ;;  %v4517_v51 = vsel %vm4474_vm0, %v4507_v24, 0.0  ;;  %v10234_v36 = vor.u32 %v11116_v39, %v10233_v28  ;;  %6339 = vmatpush.bf16.msrb.mxu0 %v10042_v35  ;;  %v11062_v53 = vld [vmem:[%s16760_s5 + $0x734] sm:$0xf0]  ;;  %v10209_v61 = vld [vmem:[%s16760_s5 + $0x8a0] sm:$0xf] }
 0x376   :  { %v9278_v60 = vor.u32 %v10873_v43, %v9275_v46  ;;  %v9470_v3 = vor.u32 %v10921_v48, %v9467_v50  ;;  %v10018_v6 = vor.u32 %v11062_v53, %v10017_v57  ;;  %v10210_v33 = vor.u32 %v11110_v19, %v10209_v61  ;;  %v9993_v42 = vld [vmem:[%s16760_s5 + $0x6f0] sm:$0xf]  ;;  %v11056_v63 = vld [vmem:[%s16760_s5 + $0x704] sm:$0xf0]  ;;  %v10849_v28 = vld [vmem:[%s16760_s5 + $0x94] sm:$0xf] }
 0x377   :  { %v4512_v11 = vadd.f32 %v4511_v10, %v4510_v7  ;;  %6319 = vmatpush.bf16.msra.mxu2 %v9514_v20  ;;  %6332 = vmatpush.bf16.msra.mxu3 %v9706_v31  ;;  %v9254_v58 = vor.u32 %v10867_v12, %v9251_v59  ;;  %v9446_v2 = vor.u32 %v10915_v0, %v9443_v5  ;;  %v11104_v15 = vld [vmem:[%s16760_s5 + $0x884] sm:$0xf0]  ;;  %v10861_v7 = vld [vmem:[%s16760_s5 + $0xf4] sm:$0xf]  ;;  %v10903_v31 = vld [vmem:[%s16760_s5 + $0x244] sm:$0xf] }
 0x378   :  { %6352 = vmatpush.bf16.msrb.mxu1 %v10234_v36  ;;  %v9994_v32 = vor.u32 %v11056_v63, %v9993_v42  ;;  %v10186_v4 = vor.u32 %v11104_v15, %v10185_v30  ;;  %v9230_v62 = vor.u32 %v10861_v7, %v9227_v27  ;;  %v10909_v10 = vld [vmem:[%s16760_s5 + $0x274] sm:$0xf]  ;;  %v10162_v24 = vor.u32 %v11098_v22, %v10161_v17  ;;  %v9179_v39 = vld [vmem:[%s16760_s5 + $0xa8] sm:$0xf0]  ;;  %v9921_v50 = vld [vmem:[%s16760_s5 + $0x660] sm:$0xf] }
 0x379   :  { %v4514_v38 = vadd.f32 %v4513_v41, %v4512_v11  ;;  %6340 = vmatpush.bf16.msrb.mxu0 %v10018_v6  ;;  %v9422_v14 = vor.u32 %v10909_v10, %v9419_v13  ;;  %v11050_v11 = vld [vmem:[%s16760_s5 + $0x6d4] sm:$0xf0]  ;;  %v9206_v41 = vor.u32 %v10855_v23, %v9203_v29  ;;  %v9398_v37 = vor.u32 %v10903_v31, %v9395_v18  ;;  %v9371_v46 = vld [vmem:[%s16760_s5 + $0x228] sm:$0xf0]  ;;  %v10843_v35 = vld [vmem:[%s16760_s5 + $0x64] sm:$0xf] }
 0x37a   :  { %v9970_v20 = vor.u32 %v11050_v11, %v9969_v9  ;;  %v10138_v43 = vor.u32 %v11092_v34, %v10137_v40  ;;  %v9374_v48 = vor.u32 %v10897_v44, %v9371_v46  ;;  %v9155_v36 = vld [vmem:[%s16760_s5 + $0x78] sm:$0xf0]  ;;  %v10891_v57 = vld [vmem:[%s16760_s5 + $0x1e4] sm:$0xf]  ;;  %v9897_v6 = vld [vmem:[%s16760_s5 + $0x630] sm:$0xf] }
 0x37b   :  { %v4516_v1 = vadd.f32 %v4515_v25, %v4514_v38  ;;  %6320 = vmatpush.bf16.msra.mxu2 %v9490_v52  ;;  %6333 = vmatpush.bf16.msra.mxu3 %v9682_v49  ;;  %v9945_v38 = vld [vmem:[%s16760_s5 + $0x690] sm:$0xf]  ;;  %v11044_v25 = vld [vmem:[%s16760_s5 + $0x6a4] sm:$0xf0]  ;;  %v10113_v52 = vld [vmem:[%s16760_s5 + $0x7e0] sm:$0xf] }
 0x37c   :  { %6353 = vmatpush.bf16.msrb.mxu1 %v10210_v33  ;;  %v9946_v8 = vor.u32 %v11044_v25, %v9945_v38  ;;  %v9347_v53 = vld [vmem:[%s16760_s5 + $0x1f8] sm:$0xf0]  ;;  %v11032_v19 = vld [vmem:[%s16760_s5 + $0x644] sm:$0xf0]  ;;  %v10089_v12 = vld [vmem:[%s16760_s5 + $0x7b0] sm:$0xf] }
 0x37d   :  { %v4518_v54 = vadd.f32 %v4517_v51, %v4516_v1  ;;  %6341 = vmatpush.bf16.msrb.mxu0 %v9994_v32  ;;  %v9182_v1 = vor.u32 %v10849_v28, %v9179_v39  ;;  %v11038_v51 = vld [vmem:[%s16760_s5 + $0x674] sm:$0xf0]  ;;  %v9350_v61 = vor.u32 %v10891_v57, %v9347_v53  ;;  %v9898_v59 = vor.u32 %v11032_v19, %v9897_v6  ;;  %v11080_v33 = vld [vmem:[%s16760_s5 + $0x7c4] sm:$0xf0]  ;;  %v9131_v0 = vld [vmem:[%s16760_s5 + $0x48] sm:$0xf0] }
 0x37e   :  { %v9922_v49 = vor.u32 %v11038_v51, %v9921_v50  ;;  %v10090_v5 = vor.u32 %v11080_v33, %v10089_v12  ;;  %v10885_v42 = vld [vmem:[%s16760_s5 + $0x1b4] sm:$0xf]  ;;  %v9323_v63 = vld [vmem:[%s16760_s5 + $0x1c8] sm:$0xf0]  ;;  %v9873_v32 = vld [vmem:[%s16760_s5 + $0x600] sm:$0xf] }
 0x37f   :  { %4519 = vadd.xlane.f32.xlu0 %v4518_v54  ;;  %6365 = vmatpush.bf16.msrb.mxu2 %v9278_v60  ;;  %v11086_v54 = vld [vmem:[%s16760_s5 + $0x7f4] sm:$0xf0]  ;;  %v9326_v30 = vor.u32 %v10885_v42, %v9323_v63  ;;  %v10065_v7 = vld [vmem:[%s16760_s5 + $0x780] sm:$0xf]  ;;  %v9107_v10 = vld [vmem:[%s16760_s5 + $0x18] sm:$0xf0] }
 0x380   :  { %6378 = vmatpush.bf16.msrb.mxu3 %v9470_v3  ;;  %6354 = vmatpush.bf16.msrb.mxu1 %v10186_v4  ;;  %v10114_v60 = vor.u32 %v11086_v54, %v10113_v52  ;;  %v9158_v3 = vor.u32 %v10843_v35, %v9155_v36  ;;  %v11026_v15 = vld [vmem:[%s16760_s5 + $0x614] sm:$0xf0]  ;;  %v10879_v9 = vld [vmem:[%s16760_s5 + $0x184] sm:$0xf]  ;;  %v9299_v11 = vld [vmem:[%s16760_s5 + $0x198] sm:$0xf0] }
 0x381   :  { %6342 = vmatpush.bf16.msrb.mxu0 %v9970_v20  ;;  %v9874_v27 = vor.u32 %v11026_v15, %v9873_v32  ;;  %v11074_v4 = vld [vmem:[%s16760_s5 + $0x794] sm:$0xf0]  ;;  %v9302_v17 = vor.u32 %v10879_v9, %v9299_v11  ;;  %v10969_v38 = vld [vmem:[%s16760_s5 + $0x454] sm:$0xf]  ;;  %v9659_v25 = vld [vmem:[%s16760_s5 + $0x468] sm:$0xf0] }
 0x382   :  { %v10066_v13 = vor.u32 %v11074_v4, %v10065_v7  ;;  %v9851_v40 = vld [vmem:[%s16760_s5 + $0x5e8] sm:$0xf0]  ;;  %v11065_v34 = vld [vmem:[%s16760_s5 + $0x754] sm:$0xf]  ;;  %v10963_v52 = vld [vmem:[%s16760_s5 + $0x424] sm:$0xf] }
 0x383   :  { %6366 = vmatpush.bf16.msrb.mxu2 %v9254_v58  ;;  %v10837_v58 = vld [vmem:[%s16760_s5 + $0x34] sm:$0xf]  ;;  %v10043_v44 = vld [vmem:[%s16760_s5 + $0x768] sm:$0xf0]  ;;  %v11011_v36 = vld [vmem:[%s16760_s5 + $0x5a4] sm:$0xf] }
 0x384   :  { %6379 = vmatpush.bf16.msrb.mxu3 %v9446_v2  ;;  %6355 = vmatpush.bf16.msrb.mxu1 %v10162_v24  ;;  %v9134_v2 = vor.u32 %v10837_v58, %v9131_v0  ;;  %v11113_v46 = vld [vmem:[%s16760_s5 + $0x8d4] sm:$0xf]  ;;  %v10046_v54 = vor.u32 %v11065_v34, %v10043_v44  ;;  %v10019_v57 = vld [vmem:[%s16760_s5 + $0x738] sm:$0xf0]  ;;  %v11107_v53 = vld [vmem:[%s16760_s5 + $0x8a4] sm:$0xf] }
 0x385   :  { %6343 = vmatpush.bf16.msrb.mxu0 %v9946_v8  ;;  %v10957_v12 = vld [vmem:[%s16760_s5 + $0x3f4] sm:$0xf]  ;;  %v9995_v42 = vld [vmem:[%s16760_s5 + $0x708] sm:$0xf0]  ;;  %v10951_v7 = vld [vmem:[%s16760_s5 + $0x3c4] sm:$0xf] }
 0x386   :  { %v11005_v0 = vld [vmem:[%s16760_s5 + $0x574] sm:$0xf]  ;;  %v9971_v9 = vld [vmem:[%s16760_s5 + $0x6d8] sm:$0xf0]  ;;  %v11095_v11 = vld [vmem:[%s16760_s5 + $0x844] sm:$0xf] }
 0x387   :  { %6367 = vmatpush.bf16.msrb.mxu2 %v9230_v62  ;;  %v10831_v62 = vld [vmem:[%s16760_s5 + $0x4] sm:$0xf]  ;;  %v11101_v63 = vld [vmem:[%s16760_s5 + $0x874] sm:$0xf] }
 0x388   :  { %6380 = vmatpush.bf16.msrb.mxu3 %v9422_v14  ;;  %6356 = vmatpush.bf16.msrb.mxu1 %v10138_v43  ;;  %v9110_v14 = vor.u32 %v10831_v62, %v9107_v10  ;;  %v10999_v10 = vld [vmem:[%s16760_s5 + $0x544] sm:$0xf] }
 0x389   :  { %6344 = vmatpush.bf16.msrb.mxu0 %v9922_v49  ;;  %v9635_v49 = vld [vmem:[%s16760_s5 + $0x438] sm:$0xf0] }
 0x38a   :  { %v9638_v6 = vor.u32 %v10963_v52, %v9635_v49  ;;  %v11083_v52 = vld [vmem:[%s16760_s5 + $0x7e4] sm:$0xf]  ;;  %v10115_v49 = vld [vmem:[%s16760_s5 + $0x7f8] sm:$0xf0] }
 0x38b   :  { %6368 = vmatpush.bf16.msrb.mxu2 %v9206_v41 }
 0x38c   :  { %6381 = vmatpush.bf16.msrb.mxu3 %v9398_v37  ;;  %6357 = vmatpush.bf16.msrb.mxu1 %v10114_v60  ;;  %v9827_v60 = vld [vmem:[%s16760_s5 + $0x5b8] sm:$0xf0] }
 0x38d   :  { %6345 = vmatpush.bf16.msrb.mxu0 %v9898_v59  ;;  %v9830_v19 = vor.u32 %v11011_v36, %v9827_v60  ;;  %v9611_v59 = vld [vmem:[%s16760_s5 + $0x408] sm:$0xf0]  ;;  %v10933_v36 = vld [vmem:[%s16760_s5 + $0x334] sm:$0xf] }
 0x38e   :  { %v9614_v32 = vor.u32 %v10957_v12, %v9611_v59  ;;  %v9515_v60 = vld [vmem:[%s16760_s5 + $0x348] sm:$0xf0]  ;;  %v11077_v12 = vld [vmem:[%s16760_s5 + $0x7b4] sm:$0xf] }
 0x38f   :  { %6369 = vmatpush.bf16.msrb.mxu2 %v9182_v1  ;;  %v10091_v59 = vld [vmem:[%s16760_s5 + $0x7c8] sm:$0xf0] }
 0x390   :  { %6382 = vmatpush.bf16.msrb.mxu3 %v9374_v48  ;;  %6358 = vmatpush.bf16.msrb.mxu1 %v10090_v5  ;;  %v9662_v48 = vor.u32 %v10969_v38, %v9659_v25  ;;  %v9803_v5 = vld [vmem:[%s16760_s5 + $0x588] sm:$0xf0]  ;;  %v11089_v25 = vld [vmem:[%s16760_s5 + $0x814] sm:$0xf] }
 0x391   :  { %6346 = vmatpush.bf16.msrb.mxu0 %v9874_v27  ;;  %v9806_v15 = vor.u32 %v11005_v0, %v9803_v5  ;;  %v9587_v27 = vld [vmem:[%s16760_s5 + $0x3d8] sm:$0xf0]  ;;  %v9947_v38 = vld [vmem:[%s16760_s5 + $0x6a8] sm:$0xf0] }
 0x392   :  { %v9491_v5 = vld [vmem:[%s16760_s5 + $0x318] sm:$0xf0] }
 0x393   :  { %6370 = vmatpush.bf16.msrb.mxu2 %v9158_v3  ;;  %v11059_v3 = vld [vmem:[%s16760_s5 + $0x724] sm:$0xf] }
 0x394   :  { %6383 = vmatpush.bf16.msrb.mxu3 %v9350_v61  ;;  %6359 = vmatpush.bf16.msrb.mxu1 %v10066_v13  ;;  %v10211_v61 = vld [vmem:[%s16760_s5 + $0x8b8] sm:$0xf0]  ;;  %v10022_v33 = vor.u32 %v11059_v3, %v10019_v57  ;;  %v10118_v57 = vor.u32 %v11083_v52, %v10115_v49  ;;  %v9617_v52 = vld [vmem:[%s16760_s5 + $0x3f8] sm:$0xf]  ;;  %v10961_v49 = vld [vmem:[%s16760_s5 + $0x40c] sm:$0xf0] }
 0x395   :  { %v10214_v58 = vor.u32 %v11107_v53, %v10211_v61  ;;  %v9779_v13 = vld [vmem:[%s16760_s5 + $0x558] sm:$0xf0]  ;;  %v10981_v53 = vld [vmem:[%s16760_s5 + $0x4b4] sm:$0xf]  ;;  %v9707_v61 = vld [vmem:[%s16760_s5 + $0x4c8] sm:$0xf0] }
 0x396   :  { %v9710_v0 = vor.u32 %v10981_v53, %v9707_v61  ;;  %v9618_v53 = vor.u32 %v10961_v49, %v9617_v52 }
 0x397   :  { %6371 = vmatpush.bf16.msrb.mxu2 %v9134_v2  ;;  %v11053_v2 = vld [vmem:[%s16760_s5 + $0x6f4] sm:$0xf] }
 0x398   :  { %6384 = vmatpush.bf16.msrb.mxu3 %v9326_v30  ;;  %v10187_v30 = vld [vmem:[%s16760_s5 + $0x888] sm:$0xf0]  ;;  %v9998_v4 = vor.u32 %v11053_v2, %v9995_v42  ;;  %v10975_v2 = vld [vmem:[%s16760_s5 + $0x484] sm:$0xf]  ;;  %v9683_v42 = vld [vmem:[%s16760_s5 + $0x498] sm:$0xf0] }
 0x399   :  { %v10190_v62 = vor.u32 %v11101_v63, %v10187_v30  ;;  %v10094_v30 = vor.u32 %v11077_v12, %v10091_v59  ;;  %v9593_v12 = vld [vmem:[%s16760_s5 + $0x3c8] sm:$0xf]  ;;  %v10955_v59 = vld [vmem:[%s16760_s5 + $0x3dc] sm:$0xf0] }
 0x39b   :  { %6372 = vmatpush.bf16.msrb.mxu2 %v9110_v14  ;;  %v11047_v14 = vld [vmem:[%s16760_s5 + $0x6c4] sm:$0xf] }
 0x39c   :  { %6385 = vmatpush.bf16.msrb.mxu3 %v9302_v17  ;;  %v10163_v17 = vld [vmem:[%s16760_s5 + $0x858] sm:$0xf0] }
 0x3f2   :  { %v4520_v20 = vpop.xlane.xlu0 %4519 }
 0x3f3   :  { %v4521_v22 = vmul.f32 %v4520_v20, %v15005_v26  ;;  %v11017_v26 = vld [vmem:[%s16760_s5 + $0x5d4] sm:$0xf]  ;;  %v9590_v20 = vor.u32 %v10951_v7, %v9587_v27  ;;  %v11071_v7 = vld [vmem:[%s16760_s5 + $0x784] sm:$0xf]  ;;  %v10067_v27 = vld [vmem:[%s16760_s5 + $0x798] sm:$0xf0] }
 0x3f5   :  { %v4522_v23 = vadd.f32 1e-05, %v4521_v22 }
 0x3f7   :  { %11123 = vrsqrt.f32 %v4522_v23  ;;  %vm4529_vm3 = vweird.f32 %v4522_v23 }
 0x3fd   :  { %v11124_v29 = vpop.eup %11123 }
 0x3fe   :  { %v4524_v24 = vmul.f32 %v11124_v29, %v4522_v23  ;;  %vm4530_vm2 = vweird.f32 %v11124_v29 }
 0x3ff   :  { %vm4531_vm4 = vmor %vm4529_vm3, %vm4530_vm2 }
 0x400   :  { %v4525_v41 = vmul.f32 %v11124_v29, %v4524_v24  ;;  %v10945_v24 = vld [vmem:[%s16760_s5 + $0x394] sm:$0xf] }
 0x402   :  { %v4526_v31 = vmul.f32 0.5, %v4525_v41  ;;  %v9563_v41 = vld [vmem:[%s16760_s5 + $0x3a8] sm:$0xf0] }
 0x404   :  { %v4527_v18 = vsub.f32 1.5, %v4526_v31  ;;  %v9974_v31 = vor.u32 %v11047_v14, %v9971_v9  ;;  %v9665_v14 = vld [vmem:[%s16760_s5 + $0x458] sm:$0xf] }
 0x406   :  { %v4528_v37 = vmul.f32 %v11124_v29, %v4527_v18  ;;  %v10166_v18 = vor.u32 %v11095_v11, %v10163_v17  ;;  %v9686_v11 = vor.u32 %v10975_v2, %v9683_v42  ;;  %v10973_v17 = vld [vmem:[%s16760_s5 + $0x46c] sm:$0xf0]  ;;  %v9185_v2 = vld [vmem:[%s16760_s5 + $0x98] sm:$0xf] }
 0x407   :  { %v10853_v42 = vld [vmem:[%s16760_s5 + $0xac] sm:$0xf0] }
 0x408   :  { %v15339_v8 = vsel %vm4531_vm4, %v11124_v29, %v4528_v37  ;;  %v9782_v29 = vor.u32 %v10999_v10, %v9779_v13  ;;  %v11041_v37 = vld [vmem:[%s16760_s5 + $0x694] sm:$0xf]  ;;  %v9473_v10 = vld [vmem:[%s16760_s5 + $0x2d8] sm:$0xf]  ;;  %v10925_v13 = vld [vmem:[%s16760_s5 + $0x2ec] sm:$0xf0] }
 0x409   :  { %v4533_v28 = vmul.f32 %v15339_v8, %v15042_v55  ;;  %v4534_v39 = vmul.f32 %v15339_v8, %v15045_v47  ;;  %v4535_v43 = vmul.f32 %v15339_v8, %v15048_v56  ;;  %v4536_v1 = vmul.f32 %v15339_v8, %v15051_v16  ;;  %v10235_v55 = vld [vmem:[%s16760_s5 + $0x8e8] sm:$0xf0] }
 0x40a   :  { %v9854_v47 = vor.u32 %v11017_v26, %v9851_v40  ;;  %v10238_v35 = vor.u32 %v11113_v46, %v10235_v55  ;;  %v4537_v22 = vmul.f32 %v15339_v8, %v15063_v21  ;;  %v4538_v23 = vmul.f32 %v15339_v8, %v15084_v45  ;;  %v10993_v21 = vld [vmem:[%s16760_s5 + $0x514] sm:$0xf]  ;;  %v9755_v45 = vld [vmem:[%s16760_s5 + $0x528] sm:$0xf0]  ;;  %v10987_v46 = vld [vmem:[%s16760_s5 + $0x4e4] sm:$0xf] }
 0x40b   :  { %v15361_v50 = vpack.c.bf16 %v4533_v28, %v4533_v28  ;;  %v15363_v56 = vpack.c.bf16 %v4534_v39, %v4534_v39  ;;  %v15365_v51 = vpack.c.bf16 %v4535_v43, %v4535_v43  ;;  %v15367_v16 = vpack.c.bf16 %v4536_v1, %v4536_v1  ;;  %v10139_v26 = vld [vmem:[%s16760_s5 + $0x828] sm:$0xf0]  ;;  %v10939_v39 = vld [vmem:[%s16760_s5 + $0x364] sm:$0xf]  ;;  %v9539_v43 = vld [vmem:[%s16760_s5 + $0x378] sm:$0xf0] }
 0x40c   :  { %v9566_v40 = vor.u32 %v10945_v24, %v9563_v41  ;;  %v15473_v8 = vpack.c.bf16 %v4537_v22, %v4537_v22  ;;  %v15475_v34 = vpack.c.bf16 %v4538_v23, %v4538_v23  ;;  %v9758_v28 = vor.u32 %v10993_v21, %v9755_v45  ;;  %v9731_v55 = vld [vmem:[%s16760_s5 + $0x4f8] sm:$0xf0]  ;;  %v11021_v22 = vld [vmem:[%s16760_s5 + $0x5ec] sm:$0xf0] }
 0x40d   :  { %6295 = vmatmul.bf16.vlgmr.msra.gmra.mxu0 %v15361_v50  ;;  %6308 = vmatmul.bf16.vlgmr.msra.gmra.mxu1 %v15363_v56  ;;  %v9950_v1 = vor.u32 %v11041_v37, %v9947_v38  ;;  %v10142_v44 = vor.u32 %v11089_v25, %v10139_v26  ;;  %v9474_v41 = vor.u32 %v10925_v13, %v9473_v10  ;;  %v9449_v37 = vld [vmem:[%s16760_s5 + $0x2a8] sm:$0xf]  ;;  %v10919_v38 = vld [vmem:[%s16760_s5 + $0x2bc] sm:$0xf0] }
 0x40e   :  { %6321 = vmatmul.bf16.vlgmr.msra.gmra.mxu2 %v15365_v51  ;;  %6334 = vmatmul.bf16.vlgmr.msra.gmra.mxu3 %v15367_v16  ;;  %v9666_v21 = vor.u32 %v10973_v17, %v9665_v14  ;;  %v9641_v25 = vld [vmem:[%s16760_s5 + $0x428] sm:$0xf]  ;;  %v10967_v26 = vld [vmem:[%s16760_s5 + $0x43c] sm:$0xf0]  ;;  %v9186_v10 = vor.u32 %v10853_v42, %v9185_v2 }
 0x40f   :  { %6391 = vmatpush.bf16.msra.mxu0 %v9662_v48  ;;  %6404 = vmatpush.bf16.msra.mxu1 %v9854_v47  ;;  %v11035_v48 = vld [vmem:[%s16760_s5 + $0x664] sm:$0xf]  ;;  %v9923_v47 = vld [vmem:[%s16760_s5 + $0x678] sm:$0xf0]  ;;  %v9161_v14 = vld [vmem:[%s16760_s5 + $0x68] sm:$0xf] }
 0x410   :  { %6417 = vmatpush.bf16.msra.mxu2 %v10046_v54  ;;  %6430 = vmatpush.bf16.msra.mxu3 %v10238_v35  ;;  %v9542_v54 = vor.u32 %v10939_v39, %v9539_v43  ;;  %v9734_v35 = vor.u32 %v10987_v46, %v9731_v55  ;;  %v9926_v3 = vor.u32 %v11035_v48, %v9923_v47  ;;  %v9425_v48 = vld [vmem:[%s16760_s5 + $0x278] sm:$0xf]  ;;  %v10913_v47 = vld [vmem:[%s16760_s5 + $0x28c] sm:$0xf0] }
 0x411   :  { %v9450_v43 = vor.u32 %v10919_v38, %v9449_v37  ;;  %v9642_v46 = vor.u32 %v10967_v26, %v9641_v25  ;;  %v9329_v25 = vld [vmem:[%s16760_s5 + $0x1b8] sm:$0xf]  ;;  %v10889_v26 = vld [vmem:[%s16760_s5 + $0x1cc] sm:$0xf0] }
 0x413   :  { %6392 = vmatpush.bf16.msra.mxu0 %v9638_v6  ;;  %6405 = vmatpush.bf16.msra.mxu1 %v9830_v19  ;;  %v11029_v6 = vld [vmem:[%s16760_s5 + $0x634] sm:$0xf]  ;;  %v9899_v19 = vld [vmem:[%s16760_s5 + $0x648] sm:$0xf0] }
 0x414   :  { %6418 = vmatpush.bf16.msra.mxu2 %v10022_v33  ;;  %6431 = vmatpush.bf16.msra.mxu3 %v10214_v58  ;;  %v10927_v33 = vld [vmem:[%s16760_s5 + $0x304] sm:$0xf]  ;;  %v9518_v58 = vor.u32 %v10933_v36, %v9515_v60  ;;  %v9902_v63 = vor.u32 %v11029_v6, %v9899_v19  ;;  %v9426_v60 = vor.u32 %v10913_v47, %v9425_v48  ;;  %v9401_v6 = vld [vmem:[%s16760_s5 + $0x248] sm:$0xf]  ;;  %v10907_v19 = vld [vmem:[%s16760_s5 + $0x25c] sm:$0xf0] }
 0x415   :  { %v9494_v9 = vor.u32 %v10927_v33, %v9491_v5  ;;  %v9785_v33 = vld [vmem:[%s16760_s5 + $0x548] sm:$0xf]  ;;  %v9402_v5 = vor.u32 %v10907_v19, %v9401_v6  ;;  %v10883_v47 = vld [vmem:[%s16760_s5 + $0x19c] sm:$0xf0]  ;;  %v10874_v6 = vld [vmem:[%s16760_s5 + $0x15c] sm:$0xf] }
 0x416   :  { %v9305_v48 = vld [vmem:[%s16760_s5 + $0x188] sm:$0xf] }
 0x417   :  { %6393 = vmatpush.bf16.msra.mxu0 %v9614_v32  ;;  %6406 = vmatpush.bf16.msra.mxu1 %v9806_v15  ;;  %v11023_v32 = vld [vmem:[%s16760_s5 + $0x604] sm:$0xf]  ;;  %v9875_v15 = vld [vmem:[%s16760_s5 + $0x618] sm:$0xf0] }
 0x418   :  { %6419 = vmatpush.bf16.msra.mxu2 %v9998_v4  ;;  %6432 = vmatpush.bf16.msra.mxu3 %v10190_v62  ;;  %v9281_v4 = vld [vmem:[%s16760_s5 + $0x158] sm:$0xf]  ;;  %v10877_v62 = vld [vmem:[%s16760_s5 + $0x16c] sm:$0xf0]  ;;  %v9878_v23 = vor.u32 %v11023_v32, %v9875_v15 }
 0x419   :  { %v9282_v24 = vor.u32 %v10877_v62, %v9281_v4  ;;  %v9377_v32 = vld [vmem:[%s16760_s5 + $0x218] sm:$0xf]  ;;  %v10901_v15 = vld [vmem:[%s16760_s5 + $0x22c] sm:$0xf0] }
 0x41a   :  { %v9761_v4 = vld [vmem:[%s16760_s5 + $0x518] sm:$0xf]  ;;  %v10997_v62 = vld [vmem:[%s16760_s5 + $0x52c] sm:$0xf0]  ;;  %v9378_v13 = vor.u32 %v10901_v15, %v9377_v32 }
 0x41b   :  { %6394 = vmatpush.bf16.msra.mxu0 %v9590_v20  ;;  %6407 = vmatpush.bf16.msra.mxu1 %v9782_v29  ;;  %v9857_v20 = vld [vmem:[%s16760_s5 + $0x5d8] sm:$0xf]  ;;  %v10070_v29 = vor.u32 %v11071_v7, %v10067_v27  ;;  %v10949_v27 = vld [vmem:[%s16760_s5 + $0x3ac] sm:$0xf0]  ;;  %v9762_v17 = vor.u32 %v10997_v62, %v9761_v4  ;;  %v10868_v4 = vld [vmem:[%s16760_s5 + $0x12c] sm:$0xf] }
 0x41c   :  { %6420 = vmatpush.bf16.msra.mxu2 %v9974_v31  ;;  %6433 = vmatpush.bf16.msra.mxu3 %v10166_v18  ;;  %v9257_v31 = vld [vmem:[%s16760_s5 + $0x128] sm:$0xf]  ;;  %v10871_v18 = vld [vmem:[%s16760_s5 + $0x13c] sm:$0xf0]  ;;  %v9858_v45 = vor.u32 %v11021_v22, %v9857_v20  ;;  %v9569_v7 = vld [vmem:[%s16760_s5 + $0x398] sm:$0xf] }
 0x41d   :  { %6347 = vmatmul.bf16.vlgmr.msrb.gmra.mxu0 %v15473_v8  ;;  %6360 = vmatmul.bf16.vlgmr.msrb.gmra.mxu1 %v15475_v34  ;;  %v9258_v39 = vor.u32 %v10871_v18, %v9257_v31  ;;  %v9353_v20 = vld [vmem:[%s16760_s5 + $0x1e8] sm:$0xf]  ;;  %v10895_v22 = vld [vmem:[%s16760_s5 + $0x1fc] sm:$0xf0]  ;;  %v9259_v62 = vld [vmem:[%s16760_s5 + $0x140] sm:$0xf0] }
 0x41e   :  { %6373 = vmatmul.bf16.vlgmr.msrb.gmra.mxu2 %v15361_v50  ;;  %6386 = vmatmul.bf16.vlgmr.msrb.gmra.mxu3 %v15363_v56  ;;  %v9354_v18 = vor.u32 %v10895_v22, %v9353_v20  ;;  %v9262_v20 = vor.u32 %v10868_v4, %v9259_v62  ;;  %v10097_v4 = vld [vmem:[%s16760_s5 + $0x7b8] sm:$0xf]  ;;  %v11081_v62 = vld [vmem:[%s16760_s5 + $0x7cc] sm:$0xf0] }
 0x41f   :  { %6395 = vmatpush.bf16.msra.mxu0 %v9566_v40  ;;  %6408 = vmatpush.bf16.msra.mxu1 %v9758_v28  ;;  %v9833_v40 = vld [vmem:[%s16760_s5 + $0x5a8] sm:$0xf]  ;;  %v11015_v28 = vld [vmem:[%s16760_s5 + $0x5bc] sm:$0xf0] }
 0x420   :  { %6421 = vmatpush.bf16.msra.mxu2 %v9950_v1  ;;  %6434 = vmatpush.bf16.msra.mxu3 %v10142_v44  ;;  %v9233_v1 = vld [vmem:[%s16760_s5 + $0xf8] sm:$0xf]  ;;  %v10865_v44 = vld [vmem:[%s16760_s5 + $0x10c] sm:$0xf0]  ;;  %v9834_v55 = vor.u32 %v11015_v28, %v9833_v40 }
 0x421   :  { %v9234_v36 = vor.u32 %v10865_v44, %v9233_v1  ;;  %v9521_v40 = vld [vmem:[%s16760_s5 + $0x338] sm:$0xf]  ;;  %v10937_v28 = vld [vmem:[%s16760_s5 + $0x34c] sm:$0xf0]  ;;  %v9113_v1 = vld [vmem:[%s16760_s5 + $0x8] sm:$0xf] }
 0x422   :  { %v9522_v52 = vor.u32 %v10937_v28, %v9521_v40  ;;  %v10169_v40 = vld [vmem:[%s16760_s5 + $0x848] sm:$0xf]  ;;  %v11099_v28 = vld [vmem:[%s16760_s5 + $0x85c] sm:$0xf0] }
 0x423   :  { %6396 = vmatpush.bf16.msra.mxu0 %v9542_v54  ;;  %6409 = vmatpush.bf16.msra.mxu1 %v9734_v35  ;;  %v9809_v54 = vld [vmem:[%s16760_s5 + $0x578] sm:$0xf]  ;;  %v11009_v35 = vld [vmem:[%s16760_s5 + $0x58c] sm:$0xf0] }
 0x424   :  { %6422 = vmatpush.bf16.msra.mxu2 %v9926_v3  ;;  %6435 = vmatpush.bf16.msra.mxu3 %v10118_v57  ;;  %v9209_v3 = vld [vmem:[%s16760_s5 + $0xc8] sm:$0xf]  ;;  %v10859_v57 = vld [vmem:[%s16760_s5 + $0xdc] sm:$0xf0]  ;;  %v9810_v61 = vor.u32 %v11009_v35, %v9809_v54 }
 0x425   :  { %v9497_v54 = vld [vmem:[%s16760_s5 + $0x308] sm:$0xf]  ;;  %v10931_v35 = vld [vmem:[%s16760_s5 + $0x31c] sm:$0xf0] }
 0x427   :  { %6397 = vmatpush.bf16.msra.mxu0 %v9518_v58  ;;  %6410 = vmatpush.bf16.msra.mxu1 %v9710_v0  ;;  %v11003_v58 = vld [vmem:[%s16760_s5 + $0x55c] sm:$0xf0]  ;;  %v9210_v0 = vor.u32 %v10859_v57, %v9209_v3  ;;  %v10049_v3 = vld [vmem:[%s16760_s5 + $0x758] sm:$0xf]  ;;  %v11069_v57 = vld [vmem:[%s16760_s5 + $0x76c] sm:$0xf0] }
 0x428   :  { %6423 = vmatpush.bf16.msra.mxu2 %v9902_v63  ;;  %6436 = vmatpush.bf16.msra.mxu3 %v10094_v30  ;;  %v9594_v63 = vor.u32 %v10955_v59, %v9593_v12  ;;  %v9786_v30 = vor.u32 %v11003_v58, %v9785_v33  ;;  %v9306_v12 = vor.u32 %v10883_v47, %v9305_v48  ;;  %v9283_v59 = vld [vmem:[%s16760_s5 + $0x170] sm:$0xf0]  ;;  %v10922_v33 = vld [vmem:[%s16760_s5 + $0x2dc] sm:$0xf]  ;;  %v9953_v48 = vld [vmem:[%s16760_s5 + $0x698] sm:$0xf] }
 0x429   :  { %v9475_v58 = vld [vmem:[%s16760_s5 + $0x2f0] sm:$0xf0]  ;;  %v10050_v2 = vor.u32 %v11069_v57, %v10049_v3  ;;  %v9286_v32 = vor.u32 %v10874_v6, %v9283_v59  ;;  %v11045_v47 = vld [vmem:[%s16760_s5 + $0x6ac] sm:$0xf0]  ;;  %v10898_v3 = vld [vmem:[%s16760_s5 + $0x21c] sm:$0xf] }
 0x42a   :  { %v9478_v15 = vor.u32 %v10922_v33, %v9475_v58  ;;  %v9379_v57 = vld [vmem:[%s16760_s5 + $0x230] sm:$0xf0]  ;;  %v9929_v6 = vld [vmem:[%s16760_s5 + $0x668] sm:$0xf]  ;;  %v11087_v58 = vld [vmem:[%s16760_s5 + $0x7fc] sm:$0xf0] }
 0x42b   :  { %6398 = vmatpush.bf16.msra.mxu0 %v9494_v9  ;;  %6411 = vmatpush.bf16.msra.mxu1 %v9686_v11  ;;  %v10847_v9 = vld [vmem:[%s16760_s5 + $0x7c] sm:$0xf0]  ;;  %v9570_v11 = vor.u32 %v10949_v27, %v9569_v7  ;;  %v10217_v7 = vld [vmem:[%s16760_s5 + $0x8a8] sm:$0xf]  ;;  %v9382_v59 = vor.u32 %v10898_v3, %v9379_v57  ;;  %v11060_v3 = vld [vmem:[%s16760_s5 + $0x72c] sm:$0xf] }
 0x42c   :  { %6424 = vmatpush.bf16.msra.mxu2 %v9878_v23  ;;  %6437 = vmatpush.bf16.msra.mxu3 %v10070_v29  ;;  %v9545_v23 = vld [vmem:[%s16760_s5 + $0x368] sm:$0xf]  ;;  %v10943_v29 = vld [vmem:[%s16760_s5 + $0x37c] sm:$0xf0]  ;;  %v9162_v31 = vor.u32 %v10847_v9, %v9161_v14  ;;  %v10027_v57 = vld [vmem:[%s16760_s5 + $0x740] sm:$0xf0] }
 0x42d   :  { %v9546_v37 = vor.u32 %v10943_v29, %v9545_v23  ;;  %v11111_v27 = vld [vmem:[%s16760_s5 + $0x8bc] sm:$0xf0]  ;;  %v10193_v23 = vld [vmem:[%s16760_s5 + $0x878] sm:$0xf]  ;;  %v11105_v29 = vld [vmem:[%s16760_s5 + $0x88c] sm:$0xf0] }
 0x42e   :  { %6399 = vmatmul.bf16.vlgmr.msra.gmra.mxu0 %v15365_v51  ;;  %6412 = vmatmul.bf16.vlgmr.msra.gmra.mxu1 %v15367_v16  ;;  %v10218_v9 = vor.u32 %v11111_v27, %v10217_v7  ;;  %v10121_v33 = vld [vmem:[%s16760_s5 + $0x7e8] sm:$0xf] }
 0x42f   :  { %6443 = vmatpush.bf16.msrb.mxu0 %v9282_v24  ;;  %6456 = vmatpush.bf16.msrb.mxu1 %v9474_v41  ;;  %v9737_v24 = vld [vmem:[%s16760_s5 + $0x4e8] sm:$0xf]  ;;  %v10991_v41 = vld [vmem:[%s16760_s5 + $0x4fc] sm:$0xf0] }
 0x430   :  { %6469 = vmatpush.bf16.msrb.mxu2 %v9666_v21  ;;  %6482 = vmatpush.bf16.msrb.mxu3 %v9858_v45  ;;  %v9137_v21 = vld [vmem:[%s16760_s5 + $0x38] sm:$0xf]  ;;  %v10841_v45 = vld [vmem:[%s16760_s5 + $0x4c] sm:$0xf0]  ;;  %v9738_v38 = vor.u32 %v10991_v41, %v9737_v24  ;;  %v10862_v24 = vld [vmem:[%s16760_s5 + $0xfc] sm:$0xf] }
 0x431   :  { %6425 = vmatmul.bf16.vlgmr.msra.gmra.mxu2 %v15473_v8  ;;  %6438 = vmatmul.bf16.vlgmr.msra.gmra.mxu3 %v15475_v34  ;;  %v9138_v44 = vor.u32 %v10841_v45, %v9137_v21  ;;  %v9235_v41 = vld [vmem:[%s16760_s5 + $0x110] sm:$0xf0]  ;;  %v10194_v45 = vor.u32 %v11105_v29, %v10193_v23  ;;  %v10073_v23 = vld [vmem:[%s16760_s5 + $0x788] sm:$0xf]  ;;  %v11075_v29 = vld [vmem:[%s16760_s5 + $0x79c] sm:$0xf0] }
 0x433   :  { %6444 = vmatpush.bf16.msrb.mxu0 %v9258_v39  ;;  %6457 = vmatpush.bf16.msrb.mxu1 %v9450_v43  ;;  %v9713_v39 = vld [vmem:[%s16760_s5 + $0x4b8] sm:$0xf]  ;;  %v10985_v43 = vld [vmem:[%s16760_s5 + $0x4cc] sm:$0xf0] }
 0x434   :  { %6470 = vmatpush.bf16.msrb.mxu2 %v9642_v46  ;;  %6483 = vmatpush.bf16.msrb.mxu3 %v9834_v55  ;;  %v9330_v46 = vor.u32 %v10889_v26, %v9329_v25  ;;  %v10835_v55 = vld [vmem:[%s16760_s5 + $0x1c] sm:$0xf0]  ;;  %v9714_v49 = vor.u32 %v10985_v43, %v9713_v39  ;;  %v9238_v25 = vor.u32 %v10862_v24, %v9235_v41  ;;  %v10856_v39 = vld [vmem:[%s16760_s5 + $0xcc] sm:$0xf]  ;;  %v9211_v43 = vld [vmem:[%s16760_s5 + $0xe0] sm:$0xf0] }
 0x435   :  { %v9114_v19 = vor.u32 %v10835_v55, %v9113_v1  ;;  %v10904_v1 = vld [vmem:[%s16760_s5 + $0x24c] sm:$0xf]  ;;  %v10170_v55 = vor.u32 %v11099_v28, %v10169_v40  ;;  %v11066_v40 = vld [vmem:[%s16760_s5 + $0x75c] sm:$0xf] }
 0x437   :  { %6445 = vmatpush.bf16.msrb.mxu0 %v9234_v36  ;;  %6458 = vmatpush.bf16.msrb.mxu1 %v9426_v60  ;;  %v9689_v36 = vld [vmem:[%s16760_s5 + $0x488] sm:$0xf]  ;;  %v10979_v60 = vld [vmem:[%s16760_s5 + $0x49c] sm:$0xf0] }
 0x438   :  { %6471 = vmatpush.bf16.msrb.mxu2 %v9618_v53  ;;  %6484 = vmatpush.bf16.msrb.mxu3 %v9810_v61  ;;  %v10241_v53 = vld [vmem:[%s16760_s5 + $0x8d8] sm:$0xf]  ;;  %v11117_v61 = vld [vmem:[%s16760_s5 + $0x8ec] sm:$0xf0] }
 0x439   :  { %v10242_v42 = vor.u32 %v11117_v61, %v10241_v53  ;;  %v9954_v53 = vor.u32 %v11045_v47, %v9953_v48 }
 0x43b   :  { %6446 = vmatpush.bf16.msrb.mxu0 %v9210_v0  ;;  %6459 = vmatpush.bf16.msrb.mxu1 %v9402_v5  ;;  %v9498_v0 = vor.u32 %v10931_v35, %v9497_v54  ;;  %v9690_v5 = vor.u32 %v10979_v60, %v9689_v36  ;;  %v10145_v54 = vld [vmem:[%s16760_s5 + $0x818] sm:$0xf]  ;;  %v11093_v35 = vld [vmem:[%s16760_s5 + $0x82c] sm:$0xf0]  ;;  %v10850_v36 = vld [vmem:[%s16760_s5 + $0x9c] sm:$0xf] }
 0x43c   :  { %6472 = vmatpush.bf16.msrb.mxu2 %v9594_v63  ;;  %6485 = vmatpush.bf16.msrb.mxu3 %v9786_v30  ;;  %v10025_v63 = vld [vmem:[%s16760_s5 + $0x728] sm:$0xf]  ;;  %v11063_v30 = vld [vmem:[%s16760_s5 + $0x73c] sm:$0xf0]  ;;  %v9187_v60 = vld [vmem:[%s16760_s5 + $0xb0] sm:$0xf0]  ;;  %v10146_v61 = vor.u32 %v11093_v35, %v10145_v54 }
 0x43d   :  { %v10026_v14 = vor.u32 %v11063_v30, %v10025_v63  ;;  %v10122_v30 = vor.u32 %v11087_v58, %v10121_v33  ;;  %v10030_v33 = vor.u32 %v11060_v3, %v10027_v57  ;;  %v10982_v3 = vld [vmem:[%s16760_s5 + $0x4bc] sm:$0xf]  ;;  %v9715_v57 = vld [vmem:[%s16760_s5 + $0x4d0] sm:$0xf0] }
 0x43f   :  { %6447 = vmatpush.bf16.msrb.mxu0 %v9186_v10  ;;  %6460 = vmatpush.bf16.msrb.mxu1 %v9378_v13  ;;  %v10916_v10 = vld [vmem:[%s16760_s5 + $0x2ac] sm:$0xf]  ;;  %v9451_v13 = vld [vmem:[%s16760_s5 + $0x2c0] sm:$0xf0] }
 0x440   :  { %6473 = vmatpush.bf16.msrb.mxu2 %v9570_v11  ;;  %6486 = vmatpush.bf16.msrb.mxu3 %v9762_v17  ;;  %v10001_v11 = vld [vmem:[%s16760_s5 + $0x6f8] sm:$0xf]  ;;  %v11057_v17 = vld [vmem:[%s16760_s5 + $0x70c] sm:$0xf0]  ;;  %v9454_v22 = vor.u32 %v10916_v10, %v9451_v13  ;;  %v10838_v10 = vld [vmem:[%s16760_s5 + $0x3c] sm:$0xf] }
 0x441   :  { %v10002_v21 = vor.u32 %v11057_v17, %v10001_v11  ;;  %v9139_v13 = vld [vmem:[%s16760_s5 + $0x50] sm:$0xf0]  ;;  %v9881_v11 = vld [vmem:[%s16760_s5 + $0x608] sm:$0xf] }
 0x442   :  { %v9142_v24 = vor.u32 %v10838_v10, %v9139_v13  ;;  %v11000_v10 = vld [vmem:[%s16760_s5 + $0x54c] sm:$0xf]  ;;  %v9787_v13 = vld [vmem:[%s16760_s5 + $0x560] sm:$0xf0] }
 0x443   :  { %6448 = vmatpush.bf16.msrb.mxu0 %v9162_v31  ;;  %6461 = vmatpush.bf16.msrb.mxu1 %v9354_v18  ;;  %v10910_v31 = vld [vmem:[%s16760_s5 + $0x27c] sm:$0xf]  ;;  %v9427_v18 = vld [vmem:[%s16760_s5 + $0x290] sm:$0xf0] }
 0x444   :  { %6474 = vmatpush.bf16.msrb.mxu2 %v9546_v37  ;;  %6487 = vmatpush.bf16.msrb.mxu3 %v9738_v38  ;;  %v9977_v37 = vld [vmem:[%s16760_s5 + $0x6c8] sm:$0xf]  ;;  %v11051_v38 = vld [vmem:[%s16760_s5 + $0x6dc] sm:$0xf0]  ;;  %v9430_v26 = vor.u32 %v10910_v31, %v9427_v18  ;;  %v10832_v31 = vld [vmem:[%s16760_s5 + $0xc] sm:$0xf] }
 0x445   :  { %v9115_v18 = vld [vmem:[%s16760_s5 + $0x20] sm:$0xf0] }
 0x447   :  { %6449 = vmatpush.bf16.msrb.mxu0 %v9138_v44  ;;  %6462 = vmatpush.bf16.msrb.mxu1 %v9330_v46  ;;  %v9403_v44 = vld [vmem:[%s16760_s5 + $0x260] sm:$0xf0]  ;;  %v9978_v46 = vor.u32 %v11051_v38, %v9977_v37  ;;  %v10970_v37 = vld [vmem:[%s16760_s5 + $0x45c] sm:$0xf]  ;;  %v9667_v38 = vld [vmem:[%s16760_s5 + $0x470] sm:$0xf0] }
 0x448   :  { %6475 = vmatpush.bf16.msrb.mxu2 %v9522_v52  ;;  %6488 = vmatpush.bf16.msrb.mxu3 %v9714_v49  ;;  %v9214_v52 = vor.u32 %v10856_v39, %v9211_v43  ;;  %v9406_v49 = vor.u32 %v10904_v1, %v9403_v44  ;;  %v10074_v39 = vor.u32 %v11075_v29, %v10073_v23  ;;  %v10051_v43 = vld [vmem:[%s16760_s5 + $0x770] sm:$0xf0]  ;;  %v11114_v1 = vld [vmem:[%s16760_s5 + $0x8dc] sm:$0xf] }
 0x449   :  { %v10243_v44 = vld [vmem:[%s16760_s5 + $0x8f0] sm:$0xf0]  ;;  %v9670_v48 = vor.u32 %v10970_v37, %v9667_v38  ;;  %v10054_v54 = vor.u32 %v11066_v40, %v10051_v43  ;;  %v10946_v23 = vld [vmem:[%s16760_s5 + $0x39c] sm:$0xf]  ;;  %v10940_v40 = vld [vmem:[%s16760_s5 + $0x36c] sm:$0xf] }
 0x44a   :  { %v10246_v35 = vor.u32 %v11114_v1, %v10243_v44  ;;  %v9571_v29 = vld [vmem:[%s16760_s5 + $0x3b0] sm:$0xf0]  ;;  %v11090_v37 = vld [vmem:[%s16760_s5 + $0x81c] sm:$0xf]  ;;  %v10988_v1 = vld [vmem:[%s16760_s5 + $0x4ec] sm:$0xf] }
 0x44b   :  { %6450 = vmatpush.bf16.msrb.mxu0 %v9114_v19  ;;  %6463 = vmatpush.bf16.msrb.mxu1 %v9306_v12  ;;  %v11039_v19 = vld [vmem:[%s16760_s5 + $0x67c] sm:$0xf0]  ;;  %v9190_v12 = vor.u32 %v10850_v36, %v9187_v60  ;;  %v11012_v36 = vld [vmem:[%s16760_s5 + $0x5ac] sm:$0xf]  ;;  %v9835_v60 = vld [vmem:[%s16760_s5 + $0x5c0] sm:$0xf0] }
 0x44c   :  { %6476 = vmatpush.bf16.msrb.mxu2 %v9498_v0  ;;  %6489 = vmatpush.bf16.msrb.mxu3 %v9690_v5  ;;  %v10844_v0 = vld [vmem:[%s16760_s5 + $0x6c] sm:$0xf]  ;;  %v9163_v5 = vld [vmem:[%s16760_s5 + $0x80] sm:$0xf0]  ;;  %v9930_v63 = vor.u32 %v11039_v19, %v9929_v6  ;;  %v9838_v19 = vor.u32 %v11012_v36, %v9835_v60  ;;  %v10147_v38 = vld [vmem:[%s16760_s5 + $0x830] sm:$0xf0] }
 0x44d   :  { %v9166_v7 = vor.u32 %v10844_v0, %v9163_v5  ;;  %v11006_v0 = vld [vmem:[%s16760_s5 + $0x57c] sm:$0xf]  ;;  %v9811_v5 = vld [vmem:[%s16760_s5 + $0x590] sm:$0xf0]  ;;  %v10150_v43 = vor.u32 %v11090_v37, %v10147_v38  ;;  %v9739_v44 = vld [vmem:[%s16760_s5 + $0x500] sm:$0xf0] }
 0x44e   :  { %6451 = vmatmul.bf16.vlgmr.msrb.gmra.mxu0 %v15361_v50  ;;  %6464 = vmatmul.bf16.vlgmr.msrb.gmra.mxu1 %v15363_v56  ;;  %v9649_v37 = vld [vmem:[%s16760_s5 + $0x430] sm:$0xf]  ;;  %v16183_v38 = vld [vmem:[%s16761_s6] sm:$0x3f] }
 0x44f   :  { %6495 = vmatpush.bf16.msra.mxu0 %v10050_v2  ;;  %6508 = vmatpush.bf16.msra.mxu1 %v10242_v42  ;;  %v10892_v2 = vld [vmem:[%s16760_s5 + $0x1ec] sm:$0xf]  ;;  %v9355_v42 = vld [vmem:[%s16760_s5 + $0x200] sm:$0xf0] }
 0x450   :  { %6521 = vmatpush.bf16.msra.mxu2 %v9286_v32  ;;  %6534 = vmatpush.bf16.msra.mxu3 %v9478_v15  ;;  %v9905_v32 = vld [vmem:[%s16760_s5 + $0x638] sm:$0xf]  ;;  %v11033_v15 = vld [vmem:[%s16760_s5 + $0x64c] sm:$0xf0]  ;;  %v9358_v27 = vor.u32 %v10892_v2, %v9355_v42  ;;  %v11054_v2 = vld [vmem:[%s16760_s5 + $0x6fc] sm:$0xf] }
 0x451   :  { %6477 = vmatmul.bf16.vlgmr.msrb.gmra.mxu2 %v15365_v51  ;;  %6490 = vmatmul.bf16.vlgmr.msrb.gmra.mxu3 %v15367_v16  ;;  %v9906_v17 = vor.u32 %v11033_v15, %v9905_v32  ;;  %v10003_v42 = vld [vmem:[%s16760_s5 + $0x710] sm:$0xf0]  ;;  %v9814_v15 = vor.u32 %v11006_v0, %v9811_v5  ;;  %v10976_v0 = vld [vmem:[%s16760_s5 + $0x48c] sm:$0xf]  ;;  %v9691_v5 = vld [vmem:[%s16760_s5 + $0x4a0] sm:$0xf0] }
 0x453   :  { %6496 = vmatpush.bf16.msra.mxu0 %v10026_v14  ;;  %6509 = vmatpush.bf16.msra.mxu1 %v10218_v9  ;;  %v10886_v14 = vld [vmem:[%s16760_s5 + $0x1bc] sm:$0xf]  ;;  %v9331_v9 = vld [vmem:[%s16760_s5 + $0x1d0] sm:$0xf0] }
 0x454   :  { %6522 = vmatpush.bf16.msra.mxu2 %v9262_v20  ;;  %6535 = vmatpush.bf16.msra.mxu3 %v9454_v22  ;;  %v10098_v20 = vor.u32 %v11081_v62, %v10097_v4  ;;  %v11027_v22 = vld [vmem:[%s16760_s5 + $0x61c] sm:$0xf0]  ;;  %v9334_v41 = vor.u32 %v10886_v14, %v9331_v9  ;;  %v10006_v4 = vor.u32 %v11054_v2, %v10003_v42  ;;  %v11048_v14 = vld [vmem:[%s16760_s5 + $0x6cc] sm:$0xf]  ;;  %v9979_v9 = vld [vmem:[%s16760_s5 + $0x6e0] sm:$0xf0] }
 0x455   :  { %v9882_v28 = vor.u32 %v11027_v22, %v9881_v11  ;;  %v11096_v11 = vld [vmem:[%s16760_s5 + $0x84c] sm:$0xf]  ;;  %v9790_v22 = vor.u32 %v11000_v10, %v9787_v13  ;;  %v9673_v10 = vld [vmem:[%s16760_s5 + $0x460] sm:$0xf] }
 0x457   :  { %6497 = vmatpush.bf16.msra.mxu0 %v10002_v21  ;;  %6510 = vmatpush.bf16.msra.mxu1 %v10194_v45  ;;  %v10880_v21 = vld [vmem:[%s16760_s5 + $0x18c] sm:$0xf]  ;;  %v9307_v45 = vld [vmem:[%s16760_s5 + $0x1a0] sm:$0xf0] }
 0x458   :  { %6523 = vmatpush.bf16.msra.mxu2 %v9238_v25  ;;  %6536 = vmatpush.bf16.msra.mxu3 %v9430_v26  ;;  %v11018_v25 = vld [vmem:[%s16760_s5 + $0x5dc] sm:$0xf]  ;;  %v9859_v26 = vld [vmem:[%s16760_s5 + $0x5f0] sm:$0xf0] }
 0x459   :  { %v9862_v47 = vor.u32 %v11018_v25, %v9859_v26  ;;  %v9574_v25 = vor.u32 %v10946_v23, %v9571_v29 }
 0x45b   :  { %6498 = vmatpush.bf16.msra.mxu0 %v9978_v46  ;;  %6511 = vmatpush.bf16.msra.mxu1 %v10170_v55  ;;  %v9118_v46 = vor.u32 %v10832_v31, %v9115_v18  ;;  %v9310_v55 = vor.u32 %v10880_v21, %v9307_v45  ;;  %v10994_v31 = vld [vmem:[%s16760_s5 + $0x51c] sm:$0xf]  ;;  %v9763_v18 = vld [vmem:[%s16760_s5 + $0x530] sm:$0xf0] }
 0x45c   :  { %6524 = vmatpush.bf16.msra.mxu2 %v9214_v52  ;;  %6537 = vmatpush.bf16.msra.mxu3 %v9406_v49  ;;  %v10964_v52 = vld [vmem:[%s16760_s5 + $0x42c] sm:$0xf]  ;;  %v9643_v49 = vld [vmem:[%s16760_s5 + $0x440] sm:$0xf0]  ;;  %v11042_v21 = vld [vmem:[%s16760_s5 + $0x69c] sm:$0xf]  ;;  %v9766_v26 = vor.u32 %v10994_v31, %v9763_v18 }
 0x45d   :  { %v9646_v6 = vor.u32 %v10964_v52, %v9643_v49  ;;  %v9955_v45 = vld [vmem:[%s16760_s5 + $0x6b0] sm:$0xf0]  ;;  %v9742_v49 = vor.u32 %v10988_v1, %v9739_v44  ;;  %v9457_v31 = vld [vmem:[%s16760_s5 + $0x2b0] sm:$0xf]  ;;  %v10866_v1 = vld [vmem:[%s16760_s5 + $0x114] sm:$0xf0] }
 0x45e   :  { %v4835_v44 = vperm.slane %v16183_v38, 0 }
 0x45f   :  { %6499 = vmatpush.bf16.msra.mxu0 %v9954_v53  ;;  %6512 = vmatpush.bf16.msra.mxu1 %v10146_v61  ;;  %v11108_v53 = vld [vmem:[%s16760_s5 + $0x8ac] sm:$0xf]  ;;  %v10219_v61 = vld [vmem:[%s16760_s5 + $0x8c0] sm:$0xf0] }
 0x460   :  { %6525 = vmatpush.bf16.msra.mxu2 %v9190_v12  ;;  %6538 = vmatpush.bf16.msra.mxu3 %v9382_v59  ;;  %v10958_v12 = vld [vmem:[%s16760_s5 + $0x3fc] sm:$0xf]  ;;  %v9619_v59 = vld [vmem:[%s16760_s5 + $0x410] sm:$0xf0]  ;;  %v10222_v58 = vor.u32 %v11108_v53, %v10219_v61 }
 0x461   :  { %v9622_v32 = vor.u32 %v10958_v12, %v9619_v59  ;;  %v11030_v53 = vld [vmem:[%s16760_s5 + $0x63c] sm:$0xf]  ;;  %v9907_v61 = vld [vmem:[%s16760_s5 + $0x650] sm:$0xf0]  ;;  %v10928_v12 = vld [vmem:[%s16760_s5 + $0x30c] sm:$0xf] }
 0x462   :  { %v9910_v2 = vor.u32 %v11030_v53, %v9907_v61  ;;  %v9217_v61 = vld [vmem:[%s16760_s5 + $0xd0] sm:$0xf] }
 0x463   :  { %6500 = vmatpush.bf16.msra.mxu0 %v9930_v63  ;;  %6513 = vmatpush.bf16.msra.mxu1 %v10122_v30  ;;  %v11102_v63 = vld [vmem:[%s16760_s5 + $0x87c] sm:$0xf]  ;;  %v10195_v30 = vld [vmem:[%s16760_s5 + $0x890] sm:$0xf0] }
 0x464   :  { %6526 = vmatpush.bf16.msra.mxu2 %v9166_v7  ;;  %6539 = vmatpush.bf16.msra.mxu3 %v9358_v27  ;;  %v10952_v7 = vld [vmem:[%s16760_s5 + $0x3cc] sm:$0xf]  ;;  %v9595_v27 = vld [vmem:[%s16760_s5 + $0x3e0] sm:$0xf0]  ;;  %v10198_v62 = vor.u32 %v11102_v63, %v10195_v30 }
 0x465   :  { %v11024_v63 = vld [vmem:[%s16760_s5 + $0x60c] sm:$0xf]  ;;  %v9883_v30 = vld [vmem:[%s16760_s5 + $0x620] sm:$0xf0] }
 0x467   :  { %6501 = vmatpush.bf16.msra.mxu0 %v9906_v17  ;;  %6514 = vmatpush.bf16.msra.mxu1 %v10098_v20  ;;  %v10171_v17 = vld [vmem:[%s16760_s5 + $0x860] sm:$0xf0]  ;;  %v9598_v20 = vor.u32 %v10952_v7, %v9595_v27  ;;  %v9289_v7 = vld [vmem:[%s16760_s5 + $0x160] sm:$0xf]  ;;  %v10878_v27 = vld [vmem:[%s16760_s5 + $0x174] sm:$0xf0] }
 0x468   :  { %6527 = vmatpush.bf16.msra.mxu2 %v9142_v24  ;;  %6540 = vmatpush.bf16.msra.mxu3 %v9334_v41  ;;  %v9982_v24 = vor.u32 %v11048_v14, %v9979_v9  ;;  %v10174_v41 = vor.u32 %v11096_v11, %v10171_v17  ;;  %v9694_v14 = vor.u32 %v10976_v0, %v9691_v5  ;;  %v10974_v9 = vld [vmem:[%s16760_s5 + $0x474] sm:$0xf0]  ;;  %v9865_v11 = vld [vmem:[%s16760_s5 + $0x5e0] sm:$0xf]  ;;  %v10956_v5 = vld [vmem:[%s16760_s5 + $0x3e4] sm:$0xf0] }
 0x469   :  { %v11022_v17 = vld [vmem:[%s16760_s5 + $0x5f4] sm:$0xf0]  ;;  %v9290_v23 = vor.u32 %v10878_v27, %v9289_v7  ;;  %v9674_v18 = vor.u32 %v10974_v9, %v9673_v10  ;;  %v9577_v10 = vld [vmem:[%s16760_s5 + $0x3a0] sm:$0xf] }
 0x46a   :  { %v10950_v9 = vld [vmem:[%s16760_s5 + $0x3b4] sm:$0xf0] }
 0x46b   :  { %6502 = vmatpush.bf16.msra.mxu0 %v9882_v28  ;;  %6515 = vmatpush.bf16.msra.mxu1 %v10074_v39  ;;  %v9547_v28 = vld [vmem:[%s16760_s5 + $0x380] sm:$0xf0]  ;;  %v9958_v39 = vor.u32 %v11042_v21, %v9955_v45  ;;  %v9866_v21 = vor.u32 %v11022_v17, %v9865_v11  ;;  %v10920_v45 = vld [vmem:[%s16760_s5 + $0x2c4] sm:$0xf0]  ;;  %v9769_v11 = vld [vmem:[%s16760_s5 + $0x520] sm:$0xf] }
 0x46c   :  { %6528 = vmatpush.bf16.msra.mxu2 %v9118_v46  ;;  %6541 = vmatpush.bf16.msra.mxu3 %v9310_v55  ;;  %v11036_v46 = vld [vmem:[%s16760_s5 + $0x66c] sm:$0xf]  ;;  %v9931_v55 = vld [vmem:[%s16760_s5 + $0x680] sm:$0xf0]  ;;  %v9550_v52 = vor.u32 %v10940_v40, %v9547_v28  ;;  %v11016_v40 = vld [vmem:[%s16760_s5 + $0x5c4] sm:$0xf0] }
 0x46d   :  { %v9934_v36 = vor.u32 %v11036_v46, %v9931_v55  ;;  %v10998_v17 = vld [vmem:[%s16760_s5 + $0x534] sm:$0xf0] }
 0x46e   :  { %6503 = vmatmul.bf16.vlgmr.msra.gmra.mxu0 %v15473_v8  ;;  %6516 = vmatmul.bf16.vlgmr.msra.gmra.mxu1 %v15475_v34 }
 0x46f   :  { %6547 = vmatpush.bf16.msrb.mxu0 %v9670_v48  ;;  %6560 = vmatpush.bf16.msrb.mxu1 %v9862_v47  ;;  %v11084_v48 = vld [vmem:[%s16760_s5 + $0x7ec] sm:$0xf]  ;;  %v10123_v47 = vld [vmem:[%s16760_s5 + $0x800] sm:$0xf0] }
 0x470   :  { %6573 = vmatpush.bf16.msrb.mxu2 %v10054_v54  ;;  %6586 = vmatpush.bf16.msrb.mxu3 %v10246_v35  ;;  %v10934_v54 = vld [vmem:[%s16760_s5 + $0x33c] sm:$0xf]  ;;  %v9523_v35 = vld [vmem:[%s16760_s5 + $0x350] sm:$0xf0]  ;;  %v10126_v60 = vor.u32 %v11084_v48, %v10123_v47  ;;  %v9433_v48 = vld [vmem:[%s16760_s5 + $0x280] sm:$0xf] }
 0x471   :  { %6529 = vmatmul.bf16.vlgmr.msra.gmra.mxu2 %v15361_v50  ;;  %6542 = vmatmul.bf16.vlgmr.msra.gmra.mxu3 %v15363_v56  ;;  %v9526_v59 = vor.u32 %v10934_v54, %v9523_v35  ;;  %v10914_v47 = vld [vmem:[%s16760_s5 + $0x294] sm:$0xf0]  ;;  %v9817_v54 = vld [vmem:[%s16760_s5 + $0x580] sm:$0xf] }
 0x472   :  { %v11010_v35 = vld [vmem:[%s16760_s5 + $0x594] sm:$0xf0] }
 0x473   :  { %6548 = vmatpush.bf16.msrb.mxu0 %v9646_v6  ;;  %6561 = vmatpush.bf16.msrb.mxu1 %v9838_v19  ;;  %v11078_v6 = vld [vmem:[%s16760_s5 + $0x7bc] sm:$0xf]  ;;  %v10099_v19 = vld [vmem:[%s16760_s5 + $0x7d0] sm:$0xf0] }
 0x474   :  { %6574 = vmatpush.bf16.msrb.mxu2 %v10030_v33  ;;  %6587 = vmatpush.bf16.msrb.mxu3 %v10222_v58  ;;  %v9718_v33 = vor.u32 %v10982_v3, %v9715_v57  ;;  %v9499_v58 = vld [vmem:[%s16760_s5 + $0x320] sm:$0xf0]  ;;  %v10102_v42 = vor.u32 %v11078_v6, %v10099_v19  ;;  %v9434_v57 = vor.u32 %v10914_v47, %v9433_v48  ;;  %v10860_v6 = vld [vmem:[%s16760_s5 + $0xe4] sm:$0xf0]  ;;  %v9337_v47 = vld [vmem:[%s16760_s5 + $0x1c0] sm:$0xf] }
 0x475   :  { %v9502_v13 = vor.u32 %v10928_v12, %v9499_v58  ;;  %v9818_v12 = vor.u32 %v11010_v35, %v9817_v54  ;;  %v9601_v58 = vld [vmem:[%s16760_s5 + $0x3d0] sm:$0xf] }
 0x476   :  { %v9602_v7 = vor.u32 %v10956_v5, %v9601_v58  ;;  %v10884_v58 = vld [vmem:[%s16760_s5 + $0x1a4] sm:$0xf0] }
 0x477   :  { %6549 = vmatpush.bf16.msrb.mxu0 %v9622_v32  ;;  %6562 = vmatpush.bf16.msrb.mxu1 %v9814_v15  ;;  %v11072_v32 = vld [vmem:[%s16760_s5 + $0x78c] sm:$0xf]  ;;  %v10075_v15 = vld [vmem:[%s16760_s5 + $0x7a0] sm:$0xf0] }
 0x478   :  { %6575 = vmatpush.bf16.msrb.mxu2 %v10006_v4  ;;  %6588 = vmatpush.bf16.msrb.mxu3 %v10198_v62  ;;  %v9481_v4 = vld [vmem:[%s16760_s5 + $0x2e0] sm:$0xf]  ;;  %v10926_v62 = vld [vmem:[%s16760_s5 + $0x2f4] sm:$0xf0] }
 0x479   :  { %v9482_v29 = vor.u32 %v10926_v62, %v9481_v4  ;;  %v9385_v4 = vld [vmem:[%s16760_s5 + $0x220] sm:$0xf]  ;;  %v10902_v62 = vld [vmem:[%s16760_s5 + $0x234] sm:$0xf0] }
 0x47b   :  { %6550 = vmatpush.bf16.msrb.mxu0 %v9598_v20  ;;  %6563 = vmatpush.bf16.msrb.mxu1 %v9790_v22  ;;  %v9886_v20 = vor.u32 %v11024_v63, %v9883_v30  ;;  %v10078_v22 = vor.u32 %v11072_v32, %v10075_v15  ;;  %v9218_v63 = vor.u32 %v10860_v6, %v9217_v61  ;;  %v9193_v32 = vld [vmem:[%s16760_s5 + $0xa0] sm:$0xf]  ;;  %v10854_v15 = vld [vmem:[%s16760_s5 + $0xb4] sm:$0xf0]  ;;  %v9121_v61 = vld [vmem:[%s16760_s5 + $0x10] sm:$0xf] }
 0x47c   :  { %6576 = vmatpush.bf16.msrb.mxu2 %v9982_v24  ;;  %6589 = vmatpush.bf16.msrb.mxu3 %v10174_v41  ;;  %v9265_v24 = vld [vmem:[%s16760_s5 + $0x130] sm:$0xf]  ;;  %v10872_v41 = vld [vmem:[%s16760_s5 + $0x144] sm:$0xf0] }
 0x47d   :  { %v9266_v28 = vor.u32 %v10872_v41, %v9265_v24  ;;  %v9386_v24 = vor.u32 %v10902_v62, %v9385_v4  ;;  %v9169_v41 = vld [vmem:[%s16760_s5 + $0x70] sm:$0xf]  ;;  %v10836_v6 = vld [vmem:[%s16760_s5 + $0x24] sm:$0xf0]  ;;  %v11118_v4 = vld [vmem:[%s16760_s5 + $0x8f4] sm:$0xf0] }
 0x47e   :  { %v10875_v62 = vld [vmem:[%s16760_s5 + $0x164] sm:$0xf] }
 0x47f   :  { %6551 = vmatpush.bf16.msrb.mxu0 %v9574_v25  ;;  %6564 = vmatpush.bf16.msrb.mxu1 %v9766_v26  ;;  %v10968_v25 = vld [vmem:[%s16760_s5 + $0x444] sm:$0xf0]  ;;  %v9841_v26 = vld [vmem:[%s16760_s5 + $0x5b0] sm:$0xf] }
 0x480   :  { %6577 = vmatpush.bf16.msrb.mxu2 %v9958_v39  ;;  %6590 = vmatpush.bf16.msrb.mxu3 %v10150_v43  ;;  %v9458_v39 = vor.u32 %v10920_v45, %v9457_v31  ;;  %v9241_v43 = vld [vmem:[%s16760_s5 + $0x100] sm:$0xf]  ;;  %v9650_v46 = vor.u32 %v10968_v25, %v9649_v37  ;;  %v9842_v55 = vor.u32 %v11016_v40, %v9841_v26  ;;  %v10848_v31 = vld [vmem:[%s16760_s5 + $0x84] sm:$0xf0]  ;;  %v9361_v37 = vld [vmem:[%s16760_s5 + $0x1f0] sm:$0xf] }
 0x481   :  { %v9242_v3 = vor.u32 %v10866_v1, %v9241_v43  ;;  %v9770_v45 = vor.u32 %v10998_v17, %v9769_v11  ;;  %v10896_v25 = vld [vmem:[%s16760_s5 + $0x204] sm:$0xf0]  ;;  %v9553_v26 = vld [vmem:[%s16760_s5 + $0x370] sm:$0xf]  ;;  %v9170_v43 = vor.u32 %v10848_v31, %v9169_v41  ;;  %v10923_v11 = vld [vmem:[%s16760_s5 + $0x2e4] sm:$0xf] }
 0x482   :  { %v10944_v40 = vld [vmem:[%s16760_s5 + $0x384] sm:$0xf0]  ;;  %v9362_v1 = vor.u32 %v10896_v25, %v9361_v37  ;;  %v9483_v17 = vld [vmem:[%s16760_s5 + $0x2f8] sm:$0xf0]  ;;  %v10033_v31 = vld [vmem:[%s16760_s5 + $0x730] sm:$0xf] }
 0x483   :  { %6552 = vmatpush.bf16.msrb.mxu0 %v9550_v52  ;;  %6565 = vmatpush.bf16.msrb.mxu1 %v9742_v49  ;;  %v9625_v52 = vld [vmem:[%s16760_s5 + $0x400] sm:$0xf]  ;;  %v10962_v49 = vld [vmem:[%s16760_s5 + $0x414] sm:$0xf0] }
 0x484   :  { %6578 = vmatpush.bf16.msrb.mxu2 %v9934_v36  ;;  %6591 = vmatpush.bf16.msrb.mxu3 %v10126_v60  ;;  %v9626_v19 = vor.u32 %v10962_v49, %v9625_v52  ;;  %v10890_v52 = vld [vmem:[%s16760_s5 + $0x1d4] sm:$0xf0]  ;;  %v9529_v49 = vld [vmem:[%s16760_s5 + $0x340] sm:$0xf] }
 0x487   :  { %6553 = vmatpush.bf16.msrb.mxu0 %v9526_v59  ;;  %6566 = vmatpush.bf16.msrb.mxu1 %v9718_v33  ;;  %v9409_v59 = vld [vmem:[%s16760_s5 + $0x250] sm:$0xf]  ;;  %v10908_v33 = vld [vmem:[%s16760_s5 + $0x264] sm:$0xf0] }
 0x488   :  { %6579 = vmatpush.bf16.msrb.mxu2 %v9910_v2  ;;  %6592 = vmatpush.bf16.msrb.mxu3 %v10102_v42  ;;  %v9793_v2 = vld [vmem:[%s16760_s5 + $0x550] sm:$0xf]  ;;  %v11004_v42 = vld [vmem:[%s16760_s5 + $0x564] sm:$0xf0]  ;;  %v9410_v30 = vor.u32 %v10908_v33, %v9409_v59 }
 0x489   :  { %v9794_v27 = vor.u32 %v11004_v42, %v9793_v2  ;;  %v9313_v33 = vld [vmem:[%s16760_s5 + $0x190] sm:$0xf]  ;;  %v10932_v42 = vld [vmem:[%s16760_s5 + $0x324] sm:$0xf0] }
 0x48a   :  { %v6296_v36 = vpop.f32.mrf.mxu0  ;;  %v6309_v60 = vpop.f32.mrf.mxu1 }
 0x48b   :  { %6554 = vmatpush.bf16.msrb.mxu0 %v9502_v13  ;;  %6567 = vmatpush.bf16.msrb.mxu1 %v9694_v14  ;;  %v6297_v53 = vadd.f32 %v6296_v36, %v4835_v44  ;;  %v9145_v44 = vld [vmem:[%s16760_s5 + $0x40] sm:$0xf]  ;;  %v10938_v36 = vld [vmem:[%s16760_s5 + $0x354] sm:$0xf0] }
 0x48c   :  { %6580 = vmatpush.bf16.msrb.mxu2 %v9886_v20  ;;  %6593 = vmatpush.bf16.msrb.mxu3 %v10078_v22  ;;  %v9530_v5 = vor.u32 %v10938_v36, %v9529_v49  ;;  %v11106_v36 = vld [vmem:[%s16760_s5 + $0x894] sm:$0xf0] }
 0x48d   :  { %v6310_v0 = vadd.f32 %v6309_v60, %v6297_v53  ;;  %v9721_v60 = vld [vmem:[%s16760_s5 + $0x4c0] sm:$0xf] }
 0x48e   :  { %6555 = vmatmul.bf16.vlgmr.msrb.gmra.mxu0 %v15365_v51  ;;  %6568 = vmatmul.bf16.vlgmr.msrb.gmra.mxu1 %v15367_v16 }
 0x48f   :  { %6599 = vmatpush.bf16.msra.mxu0 %v9290_v23  ;;  %6612 = vmatpush.bf16.msra.mxu1 %v9482_v29  ;;  %v9194_v29 = vor.u32 %v10854_v15, %v9193_v32  ;;  %v10057_v15 = vld [vmem:[%s16760_s5 + $0x760] sm:$0xf] }
 0x490   :  { %6625 = vmatpush.bf16.msra.mxu2 %v9674_v18  ;;  %6638 = vmatpush.bf16.msra.mxu3 %v9866_v21  ;;  %v9578_v21 = vor.u32 %v10950_v9, %v9577_v10  ;;  %v4836_v10 = vperm.slane %v16183_v38, 1  ;;  %v9291_v9 = vld [vmem:[%s16760_s5 + $0x178] sm:$0xf0] }
 0x491   :  { %6581 = vmatmul.bf16.vlgmr.msrb.gmra.mxu2 %v15473_v8  ;;  %6594 = vmatmul.bf16.vlgmr.msrb.gmra.mxu3 %v15475_v34  ;;  %v6322_v13 = vpop.f32.mrf.mxu2  ;;  %v6335_v14 = vpop.f32.mrf.mxu3 }
 0x492   :  { %v6323_v20 = vadd.f32 %v6322_v13, %v6310_v0  ;;  %v6298_v22 = vpop.f32.mrf.mxu0  ;;  %v6311_v23 = vpop.f32.mrf.mxu1  ;;  %v9505_v0 = vld [vmem:[%s16760_s5 + $0x310] sm:$0xf]  ;;  %v9122_v13 = vor.u32 %v10836_v6, %v9121_v61 }
 0x493   :  { %6600 = vmatpush.bf16.msra.mxu0 %v9266_v28  ;;  %6613 = vmatpush.bf16.msra.mxu1 %v9458_v39  ;;  %v9745_v28 = vld [vmem:[%s16760_s5 + $0x4f0] sm:$0xf]  ;;  %v10992_v39 = vld [vmem:[%s16760_s5 + $0x504] sm:$0xf0] }
 0x494   :  { %6626 = vmatpush.bf16.msra.mxu2 %v9650_v46  ;;  %6639 = vmatpush.bf16.msra.mxu3 %v9842_v55  ;;  %v6336_v18 = vadd.f32 %v6335_v14, %v6323_v20  ;;  %v10842_v46 = vld [vmem:[%s16760_s5 + $0x54] sm:$0xf0]  ;;  %v9554_v55 = vor.u32 %v10944_v40, %v9553_v26  ;;  %v9746_v48 = vor.u32 %v10992_v39, %v9745_v28  ;;  %v10225_v40 = vld [vmem:[%s16760_s5 + $0x8b0] sm:$0xf]  ;;  %v11112_v28 = vld [vmem:[%s16760_s5 + $0x8c4] sm:$0xf0] }
 0x495   :  { %v9314_v14 = vor.u32 %v10884_v58, %v9313_v33  ;;  %v9506_v20 = vor.u32 %v10932_v42, %v9505_v0  ;;  %v10869_v39 = vld [vmem:[%s16760_s5 + $0x134] sm:$0xf]  ;;  %v11052_v33 = vld [vmem:[%s16760_s5 + $0x6e4] sm:$0xf0] }
 0x496   :  { %v10857_v42 = vld [vmem:[%s16760_s5 + $0xd4] sm:$0xf] }
 0x497   :  { %6601 = vmatpush.bf16.msra.mxu0 %v9242_v3  ;;  %6614 = vmatpush.bf16.msra.mxu1 %v9434_v57  ;;  %v10986_v3 = vld [vmem:[%s16760_s5 + $0x4d4] sm:$0xf0] }
 0x498   :  { %6627 = vmatpush.bf16.msra.mxu2 %v9626_v19  ;;  %6640 = vmatpush.bf16.msra.mxu3 %v9818_v12  ;;  %v9146_v19 = vor.u32 %v10842_v46, %v9145_v44  ;;  %v9338_v12 = vor.u32 %v10890_v52, %v9337_v47  ;;  %v9722_v2 = vor.u32 %v10986_v3, %v9721_v60  ;;  %v9459_v44 = vld [vmem:[%s16760_s5 + $0x2c8] sm:$0xf0]  ;;  %v10009_v47 = vld [vmem:[%s16760_s5 + $0x700] sm:$0xf]  ;;  %v11058_v52 = vld [vmem:[%s16760_s5 + $0x714] sm:$0xf0] }
 0x499   :  { %v6324_v54 = vpop.f32.mrf.mxu2  ;;  %v6337_v35 = vpop.f32.mrf.mxu3  ;;  %v10863_v60 = vld [vmem:[%s16760_s5 + $0x104] sm:$0xf]  ;;  %v9243_v3 = vld [vmem:[%s16760_s5 + $0x118] sm:$0xf0]  ;;  %v10010_v61 = vor.u32 %v11058_v52, %v10009_v47 }
 0x49a   :  { %v6348_v57 = vpop.f32.mrf.mxu0  ;;  %v6361_v53 = vpop.f32.mrf.mxu1  ;;  %v10201_v35 = vld [vmem:[%s16760_s5 + $0x880] sm:$0xf]  ;;  %v9246_v58 = vor.u32 %v10863_v60, %v9243_v3 }
 0x49b   :  { %6602 = vmatpush.bf16.msra.mxu0 %v9218_v63  ;;  %6615 = vmatpush.bf16.msra.mxu1 %v9410_v30  ;;  %v6349_v59 = vadd.f32 %v6348_v57, %v6336_v18  ;;  %v9697_v63 = vld [vmem:[%s16760_s5 + $0x490] sm:$0xf]  ;;  %v10980_v30 = vld [vmem:[%s16760_s5 + $0x4a4] sm:$0xf0]  ;;  %v10911_v57 = vld [vmem:[%s16760_s5 + $0x284] sm:$0xf]  ;;  %v10202_v6 = vor.u32 %v11106_v36, %v10201_v35 }
 0x49c   :  { %6628 = vmatpush.bf16.msra.mxu2 %v9602_v7  ;;  %6641 = vmatpush.bf16.msra.mxu3 %v9794_v27  ;;  %v11070_v7 = vld [vmem:[%s16760_s5 + $0x774] sm:$0xf0]  ;;  %v10249_v27 = vld [vmem:[%s16760_s5 + $0x8e0] sm:$0xf]  ;;  %v9698_v22 = vor.u32 %v10980_v30, %v9697_v63  ;;  %v11064_v18 = vld [vmem:[%s16760_s5 + $0x744] sm:$0xf0] }
 0x49d   :  { %v16343_v32 = vadd.f32 %v6361_v53, %v6349_v59  ;;  %v10058_v23 = vor.u32 %v11070_v7, %v10057_v15  ;;  %v9435_v53 = vld [vmem:[%s16760_s5 + $0x298] sm:$0xf0]  ;;  %v9985_v59 = vld [vmem:[%s16760_s5 + $0x6d0] sm:$0xf]  ;;  %v9219_v63 = vld [vmem:[%s16760_s5 + $0xe8] sm:$0xf0] }
 0x49e   :  { %v9438_v0 = vor.u32 %v10911_v57, %v9435_v53  ;;  %v10905_v30 = vld [vmem:[%s16760_s5 + $0x254] sm:$0xf]  ;;  %v9411_v15 = vld [vmem:[%s16760_s5 + $0x268] sm:$0xf0]  ;;  %v11034_v35 = vld [vmem:[%s16760_s5 + $0x654] sm:$0xf0] }
 0x49f   :  { %6603 = vmatpush.bf16.msra.mxu0 %v9194_v29  ;;  %6616 = vmatpush.bf16.msra.mxu1 %v9386_v24  ;;  %v10250_v29 = vor.u32 %v11118_v4, %v10249_v27  ;;  %v10105_v57 = vld [vmem:[%s16760_s5 + $0x7c0] sm:$0xf]  ;;  %v11082_v53 = vld [vmem:[%s16760_s5 + $0x7d4] sm:$0xf0] }
 0x4a0   :  { %6629 = vmatpush.bf16.msra.mxu2 %v9578_v21  ;;  %6642 = vmatpush.bf16.msra.mxu3 %v9770_v45  ;;  %v9294_v21 = vor.u32 %v10875_v62, %v9291_v9  ;;  %v9486_v45 = vor.u32 %v10923_v11, %v9483_v17  ;;  %v9986_v62 = vor.u32 %v11052_v33, %v9985_v59  ;;  %v10153_v17 = vld [vmem:[%s16760_s5 + $0x820] sm:$0xf]  ;;  %v9889_v33 = vld [vmem:[%s16760_s5 + $0x610] sm:$0xf] }
 0x4a1   :  { %v6374_v24 = vpop.f32.mrf.mxu2  ;;  %v6387_v41 = vpop.f32.mrf.mxu3  ;;  %v9222_v9 = vor.u32 %v10857_v42, %v9219_v63  ;;  %v9414_v11 = vor.u32 %v10905_v30, %v9411_v15  ;;  %v10833_v30 = vld [vmem:[%s16760_s5 + $0x14] sm:$0xf]  ;;  %v9123_v15 = vld [vmem:[%s16760_s5 + $0x28] sm:$0xf0] }
 0x4a2   :  { %v6375_v37 = vadd.f32 %v6374_v24, %v4836_v10  ;;  %v6350_v25 = vpop.f32.mrf.mxu0  ;;  %v6363_v26 = vpop.f32.mrf.mxu1  ;;  %v10899_v24 = vld [vmem:[%s16760_s5 + $0x224] sm:$0xf] }
 0x4a3   :  { %6604 = vmatpush.bf16.msra.mxu0 %v9170_v43  ;;  %6617 = vmatpush.bf16.msra.mxu1 %v9362_v1  ;;  %v9267_v43 = vld [vmem:[%s16760_s5 + $0x148] sm:$0xf0]  ;;  %v10917_v1 = vld [vmem:[%s16760_s5 + $0x2b4] sm:$0xf]  ;;  %v10129_v26 = vld [vmem:[%s16760_s5 + $0x7f0] sm:$0xf] }
 0x4a4   :  { %6630 = vmatpush.bf16.msra.mxu2 %v9554_v55  ;;  %6643 = vmatpush.bf16.msra.mxu3 %v9746_v48  ;;  %v6388_v46 = vadd.f32 %v6387_v41, %v6375_v37  ;;  %v10034_v55 = vor.u32 %v11064_v18, %v10033_v31  ;;  %v10226_v48 = vor.u32 %v11112_v28, %v10225_v40  ;;  %v9387_v41 = vld [vmem:[%s16760_s5 + $0x238] sm:$0xf0]  ;;  %v11088_v40 = vld [vmem:[%s16760_s5 + $0x804] sm:$0xf0]  ;;  %v10845_v28 = vld [vmem:[%s16760_s5 + $0x74] sm:$0xf] }
 0x4a5   :  { %v9270_v49 = vor.u32 %v10869_v39, %v9267_v43  ;;  %v9462_v54 = vor.u32 %v10917_v1, %v9459_v44  ;;  %v9390_v25 = vor.u32 %v10899_v24, %v9387_v41  ;;  %v9171_v1 = vld [vmem:[%s16760_s5 + $0x88] sm:$0xf0]  ;;  %v10893_v44 = vld [vmem:[%s16760_s5 + $0x1f4] sm:$0xf]  ;;  %v9126_v24 = vor.u32 %v10833_v30, %v9123_v15 }
 0x4a6   :  { %v9174_v60 = vor.u32 %v10845_v28, %v9171_v1  ;;  %v11061_v28 = vld [vmem:[%s16760_s5 + $0x734] sm:$0xf]  ;;  %v10227_v1 = vld [vmem:[%s16760_s5 + $0x8c8] sm:$0xf0] }
 0x4a7   :  { %6605 = vmatpush.bf16.msra.mxu0 %v9146_v19  ;;  %6618 = vmatpush.bf16.msra.mxu1 %v9338_v12 }
 0x4a8   :  { %6631 = vmatpush.bf16.msra.mxu2 %v9530_v5  ;;  %6644 = vmatpush.bf16.msra.mxu3 %v9722_v2  ;;  %v10177_v5 = vld [vmem:[%s16760_s5 + $0x850] sm:$0xf]  ;;  %v11100_v2 = vld [vmem:[%s16760_s5 + $0x864] sm:$0xf0] }
 0x4a9   :  { %v6376_v19 = vpop.f32.mrf.mxu2  ;;  %v6389_v12 = vpop.f32.mrf.mxu3  ;;  %v10178_v10 = vor.u32 %v11100_v2, %v10177_v5  ;;  %v11028_v5 = vld [vmem:[%s16760_s5 + $0x624] sm:$0xf0]  ;;  %v10081_v2 = vld [vmem:[%s16760_s5 + $0x790] sm:$0xf] }
 0x4aa   :  { %v10887_v19 = vld [vmem:[%s16760_s5 + $0x1c4] sm:$0xf]  ;;  %v9339_v12 = vld [vmem:[%s16760_s5 + $0x1d8] sm:$0xf0] }
 0x4ab   :  { %6606 = vmatpush.bf16.msra.mxu0 %v9122_v13  ;;  %6619 = vmatpush.bf16.msra.mxu1 %v9314_v14  ;;  %v6400_v7 = vpop.f32.mrf.mxu0  ;;  %v6413_v27 = vpop.f32.mrf.mxu1  ;;  %v9961_v13 = vld [vmem:[%s16760_s5 + $0x6a0] sm:$0xf]  ;;  %v11046_v14 = vld [vmem:[%s16760_s5 + $0x6b4] sm:$0xf0]  ;;  %v9342_v63 = vor.u32 %v10887_v19, %v9339_v12  ;;  %v9603_v19 = vld [vmem:[%s16760_s5 + $0x3e8] sm:$0xf0] }
 0x4ac   :  { %6632 = vmatpush.bf16.msra.mxu2 %v9506_v20  ;;  %6645 = vmatpush.bf16.msra.mxu3 %v9698_v22  ;;  %v6401_v4 = vadd.f32 %v6400_v7, %v6388_v46  ;;  %v11094_v20 = vld [vmem:[%s16760_s5 + $0x834] sm:$0xf0]  ;;  %v10851_v22 = vld [vmem:[%s16760_s5 + $0xa4] sm:$0xf]  ;;  %v9962_v31 = vor.u32 %v11046_v14, %v9961_v13  ;;  %v9363_v46 = vld [vmem:[%s16760_s5 + $0x208] sm:$0xf0] }
 0x4ad   :  { %v10154_v18 = vor.u32 %v11094_v20, %v10153_v17  ;;  %v9366_v3 = vor.u32 %v10893_v44, %v9363_v46  ;;  %v10881_v7 = vld [vmem:[%s16760_s5 + $0x194] sm:$0xf]  ;;  %v9675_v13 = vld [vmem:[%s16760_s5 + $0x478] sm:$0xf0]  ;;  %v11019_v14 = vld [vmem:[%s16760_s5 + $0x5e4] sm:$0xf]  ;;  %v9890_v17 = vor.u32 %v11028_v5, %v9889_v33 }
 0x4ae   :  { %6607 = vmatmul.bf16.vlgmr.msra.gmra.mxu0 %v15361_v50  ;;  %6620 = vmatmul.bf16.vlgmr.msra.gmra.mxu1 %v15363_v56  ;;  %v9795_v33 = vld [vmem:[%s16760_s5 + $0x568] sm:$0xf0]  ;;  %v11097_v5 = vld [vmem:[%s16760_s5 + $0x854] sm:$0xf] }
 0x4af   :  { %6651 = vmatpush.bf16.msrb.mxu0 %v10058_v23  ;;  %6664 = vmatpush.bf16.msrb.mxu1 %v10250_v29  ;;  %v6414_v23 = vadd.f32 %v6413_v27, %v6401_v4  ;;  %v9195_v29 = vld [vmem:[%s16760_s5 + $0xb8] sm:$0xf0] }
 0x4b0   :  { %6677 = vmatpush.bf16.msrb.mxu2 %v9294_v21  ;;  %6690 = vmatpush.bf16.msrb.mxu3 %v9486_v45  ;;  %v9937_v21 = vld [vmem:[%s16760_s5 + $0x670] sm:$0xf]  ;;  %v11040_v45 = vld [vmem:[%s16760_s5 + $0x684] sm:$0xf0]  ;;  %v9198_v37 = vor.u32 %v10851_v22, %v9195_v29  ;;  %v10059_v22 = vld [vmem:[%s16760_s5 + $0x778] sm:$0xf0] }
 0x4b1   :  { %6633 = vmatmul.bf16.vlgmr.msra.gmra.mxu2 %v15365_v51  ;;  %6646 = vmatmul.bf16.vlgmr.msra.gmra.mxu3 %v15367_v16  ;;  %v9938_v52 = vor.u32 %v11040_v45, %v9937_v21  ;;  %v10251_v29 = vld [vmem:[%s16760_s5 + $0x8f8] sm:$0xf0]  ;;  %v10965_v21 = vld [vmem:[%s16760_s5 + $0x434] sm:$0xf]  ;;  %v9651_v45 = vld [vmem:[%s16760_s5 + $0x448] sm:$0xf0] }
 0x4b2   :  { %v9654_v44 = vor.u32 %v10965_v21, %v9651_v45  ;;  %v9747_v21 = vld [vmem:[%s16760_s5 + $0x508] sm:$0xf0]  ;;  %v11037_v45 = vld [vmem:[%s16760_s5 + $0x674] sm:$0xf] }
 0x4b3   :  { %6652 = vmatpush.bf16.msrb.mxu0 %v10034_v55  ;;  %6665 = vmatpush.bf16.msrb.mxu1 %v10226_v48  ;;  %v6402_v48 = vpop.f32.mrf.mxu0  ;;  %v6415_v47 = vpop.f32.mrf.mxu1 }
 0x4b4   :  { %6678 = vmatpush.bf16.msrb.mxu2 %v9270_v49  ;;  %6691 = vmatpush.bf16.msrb.mxu3 %v9462_v54  ;;  %v6426_v39 = vpop.f32.mrf.mxu2  ;;  %v6439_v43 = vpop.f32.mrf.mxu3  ;;  %v10130_v49 = vor.u32 %v11088_v40, %v10129_v26  ;;  %v9913_v54 = vld [vmem:[%s16760_s5 + $0x640] sm:$0xf]  ;;  %v11013_v26 = vld [vmem:[%s16760_s5 + $0x5b4] sm:$0xf]  ;;  %v9843_v40 = vld [vmem:[%s16760_s5 + $0x5c8] sm:$0xf0] }
 0x4b5   :  { %v6427_v55 = vadd.f32 %v6426_v39, %v6414_v23  ;;  %v11115_v23 = vld [vmem:[%s16760_s5 + $0x8e4] sm:$0xf]  ;;  %v10035_v39 = vld [vmem:[%s16760_s5 + $0x748] sm:$0xf0]  ;;  %v9846_v46 = vor.u32 %v11013_v26, %v9843_v40  ;;  %v9627_v48 = vld [vmem:[%s16760_s5 + $0x418] sm:$0xf0] }
 0x4b6   :  { %v10038_v47 = vor.u32 %v11061_v28, %v10035_v39  ;;  %v9939_v26 = vld [vmem:[%s16760_s5 + $0x688] sm:$0xf0]  ;;  %v11085_v40 = vld [vmem:[%s16760_s5 + $0x7f4] sm:$0xf] }
 0x4b7   :  { %6653 = vmatpush.bf16.msrb.mxu0 %v10010_v61  ;;  %6666 = vmatpush.bf16.msrb.mxu1 %v10202_v6  ;;  %v6440_v36 = vadd.f32 %v6439_v43, %v6427_v55  ;;  %v10839_v61 = vld [vmem:[%s16760_s5 + $0x44] sm:$0xf]  ;;  %v9147_v6 = vld [vmem:[%s16760_s5 + $0x58] sm:$0xf0]  ;;  %v11109_v43 = vld [vmem:[%s16760_s5 + $0x8b4] sm:$0xf] }
 0x4b8   :  { %6679 = vmatpush.bf16.msrb.mxu2 %v9246_v58  ;;  %6692 = vmatpush.bf16.msrb.mxu3 %v9438_v0  ;;  %v9914_v58 = vor.u32 %v11034_v35, %v9913_v54  ;;  %v10106_v0 = vor.u32 %v11082_v53, %v10105_v57  ;;  %v9150_v42 = vor.u32 %v10839_v61, %v9147_v6  ;;  %v10959_v55 = vld [vmem:[%s16760_s5 + $0x404] sm:$0xf]  ;;  %v9819_v54 = vld [vmem:[%s16760_s5 + $0x598] sm:$0xf0]  ;;  %v4837_v61 = vperm.slane %v16183_v38, 2 }
 0x4b9   :  { %v16519_v59 = vpack.c.bf16 %v6440_v36, %v16343_v32  ;;  %v11076_v32 = vld [vmem:[%s16760_s5 + $0x7a4] sm:$0xf0]  ;;  %v11055_v35 = vld [vmem:[%s16760_s5 + $0x704] sm:$0xf]  ;;  %v10011_v36 = vld [vmem:[%s16760_s5 + $0x718] sm:$0xf0]  ;;  %v9630_v57 = vor.u32 %v10959_v55, %v9627_v48 }
 0x4ba   :  { %v10082_v20 = vor.u32 %v11076_v32, %v10081_v2  ;;  %v10953_v6 = vld [vmem:[%s16760_s5 + $0x3d4] sm:$0xf]  ;;  %v10014_v12 = vor.u32 %v11055_v35, %v10011_v36  ;;  %v10179_v2 = vld [vmem:[%s16760_s5 + $0x868] sm:$0xf0]  ;;  %v10935_v55 = vld [vmem:[%s16760_s5 + $0x344] sm:$0xf] }
 0x4bb   :  { %6654 = vmatpush.bf16.msrb.mxu0 %v9986_v62  ;;  %6667 = vmatpush.bf16.msrb.mxu1 %v10178_v10  ;;  %v9315_v62 = vld [vmem:[%s16760_s5 + $0x1a8] sm:$0xf0]  ;;  %v10971_v10 = vld [vmem:[%s16760_s5 + $0x464] sm:$0xf]  ;;  %v9606_v30 = vor.u32 %v10953_v6, %v9603_v19  ;;  %v9531_v48 = vld [vmem:[%s16760_s5 + $0x358] sm:$0xf0] }
 0x4bc   :  { %6680 = vmatpush.bf16.msrb.mxu2 %v9222_v9  ;;  %6693 = vmatpush.bf16.msrb.mxu3 %v9414_v11  ;;  %v6428_v27 = vpop.f32.mrf.mxu2  ;;  %v6441_v4 = vpop.f32.mrf.mxu3  ;;  %v9867_v9 = vld [vmem:[%s16760_s5 + $0x5f8] sm:$0xf0]  ;;  %v11067_v11 = vld [vmem:[%s16760_s5 + $0x764] sm:$0xf]  ;;  %v9318_v41 = vor.u32 %v10881_v7, %v9315_v62  ;;  %v10182_v62 = vor.u32 %v11097_v5, %v10179_v2  ;;  %v10131_v28 = vld [vmem:[%s16760_s5 + $0x808] sm:$0xf0] }
 0x4bd   :  { %v10947_v7 = vld [vmem:[%s16760_s5 + $0x3a4] sm:$0xf]  ;;  %v9579_v27 = vld [vmem:[%s16760_s5 + $0x3b8] sm:$0xf0]  ;;  %v10929_v6 = vld [vmem:[%s16760_s5 + $0x314] sm:$0xf] }
 0x4be   :  { %v9723_v35 = vld [vmem:[%s16760_s5 + $0x4d8] sm:$0xf0]  ;;  %v11031_v36 = vld [vmem:[%s16760_s5 + $0x644] sm:$0xf]  ;;  %v9507_v19 = vld [vmem:[%s16760_s5 + $0x328] sm:$0xf0] }
 0x4bf   :  { %6655 = vmatpush.bf16.msrb.mxu0 %v9962_v31  ;;  %6668 = vmatpush.bf16.msrb.mxu1 %v10154_v18  ;;  %v9678_v31 = vor.u32 %v10971_v10, %v9675_v13  ;;  %v9870_v18 = vor.u32 %v11019_v14, %v9867_v9  ;;  %v10995_v10 = vld [vmem:[%s16760_s5 + $0x524] sm:$0xf]  ;;  %v9771_v13 = vld [vmem:[%s16760_s5 + $0x538] sm:$0xf0]  ;;  %v9891_v2 = vld [vmem:[%s16760_s5 + $0x628] sm:$0xf0] }
 0x4c0   :  { %6681 = vmatpush.bf16.msrb.mxu2 %v9198_v37  ;;  %6694 = vmatpush.bf16.msrb.mxu3 %v9390_v25  ;;  %v10062_v37 = vor.u32 %v11067_v11, %v10059_v22  ;;  %v10254_v25 = vor.u32 %v11115_v23, %v10251_v29  ;;  %v11043_v14 = vld [vmem:[%s16760_s5 + $0x6a4] sm:$0xf]  ;;  %v9963_v11 = vld [vmem:[%s16760_s5 + $0x6b8] sm:$0xf0]  ;;  %v9582_v22 = vor.u32 %v10947_v7, %v9579_v27  ;;  %v10941_v29 = vld [vmem:[%s16760_s5 + $0x374] sm:$0xf] }
 0x4c1   :  { %v9774_v23 = vor.u32 %v10995_v10, %v9771_v13  ;;  %v4838_v13 = vperm.slane %v16183_v38, 3 }
 0x4c3   :  { %6656 = vmatpush.bf16.msrb.mxu0 %v9938_v52  ;;  %6669 = vmatpush.bf16.msrb.mxu1 %v10130_v49  ;;  %v10230_v52 = vor.u32 %v11109_v43, %v10227_v1  ;;  %v11007_v49 = vld [vmem:[%s16760_s5 + $0x584] sm:$0xf] }
 0x4c4   :  { %6682 = vmatpush.bf16.msrb.mxu2 %v9174_v60  ;;  %6695 = vmatpush.bf16.msrb.mxu3 %v9366_v3  ;;  %v11103_v60 = vld [vmem:[%s16760_s5 + $0x884] sm:$0xf]  ;;  %v10203_v3 = vld [vmem:[%s16760_s5 + $0x898] sm:$0xf0]  ;;  %v9822_v53 = vor.u32 %v11007_v49, %v9819_v54  ;;  %v10134_v49 = vor.u32 %v11085_v40, %v10131_v28 }
 0x4c5   :  { %v10983_v54 = vld [vmem:[%s16760_s5 + $0x4c4] sm:$0xf] }
 0x4c7   :  { %6657 = vmatpush.bf16.msrb.mxu0 %v9914_v58  ;;  %6670 = vmatpush.bf16.msrb.mxu1 %v10106_v0  ;;  %v11049_v58 = vld [vmem:[%s16760_s5 + $0x6d4] sm:$0xf]  ;;  %v9987_v0 = vld [vmem:[%s16760_s5 + $0x6e8] sm:$0xf0] }
 0x4c8   :  { %6683 = vmatpush.bf16.msrb.mxu2 %v9150_v42  ;;  %6696 = vmatpush.bf16.msrb.mxu3 %v9342_v63  ;;  %v9990_v4 = vor.u32 %v11049_v58, %v9987_v0  ;;  %v11025_v58 = vld [vmem:[%s16760_s5 + $0x614] sm:$0xf] }
 0x4cb   :  { %6658 = vmatpush.bf16.msrb.mxu0 %v9890_v17  ;;  %6671 = vmatpush.bf16.msrb.mxu1 %v10082_v20  ;;  %v6452_v32 = vpop.f32.mrf.mxu0  ;;  %v6465_v42 = vpop.f32.mrf.mxu1  ;;  %v11091_v17 = vld [vmem:[%s16760_s5 + $0x824] sm:$0xf]  ;;  %v10155_v20 = vld [vmem:[%s16760_s5 + $0x838] sm:$0xf0] }
 0x4cc   :  { %6684 = vmatpush.bf16.msrb.mxu2 %v9126_v24  ;;  %6697 = vmatpush.bf16.msrb.mxu3 %v9318_v41  ;;  %v6453_v63 = vadd.f32 %v6452_v32, %v4837_v61  ;;  %v9555_v24 = vld [vmem:[%s16760_s5 + $0x388] sm:$0xf0]  ;;  %v9966_v41 = vor.u32 %v11043_v14, %v9963_v11  ;;  %v9726_v61 = vor.u32 %v10983_v54, %v9723_v35  ;;  %v11073_v32 = vld [vmem:[%s16760_s5 + $0x794] sm:$0xf] }
 0x4ce   :  { %6659 = vmatmul.bf16.vlgmr.msrb.gmra.mxu0 %v15473_v8  ;;  %6672 = vmatmul.bf16.vlgmr.msrb.gmra.mxu1 %v15475_v34  ;;  %v6466_v9 = vadd.f32 %v6465_v42, %v6453_v63  ;;  %v10083_v42 = vld [vmem:[%s16760_s5 + $0x7a8] sm:$0xf0]  ;;  %v9510_v63 = vor.u32 %v10929_v6, %v9507_v19  ;;  %v4840_v6 = vperm.slane %v16183_v38, 5 }
 0x4cf   :  { %6703 = vmatpush.bf16.msra.mxu0 %v9678_v31  ;;  %6716 = vmatpush.bf16.msra.mxu1 %v9870_v18  ;;  %v10158_v31 = vor.u32 %v11091_v17, %v10155_v20  ;;  %v10989_v18 = vld [vmem:[%s16760_s5 + $0x4f4] sm:$0xf]  ;;  %v10086_v7 = vor.u32 %v11073_v32, %v10083_v42 }
 0x4d0   :  { %6729 = vmatpush.bf16.msra.mxu2 %v10062_v37  ;;  %6742 = vmatpush.bf16.msra.mxu3 %v10254_v25 }
 0x4d1   :  { %6685 = vmatmul.bf16.vlgmr.msrb.gmra.mxu2 %v15361_v50  ;;  %6698 = vmatmul.bf16.vlgmr.msrb.gmra.mxu3 %v15363_v56  ;;  %v10206_v50 = vor.u32 %v11103_v60, %v10203_v3  ;;  %v11001_v56 = vld [vmem:[%s16760_s5 + $0x554] sm:$0xf]  ;;  %v9915_v60 = vld [vmem:[%s16760_s5 + $0x658] sm:$0xf0]  ;;  %v11079_v3 = vld [vmem:[%s16760_s5 + $0x7c4] sm:$0xf] }
 0x4d2   :  { %v9798_v15 = vor.u32 %v11001_v56, %v9795_v33  ;;  %v10977_v56 = vld [vmem:[%s16760_s5 + $0x494] sm:$0xf]  ;;  %v9699_v33 = vld [vmem:[%s16760_s5 + $0x4a8] sm:$0xf0] }
 0x4d3   :  { %6704 = vmatpush.bf16.msra.mxu0 %v9654_v44  ;;  %6717 = vmatpush.bf16.msra.mxu1 %v9846_v46  ;;  %v6454_v43 = vpop.f32.mrf.mxu0  ;;  %v6467_v1 = vpop.f32.mrf.mxu1  ;;  %v9558_v44 = vor.u32 %v10941_v29, %v9555_v24  ;;  %v9750_v46 = vor.u32 %v10989_v18, %v9747_v21 }
 0x4d4   :  { %6730 = vmatpush.bf16.msra.mxu2 %v10038_v47  ;;  %6743 = vmatpush.bf16.msra.mxu3 %v10230_v52  ;;  %v6478_v37 = vpop.f32.mrf.mxu2  ;;  %v6491_v25 = vpop.f32.mrf.mxu3  ;;  %v9942_v52 = vor.u32 %v11037_v45, %v9939_v26 }
 0x4d5   :  { %v6479_v39 = vadd.f32 %v6478_v37, %v6466_v9  ;;  %v6761_v37 = vrot.slane %v16519_v59, 3 }
 0x4d7   :  { %6705 = vmatpush.bf16.msra.mxu0 %v9630_v57  ;;  %6718 = vmatpush.bf16.msra.mxu1 %v9822_v53  ;;  %v6492_v47 = vadd.f32 %v6491_v25, %v6479_v39  ;;  %v10107_v57 = vld [vmem:[%s16760_s5 + $0x7d8] sm:$0xf0]  ;;  %v9534_v53 = vor.u32 %v10935_v55, %v9531_v48  ;;  %v6769_v40 = vsel %vm6766_vm5, %v16519_v59, %v6761_v37  ;;  %s11160_s5 = smov [#allocation2]  }
 0x4d8   :  { %6731 = vmatpush.bf16.msra.mxu2 %v10014_v12  ;;  %6744 = vmatpush.bf16.msra.mxu3 %v10206_v50  ;;  %v9918_v12 = vor.u32 %v11031_v36, %v9915_v60  ;;  %v10110_v50 = vor.u32 %v11079_v3, %v10107_v57  ;;  %s6788_s22 = sshll.u32 %s11160_s5, 4  ;;  %s6789_s22 = int_to_ptr.vmem [resolvable:$true] %s6788_s22 }
 0x4db   :  { %6706 = vmatpush.bf16.msra.mxu0 %v9606_v30  ;;  %6719 = vmatpush.bf16.msra.mxu1 %v9798_v15  ;;  %v9702_v30 = vor.u32 %v10977_v56, %v9699_v33  ;;  %v9894_v15 = vor.u32 %v11025_v58, %v9891_v2 }
 0x4dc   :  { %6732 = vmatpush.bf16.msra.mxu2 %v9990_v4  ;;  %6745 = vmatpush.bf16.msra.mxu3 %v10182_v62  ;;  %v6480_v0 = vpop.f32.mrf.mxu2  ;;  %v6493_v5 = vpop.f32.mrf.mxu3 }
 0x4df   :  { %6707 = vmatpush.bf16.msra.mxu0 %v9582_v22  ;;  %6720 = vmatpush.bf16.msra.mxu1 %v9774_v23 }
 0x4e0   :  { %6733 = vmatpush.bf16.msra.mxu2 %v9966_v41  ;;  %6746 = vmatpush.bf16.msra.mxu3 %v10158_v31 }
 0x4e3   :  { %6708 = vmatpush.bf16.msra.mxu0 %v9558_v44  ;;  %6721 = vmatpush.bf16.msra.mxu1 %v9750_v46 }
 0x4e4   :  { %6734 = vmatpush.bf16.msra.mxu2 %v9942_v52  ;;  %6747 = vmatpush.bf16.msra.mxu3 %v10134_v49 }
 0x4e7   :  { %6709 = vmatpush.bf16.msra.mxu0 %v9534_v53  ;;  %6722 = vmatpush.bf16.msra.mxu1 %v9726_v61  ;;  %v4839_v61 = vperm.slane %v16183_v38, 4 }
 0x4e8   :  { %6735 = vmatpush.bf16.msra.mxu2 %v9918_v12  ;;  %6748 = vmatpush.bf16.msra.mxu3 %v10110_v50 }
 0x4eb   :  { %6710 = vmatpush.bf16.msra.mxu0 %v9510_v63  ;;  %6723 = vmatpush.bf16.msra.mxu1 %v9702_v30  ;;  %v6504_v27 = vpop.f32.mrf.mxu0  ;;  %v6517_v4 = vpop.f32.mrf.mxu1 }
 0x4ec   :  { %6736 = vmatpush.bf16.msra.mxu2 %v9894_v15  ;;  %6749 = vmatpush.bf16.msra.mxu3 %v10086_v7  ;;  %v6505_v62 = vadd.f32 %v6504_v27, %v6492_v47 }
 0x4ee   :  { %6711 = vmatmul.bf16.vlgmr.msra.gmra.mxu0 %v15365_v51  ;;  %6724 = vmatmul.bf16.vlgmr.msra.gmra.mxu1 %v15367_v16  ;;  %v6518_v10 = vadd.f32 %v6517_v4, %v6505_v62 }
 0x4ef   :  { %6737 = vmatmul.bf16.vlgmr.msra.gmra.mxu2 %v15473_v8  ;;  %6750 = vmatmul.bf16.vlgmr.msra.gmra.mxu3 %v15475_v34 }
 0x4f3   :  { %v6506_v17 = vpop.f32.mrf.mxu0  ;;  %v6519_v20 = vpop.f32.mrf.mxu1 }
 0x4f4   :  { %v6530_v14 = vpop.f32.mrf.mxu2  ;;  %v6543_v9 = vpop.f32.mrf.mxu3 }
 0x4f5   :  { %v6531_v11 = vadd.f32 %v6530_v14, %v4838_v13 }
 0x4f7   :  { %v6544_v22 = vadd.f32 %v6543_v9, %v6531_v11 }
 0x4fc   :  { %v6532_v23 = vpop.f32.mrf.mxu2  ;;  %v6545_v51 = vpop.f32.mrf.mxu3 }
 0x50b   :  { %v6556_v29 = vpop.f32.mrf.mxu0  ;;  %v6569_v16 = vpop.f32.mrf.mxu1 }
 0x50c   :  { %v6557_v24 = vadd.f32 %v6556_v29, %v6544_v22 }
 0x50e   :  { %v6570_v8 = vadd.f32 %v6569_v16, %v6557_v24 }
 0x513   :  { %v6558_v18 = vpop.f32.mrf.mxu0  ;;  %v6571_v21 = vpop.f32.mrf.mxu1 }
 0x514   :  { %v6582_v41 = vpop.f32.mrf.mxu2  ;;  %v6595_v34 = vpop.f32.mrf.mxu3 }
 0x515   :  { %v6583_v31 = vadd.f32 %v6582_v41, %v6570_v8 }
 0x517   :  { %v6596_v45 = vadd.f32 %v6595_v34, %v6583_v31 }
 0x519   :  { %v6756_v25 = vpack.c.bf16 %v6596_v45, %v6518_v10 }
 0x51b   :  { %v6762_v26 = vrot.slane %v6756_v25, 6  ;;  %v6763_v38 = vrot.slane %v6756_v25, 1 }
 0x51c   :  { %v6584_v28 = vpop.f32.mrf.mxu2  ;;  %v6597_v39 = vpop.f32.mrf.mxu3 }
 0x51d   :  { %v6771_v43 = vsel %vm4474_vm0, %v6769_v40, %v6762_v26 }
 0x52b   :  { %v6608_v1 = vpop.f32.mrf.mxu0  ;;  %v6621_v44 = vpop.f32.mrf.mxu1 }
 0x52c   :  { %v6609_v19 = vadd.f32 %v6608_v1, %v4839_v61 }
 0x52e   :  { %v6622_v50 = vadd.f32 %v6621_v44, %v6609_v19 }
 0x533   :  { %v6610_v48 = vpop.f32.mrf.mxu0  ;;  %v6623_v47 = vpop.f32.mrf.mxu1 }
 0x534   :  { %v6634_v46 = vpop.f32.mrf.mxu2  ;;  %v6647_v55 = vpop.f32.mrf.mxu3 }
 0x535   :  { %v6635_v56 = vadd.f32 %v6634_v46, %v6622_v50 }
 0x537   :  { %v6648_v2 = vadd.f32 %v6647_v55, %v6635_v56 }
 0x53c   :  { %v6636_v52 = vpop.f32.mrf.mxu2  ;;  %v6649_v49 = vpop.f32.mrf.mxu3 }
 0x54b   :  { %v6660_v54 = vpop.f32.mrf.mxu0  ;;  %v6673_v35 = vpop.f32.mrf.mxu1 }
 0x54c   :  { %v6661_v32 = vadd.f32 %v6660_v54, %v6648_v2 }
 0x54e   :  { %v6674_v4 = vadd.f32 %v6673_v35, %v6661_v32 }
 0x553   :  { %v6662_v3 = vpop.f32.mrf.mxu0  ;;  %v6675_v57 = vpop.f32.mrf.mxu1 }
 0x554   :  { %v6686_v36 = vpop.f32.mrf.mxu2  ;;  %v6699_v60 = vpop.f32.mrf.mxu3 }
 0x555   :  { %v6687_v12 = vadd.f32 %v6686_v36, %v4840_v6 }
 0x557   :  { %v6700_v33 = vadd.f32 %v6699_v60, %v6687_v12 }
 0x55c   :  { %v6688_v53 = vpop.f32.mrf.mxu2  ;;  %v6701_v59 = vpop.f32.mrf.mxu3 }
 0x56b   :  { %v6712_v58 = vpop.f32.mrf.mxu0  ;;  %v6725_v0 = vpop.f32.mrf.mxu1 }
 0x56c   :  { %v6713_v5 = vadd.f32 %v6712_v58, %v6700_v33 }
 0x56e   :  { %v6726_v42 = vadd.f32 %v6725_v0, %v6713_v5 }
 0x572   :  { %v6738_v63 = vpop.f32.mrf.mxu2  ;;  %v6751_v30 = vpop.f32.mrf.mxu3 }
 0x573   :  { %v6739_v15 = vadd.f32 %v6738_v63, %v6726_v42  ;;  %v6714_v7 = vpop.f32.mrf.mxu0  ;;  %v6727_v27 = vpop.f32.mrf.mxu1 }
 0x575   :  { %v6752_v62 = vadd.f32 %v6751_v30, %v6739_v15 }
 0x577   :  { %v6757_v10 = vpack.c.bf16 %v6752_v62, %v6674_v4 }
 0x579   :  { %v6764_v13 = vrot.slane %v6757_v10, 4  ;;  %v6765_v14 = vrot.slane %v6757_v10, 7 }
 0x57a   :  { %v6740_v9 = vpop.f32.mrf.mxu2  ;;  %v6753_v11 = vpop.f32.mrf.mxu3 }
 0x57b   :  { %v6775_v17 = vsel %vm6772_vm6, %v6763_v38, %v6764_v13 }
 0x57c   :  { %v6778_v20 = vsel %vm6776_vm7, %v6775_v17, %v6765_v14 }
 0x57d   :  { %v6780_v22 = vsel %vm6779_vm8, %v6771_v43, %v6778_v20 }
 0x57e   :  { %6782 = vst [vmem:[#allocation2] sm:$0x3f] %v6780_v22 }
 0x57f   :  { %6793 = dma.vmem_to_hbm [thread:$0]  %s6789_s22, 96, %s6791_s25, [#allocation3]  }
 0x580   :  { %11157 = dma.done.wait [#allocation3], 96  }
 0x581   :  { %11158 = vsyncadd [#allocation3], 4294967200 }
 0x582   :  { %6798 = vsyncpa [#allocation3], 1 }

</bundles_post_ra>
